<compile_context>
chip_gen: v7x
topology: tpu7x:2x2x1
jax: 0.10.0
libtpu: 0.0.40
codegen_flags: <defaults>
</compile_context>

<pallas_src>
import functools

import jax
import jax.numpy as jnp
import numpy as np
from jax import lax
from jax.experimental import pallas as pl
from jax.experimental.pallas import tpu as pltpu


# ======================================================================================
# Pallas kernel 1: conv-as-matmul on im2col columns, fused bias / activation epilogue.
# ======================================================================================
def _conv_matmul_kernel(*refs, nb, has_bias, activation):
    if has_bias:
        x_ref, w_ref, b_ref, o_ref = refs
    else:
        x_ref, w_ref, o_ref = refs
        b_ref = None
    w = w_ref[...]                            # (Cout, K2C)
    for n in range(nb):                       # static & tiny (1 on v7x, N on v5e/v6e)
        acc = jnp.dot(w, x_ref[n], preferred_element_type=jnp.float32)  # (Cout, TL)
        if has_bias:
            acc = acc + b_ref[...]
        if activation == "relu":
            acc = jnp.maximum(acc, 0.0)
        elif activation == "tanh":
            acc = jnp.tanh(acc)
        o_ref[n] = acc.astype(o_ref.dtype)


def _tpu_tensorcores_per_chip():
    try:
        kind = jax.devices()[0].device_kind.lower()
    except Exception:
        return 1
    return 2 if ("v7" in kind or "7x" in kind) else 1


def _pick_batch_block(n):
    # v5e/v6e: single TensorCore -> collapse the batch into one grid step (no per-step
    # loop overhead).  v7x: keep a parallel batch axis so both TensorCores get work.
    return 1 if (_tpu_tensorcores_per_chip() >= 2 and n >= 2) else n


def _pick_lane_tile(l, k2c, cout, nb, budget_bytes=8 << 20):
    # Split the lane (Ho*Wo) axis into multiple-of-128 tiles once the double-buffered
    # in+out blocks get large (VMEM guard; matters for v7x's 64 MiB VMEM / big images).
    def blk_bytes(t):
        return 2 * 4 * nb * t * (k2c + cout)
    if l % 128 != 0 or blk_bytes(l) <= budget_bytes:
        return l
    t = l
    while t % 256 == 0 and blk_bytes(t) > budget_bytes:
        t //= 2
    return t


def conv2d_matmul_pallas(cols, w_mat, b_col=None, activation=None):
    """cols: (N, K2C, L); w_mat: (Cout, K2C); b_col: (Cout,1)|None -> (N, Cout, L)."""
    n, k2c, l = cols.shape
    cout = w_mat.shape[0]
    nb = _pick_batch_block(n)
    tl = _pick_lane_tile(l, k2c, cout, nb)
    has_bias = b_col is not None
    in_specs = [pl.BlockSpec((nb, k2c, tl), lambda b, s: (b, 0, s)),
                pl.BlockSpec((cout, k2c), lambda b, s: (0, 0))]
    args = [cols, w_mat]
    if has_bias:
        in_specs.append(pl.BlockSpec((cout, 1), lambda b, s: (0, 0)))
        args.append(b_col)
    kernel = functools.partial(_conv_matmul_kernel, nb=nb, has_bias=has_bias,
                               activation=activation)
    return pl.pallas_call(
        kernel,
        out_shape=jax.ShapeDtypeStruct((n, cout, l), cols.dtype),
        grid_spec=pltpu.PrefetchScalarGridSpec(
            num_scalar_prefetch=0,
            grid=(n // nb, l // tl),
            in_specs=in_specs,
            out_specs=pl.BlockSpec((nb, cout, tl), lambda b, s: (b, 0, s)),
        ),
        compiler_params=pltpu.CompilerParams(
            dimension_semantics=("parallel", "parallel")),
    )(*args)


# ======================================================================================
# Pallas kernel 2: InstanceNorm2d(affine=False) with optional fused ReLU / residual add.
# ======================================================================================
def _instance_norm_kernel(*refs, eps, relu, add_res):
    if add_res:
        x_ref, r_ref, o_ref = refs
    else:
        x_ref, o_ref = refs
        r_ref = None
    x = x_ref[0].astype(jnp.float32)                         # (C, L)
    mean = jnp.mean(x, axis=-1, keepdims=True)
    xc = x - mean
    var = jnp.mean(xc * xc, axis=-1, keepdims=True)
    y = xc * lax.rsqrt(var + eps)
    if add_res:
        y = y + r_ref[0].astype(jnp.float32)
    if relu:
        y = jnp.maximum(y, 0.0)
    o_ref[0] = y.astype(o_ref.dtype)


def instance_norm_pallas(x_nchw, residual=None, relu=False, eps=1e-5):
    n, c, h, w = x_nchw.shape
    l = h * w
    args = [x_nchw.reshape(n, c, l)]
    in_specs = [pl.BlockSpec((1, c, l), lambda i: (i, 0, 0))]
    if residual is not None:
        args.append(residual.reshape(n, c, l))
        in_specs.append(pl.BlockSpec((1, c, l), lambda i: (i, 0, 0)))
    kernel = functools.partial(_instance_norm_kernel, eps=eps, relu=relu,
                               add_res=residual is not None)
    y = pl.pallas_call(
        kernel,
        out_shape=jax.ShapeDtypeStruct((n, c, l), x_nchw.dtype),
        grid_spec=pltpu.PrefetchScalarGridSpec(
            num_scalar_prefetch=0, grid=(n,),
            in_specs=in_specs,
            out_specs=pl.BlockSpec((1, c, l), lambda i: (i, 0, 0))),
        compiler_params=pltpu.CompilerParams(dimension_semantics=("parallel",)),
    )(*args)
    return y.reshape(n, c, h, w)


# ======================================================================================
# Pallas kernel 3: LayerNorm over (C,H,W) with per-channel affine, optional fused ReLU.
# ======================================================================================
def _layer_norm_kernel(x_ref, g_ref, b_ref, o_ref, *, eps, relu):
    x = x_ref[0].astype(jnp.float32)                         # (C, L)
    mean = jnp.mean(x)
    xc = x - mean
    var = jnp.mean(xc * xc)
    y = xc * lax.rsqrt(var + eps) * g_ref[...] + b_ref[...]  # (C,1) broadcasts over L
    if relu:
        y = jnp.maximum(y, 0.0)
    o_ref[0] = y.astype(o_ref.dtype)


def layer_norm_pallas(x_nchw, weight, bias, relu=False, eps=1e-5):
    n, c, h, w = x_nchw.shape
    l = h * w
    kernel = functools.partial(_layer_norm_kernel, eps=eps, relu=relu)
    y = pl.pallas_call(
        kernel,
        out_shape=jax.ShapeDtypeStruct((n, c, l), x_nchw.dtype),
        grid_spec=pltpu.PrefetchScalarGridSpec(
            num_scalar_prefetch=0, grid=(n,),
            in_specs=[pl.BlockSpec((1, c, l), lambda i: (i, 0, 0)),
                      pl.BlockSpec((c, 1), lambda i: (0, 0)),
                      pl.BlockSpec((c, 1), lambda i: (0, 0))],
            out_specs=pl.BlockSpec((1, c, l), lambda i: (i, 0, 0))),
        compiler_params=pltpu.CompilerParams(dimension_semantics=("parallel",)),
    )(x_nchw.reshape(n, c, l), weight.reshape(c, 1), bias.reshape(c, 1))
    return y.reshape(n, c, h, w)


# ======================================================================================
# Layout plumbing (fused under jit by XLA): reflect pad / zero-dilation + im2col.
# ======================================================================================
def _im2col(xp, kh, kw, ho, wo):
    n, cin = xp.shape[:2]
    taps = [xp[:, :, i:i + ho, j:j + wo] for i in range(kh) for j in range(kw)]
    # contraction ordered (Cin, KH, KW) to match the flattened OIHW weight.
    return jnp.stack(taps, axis=2).reshape(n, cin * kh * kw, ho * wo)


def conv2d_block_forward(x, w_oihw, bias=None, padding=0, pad_type="reflect",
                         activation=None):
    """Conv2dBlock: pad -> spectral_norm(Conv2d) -> (identity norm) -> activation."""
    n, cin, h, w = x.shape
    cout, _, kh, kw = w_oihw.shape
    pad_mode = {"reflect": "reflect", "replicate": "edge", "zero": "constant"}[pad_type]
    xp = jnp.pad(x, ((0, 0), (0, 0), (padding, padding), (padding, padding)),
                 mode=pad_mode)
    ho, wo = h + 2 * padding - kh + 1, w + 2 * padding - kw + 1
    cols = _im2col(xp, kh, kw, ho, wo)
    w_mat = w_oihw.reshape(cout, cin * kh * kw)
    b_col = None if bias is None else bias.reshape(cout, 1)
    y = conv2d_matmul_pallas(cols, w_mat, b_col, activation=activation)
    return y.reshape(n, cout, ho, wo)          # already NCHW: pure reshape


def conv_transpose2d_forward(x, w_iohw, stride=2, padding=1):
    """spectral_norm(ConvTranspose2d) as a VALID conv over the zero-dilated input."""
    n, cin, h, w = x.shape
    _, cout, kh, kw = w_iohw.shape
    hd, wd = (h - 1) * stride + 1, (w - 1) * stride + 1
    xd = jnp.zeros((n, cin, hd, wd), x.dtype).at[:, :, ::stride, ::stride].set(x)
    ph, pw = kh - 1 - padding, kw - 1 - padding
    xp = jnp.pad(xd, ((0, 0), (0, 0), (ph, ph), (pw, pw)))
    ho = (h - 1) * stride - 2 * padding + kh
    wo = (w - 1) * stride - 2 * padding + kw
    cols = _im2col(xp, kh, kw, ho, wo)
    # equivalent OIHW conv weight: swap in/out channels and flip spatially.
    w_conv = jnp.flip(w_iohw, axis=(2, 3)).transpose(1, 0, 2, 3)
    w_mat = w_conv.reshape(cout, cin * kh * kw)
    y = conv2d_matmul_pallas(cols, w_mat, None, activation=None)
    return y.reshape(n, cout, ho, wo)


# ======================================================================================
# Decoder forward.
# ======================================================================================
def con_residual_block_forward(x, p):
    # TODO(synk): CBINorm2d (code-conditioned norm) is undefined in the provided source;
    # only its InstanceNorm2d(affine=False) base is applied, the `code` modulation is skipped.
    y = conv2d_block_forward(x, p["w1"], None, padding=1, pad_type="reflect")
    y = instance_norm_pallas(y, relu=True)
    y = conv2d_block_forward(y, p["w2"], None, padding=1, pad_type="reflect")
    return instance_norm_pallas(y, residual=x, relu=False)    # out = x + y


def upsampling_block_forward(x, p):
    y = conv_transpose2d_forward(x, p["w"], stride=2, padding=1)
    return layer_norm_pallas(y, p["ln_w"], p["ln_b"], relu=True)


def decoder_forward(params, content, code):
    del code  # TODO(synk): consumed only by the undefined CBINorm2d (see note above).
    x = content
    for p in params["res"]:
        x = con_residual_block_forward(x, p)
    for p in params["up"]:
        x = upsampling_block_forward(x, p)
    return conv2d_block_forward(x, params["out"]["w"], params["out"]["b"],
                                padding=3, pad_type="reflect", activation="tanh")


# ======================================================================================
# Parameter construction: deterministic init + spectral norm (one power iteration,
# matching torch.nn.utils.spectral_norm's forward-time behavior for a single call).
# ======================================================================================
def _spectral_normalize(w, dim, key):
    perm = (dim,) + tuple(i for i in range(w.ndim) if i != dim)
    w_mat = jnp.transpose(w, perm).reshape(w.shape[dim], -1)
    u = jax.random.normal(key, (w.shape[dim],), dtype=w.dtype)
    u = u / (jnp.linalg.norm(u) + 1e-12)
    v = w_mat.T @ u
    v = v / (jnp.linalg.norm(v) + 1e-12)
    u = w_mat @ v
    u = u / (jnp.linalg.norm(u) + 1e-12)
    sigma = jnp.dot(u, w_mat @ v)
    return w / sigma


def _conv_weight(key, cout, cin, k):
    bound = 1.0 / np.sqrt(cin * k * k)
    return jax.random.uniform(key, (cout, cin, k, k), minval=-bound, maxval=bound,
                              dtype=jnp.float32)


def make_decoder_params(key, input_nc, output_nc, n_resblocks, n_us_blocks):
    params = {"res": [], "up": [], "out": {}}
    ch = input_nc
    for _ in range(n_resblocks):
        key, k1, k2, s1, s2 = jax.random.split(key, 5)
        params["res"].append({
            "w1": _spectral_normalize(_conv_weight(k1, ch, ch, 3), 0, s1),
            "w2": _spectral_normalize(_conv_weight(k2, ch, ch, 3), 0, s2),
        })
    for _ in range(n_us_blocks):
        key, kw, sw, kg, kb = jax.random.split(key, 5)
        cout = ch // 2
        bound = 1.0 / np.sqrt(cout * 4 * 4)
        w = jax.random.uniform(kw, (ch, cout, 4, 4), minval=-bound, maxval=bound,
                               dtype=jnp.float32)                  # (in, out, kh, kw)
        params["up"].append({
            "w": _spectral_normalize(w, 1, sw),    # spectral_norm uses dim=1 for ConvT
            "ln_w": 1.0 + 0.1 * jax.random.normal(kg, (cout,), dtype=jnp.float32),
            "ln_b": 0.1 * jax.random.normal(kb, (cout,), dtype=jnp.float32),
        })
        ch = cout
    key, kw, kb, sw = jax.random.split(key, 4)
    bound = 1.0 / np.sqrt(ch * 7 * 7)
    params["out"]["w"] = _spectral_normalize(_conv_weight(kw, output_nc, ch, 7), 0, sw)
    params["out"]["b"] = jax.random.uniform(kb, (output_nc,), minval=-bound,
                                            maxval=bound, dtype=jnp.float32)
    return params


# ======================================================================================
# Pure-XLA reference (same math) for the correctness check.
# ======================================================================================
def ref_decoder(params, x):
    def conv(xx, w, b, pad, act=None):
        xp = jnp.pad(xx, ((0, 0), (0, 0), (pad, pad), (pad, pad)), mode="reflect")
        y = lax.conv_general_dilated(xp, w, (1, 1), "VALID",
                                     dimension_numbers=("NCHW", "OIHW", "NCHW"),
                                     precision=lax.Precision.HIGHEST)
        if b is not None:
            y = y + b.reshape(1, -1, 1, 1)
        return jnp.tanh(y) if act == "tanh" else y

    def inorm(xx, eps=1e-5):
        m = xx.mean(axis=(2, 3), keepdims=True)
        v = ((xx - m) ** 2).mean(axis=(2, 3), keepdims=True)
        return (xx - m) * lax.rsqrt(v + eps)

    def lnorm(xx, g, b, eps=1e-5):
        m = xx.mean(axis=(1, 2, 3), keepdims=True)
        v = ((xx - m) ** 2).mean(axis=(1, 2, 3), keepdims=True)
        return ((xx - m) * lax.rsqrt(v + eps) * g.reshape(1, -1, 1, 1)
                + b.reshape(1, -1, 1, 1))

    def trconv(xx, w_iohw, stride=2, padding=1):
        k = w_iohw.shape[2]
        w_conv = jnp.flip(w_iohw, axis=(2, 3)).transpose(1, 0, 2, 3)
        return lax.conv_general_dilated(
            xx, w_conv, (1, 1), [(k - 1 - padding, k - 1 - padding)] * 2,
            lhs_dilation=(stride, stride),
            dimension_numbers=("NCHW", "OIHW", "NCHW"),
            precision=lax.Precision.HIGHEST)

    for p in params["res"]:
        y = jnp.maximum(inorm(conv(x, p["w1"], None, 1)), 0.0)
        y = inorm(conv(y, p["w2"], None, 1))
        x = x + y
    for p in params["up"]:
        x = jnp.maximum(lnorm(trconv(x, p["w"]), p["ln_w"], p["ln_b"]), 0.0)
    return conv(x, params["out"]["w"], params["out"]["b"], 3, "tanh")


if __name__ == "__main__":
    key = jax.random.PRNGKey(0)
    key, xk, ck, pk = jax.random.split(key, 4)

    # Small Decoder consistent with the module: input_nc=32, output_nc=3, n_latent=16,
    # n_resblocks=2, n_us_blocks=2, batch=2, spatial 8x8 (upsampled to 32x32).
    n, input_nc, h, w = 2, 32, 8, 8
    n_latent, output_nc = 16, 3
    content = jax.random.normal(xk, (n, input_nc, h, w), dtype=jnp.float32)
    code = jax.random.normal(ck, (n, n_latent), dtype=jnp.float32)
    params = make_decoder_params(pk, input_nc, output_nc, n_resblocks=2, n_us_blocks=2)

    out = jax.block_until_ready(jax.jit(decoder_forward)(params, content, code))
    assert out.shape == (n, output_nc, 4 * h, 4 * w), out.shape

    ref = jax.block_until_ready(jax.jit(ref_decoder)(params, content))
    np.testing.assert_allclose(np.asarray(out), np.asarray(ref), rtol=1e-3, atol=1e-3)
    print("KERNEL_OK")
</pallas_src>

<mosaic_0001>
module attributes {stable_mosaic.version = 11 : i64} {
  func.func @_conv_matmul_kernel(%arg0: i32, %arg1: i32, %arg2: memref<2x288x64xf32, #tpu.memory_space<vmem>>, %arg3: memref<32x288xf32, #tpu.memory_space<vmem>>, %arg4: memref<2x32x64xf32, #tpu.memory_space<vmem>>) attributes {dimension_semantics = [#tpu.dimension_semantics<parallel>, #tpu.dimension_semantics<parallel>], iteration_bounds = array<i64: 1, 1>, scalar_prefetch = 0 : i64, scratch_operands = 0 : i64, tpu.core_type = #tpu.core_type<tc>, window_params = [{transform_indices = @transform_0, window_bounds = array<i64: 2, 288, 64>}, {pipeline_mode = #tpu.pipeline_mode<synchronous>, transform_indices = @transform_1, window_bounds = array<i64: 32, 288>}, {transform_indices = @transform_2, window_bounds = array<i64: 2, 32, 64>}]} {
    %c0 = arith.constant 0 : index
    %c0_0 = arith.constant 0 : index
    %0 = vector.load %arg3[%c0, %c0_0] : memref<32x288xf32, #tpu.memory_space<vmem>>, vector<32x288xf32>
    %c0_1 = arith.constant 0 : index
    %c0_2 = arith.constant 0 : index
    %c0_3 = arith.constant 0 : index
    %1 = vector.load %arg2[%c0_1, %c0_2, %c0_3] : memref<2x288x64xf32, #tpu.memory_space<vmem>>, vector<1x288x64xf32>
    %2 = vector.shape_cast %1 : vector<1x288x64xf32> to vector<288x64xf32>
    %cst = arith.constant dense<0.000000e+00> : vector<32x64xf32>
    %3 = tpu.matmul %0, %2, %cst {dimension_numbers = #tpu.dot_dimension_numbers<[1], [0], [0], [1], [0, 0, 1, 1], [], []>} : vector<32x288xf32>, vector<288x64xf32>, vector<32x64xf32> -> vector<32x64xf32>
    %c0_4 = arith.constant 0 : index
    %c0_5 = arith.constant 0 : index
    %c0_6 = arith.constant 0 : index
    %4 = vector.load %arg4[%c0_4, %c0_5, %c0_6] : memref<2x32x64xf32, #tpu.memory_space<vmem>>, vector<1x32x64xf32>
    %5 = vector.shape_cast %4 : vector<1x32x64xf32> to vector<32x64xf32>
    %6 = vector.shape_cast %3 : vector<32x64xf32> to vector<1x32x64xf32>
    tpu.vector_store %arg4[%c0_4, %c0_5, %c0_6], %6 {strides = array<i32>} : memref<2x32x64xf32, #tpu.memory_space<vmem>>, vector<1x32x64xf32>,
    %c1 = arith.constant 1 : index
    %c0_7 = arith.constant 0 : index
    %c0_8 = arith.constant 0 : index
    %7 = vector.load %arg2[%c1, %c0_7, %c0_8] : memref<2x288x64xf32, #tpu.memory_space<vmem>>, vector<1x288x64xf32>
    %8 = vector.shape_cast %7 : vector<1x288x64xf32> to vector<288x64xf32>
    %cst_9 = arith.constant dense<0.000000e+00> : vector<32x64xf32>
    %9 = tpu.matmul %0, %8, %cst_9 {dimension_numbers = #tpu.dot_dimension_numbers<[1], [0], [0], [1], [0, 0, 1, 1], [], []>} : vector<32x288xf32>, vector<288x64xf32>, vector<32x64xf32> -> vector<32x64xf32>
    %c1_10 = arith.constant 1 : index
    %c0_11 = arith.constant 0 : index
    %c0_12 = arith.constant 0 : index
    %10 = vector.load %arg4[%c1_10, %c0_11, %c0_12] : memref<2x32x64xf32, #tpu.memory_space<vmem>>, vector<1x32x64xf32>
    %11 = vector.shape_cast %10 : vector<1x32x64xf32> to vector<32x64xf32>
    %12 = vector.shape_cast %9 : vector<32x64xf32> to vector<1x32x64xf32>
    tpu.vector_store %arg4[%c1_10, %c0_11, %c0_12], %12 {strides = array<i32>} : memref<2x32x64xf32, #tpu.memory_space<vmem>>, vector<1x32x64xf32>,
    return
  }
  func.func @transform_0(%arg0: i32, %arg1: i32) -> (i32, i32, i32) {
    %c0_i32 = arith.constant 0 : i32
    %c0_i32_0 = arith.constant 0 : i32
    return %arg0, %c0_i32, %arg1 : i32, i32, i32
  }
  func.func @transform_1(%arg0: i32, %arg1: i32) -> (i32, i32) {
    %c0_i32 = arith.constant 0 : i32
    %c0_i32_0 = arith.constant 0 : i32
    %c0_i32_1 = arith.constant 0 : i32
    return %c0_i32, %c0_i32_0 : i32, i32
  }
  func.func @transform_2(%arg0: i32, %arg1: i32) -> (i32, i32, i32) {
    %c0_i32 = arith.constant 0 : i32
    %c0_i32_0 = arith.constant 0 : i32
    return %arg0, %c0_i32, %arg1 : i32, i32, i32
  }
}

module attributes {stable_mosaic.version = 11 : i64} {
  func.func @_instance_norm_kernel(%arg0: i32, %arg1: memref<1x32x64xf32, #tpu.memory_space<vmem>>, %arg2: memref<1x32x64xf32, #tpu.memory_space<vmem>>) attributes {dimension_semantics = [#tpu.dimension_semantics<parallel>], iteration_bounds = array<i64: 2>, scalar_prefetch = 0 : i64, scratch_operands = 0 : i64, tpu.core_type = #tpu.core_type<tc>, window_params = [{transform_indices = @transform_0, window_bounds = array<i64: 1, 32, 64>}, {transform_indices = @transform_1, window_bounds = array<i64: 1, 32, 64>}]} {
    %c0 = arith.constant 0 : index
    %c0_0 = arith.constant 0 : index
    %c0_1 = arith.constant 0 : index
    %0 = vector.load %arg1[%c0, %c0_0, %c0_1] : memref<1x32x64xf32, #tpu.memory_space<vmem>>, vector<1x32x64xf32>
    %1 = vector.shape_cast %0 : vector<1x32x64xf32> to vector<32x64xf32>
    %cst = arith.constant dense<0.000000e+00> : vector<32xf32>
    %2 = vector.multi_reduction <add>, %1, %cst [1] : vector<32x64xf32> to vector<32xf32>
    %3 = vector.shape_cast %2 : vector<32xf32> to vector<32x1xf32>
    %cst_2 = arith.constant 6.400000e+01 : f32
    %4 = vector.broadcast %cst_2 : f32 to vector<32x1xf32>
    %5 = arith.divf %3, %4 : vector<32x1xf32>
    %6 = vector.broadcast %5 : vector<32x1xf32> to vector<32x64xf32>
    %7 = arith.subf %1, %6 : vector<32x64xf32>
    %8 = arith.mulf %7, %7 : vector<32x64xf32>
    %cst_3 = arith.constant dense<0.000000e+00> : vector<32xf32>
    %9 = vector.multi_reduction <add>, %8, %cst_3 [1] : vector<32x64xf32> to vector<32xf32>
    %10 = vector.shape_cast %9 : vector<32xf32> to vector<32x1xf32>
    %cst_4 = arith.constant 6.400000e+01 : f32
    %11 = vector.broadcast %cst_4 : f32 to vector<32x1xf32>
    %12 = arith.divf %10, %11 : vector<32x1xf32>
    %cst_5 = arith.constant 9.99999974E-6 : f32
    %13 = vector.broadcast %cst_5 : f32 to vector<32x1xf32>
    %14 = arith.addf %12, %13 : vector<32x1xf32>
    %15 = math.rsqrt %14 : vector<32x1xf32>
    %16 = vector.broadcast %15 : vector<32x1xf32> to vector<32x64xf32>
    %17 = arith.mulf %7, %16 : vector<32x64xf32>
    %cst_6 = arith.constant 0.000000e+00 : f32
    %18 = vector.broadcast %cst_6 : f32 to vector<32x64xf32>
    %19 = arith.maximumf %17, %18 : vector<32x64xf32>
    %c0_7 = arith.constant 0 : index
    %c0_8 = arith.constant 0 : index
    %c0_9 = arith.constant 0 : index
    %20 = vector.load %arg2[%c0_7, %c0_8, %c0_9] : memref<1x32x64xf32, #tpu.memory_space<vmem>>, vector<1x32x64xf32>
    %21 = vector.shape_cast %20 : vector<1x32x64xf32> to vector<32x64xf32>
    %22 = vector.shape_cast %19 : vector<32x64xf32> to vector<1x32x64xf32>
    tpu.vector_store %arg2[%c0_7, %c0_8, %c0_9], %22 {strides = array<i32>} : memref<1x32x64xf32, #tpu.memory_space<vmem>>, vector<1x32x64xf32>,
    return
  }
  func.func @transform_0(%arg0: i32) -> (i32, i32, i32) {
    %c0_i32 = arith.constant 0 : i32
    %c0_i32_0 = arith.constant 0 : i32
    %c0_i32_1 = arith.constant 0 : i32
    return %arg0, %c0_i32, %c0_i32_0 : i32, i32, i32
  }
  func.func @transform_1(%arg0: i32) -> (i32, i32, i32) {
    %c0_i32 = arith.constant 0 : i32
    %c0_i32_0 = arith.constant 0 : i32
    %c0_i32_1 = arith.constant 0 : i32
    return %arg0, %c0_i32, %c0_i32_0 : i32, i32, i32
  }
}

module attributes {stable_mosaic.version = 11 : i64} {
  func.func @_instance_norm_kernel(%arg0: i32, %arg1: memref<1x32x64xf32, #tpu.memory_space<vmem>>, %arg2: memref<1x32x64xf32, #tpu.memory_space<vmem>>, %arg3: memref<1x32x64xf32, #tpu.memory_space<vmem>>) attributes {dimension_semantics = [#tpu.dimension_semantics<parallel>], iteration_bounds = array<i64: 2>, scalar_prefetch = 0 : i64, scratch_operands = 0 : i64, tpu.core_type = #tpu.core_type<tc>, window_params = [{transform_indices = @transform_0, window_bounds = array<i64: 1, 32, 64>}, {transform_indices = @transform_1, window_bounds = array<i64: 1, 32, 64>}, {transform_indices = @transform_2, window_bounds = array<i64: 1, 32, 64>}]} {
    %c0 = arith.constant 0 : index
    %c0_0 = arith.constant 0 : index
    %c0_1 = arith.constant 0 : index
    %0 = vector.load %arg1[%c0, %c0_0, %c0_1] : memref<1x32x64xf32, #tpu.memory_space<vmem>>, vector<1x32x64xf32>
    %1 = vector.shape_cast %0 : vector<1x32x64xf32> to vector<32x64xf32>
    %cst = arith.constant dense<0.000000e+00> : vector<32xf32>
    %2 = vector.multi_reduction <add>, %1, %cst [1] : vector<32x64xf32> to vector<32xf32>
    %3 = vector.shape_cast %2 : vector<32xf32> to vector<32x1xf32>
    %cst_2 = arith.constant 6.400000e+01 : f32
    %4 = vector.broadcast %cst_2 : f32 to vector<32x1xf32>
    %5 = arith.divf %3, %4 : vector<32x1xf32>
    %6 = vector.broadcast %5 : vector<32x1xf32> to vector<32x64xf32>
    %7 = arith.subf %1, %6 : vector<32x64xf32>
    %8 = arith.mulf %7, %7 : vector<32x64xf32>
    %cst_3 = arith.constant dense<0.000000e+00> : vector<32xf32>
    %9 = vector.multi_reduction <add>, %8, %cst_3 [1] : vector<32x64xf32> to vector<32xf32>
    %10 = vector.shape_cast %9 : vector<32xf32> to vector<32x1xf32>
    %cst_4 = arith.constant 6.400000e+01 : f32
    %11 = vector.broadcast %cst_4 : f32 to vector<32x1xf32>
    %12 = arith.divf %10, %11 : vector<32x1xf32>
    %cst_5 = arith.constant 9.99999974E-6 : f32
    %13 = vector.broadcast %cst_5 : f32 to vector<32x1xf32>
    %14 = arith.addf %12, %13 : vector<32x1xf32>
    %15 = math.rsqrt %14 : vector<32x1xf32>
    %16 = vector.broadcast %15 : vector<32x1xf32> to vector<32x64xf32>
    %17 = arith.mulf %7, %16 : vector<32x64xf32>
    %c0_6 = arith.constant 0 : index
    %c0_7 = arith.constant 0 : index
    %c0_8 = arith.constant 0 : index
    %18 = vector.load %arg2[%c0_6, %c0_7, %c0_8] : memref<1x32x64xf32, #tpu.memory_space<vmem>>, vector<1x32x64xf32>
    %19 = vector.shape_cast %18 : vector<1x32x64xf32> to vector<32x64xf32>
    %20 = arith.addf %17, %19 : vector<32x64xf32>
    %c0_9 = arith.constant 0 : index
    %c0_10 = arith.constant 0 : index
    %c0_11 = arith.constant 0 : index
    %21 = vector.load %arg3[%c0_9, %c0_10, %c0_11] : memref<1x32x64xf32, #tpu.memory_space<vmem>>, vector<1x32x64xf32>
    %22 = vector.shape_cast %21 : vector<1x32x64xf32> to vector<32x64xf32>
    %23 = vector.shape_cast %20 : vector<32x64xf32> to vector<1x32x64xf32>
    tpu.vector_store %arg3[%c0_9, %c0_10, %c0_11], %23 {strides = array<i32>} : memref<1x32x64xf32, #tpu.memory_space<vmem>>, vector<1x32x64xf32>,
    return
  }
  func.func @transform_0(%arg0: i32) -> (i32, i32, i32) {
    %c0_i32 = arith.constant 0 : i32
    %c0_i32_0 = arith.constant 0 : i32
    %c0_i32_1 = arith.constant 0 : i32
    return %arg0, %c0_i32, %c0_i32_0 : i32, i32, i32
  }
  func.func @transform_1(%arg0: i32) -> (i32, i32, i32) {
    %c0_i32 = arith.constant 0 : i32
    %c0_i32_0 = arith.constant 0 : i32
    %c0_i32_1 = arith.constant 0 : i32
    return %arg0, %c0_i32, %c0_i32_0 : i32, i32, i32
  }
  func.func @transform_2(%arg0: i32) -> (i32, i32, i32) {
    %c0_i32 = arith.constant 0 : i32
    %c0_i32_0 = arith.constant 0 : i32
    %c0_i32_1 = arith.constant 0 : i32
    return %arg0, %c0_i32, %c0_i32_0 : i32, i32, i32
  }
}

module attributes {stable_mosaic.version = 11 : i64} {
  func.func @_conv_matmul_kernel(%arg0: i32, %arg1: i32, %arg2: memref<2x512x256xf32, #tpu.memory_space<vmem>>, %arg3: memref<16x512xf32, #tpu.memory_space<vmem>>, %arg4: memref<2x16x256xf32, #tpu.memory_space<vmem>>) attributes {dimension_semantics = [#tpu.dimension_semantics<parallel>, #tpu.dimension_semantics<parallel>], iteration_bounds = array<i64: 1, 1>, scalar_prefetch = 0 : i64, scratch_operands = 0 : i64, tpu.core_type = #tpu.core_type<tc>, window_params = [{transform_indices = @transform_0, window_bounds = array<i64: 2, 512, 256>}, {pipeline_mode = #tpu.pipeline_mode<synchronous>, transform_indices = @transform_1, window_bounds = array<i64: 16, 512>}, {transform_indices = @transform_2, window_bounds = array<i64: 2, 16, 256>}]} {
    %c0 = arith.constant 0 : index
    %c0_0 = arith.constant 0 : index
    %0 = vector.load %arg3[%c0, %c0_0] : memref<16x512xf32, #tpu.memory_space<vmem>>, vector<16x512xf32>
    %c0_1 = arith.constant 0 : index
    %c0_2 = arith.constant 0 : index
    %c0_3 = arith.constant 0 : index
    %1 = vector.load %arg2[%c0_1, %c0_2, %c0_3] : memref<2x512x256xf32, #tpu.memory_space<vmem>>, vector<1x512x256xf32>
    %2 = vector.shape_cast %1 : vector<1x512x256xf32> to vector<512x256xf32>
    %cst = arith.constant dense<0.000000e+00> : vector<16x256xf32>
    %3 = tpu.matmul %0, %2, %cst {dimension_numbers = #tpu.dot_dimension_numbers<[1], [0], [0], [1], [0, 0, 1, 1], [], []>} : vector<16x512xf32>, vector<512x256xf32>, vector<16x256xf32> -> vector<16x256xf32>
    %c0_4 = arith.constant 0 : index
    %c0_5 = arith.constant 0 : index
    %c0_6 = arith.constant 0 : index
    %4 = vector.load %arg4[%c0_4, %c0_5, %c0_6] : memref<2x16x256xf32, #tpu.memory_space<vmem>>, vector<1x16x256xf32>
    %5 = vector.shape_cast %4 : vector<1x16x256xf32> to vector<16x256xf32>
    %6 = vector.shape_cast %3 : vector<16x256xf32> to vector<1x16x256xf32>
    tpu.vector_store %arg4[%c0_4, %c0_5, %c0_6], %6 {strides = array<i32>} : memref<2x16x256xf32, #tpu.memory_space<vmem>>, vector<1x16x256xf32>,
    %c1 = arith.constant 1 : index
    %c0_7 = arith.constant 0 : index
    %c0_8 = arith.constant 0 : index
    %7 = vector.load %arg2[%c1, %c0_7, %c0_8] : memref<2x512x256xf32, #tpu.memory_space<vmem>>, vector<1x512x256xf32>
    %8 = vector.shape_cast %7 : vector<1x512x256xf32> to vector<512x256xf32>
    %cst_9 = arith.constant dense<0.000000e+00> : vector<16x256xf32>
    %9 = tpu.matmul %0, %8, %cst_9 {dimension_numbers = #tpu.dot_dimension_numbers<[1], [0], [0], [1], [0, 0, 1, 1], [], []>} : vector<16x512xf32>, vector<512x256xf32>, vector<16x256xf32> -> vector<16x256xf32>
    %c1_10 = arith.constant 1 : index
    %c0_11 = arith.constant 0 : index
    %c0_12 = arith.constant 0 : index
    %10 = vector.load %arg4[%c1_10, %c0_11, %c0_12] : memref<2x16x256xf32, #tpu.memory_space<vmem>>, vector<1x16x256xf32>
    %11 = vector.shape_cast %10 : vector<1x16x256xf32> to vector<16x256xf32>
    %12 = vector.shape_cast %9 : vector<16x256xf32> to vector<1x16x256xf32>
    tpu.vector_store %arg4[%c1_10, %c0_11, %c0_12], %12 {strides = array<i32>} : memref<2x16x256xf32, #tpu.memory_space<vmem>>, vector<1x16x256xf32>,
    return
  }
  func.func @transform_0(%arg0: i32, %arg1: i32) -> (i32, i32, i32) {
    %c0_i32 = arith.constant 0 : i32
    %c0_i32_0 = arith.constant 0 : i32
    return %arg0, %c0_i32, %arg1 : i32, i32, i32
  }
  func.func @transform_1(%arg0: i32, %arg1: i32) -> (i32, i32) {
    %c0_i32 = arith.constant 0 : i32
    %c0_i32_0 = arith.constant 0 : i32
    %c0_i32_1 = arith.constant 0 : i32
    return %c0_i32, %c0_i32_0 : i32, i32
  }
  func.func @transform_2(%arg0: i32, %arg1: i32) -> (i32, i32, i32) {
    %c0_i32 = arith.constant 0 : i32
    %c0_i32_0 = arith.constant 0 : i32
    return %arg0, %c0_i32, %arg1 : i32, i32, i32
  }
}

module attributes {stable_mosaic.version = 11 : i64} {
  func.func @_layer_norm_kernel(%arg0: i32, %arg1: memref<1x16x256xf32, #tpu.memory_space<vmem>>, %arg2: memref<16x1xf32, #tpu.memory_space<vmem>>, %arg3: memref<16x1xf32, #tpu.memory_space<vmem>>, %arg4: memref<1x16x256xf32, #tpu.memory_space<vmem>>) attributes {dimension_semantics = [#tpu.dimension_semantics<parallel>], iteration_bounds = array<i64: 2>, scalar_prefetch = 0 : i64, scratch_operands = 0 : i64, tpu.core_type = #tpu.core_type<tc>, window_params = [{transform_indices = @transform_0, window_bounds = array<i64: 1, 16, 256>}, {pipeline_mode = #tpu.pipeline_mode<synchronous>, transform_indices = @transform_1, window_bounds = array<i64: 16, 1>}, {pipeline_mode = #tpu.pipeline_mode<synchronous>, transform_indices = @transform_2, window_bounds = array<i64: 16, 1>}, {transform_indices = @transform_3, window_bounds = array<i64: 1, 16, 256>}]} {
    %c0 = arith.constant 0 : index
    %c0_0 = arith.constant 0 : index
    %c0_1 = arith.constant 0 : index
    %0 = vector.load %arg1[%c0, %c0_0, %c0_1] : memref<1x16x256xf32, #tpu.memory_space<vmem>>, vector<1x16x256xf32>
    %1 = vector.shape_cast %0 : vector<1x16x256xf32> to vector<16x256xf32>
    %2 = vector.shape_cast %1 : vector<16x256xf32> to vector<1x16x256xf32>
    %cst = arith.constant dense<0.000000e+00> : vector<1xf32>
    %3 = vector.multi_reduction <add>, %2, %cst [1, 2] : vector<1x16x256xf32> to vector<1xf32>
    %4 = vector.shape_cast %3 : vector<1xf32> to vector<1x1x1xf32>
    %5 = vector.extract %4[0, 0, 0] : f32 from vector<1x1x1xf32>
    %cst_2 = arith.constant 4.096000e+03 : f32
    %6 = arith.divf %5, %cst_2 : f32
    %7 = vector.broadcast %6 : f32 to vector<16x256xf32>
    %8 = arith.subf %1, %7 : vector<16x256xf32>
    %9 = arith.mulf %8, %8 : vector<16x256xf32>
    %10 = vector.shape_cast %9 : vector<16x256xf32> to vector<1x16x256xf32>
    %cst_3 = arith.constant dense<0.000000e+00> : vector<1xf32>
    %11 = vector.multi_reduction <add>, %10, %cst_3 [1, 2] : vector<1x16x256xf32> to vector<1xf32>
    %12 = vector.shape_cast %11 : vector<1xf32> to vector<1x1x1xf32>
    %13 = vector.extract %12[0, 0, 0] : f32 from vector<1x1x1xf32>
    %cst_4 = arith.constant 4.096000e+03 : f32
    %14 = arith.divf %13, %cst_4 : f32
    %cst_5 = arith.constant 9.99999974E-6 : f32
    %15 = arith.addf %14, %cst_5 : f32
    %16 = math.rsqrt %15 : f32
    %17 = vector.broadcast %16 : f32 to vector<16x256xf32>
    %18 = arith.mulf %8, %17 : vector<16x256xf32>
    %c0_6 = arith.constant 0 : index
    %c0_7 = arith.constant 0 : index
    %19 = vector.load %arg2[%c0_6, %c0_7] : memref<16x1xf32, #tpu.memory_space<vmem>>, vector<16x1xf32>
    %20 = vector.broadcast %19 : vector<16x1xf32> to vector<16x256xf32>
    %21 = arith.mulf %18, %20 : vector<16x256xf32>
    %c0_8 = arith.constant 0 : index
    %c0_9 = arith.constant 0 : index
    %22 = vector.load %arg3[%c0_8, %c0_9] : memref<16x1xf32, #tpu.memory_space<vmem>>, vector<16x1xf32>
    %23 = vector.broadcast %22 : vector<16x1xf32> to vector<16x256xf32>
    %24 = arith.addf %21, %23 : vector<16x256xf32>
    %cst_10 = arith.constant 0.000000e+00 : f32
    %25 = vector.broadcast %cst_10 : f32 to vector<16x256xf32>
    %26 = arith.maximumf %24, %25 : vector<16x256xf32>
    %c0_11 = arith.constant 0 : index
    %c0_12 = arith.constant 0 : index
    %c0_13 = arith.constant 0 : index
    %27 = vector.load %arg4[%c0_11, %c0_12, %c0_13] : memref<1x16x256xf32, #tpu.memory_space<vmem>>, vector<1x16x256xf32>
    %28 = vector.shape_cast %27 : vector<1x16x256xf32> to vector<16x256xf32>
    %29 = vector.shape_cast %26 : vector<16x256xf32> to vector<1x16x256xf32>
    tpu.vector_store %arg4[%c0_11, %c0_12, %c0_13], %29 {strides = array<i32>} : memref<1x16x256xf32, #tpu.memory_space<vmem>>, vector<1x16x256xf32>,
    return
  }
  func.func @transform_0(%arg0: i32) -> (i32, i32, i32) {
    %c0_i32 = arith.constant 0 : i32
    %c0_i32_0 = arith.constant 0 : i32
    %c0_i32_1 = arith.constant 0 : i32
    return %arg0, %c0_i32, %c0_i32_0 : i32, i32, i32
  }
  func.func @transform_1(%arg0: i32) -> (i32, i32) {
    %c0_i32 = arith.constant 0 : i32
    %c0_i32_0 = arith.constant 0 : i32
    %c0_i32_1 = arith.constant 0 : i32
    return %c0_i32, %c0_i32_0 : i32, i32
  }
  func.func @transform_2(%arg0: i32) -> (i32, i32) {
    %c0_i32 = arith.constant 0 : i32
    %c0_i32_0 = arith.constant 0 : i32
    %c0_i32_1 = arith.constant 0 : i32
    return %c0_i32, %c0_i32_0 : i32, i32
  }
  func.func @transform_3(%arg0: i32) -> (i32, i32, i32) {
    %c0_i32 = arith.constant 0 : i32
    %c0_i32_0 = arith.constant 0 : i32
    %c0_i32_1 = arith.constant 0 : i32
    return %arg0, %c0_i32, %c0_i32_0 : i32, i32, i32
  }
}

module attributes {stable_mosaic.version = 11 : i64} {
  func.func @_conv_matmul_kernel(%arg0: i32, %arg1: i32, %arg2: memref<2x256x1024xf32, #tpu.memory_space<vmem>>, %arg3: memref<8x256xf32, #tpu.memory_space<vmem>>, %arg4: memref<2x8x1024xf32, #tpu.memory_space<vmem>>) attributes {dimension_semantics = [#tpu.dimension_semantics<parallel>, #tpu.dimension_semantics<parallel>], iteration_bounds = array<i64: 1, 1>, scalar_prefetch = 0 : i64, scratch_operands = 0 : i64, tpu.core_type = #tpu.core_type<tc>, window_params = [{transform_indices = @transform_0, window_bounds = array<i64: 2, 256, 1024>}, {pipeline_mode = #tpu.pipeline_mode<synchronous>, transform_indices = @transform_1, window_bounds = array<i64: 8, 256>}, {transform_indices = @transform_2, window_bounds = array<i64: 2, 8, 1024>}]} {
    %c0 = arith.constant 0 : index
    %c0_0 = arith.constant 0 : index
    %0 = vector.load %arg3[%c0, %c0_0] : memref<8x256xf32, #tpu.memory_space<vmem>>, vector<8x256xf32>
    %c0_1 = arith.constant 0 : index
    %c0_2 = arith.constant 0 : index
    %c0_3 = arith.constant 0 : index
    %1 = vector.load %arg2[%c0_1, %c0_2, %c0_3] : memref<2x256x1024xf32, #tpu.memory_space<vmem>>, vector<1x256x1024xf32>
    %2 = vector.shape_cast %1 : vector<1x256x1024xf32> to vector<256x1024xf32>
    %cst = arith.constant dense<0.000000e+00> : vector<8x1024xf32>
    %3 = tpu.matmul %0, %2, %cst {dimension_numbers = #tpu.dot_dimension_numbers<[1], [0], [0], [1], [0, 0, 1, 1], [], []>} : vector<8x256xf32>, vector<256x1024xf32>, vector<8x1024xf32> -> vector<8x1024xf32>
    %c0_4 = arith.constant 0 : index
    %c0_5 = arith.constant 0 : index
    %c0_6 = arith.constant 0 : index
    %4 = vector.load %arg4[%c0_4, %c0_5, %c0_6] : memref<2x8x1024xf32, #tpu.memory_space<vmem>>, vector<1x8x1024xf32>
    %5 = vector.shape_cast %4 : vector<1x8x1024xf32> to vector<8x1024xf32>
    %6 = vector.shape_cast %3 : vector<8x1024xf32> to vector<1x8x1024xf32>
    tpu.vector_store %arg4[%c0_4, %c0_5, %c0_6], %6 {strides = array<i32>} : memref<2x8x1024xf32, #tpu.memory_space<vmem>>, vector<1x8x1024xf32>,
    %c1 = arith.constant 1 : index
    %c0_7 = arith.constant 0 : index
    %c0_8 = arith.constant 0 : index
    %7 = vector.load %arg2[%c1, %c0_7, %c0_8] : memref<2x256x1024xf32, #tpu.memory_space<vmem>>, vector<1x256x1024xf32>
    %8 = vector.shape_cast %7 : vector<1x256x1024xf32> to vector<256x1024xf32>
    %cst_9 = arith.constant dense<0.000000e+00> : vector<8x1024xf32>
    %9 = tpu.matmul %0, %8, %cst_9 {dimension_numbers = #tpu.dot_dimension_numbers<[1], [0], [0], [1], [0, 0, 1, 1], [], []>} : vector<8x256xf32>, vector<256x1024xf32>, vector<8x1024xf32> -> vector<8x1024xf32>
    %c1_10 = arith.constant 1 : index
    %c0_11 = arith.constant 0 : index
    %c0_12 = arith.constant 0 : index
    %10 = vector.load %arg4[%c1_10, %c0_11, %c0_12] : memref<2x8x1024xf32, #tpu.memory_space<vmem>>, vector<1x8x1024xf32>
    %11 = vector.shape_cast %10 : vector<1x8x1024xf32> to vector<8x1024xf32>
    %12 = vector.shape_cast %9 : vector<8x1024xf32> to vector<1x8x1024xf32>
    tpu.vector_store %arg4[%c1_10, %c0_11, %c0_12], %12 {strides = array<i32>} : memref<2x8x1024xf32, #tpu.memory_space<vmem>>, vector<1x8x1024xf32>,
    return
  }
  func.func @transform_0(%arg0: i32, %arg1: i32) -> (i32, i32, i32) {
    %c0_i32 = arith.constant 0 : i32
    %c0_i32_0 = arith.constant 0 : i32
    return %arg0, %c0_i32, %arg1 : i32, i32, i32
  }
  func.func @transform_1(%arg0: i32, %arg1: i32) -> (i32, i32) {
    %c0_i32 = arith.constant 0 : i32
    %c0_i32_0 = arith.constant 0 : i32
    %c0_i32_1 = arith.constant 0 : i32
    return %c0_i32, %c0_i32_0 : i32, i32
  }
  func.func @transform_2(%arg0: i32, %arg1: i32) -> (i32, i32, i32) {
    %c0_i32 = arith.constant 0 : i32
    %c0_i32_0 = arith.constant 0 : i32
    return %arg0, %c0_i32, %arg1 : i32, i32, i32
  }
}

module attributes {stable_mosaic.version = 11 : i64} {
  func.func @_layer_norm_kernel(%arg0: i32, %arg1: memref<1x8x1024xf32, #tpu.memory_space<vmem>>, %arg2: memref<8x1xf32, #tpu.memory_space<vmem>>, %arg3: memref<8x1xf32, #tpu.memory_space<vmem>>, %arg4: memref<1x8x1024xf32, #tpu.memory_space<vmem>>) attributes {dimension_semantics = [#tpu.dimension_semantics<parallel>], iteration_bounds = array<i64: 2>, scalar_prefetch = 0 : i64, scratch_operands = 0 : i64, tpu.core_type = #tpu.core_type<tc>, window_params = [{transform_indices = @transform_0, window_bounds = array<i64: 1, 8, 1024>}, {pipeline_mode = #tpu.pipeline_mode<synchronous>, transform_indices = @transform_1, window_bounds = array<i64: 8, 1>}, {pipeline_mode = #tpu.pipeline_mode<synchronous>, transform_indices = @transform_2, window_bounds = array<i64: 8, 1>}, {transform_indices = @transform_3, window_bounds = array<i64: 1, 8, 1024>}]} {
    %c0 = arith.constant 0 : index
    %c0_0 = arith.constant 0 : index
    %c0_1 = arith.constant 0 : index
    %0 = vector.load %arg1[%c0, %c0_0, %c0_1] : memref<1x8x1024xf32, #tpu.memory_space<vmem>>, vector<1x8x1024xf32>
    %1 = vector.shape_cast %0 : vector<1x8x1024xf32> to vector<8x1024xf32>
    %2 = vector.shape_cast %1 : vector<8x1024xf32> to vector<1x8x1024xf32>
    %cst = arith.constant dense<0.000000e+00> : vector<1xf32>
    %3 = vector.multi_reduction <add>, %2, %cst [1, 2] : vector<1x8x1024xf32> to vector<1xf32>
    %4 = vector.shape_cast %3 : vector<1xf32> to vector<1x1x1xf32>
    %5 = vector.extract %4[0, 0, 0] : f32 from vector<1x1x1xf32>
    %cst_2 = arith.constant 8.192000e+03 : f32
    %6 = arith.divf %5, %cst_2 : f32
    %7 = vector.broadcast %6 : f32 to vector<8x1024xf32>
    %8 = arith.subf %1, %7 : vector<8x1024xf32>
    %9 = arith.mulf %8, %8 : vector<8x1024xf32>
    %10 = vector.shape_cast %9 : vector<8x1024xf32> to vector<1x8x1024xf32>
    %cst_3 = arith.constant dense<0.000000e+00> : vector<1xf32>
    %11 = vector.multi_reduction <add>, %10, %cst_3 [1, 2] : vector<1x8x1024xf32> to vector<1xf32>
    %12 = vector.shape_cast %11 : vector<1xf32> to vector<1x1x1xf32>
    %13 = vector.extract %12[0, 0, 0] : f32 from vector<1x1x1xf32>
    %cst_4 = arith.constant 8.192000e+03 : f32
    %14 = arith.divf %13, %cst_4 : f32
    %cst_5 = arith.constant 9.99999974E-6 : f32
    %15 = arith.addf %14, %cst_5 : f32
    %16 = math.rsqrt %15 : f32
    %17 = vector.broadcast %16 : f32 to vector<8x1024xf32>
    %18 = arith.mulf %8, %17 : vector<8x1024xf32>
    %c0_6 = arith.constant 0 : index
    %c0_7 = arith.constant 0 : index
    %19 = vector.load %arg2[%c0_6, %c0_7] : memref<8x1xf32, #tpu.memory_space<vmem>>, vector<8x1xf32>
    %20 = vector.broadcast %19 : vector<8x1xf32> to vector<8x1024xf32>
    %21 = arith.mulf %18, %20 : vector<8x1024xf32>
    %c0_8 = arith.constant 0 : index
    %c0_9 = arith.constant 0 : index
    %22 = vector.load %arg3[%c0_8, %c0_9] : memref<8x1xf32, #tpu.memory_space<vmem>>, vector<8x1xf32>
    %23 = vector.broadcast %22 : vector<8x1xf32> to vector<8x1024xf32>
    %24 = arith.addf %21, %23 : vector<8x1024xf32>
    %cst_10 = arith.constant 0.000000e+00 : f32
    %25 = vector.broadcast %cst_10 : f32 to vector<8x1024xf32>
    %26 = arith.maximumf %24, %25 : vector<8x1024xf32>
    %c0_11 = arith.constant 0 : index
    %c0_12 = arith.constant 0 : index
    %c0_13 = arith.constant 0 : index
    %27 = vector.load %arg4[%c0_11, %c0_12, %c0_13] : memref<1x8x1024xf32, #tpu.memory_space<vmem>>, vector<1x8x1024xf32>
    %28 = vector.shape_cast %27 : vector<1x8x1024xf32> to vector<8x1024xf32>
    %29 = vector.shape_cast %26 : vector<8x1024xf32> to vector<1x8x1024xf32>
    tpu.vector_store %arg4[%c0_11, %c0_12, %c0_13], %29 {strides = array<i32>} : memref<1x8x1024xf32, #tpu.memory_space<vmem>>, vector<1x8x1024xf32>,
    return
  }
  func.func @transform_0(%arg0: i32) -> (i32, i32, i32) {
    %c0_i32 = arith.constant 0 : i32
    %c0_i32_0 = arith.constant 0 : i32
    %c0_i32_1 = arith.constant 0 : i32
    return %arg0, %c0_i32, %c0_i32_0 : i32, i32, i32
  }
  func.func @transform_1(%arg0: i32) -> (i32, i32) {
    %c0_i32 = arith.constant 0 : i32
    %c0_i32_0 = arith.constant 0 : i32
    %c0_i32_1 = arith.constant 0 : i32
    return %c0_i32, %c0_i32_0 : i32, i32
  }
  func.func @transform_2(%arg0: i32) -> (i32, i32) {
    %c0_i32 = arith.constant 0 : i32
    %c0_i32_0 = arith.constant 0 : i32
    %c0_i32_1 = arith.constant 0 : i32
    return %c0_i32, %c0_i32_0 : i32, i32
  }
  func.func @transform_3(%arg0: i32) -> (i32, i32, i32) {
    %c0_i32 = arith.constant 0 : i32
    %c0_i32_0 = arith.constant 0 : i32
    %c0_i32_1 = arith.constant 0 : i32
    return %arg0, %c0_i32, %c0_i32_0 : i32, i32, i32
  }
}

module attributes {stable_mosaic.version = 11 : i64} {
  func.func @_conv_matmul_kernel(%arg0: i32, %arg1: i32, %arg2: memref<2x392x1024xf32, #tpu.memory_space<vmem>>, %arg3: memref<3x392xf32, #tpu.memory_space<vmem>>, %arg4: memref<3x1xf32, #tpu.memory_space<vmem>>, %arg5: memref<2x3x1024xf32, #tpu.memory_space<vmem>>) attributes {dimension_semantics = [#tpu.dimension_semantics<parallel>, #tpu.dimension_semantics<parallel>], iteration_bounds = array<i64: 1, 1>, scalar_prefetch = 0 : i64, scratch_operands = 0 : i64, tpu.core_type = #tpu.core_type<tc>, window_params = [{transform_indices = @transform_0, window_bounds = array<i64: 2, 392, 1024>}, {pipeline_mode = #tpu.pipeline_mode<synchronous>, transform_indices = @transform_1, window_bounds = array<i64: 3, 392>}, {pipeline_mode = #tpu.pipeline_mode<synchronous>, transform_indices = @transform_2, window_bounds = array<i64: 3, 1>}, {transform_indices = @transform_3, window_bounds = array<i64: 2, 3, 1024>}]} {
    %c0 = arith.constant 0 : index
    %c0_0 = arith.constant 0 : index
    %0 = vector.load %arg3[%c0, %c0_0] : memref<3x392xf32, #tpu.memory_space<vmem>>, vector<3x392xf32>
    %c0_1 = arith.constant 0 : index
    %c0_2 = arith.constant 0 : index
    %c0_3 = arith.constant 0 : index
    %1 = vector.load %arg2[%c0_1, %c0_2, %c0_3] : memref<2x392x1024xf32, #tpu.memory_space<vmem>>, vector<1x392x1024xf32>
    %2 = vector.shape_cast %1 : vector<1x392x1024xf32> to vector<392x1024xf32>
    %cst = arith.constant dense<0.000000e+00> : vector<3x1024xf32>
    %3 = tpu.matmul %0, %2, %cst {dimension_numbers = #tpu.dot_dimension_numbers<[1], [0], [0], [1], [0, 0, 1, 1], [], []>} : vector<3x392xf32>, vector<392x1024xf32>, vector<3x1024xf32> -> vector<3x1024xf32>
    %c0_4 = arith.constant 0 : index
    %c0_5 = arith.constant 0 : index
    %4 = vector.load %arg4[%c0_4, %c0_5] : memref<3x1xf32, #tpu.memory_space<vmem>>, vector<3x1xf32>
    %5 = vector.broadcast %4 : vector<3x1xf32> to vector<3x1024xf32>
    %6 = arith.addf %3, %5 : vector<3x1024xf32>
    %7 = math.tanh %6 : vector<3x1024xf32>
    %c0_6 = arith.constant 0 : index
    %c0_7 = arith.constant 0 : index
    %c0_8 = arith.constant 0 : index
    %8 = vector.load %arg5[%c0_6, %c0_7, %c0_8] : memref<2x3x1024xf32, #tpu.memory_space<vmem>>, vector<1x3x1024xf32>
    %9 = vector.shape_cast %8 : vector<1x3x1024xf32> to vector<3x1024xf32>
    %10 = vector.shape_cast %7 : vector<3x1024xf32> to vector<1x3x1024xf32>
    tpu.vector_store %arg5[%c0_6, %c0_7, %c0_8], %10 {strides = array<i32>} : memref<2x3x1024xf32, #tpu.memory_space<vmem>>, vector<1x3x1024xf32>,
    %c1 = arith.constant 1 : index
    %c0_9 = arith.constant 0 : index
    %c0_10 = arith.constant 0 : index
    %11 = vector.load %arg2[%c1, %c0_9, %c0_10] : memref<2x392x1024xf32, #tpu.memory_space<vmem>>, vector<1x392x1024xf32>
    %12 = vector.shape_cast %11 : vector<1x392x1024xf32> to vector<392x1024xf32>
    %cst_11 = arith.constant dense<0.000000e+00> : vector<3x1024xf32>
    %13 = tpu.matmul %0, %12, %cst_11 {dimension_numbers = #tpu.dot_dimension_numbers<[1], [0], [0], [1], [0, 0, 1, 1], [], []>} : vector<3x392xf32>, vector<392x1024xf32>, vector<3x1024xf32> -> vector<3x1024xf32>
    %c0_12 = arith.constant 0 : index
    %c0_13 = arith.constant 0 : index
    %14 = vector.load %arg4[%c0_12, %c0_13] : memref<3x1xf32, #tpu.memory_space<vmem>>, vector<3x1xf32>
    %15 = vector.broadcast %14 : vector<3x1xf32> to vector<3x1024xf32>
    %16 = arith.addf %13, %15 : vector<3x1024xf32>
    %17 = math.tanh %16 : vector<3x1024xf32>
    %c1_14 = arith.constant 1 : index
    %c0_15 = arith.constant 0 : index
    %c0_16 = arith.constant 0 : index
    %18 = vector.load %arg5[%c1_14, %c0_15, %c0_16] : memref<2x3x1024xf32, #tpu.memory_space<vmem>>, vector<1x3x1024xf32>
    %19 = vector.shape_cast %18 : vector<1x3x1024xf32> to vector<3x1024xf32>
    %20 = vector.shape_cast %17 : vector<3x1024xf32> to vector<1x3x1024xf32>
    tpu.vector_store %arg5[%c1_14, %c0_15, %c0_16], %20 {strides = array<i32>} : memref<2x3x1024xf32, #tpu.memory_space<vmem>>, vector<1x3x1024xf32>,
    return
  }
  func.func @transform_0(%arg0: i32, %arg1: i32) -> (i32, i32, i32) {
    %c0_i32 = arith.constant 0 : i32
    %c0_i32_0 = arith.constant 0 : i32
    return %arg0, %c0_i32, %arg1 : i32, i32, i32
  }
  func.func @transform_1(%arg0: i32, %arg1: i32) -> (i32, i32) {
    %c0_i32 = arith.constant 0 : i32
    %c0_i32_0 = arith.constant 0 : i32
    %c0_i32_1 = arith.constant 0 : i32
    return %c0_i32, %c0_i32_0 : i32, i32
  }
  func.func @transform_2(%arg0: i32, %arg1: i32) -> (i32, i32) {
    %c0_i32 = arith.constant 0 : i32
    %c0_i32_0 = arith.constant 0 : i32
    %c0_i32_1 = arith.constant 0 : i32
    return %c0_i32, %c0_i32_0 : i32, i32
  }
  func.func @transform_3(%arg0: i32, %arg1: i32) -> (i32, i32, i32) {
    %c0_i32 = arith.constant 0 : i32
    %c0_i32_0 = arith.constant 0 : i32
    return %arg0, %c0_i32, %arg1 : i32, i32, i32
  }
}

</mosaic_0001>

<bundles_post_ra>
// kernel: decoder_forward.14
= control target key start
LH: loop header
LB: loop body
LE: loop exit
PB: predicated region body
PF: predicated region fallthrough
CT: control target
= control target key end

     0   :  { %s285_s6 = smov 0   ;;  %s321_s0 = inlined_call_operand.vmem [shape: f32[2,32,64], index: 0, kind: input, shape index: {}]   ;;  %s322_s1 = inlined_call_operand.vmem [shape: f32[2,32,64], index: 1, kind: output, shape index: {}]  }
   0x1 LB: > { %s238_s7 = sadd.s32 4294967295, %s273_s6   ;;  %p242_p0 = scmp.ge.s32.totalorder %s273_s6, 1  ;;  %s273_s6 = sphi %s285_s6, %s11_s6  }
   0x2   : > { %p87_p1 = scmp.lt.s32.totalorder %s273_s6, 3 }
   0x4   : > { %p88_p2 = pnand %p242_p0, %p87_p1 }
   0x5   : > { %p107_p3 = scmp.lt.s32.totalorder (!%p88_p2), %s238_s7, 1  ;;  %vm121_vm0 = vcmask (!%p88_p2), 523264  }
   0x6   : > { %91 = sbr.rel (%p88_p2) target bundleno = 337 (0x151), region = 24 }
   0xd   : > { %s324_s7 = smov (!%p107_p3, %s238_s7), 1 }
   0xe   : > { %s249_s8 = sshll.u32 %s324_s7, 5 }
   0xf   : > { %s111_s11 = scalar_lea.vmem %s321_s0, %s249_s8  ;;  %s116_s14 = scalar_lea.vmem %s322_s1, %s249_s8 }
  0x10   : > { %v117_v0 = vld [vmem:[%s111_s11] sm:$0xff]  ;;  %v119_v1 = vld [vmem:[%s111_s11 + $0x10] sm:$0xff]  ;;  %v118_v2 = vld [vmem:[%s111_s11 + $0x8] sm:$0xff] }
  0x11   : > { %v122_v3 = vsel %vm121_vm0, %v117_v0, 0.0  ;;  %v128_v4 = vsel %vm121_vm0, %v119_v1, 0.0  ;;  %v120_v5 = vld [vmem:[%s111_s11 + $0x18] sm:$0xff]  ;;  %v125_v6 = vsel %vm121_vm0, %v118_v2, 0.0 }
  0x12   : > { %123 = vadd.xlane.f32.xlu0 %v122_v3  ;;  %129 = vadd.xlane.f32.xlu1 %v128_v4  ;;  %v131_v7 = vsel %vm121_vm0, %v120_v5, 0.0 }
  0x16   : > { %126 = vadd.xlane.f32.xlu0 %v125_v6  ;;  %132 = vadd.xlane.f32.xlu1 %v131_v7 }
  0x9f   : > { %v124_v8 = vpop.xlane.xlu0 %123  ;;  %v130_v9 = vpop.xlane.xlu1 %129 }
  0xa0   : > { %v135_v10 = vmul.f32 0.015625, %v124_v8  ;;  %v137_v11 = vmul.f32 0.015625, %v130_v9 }
  0xa2   : > { %v139_v12 = vsub.f32 %v117_v0, %v135_v10  ;;  %v141_v13 = vsub.f32 %v119_v1, %v137_v11 }
  0xa3   : > { %v127_v14 = vpop.xlane.xlu0 %126  ;;  %v133_v15 = vpop.xlane.xlu1 %132 }
  0xa4   : > { %v136_v16 = vmul.f32 0.015625, %v127_v14  ;;  %v138_v17 = vmul.f32 0.015625, %v133_v15  ;;  %v143_v18 = vmul.f32 %v139_v12, %v139_v12  ;;  %v145_v19 = vmul.f32 %v141_v13, %v141_v13 }
  0xa6   : > { %v140_v20 = vsub.f32 %v118_v2, %v136_v16  ;;  %v142_v21 = vsub.f32 %v120_v5, %v138_v17  ;;  %v147_v22 = vsel %vm121_vm0, %v143_v18, 0.0  ;;  %v153_v23 = vsel %vm121_vm0, %v145_v19, 0.0 }
  0xa7   : > { %148 = vadd.xlane.f32.xlu0 %v147_v22 }
  0xa8   : > { %v144_v24 = vmul.f32 %v140_v20, %v140_v20  ;;  %v146_v25 = vmul.f32 %v142_v21, %v142_v21 }
  0xaa   : > { %v150_v26 = vsel %vm121_vm0, %v144_v24, 0.0  ;;  %v156_v27 = vsel %vm121_vm0, %v146_v25, 0.0 }
  0xab   : > { %154 = vadd.xlane.f32.xlu0 %v153_v23  ;;  %151 = vadd.xlane.f32.xlu1 %v150_v26 }
  0xaf   : > { %157 = vadd.xlane.f32.xlu1 %v156_v27 }
 0x134   : > { %v149_v28 = vpop.xlane.xlu0 %148 }
 0x135   : > { %v159_v29 = vmul.f32 0.015625, %v149_v28 }
 0x137   : > { %v163_v30 = vadd.f32 1e-05, %v159_v29 }
 0x138   : > { %v152_v31 = vpop.xlane.xlu1 %151  ;;  %v155_v32 = vpop.xlane.xlu0 %154 }
 0x139   : > { %259 = vrsqrt.f32 %v163_v30  ;;  %v160_v33 = vmul.f32 0.015625, %v152_v31  ;;  %v161_v34 = vmul.f32 0.015625, %v155_v32 }
 0x13b   : > { %v164_v35 = vadd.f32 1e-05, %v160_v33  ;;  %v165_v36 = vadd.f32 1e-05, %v161_v34 }
 0x13c   : > { %v158_v37 = vpop.xlane.xlu1 %157 }
 0x13d   : > { %261 = vrsqrt.f32 %v164_v35  ;;  %v162_v38 = vmul.f32 0.015625, %v158_v37 }
 0x13e   : > { %263 = vrsqrt.f32 %v165_v36 }
 0x13f   : > { %v166_v39 = vadd.f32 1e-05, %v162_v38 }
 0x141   : > { %265 = vrsqrt.f32 %v166_v39 }
 0x143   : > { %v260_v40 = vpop.eup %259 }
 0x144   : > { %v171_v41 = vmul.f32 %v260_v40, %v139_v12 }
 0x146   : > { %v175_v42 = vmax.f32 %v171_v41, 0.0 }
 0x147   : > { %v262_v43 = vpop.eup %261 }
 0x148   : > { %v264_v44 = vpop.eup %263  ;;  %179 = vst.msk [vmem:[%s116_s14] sm:$0xff] %vm121_vm0, %v175_v42  ;;  %v172_v45 = vmul.f32 %v262_v43, %v140_v20 }
 0x149   : > { %v173_v46 = vmul.f32 %v264_v44, %v141_v13 }
 0x14a   : > { %v176_v47 = vmax.f32 %v172_v45, 0.0 }
 0x14b   : > { %v266_v48 = vpop.eup %265  ;;  %v177_v49 = vmax.f32 %v173_v46, 0.0 }
 0x14c   : > { %180 = vst.msk [vmem:[%s116_s14 + $0x8] sm:$0xff] %vm121_vm0, %v176_v47  ;;  %v174_v50 = vmul.f32 %v266_v48, %v142_v21 }
 0x14d   : > { %181 = vst.msk [vmem:[%s116_s14 + $0x10] sm:$0xff] %vm121_vm0, %v177_v49 }
 0x14e   : > { %v178_v51 = vmax.f32 %v174_v50, 0.0 }
 0x150   : > { %182 = vst.msk [vmem:[%s116_s14 + $0x18] sm:$0xff] %vm121_vm0, %v178_v51 }
 0x151 PF: > { %s11_s6 = sadd.s32 1, %s273_s6  }
 0x152   : > { %p8_p4 = scmp.ge.s32.totalorder %s11_s6, 4  }
 0x154   :  { %10 = sbr.rel (!%p8_p4) target bundleno = 1 (0x1), region = 54 }

// kernel: decoder_forward.13
= control target key start
LH: loop header
LB: loop body
LE: loop exit
PB: predicated region body
PF: predicated region fallthrough
CT: control target
= control target key end

     0   :  { %vm59_vm0 = vcmask 261120   ;;  %vm242_vm1 = vcmask 523264   ;;  %s1046_s0 = inlined_call_operand.vmem [shape: f32[2,288,64], index: 0, kind: input, shape index: {}]   ;;  %s1047_s1 = inlined_call_operand.vmem [shape: f32[32,288], index: 1, kind: input, shape index: {}]   ;;  %s1048_s2 = inlined_call_operand.vmem [shape: f32[2,32,64], index: 2, kind: output, shape index: {}]  }
   0x1   :  { %v39_v0 = vld [vmem:[%s1046_s0 + $0x80] sm:$0xff]  ;;  %v40_v1 = vld [vmem:[%s1046_s0 + $0x88] sm:$0xff]  ;;  %v41_v9 = vld [vmem:[%s1046_s0 + $0x90] sm:$0xff] }
   0x2   :  { %v55_v2 = vld [vmem:[%s1046_s0 + $0x100] sm:$0xff]  ;;  %v643_v3 = vpack.c.bf16 %v40_v1, %v39_v0  ;;  %v56_v4 = vld [vmem:[%s1046_s0 + $0x108] sm:$0xff]  ;;  %v42_v10 = vld [vmem:[%s1046_s0 + $0x98] sm:$0xff] }
   0x3   :  { %v23_v5 = vld [vmem:[%s1046_s0] sm:$0xff]  ;;  %v24_v6 = vld [vmem:[%s1046_s0 + $0x8] sm:$0xff]  ;;  %v675_v7 = vpack.c.bf16 %v56_v4, %v55_v2  ;;  %v57_v11 = vld [vmem:[%s1046_s0 + $0x110] sm:$0xff]  ;;  %v647_v12 = vpack.c.bf16 %v42_v10, %v41_v9 }
   0x4   :  { %v645_v8 = vpack.c.bf16 %v24_v6, %v23_v5  ;;  %644 = vmatprep.subr.bf16.mxu0 %v643_v3  ;;  %v58_v13 = vld [vmem:[%s1046_s0 + $0x118] sm:$0xff]  ;;  %v25_v14 = vld [vmem:[%s1046_s0 + $0x10] sm:$0xff]  ;;  %v43_v19 = vld [vmem:[%s1046_s0 + $0xa0] sm:$0xff] }
   0x5   :  { %v26_v15 = vld [vmem:[%s1046_s0 + $0x18] sm:$0xff]  ;;  %676 = vmatprep.subr.bf16.mxu1 %v675_v7  ;;  %v679_v16 = vpack.c.bf16 %v58_v13, %v57_v11  ;;  %v777_v18 = vld [vmem:[%s1047_s1 + $0x10] sm:$0xff]  ;;  %v44_v20 = vld [vmem:[%s1046_s0 + $0xa8] sm:$0xff] }
   0x6   :  { %646 = vmatpush3.bf16.msra.mxu0 %v645_v8  ;;  %v649_v17 = vpack.c.bf16 %v26_v15, %v25_v14  ;;  %678 = vmatpush3.bf16.msra.mxu1 %v675_v7  ;;  %v651_v21 = vpack.c.bf16 %v44_v20, %v43_v19  ;;  %v483_v22 = vld [vmem:[%s1046_s0 + $0x1a0] sm:$0xff]  ;;  %v484_v23 = vld [vmem:[%s1046_s0 + $0x1a8] sm:$0xff]  ;;  %v45_v29 = vld [vmem:[%s1046_s0 + $0xb0] sm:$0xff] }
   0x7   :  { %648 = vmatprep.subr.bf16.mxu0 %v647_v12  ;;  %680 = vmatprep.subr.bf16.mxu1 %v679_v16  ;;  %v683_v24 = vpack.c.bf16 %v484_v23, %v483_v22  ;;  %v27_v25 = vld [vmem:[%s1046_s0 + $0x20] sm:$0xff]  ;;  %v28_v26 = vld [vmem:[%s1046_s0 + $0x28] sm:$0xff]  ;;  %v46_v30 = vld [vmem:[%s1046_s0 + $0xb8] sm:$0xff] }
   0x8   :  { %623 = vmatprep.mubr.msk.f32.mxu1 %vm59_vm0, %v777_v18  ;;  %v467_v27 = vld [vmem:[%s1046_s0 + $0x120] sm:$0xff]  ;;  %v468_v28 = vld [vmem:[%s1046_s0 + $0x128] sm:$0xff]  ;;  %v653_v32 = vpack.c.bf16 %v28_v26, %v27_v25  ;;  %v485_v33 = vld [vmem:[%s1046_s0 + $0x1b0] sm:$0xff]  ;;  %v655_v36 = vpack.c.bf16 %v46_v30, %v45_v29 }
   0x9   :  { %v814_v31 = vld [vmem:[%s1047_s1 + $0x28] sm:$0xff]  ;;  %v486_v34 = vld [vmem:[%s1046_s0 + $0x1b8] sm:$0xff]  ;;  %v685_v35 = vpack.c.bf16 %v468_v28, %v467_v27  ;;  %v29_v37 = vld [vmem:[%s1046_s0 + $0x30] sm:$0xff] }
   0xa   :  { %650 = vmatpush3.bf16.msra.mxu0 %v649_v17  ;;  %682 = vmatpush3.bf16.msra.mxu1 %v679_v16  ;;  %v30_v38 = vld [vmem:[%s1046_s0 + $0x38] sm:$0xff]  ;;  %v469_v39 = vld [vmem:[%s1046_s0 + $0x130] sm:$0xff]  ;;  %v687_v40 = vpack.c.bf16 %v486_v34, %v485_v33  ;;  %v47_v42 = vld [vmem:[%s1046_s0 + $0xc0] sm:$0xff] }
   0xb   :  { %652 = vmatprep.subr.bf16.mxu0 %v651_v21  ;;  %684 = vmatprep.subr.bf16.mxu1 %v683_v24  ;;  %v470_v41 = vld [vmem:[%s1046_s0 + $0x138] sm:$0xff]  ;;  %v48_v43 = vld [vmem:[%s1046_s0 + $0xc8] sm:$0xff]  ;;  %v487_v44 = vld [vmem:[%s1046_s0 + $0x1c0] sm:$0xff]  ;;  %v657_v46 = vpack.c.bf16 %v30_v38, %v29_v37 }
   0xc   :  { %v488_v45 = vld [vmem:[%s1046_s0 + $0x1c8] sm:$0xff]  ;;  %v689_v47 = vpack.c.bf16 %v470_v41, %v469_v39  ;;  %v659_v48 = vpack.c.bf16 %v48_v43, %v47_v42  ;;  %v31_v49 = vld [vmem:[%s1046_s0 + $0x40] sm:$0xff]  ;;  %v49_v54 = vld [vmem:[%s1046_s0 + $0xd0] sm:$0xff] }
   0xd   :  { %624 = vmatmul.mubr.msk.f32.vlgmr.msra.gmra.mrb[0].mxu1 %vm59_vm0, %v814_v31  ;;  %v32_v50 = vld [vmem:[%s1046_s0 + $0x48] sm:$0xff]  ;;  %v471_v51 = vld [vmem:[%s1046_s0 + $0x140] sm:$0xff]  ;;  %v691_v52 = vpack.c.bf16 %v488_v45, %v487_v44  ;;  %v50_v55 = vld [vmem:[%s1046_s0 + $0xd8] sm:$0xff] }
   0xe   :  { %654 = vmatpush3.bf16.msra.mxu0 %v653_v32  ;;  %686 = vmatpush3.bf16.msra.mxu1 %v685_v35  ;;  %v472_v53 = vld [vmem:[%s1046_s0 + $0x148] sm:$0xff]  ;;  %v489_v56 = vld [vmem:[%s1046_s0 + $0x1d0] sm:$0xff]  ;;  %v490_v57 = vld [vmem:[%s1046_s0 + $0x1d8] sm:$0xff]  ;;  %v661_v58 = vpack.c.bf16 %v32_v50, %v31_v49  ;;  %v663_v60 = vpack.c.bf16 %v50_v55, %v49_v54 }
   0xf   :  { %656 = vmatprep.subr.bf16.mxu0 %v655_v36  ;;  %688 = vmatprep.subr.bf16.mxu1 %v687_v40  ;;  %v693_v59 = vpack.c.bf16 %v472_v53, %v471_v51  ;;  %v33_v61 = vld [vmem:[%s1046_s0 + $0x50] sm:$0xff]  ;;  %v34_v62 = vld [vmem:[%s1046_s0 + $0x58] sm:$0xff]  ;;  %v695_v0 = vpack.c.bf16 %v490_v57, %v489_v56  ;;  %v51_v2 = vld [vmem:[%s1046_s0 + $0xe0] sm:$0xff] }
  0x10   :  { %v473_v63 = vld [vmem:[%s1046_s0 + $0x150] sm:$0xff]  ;;  %v474_v1 = vld [vmem:[%s1046_s0 + $0x158] sm:$0xff]  ;;  %v52_v3 = vld [vmem:[%s1046_s0 + $0xe8] sm:$0xff]  ;;  %v665_v6 = vpack.c.bf16 %v34_v62, %v33_v61 }
  0x11   :  { %v491_v4 = vld [vmem:[%s1046_s0 + $0x1e0] sm:$0xff]  ;;  %v492_v5 = vld [vmem:[%s1046_s0 + $0x1e8] sm:$0xff]  ;;  %v697_v8 = vpack.c.bf16 %v474_v1, %v473_v63  ;;  %v667_v9 = vpack.c.bf16 %v52_v3, %v51_v2  ;;  %v53_v15 = vld [vmem:[%s1046_s0 + $0xf0] sm:$0xff] }
  0x12   :  { %658 = vmatpush3.bf16.msra.mxu0 %v657_v46  ;;  %690 = vmatpush3.bf16.msra.mxu1 %v689_v47  ;;  %v12_v7 = vld [vmem:[%s1047_s1 + $0x8] sm:$0xff]  ;;  %v35_v10 = vld [vmem:[%s1046_s0 + $0x60] sm:$0xff]  ;;  %v699_v13 = vpack.c.bf16 %v492_v5, %v491_v4  ;;  %v54_v16 = vld [vmem:[%s1046_s0 + $0xf8] sm:$0xff] }
  0x13   :  { %660 = vmatprep.subr.bf16.mxu0 %v659_v48  ;;  %692 = vmatprep.subr.bf16.mxu1 %v691_v52  ;;  %v36_v11 = vld [vmem:[%s1046_s0 + $0x68] sm:$0xff]  ;;  %v475_v12 = vld [vmem:[%s1046_s0 + $0x160] sm:$0xff]  ;;  %v493_v17 = vld [vmem:[%s1046_s0 + $0x1f0] sm:$0xff]  ;;  %v671_v24 = vpack.c.bf16 %v54_v16, %v53_v15 }
  0x14   :  { %v476_v14 = vld [vmem:[%s1046_s0 + $0x168] sm:$0xff]  ;;  %136 = vmatprep.mubr.f32.mxu0 %v12_v7  ;;  %v494_v19 = vld [vmem:[%s1046_s0 + $0x1f8] sm:$0xff]  ;;  %v926_v20 = vld [vmem:[%s1047_s1 + $0x40] sm:$0xff]  ;;  %v669_v21 = vpack.c.bf16 %v36_v11, %v35_v10 }
  0x15   :  { %626 = vmatprep.mubr.msk.f32.mxu1 %vm59_vm0, %v926_v20  ;;  %v933_v22 = vld [vmem:[%s1047_s1 + $0x58] sm:$0xff]  ;;  %v701_v23 = vpack.c.bf16 %v476_v14, %v475_v12  ;;  %v37_v25 = vld [vmem:[%s1046_s0 + $0x70] sm:$0xff]  ;;  %v703_v28 = vpack.c.bf16 %v494_v19, %v493_v17  ;;  %v499_v30 = vld [vmem:[%s1046_s0 + $0x220] sm:$0xff] }
  0x16   :  { %662 = vmatpush3.bf16.msra.mxu0 %v661_v58  ;;  %694 = vmatpush3.bf16.msra.mxu1 %v693_v59  ;;  %v38_v26 = vld [vmem:[%s1046_s0 + $0x78] sm:$0xff]  ;;  %v477_v27 = vld [vmem:[%s1046_s0 + $0x170] sm:$0xff]  ;;  %v500_v32 = vld [vmem:[%s1046_s0 + $0x228] sm:$0xff] }
  0x17   :  { %664 = vmatprep.subr.bf16.mxu0 %v663_v60  ;;  %696 = vmatprep.subr.bf16.mxu1 %v695_v0  ;;  %v478_v29 = vld [vmem:[%s1046_s0 + $0x178] sm:$0xff]  ;;  %v495_v33 = vld [vmem:[%s1046_s0 + $0x200] sm:$0xff]  ;;  %v496_v34 = vld [vmem:[%s1046_s0 + $0x208] sm:$0xff]  ;;  %v673_v35 = vpack.c.bf16 %v38_v26, %v37_v25  ;;  %v715_v38 = vpack.c.bf16 %v500_v32, %v499_v30 }
  0x18   :  { %627 = vmatmul.mubr.msk.f32.gmra.mrb[2].mxu1 %vm59_vm0, %v933_v22  ;;  %v705_v36 = vpack.c.bf16 %v478_v29, %v477_v27  ;;  %v479_v37 = vld [vmem:[%s1046_s0 + $0x180] sm:$0xff]  ;;  %v707_v39 = vpack.c.bf16 %v496_v34, %v495_v33  ;;  %v480_v40 = vld [vmem:[%s1046_s0 + $0x188] sm:$0xff]  ;;  %v501_v41 = vld [vmem:[%s1046_s0 + $0x230] sm:$0xff] }
  0x19   :  { %348 = vmatprep.mubr.f32.mxu1 %v12_v7  ;;  %v502_v42 = vld [vmem:[%s1046_s0 + $0x238] sm:$0xff]  ;;  %v497_v43 = vld [vmem:[%s1046_s0 + $0x210] sm:$0xff]  ;;  %v11_v45 = vld [vmem:[%s1047_s1] sm:$0xff]  ;;  %v709_v46 = vpack.c.bf16 %v480_v40, %v479_v37 }
  0x1a   :  { %666 = vmatpush3.bf16.msra.mxu0 %v665_v6  ;;  %698 = vmatpush3.bf16.msra.mxu1 %v697_v8  ;;  %v498_v44 = vld [vmem:[%s1046_s0 + $0x218] sm:$0xff]  ;;  %v15_v47 = vld [vmem:[%s1047_s1 + $0x20] sm:$0xff]  ;;  %v719_v48 = vpack.c.bf16 %v502_v42, %v501_v41  ;;  %v481_v50 = vld [vmem:[%s1046_s0 + $0x190] sm:$0xff] }
  0x1b   :  { %668 = vmatprep.subr.bf16.mxu0 %v667_v9  ;;  %700 = vmatprep.subr.bf16.mxu1 %v699_v13  ;;  %v711_v49 = vpack.c.bf16 %v498_v44, %v497_v43  ;;  %v482_v51 = vld [vmem:[%s1046_s0 + $0x198] sm:$0xff]  ;;  %v17_v55 = vld [vmem:[%s1047_s1 + $0x30] sm:$0xff]  ;;  %v20_v57 = vld [vmem:[%s1047_s1 + $0x48] sm:$0xff] }
  0x1c   :  { %v14_v52 = vld [vmem:[%s1047_s1 + $0x18] sm:$0xff]  ;;  %v713_v53 = vpack.c.bf16 %v482_v51, %v481_v50  ;;  %v21_v56 = vld [vmem:[%s1047_s1 + $0x50] sm:$0xff] }
  0x1d   :  { %v18_v54 = vld [vmem:[%s1047_s1 + $0x38] sm:$0xff] }
  0x1e   :  { %670 = vmatpush3.bf16.msra.mxu0 %v669_v21  ;;  %702 = vmatpush3.bf16.msra.mxu1 %v701_v23 }
  0x1f   :  { %672 = vmatprep.subr.bf16.mxu0 %v671_v24  ;;  %704 = vmatprep.subr.bf16.mxu1 %v703_v28 }
  0x22   :  { %674 = vmatpush3.bf16.msra.mxu0 %v673_v35  ;;  %706 = vmatpush3.bf16.msra.mxu1 %v705_v36 }
  0x23   :  { %716 = vmatprep.subr.bf16.mxu0 %v715_v38  ;;  %708 = vmatprep.subr.bf16.mxu1 %v707_v39 }
  0x25   :  { %137 = vmatmul.mubr.f32.vlgmr.msra.gmra.mrb[0].mxu0 %v11_v45 }
  0x26   :  { %718 = vmatpush3.bf16.msra.mxu0 %v715_v38  ;;  %141 = vmatprep.mubr.f32.mxu0 %v15_v47 }
  0x27   :  { %710 = vmatpush3.bf16.msra.mxu1 %v709_v46  ;;  %720 = vmatprep.subr.bf16.mxu0 %v719_v48 }
  0x28   :  { %712 = vmatprep.subr.bf16.mxu1 %v711_v49 }
  0x29   :  { %142 = vmatmul.mubr.f32.gmra.mrb[2].mxu0 %v14_v52 }
  0x2a   :  { %146 = vmatprep.mubr.f32.mxu0 %v18_v54  ;;  %722 = vmatpush3.bf16.msra.mxu0 %v719_v48 }
  0x2b   :  { %714 = vmatpush3.bf16.msra.mxu1 %v713_v53 }
  0x2d   :  { %147 = vmatmul.mubr.f32.gmra.mrb[4].mxu0 %v17_v55 }
  0x2e   :  { %349 = vmatmul.mubr.f32.vlgmr.msra.gmra.mrb[4].mxu1 %v11_v45  ;;  %151 = vmatprep.mubr.f32.mxu0 %v21_v56 }
  0x2f   :  { %353 = vmatprep.mubr.f32.mxu1 %v15_v47 }
  0x31   :  { %152 = vmatmul.mubr.f32.gmra.mrb[6].mxu0 %v20_v57 }
  0x32   :  { %354 = vmatmul.mubr.f32.gmra.mrb[6].mxu1 %v14_v52  ;;  %637 = vmatprep.mubr.msk.f32.mxu0 %vm59_vm0, %v777_v18 }
  0x33   :  { %358 = vmatprep.mubr.f32.mxu1 %v18_v54 }
  0x35   :  { %638 = vmatmul.mubr.msk.f32.vlgmr.msra.gmra.mrb[8].mxu0 %vm59_vm0, %v814_v31 }
  0x36   :  { %359 = vmatmul.mubr.f32.gmra.mrb[8].mxu1 %v17_v55  ;;  %640 = vmatprep.mubr.msk.f32.mxu0 %vm59_vm0, %v926_v20 }
  0x37   :  { %363 = vmatprep.mubr.f32.mxu1 %v21_v56 }
  0x39   :  { %641 = vmatmul.mubr.msk.f32.gmra.mrb[10].mxu0 %vm59_vm0, %v933_v22 }
  0x3a   :  { %364 = vmatmul.mubr.f32.gmra.mrb[10].mxu1 %v20_v57 }
  0xe0   :  { %v625_v58 = vpop.f32.mrb[0].mxu1 }
  0xe1   :  { %v223_v59 = vpop.f32.mrb[1].mxu1 }
  0xeb   :  { %v628_v60 = vpop.f32.mrb[2].mxu1 }
  0xec   :  { %v233_v61 = vpop.f32.mrb[3].mxu1 }
  0xf8   :  { %v543_v62 = vpop.f32.mrb[0].mxu0 }
  0xf9   :  { %v544_v63 = vpop.f32.mrb[1].mxu0 }
  0xfa   :  { %v545_v18 = vadd.f32 %v544_v63, %v543_v62 }
  0xfc   :  { %v224_v0 = vadd.f32 %v545_v18, %v223_v59  ;;  %v546_v1 = vpop.f32.mrb[2].mxu0 }
  0xfd   :  { %v547_v31 = vpop.f32.mrb[3].mxu0 }
  0xfe   :  { %243 = vst.msk [vmem:[%s1048_s2] sm:$0xff] %vm242_vm1, %v224_v0  ;;  %v548_v2 = vadd.f32 %v547_v31, %v546_v1 }
 0x100   :  { %v229_v3 = vadd.f32 %v625_v58, %v548_v2  ;;  %v549_v4 = vpop.f32.mrb[4].mxu0 }
 0x101   :  { %v595_v5 = vpop.f32.mrb[4].mxu1  ;;  %v550_v6 = vpop.f32.mrb[5].mxu0 }
 0x102   :  { %244 = vst.msk [vmem:[%s1048_s2 + $0x8] sm:$0xff] %vm242_vm1, %v229_v3  ;;  %v551_v7 = vadd.f32 %v550_v6, %v549_v4  ;;  %v596_v8 = vpop.f32.mrb[5].mxu1 }
 0x103   :  { %v597_v9 = vadd.f32 %v596_v8, %v595_v5 }
 0x104   :  { %v234_v10 = vadd.f32 %v551_v7, %v233_v61  ;;  %v552_v11 = vpop.f32.mrb[6].mxu0 }
 0x105   :  { %v598_v12 = vpop.f32.mrb[6].mxu1  ;;  %v553_v13 = vpop.f32.mrb[7].mxu0 }
 0x106   :  { %245 = vst.msk [vmem:[%s1048_s2 + $0x10] sm:$0xff] %vm242_vm1, %v234_v10  ;;  %v554_v14 = vadd.f32 %v553_v13, %v552_v11  ;;  %v599_v15 = vpop.f32.mrb[7].mxu1 }
 0x107   :  { %v600_v16 = vadd.f32 %v599_v15, %v598_v12 }
 0x108   :  { %v239_v17 = vadd.f32 %v628_v60, %v554_v14  ;;  %v639_v19 = vpop.f32.mrb[8].mxu0 }
 0x109   :  { %v601_v20 = vpop.f32.mrb[8].mxu1  ;;  %v441_v21 = vadd.f32 %v639_v19, %v600_v16  ;;  %v435_v22 = vpop.f32.mrb[9].mxu0 }
 0x10a   :  { %246 = vst.msk [vmem:[%s1048_s2 + $0x18] sm:$0xff] %vm242_vm1, %v239_v17  ;;  %v602_v23 = vpop.f32.mrb[9].mxu1  ;;  %v436_v24 = vadd.f32 %v597_v9, %v435_v22 }
 0x10b   :  { %508 = vst.msk [vmem:[%s1048_s2 + $0x28] sm:$0xff] %vm242_vm1, %v441_v21  ;;  %v603_v25 = vadd.f32 %v602_v23, %v601_v20 }
 0x10c   :  { %507 = vst.msk [vmem:[%s1048_s2 + $0x20] sm:$0xff] %vm242_vm1, %v436_v24  ;;  %v642_v26 = vpop.f32.mrb[10].mxu0 }
 0x10d   :  { %v604_v27 = vpop.f32.mrb[10].mxu1  ;;  %v445_v28 = vpop.f32.mrb[11].mxu0 }
 0x10e   :  { %v605_v29 = vpop.f32.mrb[11].mxu1  ;;  %v446_v30 = vadd.f32 %v603_v25, %v445_v28 }
 0x10f   :  { %v606_v32 = vadd.f32 %v605_v29, %v604_v27 }
 0x110   :  { %509 = vst.msk [vmem:[%s1048_s2 + $0x30] sm:$0xff] %vm242_vm1, %v446_v30 }
 0x111   :  { %v451_v33 = vadd.f32 %v642_v26, %v606_v32 }
 0x113   :  { %510 = vst.msk [vmem:[%s1048_s2 + $0x38] sm:$0xff] %vm242_vm1, %v451_v33 }

// kernel: decoder_forward.16
= control target key start
LH: loop header
LB: loop body
LE: loop exit
PB: predicated region body
PF: predicated region fallthrough
CT: control target
= control target key end

     0   :  { %s356_s9 = smov 0   ;;  %s393_s0 = inlined_call_operand.vmem [shape: f32[2,32,64], index: 0, kind: input, shape index: {}]   ;;  %s394_s1 = inlined_call_operand.vmem [shape: f32[2,32,64], index: 1, kind: input, shape index: {}]   ;;  %s395_s2 = inlined_call_operand.vmem [shape: f32[2,32,64], index: 2, kind: output, shape index: {}]  }
   0x1 LB: > { %s301_s10 = sadd.s32 4294967295, %s339_s9   ;;  %p305_p0 = scmp.ge.s32.totalorder %s339_s9, 1  ;;  %s339_s9 = sphi %s356_s9, %s12_s9  }
   0x2   : > { %p122_p1 = scmp.lt.s32.totalorder %s339_s9, 3 }
   0x4   : > { %p123_p2 = pnand %p305_p0, %p122_p1 }
   0x5   : > { %p149_p3 = scmp.lt.s32.totalorder (!%p123_p2), %s301_s10, 1  ;;  %vm168_vm0 = vcmask (!%p123_p2), 523264  }
   0x6   : > { %126 = sbr.rel (%p123_p2) target bundleno = 337 (0x151), region = 28 }
   0xd   : > { %s397_s10 = smov (!%p149_p3, %s301_s10), 1 }
   0xe   : > { %s364_s11 = sshll.u32 %s397_s10, 5 }
   0xf   : > { %s153_s14 = scalar_lea.vmem %s393_s0, %s364_s11  ;;  %s158_s17 = scalar_lea.vmem %s394_s1, %s364_s11 }
  0x10   : > { %v164_v0 = vld [vmem:[%s153_s14] sm:$0xff]  ;;  %v166_v2 = vld [vmem:[%s153_s14 + $0x10] sm:$0xff]  ;;  %v165_v4 = vld [vmem:[%s153_s14 + $0x8] sm:$0xff]  ;;  %s163_s20 = scalar_lea.vmem %s395_s2, %s364_s11 }
  0x11   : > { %v169_v1 = vsel %vm168_vm0, %v164_v0, 0.0  ;;  %v175_v3 = vsel %vm168_vm0, %v166_v2, 0.0  ;;  %v167_v5 = vld [vmem:[%s153_s14 + $0x18] sm:$0xff]  ;;  %v172_v6 = vsel %vm168_vm0, %v165_v4, 0.0  ;;  %v222_v41 = vld [vmem:[%s158_s17] sm:$0xff]  ;;  %v223_v45 = vld [vmem:[%s158_s17 + $0x8] sm:$0xff] }
  0x12   : > { %170 = vadd.xlane.f32.xlu0 %v169_v1  ;;  %176 = vadd.xlane.f32.xlu1 %v175_v3  ;;  %v178_v7 = vsel %vm168_vm0, %v167_v5, 0.0  ;;  %v224_v47 = vld [vmem:[%s158_s17 + $0x10] sm:$0xff]  ;;  %v225_v52 = vld [vmem:[%s158_s17 + $0x18] sm:$0xff] }
  0x16   : > { %173 = vadd.xlane.f32.xlu0 %v172_v6  ;;  %179 = vadd.xlane.f32.xlu1 %v178_v7 }
  0x9f   : > { %v171_v8 = vpop.xlane.xlu0 %170  ;;  %v177_v10 = vpop.xlane.xlu1 %176 }
  0xa0   : > { %v182_v9 = vmul.f32 0.015625, %v171_v8  ;;  %v184_v11 = vmul.f32 0.015625, %v177_v10 }
  0xa2   : > { %v186_v12 = vsub.f32 %v164_v0, %v182_v9  ;;  %v188_v13 = vsub.f32 %v166_v2, %v184_v11 }
  0xa3   : > { %v174_v14 = vpop.xlane.xlu0 %173  ;;  %v180_v16 = vpop.xlane.xlu1 %179 }
  0xa4   : > { %v183_v15 = vmul.f32 0.015625, %v174_v14  ;;  %v190_v17 = vmul.f32 %v186_v12, %v186_v12  ;;  %v185_v18 = vmul.f32 0.015625, %v180_v16  ;;  %v192_v19 = vmul.f32 %v188_v13, %v188_v13 }
  0xa6   : > { %v187_v20 = vsub.f32 %v165_v4, %v183_v15  ;;  %v194_v21 = vsel %vm168_vm0, %v190_v17, 0.0  ;;  %v189_v22 = vsub.f32 %v167_v5, %v185_v18  ;;  %v200_v23 = vsel %vm168_vm0, %v192_v19, 0.0 }
  0xa7   : > { %195 = vadd.xlane.f32.xlu0 %v194_v21 }
  0xa8   : > { %v191_v24 = vmul.f32 %v187_v20, %v187_v20  ;;  %v193_v25 = vmul.f32 %v189_v22, %v189_v22 }
  0xaa   : > { %v197_v26 = vsel %vm168_vm0, %v191_v24, 0.0  ;;  %v203_v27 = vsel %vm168_vm0, %v193_v25, 0.0 }
  0xab   : > { %201 = vadd.xlane.f32.xlu0 %v200_v23  ;;  %198 = vadd.xlane.f32.xlu1 %v197_v26 }
  0xaf   : > { %204 = vadd.xlane.f32.xlu1 %v203_v27 }
 0x134   : > { %v196_v28 = vpop.xlane.xlu0 %195 }
 0x135   : > { %v206_v29 = vmul.f32 0.015625, %v196_v28 }
 0x137   : > { %v210_v30 = vadd.f32 1e-05, %v206_v29 }
 0x138   : > { %v199_v31 = vpop.xlane.xlu1 %198  ;;  %v202_v32 = vpop.xlane.xlu0 %201 }
 0x139   : > { %325 = vrsqrt.f32 %v210_v30  ;;  %v207_v33 = vmul.f32 0.015625, %v199_v31  ;;  %v208_v34 = vmul.f32 0.015625, %v202_v32 }
 0x13b   : > { %v211_v35 = vadd.f32 1e-05, %v207_v33  ;;  %v212_v36 = vadd.f32 1e-05, %v208_v34 }
 0x13c   : > { %v205_v37 = vpop.xlane.xlu1 %204 }
 0x13d   : > { %327 = vrsqrt.f32 %v211_v35  ;;  %v209_v38 = vmul.f32 0.015625, %v205_v37 }
 0x13e   : > { %329 = vrsqrt.f32 %v212_v36 }
 0x13f   : > { %v213_v39 = vadd.f32 1e-05, %v209_v38 }
 0x141   : > { %331 = vrsqrt.f32 %v213_v39 }
 0x143   : > { %v326_v40 = vpop.eup %325 }
 0x144   : > { %v218_v42 = vmul.f32 %v326_v40, %v186_v12 }
 0x146   : > { %v226_v43 = vadd.f32 %v222_v41, %v218_v42 }
 0x147   : > { %v328_v44 = vpop.eup %327 }
 0x148   : > { %v330_v46 = vpop.eup %329  ;;  %230 = vst.msk [vmem:[%s163_s20] sm:$0xff] %vm168_vm0, %v226_v43  ;;  %v219_v48 = vmul.f32 %v328_v44, %v187_v20 }
 0x149   : > { %v220_v49 = vmul.f32 %v330_v46, %v188_v13 }
 0x14a   : > { %v227_v50 = vadd.f32 %v223_v45, %v219_v48 }
 0x14b   : > { %v332_v51 = vpop.eup %331  ;;  %v228_v53 = vadd.f32 %v224_v47, %v220_v49 }
 0x14c   : > { %231 = vst.msk [vmem:[%s163_s20 + $0x8] sm:$0xff] %vm168_vm0, %v227_v50  ;;  %v221_v54 = vmul.f32 %v332_v51, %v189_v22 }
 0x14d   : > { %232 = vst.msk [vmem:[%s163_s20 + $0x10] sm:$0xff] %vm168_vm0, %v228_v53 }
 0x14e   : > { %v229_v55 = vadd.f32 %v225_v52, %v221_v54 }
 0x150   : > { %233 = vst.msk [vmem:[%s163_s20 + $0x18] sm:$0xff] %vm168_vm0, %v229_v55 }
 0x151 PF: > { %s12_s9 = sadd.s32 1, %s339_s9  }
 0x152   : > { %p9_p4 = scmp.ge.s32.totalorder %s12_s9, 4  }
 0x154   :  { %11 = sbr.rel (!%p9_p4) target bundleno = 1 (0x1), region = 61 }

// kernel: decoder_forward.21
= control target key start
LH: loop header
LB: loop body
LE: loop exit
PB: predicated region body
PF: predicated region fallthrough
CT: control target
= control target key end

     0   :  { %s1824_s0 = inlined_call_operand.vmem [shape: f32[2,512,256], index: 0, kind: input, shape index: {}]   ;;  %s1825_s1 = inlined_call_operand.vmem [shape: f32[16,512], index: 1, kind: input, shape index: {}]   ;;  %s1826_s2 = inlined_call_operand.vmem [shape: f32[2,16,256], index: 2, kind: output, shape index: {}]  }
   0x1   :  { %v20_v0 = vld [vmem:[%s1824_s0 + $0x8] sm:$0xff]  ;;  %v22_v1 = vld [vmem:[%s1824_s0 + $0x18] sm:$0xff]  ;;  %v19_v5 = vld [vmem:[%s1824_s0] sm:$0xff] }
   0x2   :  { %v598_v2 = vld [vmem:[%s1824_s0 + $0x408] sm:$0xff]  ;;  %v729_v3 = vpack.c.bf16 %v22_v1, %v20_v0  ;;  %v600_v4 = vld [vmem:[%s1824_s0 + $0x418] sm:$0xff]  ;;  %v21_v6 = vld [vmem:[%s1824_s0 + $0x10] sm:$0xff] }
   0x3   :  { %v857_v7 = vpack.c.bf16 %v600_v4, %v598_v2  ;;  %v731_v8 = vpack.c.bf16 %v21_v6, %v19_v5  ;;  %v597_v9 = vld [vmem:[%s1824_s0 + $0x400] sm:$0xff]  ;;  %v599_v10 = vld [vmem:[%s1824_s0 + $0x410] sm:$0xff]  ;;  %v24_v11 = vld [vmem:[%s1824_s0 + $0x28] sm:$0xff] }
   0x4   :  { %730 = vmatprep.subr.bf16.mxu0 %v729_v3  ;;  %v859_v12 = vpack.c.bf16 %v599_v10, %v597_v9  ;;  %v26_v13 = vld [vmem:[%s1824_s0 + $0x38] sm:$0xff]  ;;  %v602_v14 = vld [vmem:[%s1824_s0 + $0x428] sm:$0xff]  ;;  %v23_v18 = vld [vmem:[%s1824_s0 + $0x20] sm:$0xff] }
   0x5   :  { %v604_v15 = vld [vmem:[%s1824_s0 + $0x438] sm:$0xff]  ;;  %858 = vmatprep.subr.bf16.mxu1 %v857_v7  ;;  %732 = vmatpush1.bf16.msra.mxu0 %v731_v8  ;;  %v733_v16 = vpack.c.bf16 %v26_v13, %v24_v11  ;;  %v25_v19 = vld [vmem:[%s1824_s0 + $0x30] sm:$0xff]  ;;  %v601_v20 = vld [vmem:[%s1824_s0 + $0x420] sm:$0xff] }
   0x6   :  { %v861_v17 = vpack.c.bf16 %v604_v15, %v602_v14  ;;  %860 = vmatpush1.bf16.msra.mxu1 %v859_v12  ;;  %v735_v21 = vpack.c.bf16 %v25_v19, %v23_v18  ;;  %v603_v22 = vld [vmem:[%s1824_s0 + $0x430] sm:$0xff]  ;;  %v28_v23 = vld [vmem:[%s1824_s0 + $0x48] sm:$0xff]  ;;  %v30_v24 = vld [vmem:[%s1824_s0 + $0x58] sm:$0xff] }
   0x7   :  { %734 = vmatprep.subr.bf16.mxu0 %v733_v16  ;;  %v863_v25 = vpack.c.bf16 %v603_v22, %v601_v20  ;;  %v737_v26 = vpack.c.bf16 %v30_v24, %v28_v23  ;;  %v606_v27 = vld [vmem:[%s1824_s0 + $0x448] sm:$0xff]  ;;  %v608_v28 = vld [vmem:[%s1824_s0 + $0x458] sm:$0xff]  ;;  %v27_v29 = vld [vmem:[%s1824_s0 + $0x40] sm:$0xff] }
   0x8   :  { %862 = vmatprep.subr.bf16.mxu1 %v861_v17  ;;  %v865_v30 = vpack.c.bf16 %v608_v28, %v606_v27  ;;  %v29_v31 = vld [vmem:[%s1824_s0 + $0x50] sm:$0xff]  ;;  %v605_v32 = vld [vmem:[%s1824_s0 + $0x440] sm:$0xff]  ;;  %v32_v35 = vld [vmem:[%s1824_s0 + $0x68] sm:$0xff] }
   0x9   :  { %v607_v33 = vld [vmem:[%s1824_s0 + $0x450] sm:$0xff]  ;;  %736 = vmatpush1.bf16.msra.mxu0 %v735_v21  ;;  %v739_v34 = vpack.c.bf16 %v29_v31, %v27_v29  ;;  %v34_v36 = vld [vmem:[%s1824_s0 + $0x78] sm:$0xff]  ;;  %v610_v37 = vld [vmem:[%s1824_s0 + $0x468] sm:$0xff] }
   0xa   :  { %864 = vmatpush1.bf16.msra.mxu1 %v863_v25  ;;  %738 = vmatprep.subr.bf16.mxu0 %v737_v26  ;;  %v867_v38 = vpack.c.bf16 %v607_v33, %v605_v32  ;;  %v741_v39 = vpack.c.bf16 %v34_v36, %v32_v35  ;;  %v612_v40 = vld [vmem:[%s1824_s0 + $0x478] sm:$0xff]  ;;  %v31_v41 = vld [vmem:[%s1824_s0 + $0x60] sm:$0xff]  ;;  %v33_v42 = vld [vmem:[%s1824_s0 + $0x70] sm:$0xff] }
   0xb   :  { %866 = vmatprep.subr.bf16.mxu1 %v865_v30  ;;  %v869_v43 = vpack.c.bf16 %v612_v40, %v610_v37  ;;  %v609_v44 = vld [vmem:[%s1824_s0 + $0x460] sm:$0xff]  ;;  %v611_v45 = vld [vmem:[%s1824_s0 + $0x470] sm:$0xff]  ;;  %v36_v46 = vld [vmem:[%s1824_s0 + $0x88] sm:$0xff]  ;;  %v743_v50 = vpack.c.bf16 %v33_v42, %v31_v41 }
   0xc   :  { %v38_v47 = vld [vmem:[%s1824_s0 + $0x98] sm:$0xff]  ;;  %v614_v48 = vld [vmem:[%s1824_s0 + $0x488] sm:$0xff]  ;;  %v871_v51 = vpack.c.bf16 %v611_v45, %v609_v44  ;;  %v35_v53 = vld [vmem:[%s1824_s0 + $0x80] sm:$0xff] }
   0xd   :  { %v616_v49 = vld [vmem:[%s1824_s0 + $0x498] sm:$0xff]  ;;  %740 = vmatpush1.bf16.msra.mxu0 %v739_v34  ;;  %v745_v52 = vpack.c.bf16 %v38_v47, %v36_v46  ;;  %v37_v54 = vld [vmem:[%s1824_s0 + $0x90] sm:$0xff]  ;;  %v613_v55 = vld [vmem:[%s1824_s0 + $0x480] sm:$0xff] }
   0xe   :  { %868 = vmatpush1.bf16.msra.mxu1 %v867_v38  ;;  %742 = vmatprep.subr.bf16.mxu0 %v741_v39  ;;  %v873_v56 = vpack.c.bf16 %v616_v49, %v614_v48  ;;  %v615_v57 = vld [vmem:[%s1824_s0 + $0x490] sm:$0xff]  ;;  %v40_v58 = vld [vmem:[%s1824_s0 + $0xa8] sm:$0xff]  ;;  %v42_v59 = vld [vmem:[%s1824_s0 + $0xb8] sm:$0xff]  ;;  %v747_v62 = vpack.c.bf16 %v37_v54, %v35_v53 }
   0xf   :  { %870 = vmatprep.subr.bf16.mxu1 %v869_v43  ;;  %v618_v60 = vld [vmem:[%s1824_s0 + $0x4a8] sm:$0xff]  ;;  %v620_v61 = vld [vmem:[%s1824_s0 + $0x4b8] sm:$0xff]  ;;  %v875_v63 = vpack.c.bf16 %v615_v57, %v613_v55  ;;  %v749_v0 = vpack.c.bf16 %v42_v59, %v40_v58  ;;  %v39_v1 = vld [vmem:[%s1824_s0 + $0xa0] sm:$0xff] }
  0x10   :  { %v41_v2 = vld [vmem:[%s1824_s0 + $0xb0] sm:$0xff]  ;;  %v617_v3 = vld [vmem:[%s1824_s0 + $0x4a0] sm:$0xff]  ;;  %v877_v4 = vpack.c.bf16 %v620_v61, %v618_v60  ;;  %v44_v6 = vld [vmem:[%s1824_s0 + $0xc8] sm:$0xff] }
  0x11   :  { %744 = vmatpush1.bf16.msra.mxu0 %v743_v50  ;;  %v619_v5 = vld [vmem:[%s1824_s0 + $0x4b0] sm:$0xff]  ;;  %v46_v7 = vld [vmem:[%s1824_s0 + $0xd8] sm:$0xff]  ;;  %v622_v8 = vld [vmem:[%s1824_s0 + $0x4c8] sm:$0xff]  ;;  %v751_v10 = vpack.c.bf16 %v41_v2, %v39_v1 }
  0x12   :  { %872 = vmatpush1.bf16.msra.mxu1 %v871_v51  ;;  %746 = vmatprep.subr.bf16.mxu0 %v745_v52  ;;  %v624_v9 = vld [vmem:[%s1824_s0 + $0x4d8] sm:$0xff]  ;;  %v879_v11 = vpack.c.bf16 %v619_v5, %v617_v3  ;;  %v753_v12 = vpack.c.bf16 %v46_v7, %v44_v6  ;;  %v43_v13 = vld [vmem:[%s1824_s0 + $0xc0] sm:$0xff]  ;;  %v45_v14 = vld [vmem:[%s1824_s0 + $0xd0] sm:$0xff] }
  0x13   :  { %874 = vmatprep.subr.bf16.mxu1 %v873_v56  ;;  %v621_v15 = vld [vmem:[%s1824_s0 + $0x4c0] sm:$0xff]  ;;  %v881_v16 = vpack.c.bf16 %v624_v9, %v622_v8  ;;  %v623_v17 = vld [vmem:[%s1824_s0 + $0x4d0] sm:$0xff]  ;;  %v48_v18 = vld [vmem:[%s1824_s0 + $0xe8] sm:$0xff]  ;;  %v755_v22 = vpack.c.bf16 %v45_v14, %v43_v13 }
  0x14   :  { %v50_v19 = vld [vmem:[%s1824_s0 + $0xf8] sm:$0xff]  ;;  %v626_v20 = vld [vmem:[%s1824_s0 + $0x4e8] sm:$0xff]  ;;  %v883_v23 = vpack.c.bf16 %v623_v17, %v621_v15  ;;  %v47_v25 = vld [vmem:[%s1824_s0 + $0xe0] sm:$0xff] }
  0x15   :  { %748 = vmatpush1.bf16.msra.mxu0 %v747_v62  ;;  %v628_v21 = vld [vmem:[%s1824_s0 + $0x4f8] sm:$0xff]  ;;  %v757_v24 = vpack.c.bf16 %v50_v19, %v48_v18  ;;  %v49_v26 = vld [vmem:[%s1824_s0 + $0xf0] sm:$0xff]  ;;  %v625_v27 = vld [vmem:[%s1824_s0 + $0x4e0] sm:$0xff] }
  0x16   :  { %876 = vmatpush1.bf16.msra.mxu1 %v875_v63  ;;  %750 = vmatprep.subr.bf16.mxu0 %v749_v0  ;;  %v885_v28 = vpack.c.bf16 %v628_v21, %v626_v20  ;;  %v627_v29 = vld [vmem:[%s1824_s0 + $0x4f0] sm:$0xff]  ;;  %v52_v30 = vld [vmem:[%s1824_s0 + $0x108] sm:$0xff]  ;;  %v54_v31 = vld [vmem:[%s1824_s0 + $0x118] sm:$0xff]  ;;  %v759_v34 = vpack.c.bf16 %v49_v26, %v47_v25 }
  0x17   :  { %878 = vmatprep.subr.bf16.mxu1 %v877_v4  ;;  %v630_v32 = vld [vmem:[%s1824_s0 + $0x508] sm:$0xff]  ;;  %v632_v33 = vld [vmem:[%s1824_s0 + $0x518] sm:$0xff]  ;;  %v887_v35 = vpack.c.bf16 %v627_v29, %v625_v27  ;;  %v761_v36 = vpack.c.bf16 %v54_v31, %v52_v30  ;;  %v51_v37 = vld [vmem:[%s1824_s0 + $0x100] sm:$0xff] }
  0x18   :  { %v53_v38 = vld [vmem:[%s1824_s0 + $0x110] sm:$0xff]  ;;  %v629_v39 = vld [vmem:[%s1824_s0 + $0x500] sm:$0xff]  ;;  %v889_v40 = vpack.c.bf16 %v632_v33, %v630_v32  ;;  %v56_v42 = vld [vmem:[%s1824_s0 + $0x128] sm:$0xff] }
  0x19   :  { %752 = vmatpush1.bf16.msra.mxu0 %v751_v10  ;;  %v631_v41 = vld [vmem:[%s1824_s0 + $0x510] sm:$0xff]  ;;  %v58_v43 = vld [vmem:[%s1824_s0 + $0x138] sm:$0xff]  ;;  %v634_v44 = vld [vmem:[%s1824_s0 + $0x528] sm:$0xff]  ;;  %v763_v46 = vpack.c.bf16 %v53_v38, %v51_v37 }
  0x1a   :  { %880 = vmatpush1.bf16.msra.mxu1 %v879_v11  ;;  %754 = vmatprep.subr.bf16.mxu0 %v753_v12  ;;  %v636_v45 = vld [vmem:[%s1824_s0 + $0x538] sm:$0xff]  ;;  %v891_v47 = vpack.c.bf16 %v631_v41, %v629_v39  ;;  %v765_v48 = vpack.c.bf16 %v58_v43, %v56_v42  ;;  %v55_v49 = vld [vmem:[%s1824_s0 + $0x120] sm:$0xff]  ;;  %v57_v50 = vld [vmem:[%s1824_s0 + $0x130] sm:$0xff] }
  0x1b   :  { %882 = vmatprep.subr.bf16.mxu1 %v881_v16  ;;  %v633_v51 = vld [vmem:[%s1824_s0 + $0x520] sm:$0xff]  ;;  %v893_v52 = vpack.c.bf16 %v636_v45, %v634_v44  ;;  %v635_v53 = vld [vmem:[%s1824_s0 + $0x530] sm:$0xff]  ;;  %v60_v54 = vld [vmem:[%s1824_s0 + $0x148] sm:$0xff]  ;;  %v767_v58 = vpack.c.bf16 %v57_v50, %v55_v49 }
  0x1c   :  { %v62_v55 = vld [vmem:[%s1824_s0 + $0x158] sm:$0xff]  ;;  %v638_v56 = vld [vmem:[%s1824_s0 + $0x548] sm:$0xff]  ;;  %v895_v59 = vpack.c.bf16 %v635_v53, %v633_v51  ;;  %v59_v61 = vld [vmem:[%s1824_s0 + $0x140] sm:$0xff] }
  0x1d   :  { %756 = vmatpush1.bf16.msra.mxu0 %v755_v22  ;;  %v640_v57 = vld [vmem:[%s1824_s0 + $0x558] sm:$0xff]  ;;  %v769_v60 = vpack.c.bf16 %v62_v55, %v60_v54  ;;  %v61_v62 = vld [vmem:[%s1824_s0 + $0x150] sm:$0xff]  ;;  %v637_v63 = vld [vmem:[%s1824_s0 + $0x540] sm:$0xff] }
  0x1e   :  { %884 = vmatpush1.bf16.msra.mxu1 %v883_v23  ;;  %758 = vmatprep.subr.bf16.mxu0 %v757_v24  ;;  %v897_v0 = vpack.c.bf16 %v640_v57, %v638_v56  ;;  %v639_v1 = vld [vmem:[%s1824_s0 + $0x550] sm:$0xff]  ;;  %v64_v2 = vld [vmem:[%s1824_s0 + $0x168] sm:$0xff]  ;;  %v66_v3 = vld [vmem:[%s1824_s0 + $0x178] sm:$0xff]  ;;  %v771_v6 = vpack.c.bf16 %v61_v62, %v59_v61 }
  0x1f   :  { %886 = vmatprep.subr.bf16.mxu1 %v885_v28  ;;  %v642_v4 = vld [vmem:[%s1824_s0 + $0x568] sm:$0xff]  ;;  %v644_v5 = vld [vmem:[%s1824_s0 + $0x578] sm:$0xff]  ;;  %v63_v7 = vld [vmem:[%s1824_s0 + $0x160] sm:$0xff]  ;;  %v899_v8 = vpack.c.bf16 %v639_v1, %v637_v63  ;;  %v773_v9 = vpack.c.bf16 %v66_v3, %v64_v2 }
  0x20   :  { %v65_v10 = vld [vmem:[%s1824_s0 + $0x170] sm:$0xff]  ;;  %v641_v11 = vld [vmem:[%s1824_s0 + $0x560] sm:$0xff]  ;;  %v901_v13 = vpack.c.bf16 %v644_v5, %v642_v4  ;;  %v68_v14 = vld [vmem:[%s1824_s0 + $0x188] sm:$0xff] }
  0x21   :  { %760 = vmatpush1.bf16.msra.mxu0 %v759_v34  ;;  %v643_v12 = vld [vmem:[%s1824_s0 + $0x570] sm:$0xff]  ;;  %v70_v15 = vld [vmem:[%s1824_s0 + $0x198] sm:$0xff]  ;;  %v12_v16 = vld [vmem:[%s1825_s1 + $0x8] sm:$0xff]  ;;  %v775_v19 = vpack.c.bf16 %v65_v10, %v63_v7 }
  0x22   :  { %888 = vmatpush1.bf16.msra.mxu1 %v887_v35  ;;  %762 = vmatprep.subr.bf16.mxu0 %v761_v36  ;;  %v646_v17 = vld [vmem:[%s1824_s0 + $0x588] sm:$0xff]  ;;  %v648_v18 = vld [vmem:[%s1824_s0 + $0x598] sm:$0xff]  ;;  %v903_v20 = vpack.c.bf16 %v643_v12, %v641_v11  ;;  %v777_v21 = vpack.c.bf16 %v70_v15, %v68_v14  ;;  %v67_v22 = vld [vmem:[%s1824_s0 + $0x180] sm:$0xff] }
  0x23   :  { %890 = vmatprep.subr.bf16.mxu1 %v889_v40  ;;  %211 = vmatprep.mubr.f32.mxu0 %v12_v16  ;;  %v69_v23 = vld [vmem:[%s1824_s0 + $0x190] sm:$0xff]  ;;  %v645_v24 = vld [vmem:[%s1824_s0 + $0x580] sm:$0xff]  ;;  %v905_v25 = vpack.c.bf16 %v648_v18, %v646_v17  ;;  %v72_v27 = vld [vmem:[%s1824_s0 + $0x1a8] sm:$0xff] }
  0x24   :  { %498 = vmatprep.mubr.f32.mxu1 %v12_v16  ;;  %v647_v26 = vld [vmem:[%s1824_s0 + $0x590] sm:$0xff]  ;;  %v74_v28 = vld [vmem:[%s1824_s0 + $0x1b8] sm:$0xff]  ;;  %v650_v29 = vld [vmem:[%s1824_s0 + $0x5a8] sm:$0xff]  ;;  %v779_v31 = vpack.c.bf16 %v69_v23, %v67_v22 }
  0x25   :  { %764 = vmatpush1.bf16.msra.mxu0 %v763_v46  ;;  %v652_v30 = vld [vmem:[%s1824_s0 + $0x5b8] sm:$0xff]  ;;  %v907_v32 = vpack.c.bf16 %v647_v26, %v645_v24  ;;  %v781_v33 = vpack.c.bf16 %v74_v28, %v72_v27  ;;  %v71_v34 = vld [vmem:[%s1824_s0 + $0x1a0] sm:$0xff]  ;;  %v73_v35 = vld [vmem:[%s1824_s0 + $0x1b0] sm:$0xff] }
  0x26   :  { %892 = vmatpush1.bf16.msra.mxu1 %v891_v47  ;;  %766 = vmatprep.subr.bf16.mxu0 %v765_v48  ;;  %v649_v36 = vld [vmem:[%s1824_s0 + $0x5a0] sm:$0xff]  ;;  %v909_v37 = vpack.c.bf16 %v652_v30, %v650_v29  ;;  %v651_v38 = vld [vmem:[%s1824_s0 + $0x5b0] sm:$0xff]  ;;  %v76_v39 = vld [vmem:[%s1824_s0 + $0x1c8] sm:$0xff]  ;;  %v783_v43 = vpack.c.bf16 %v73_v35, %v71_v34 }
  0x27   :  { %894 = vmatprep.subr.bf16.mxu1 %v893_v52  ;;  %v78_v40 = vld [vmem:[%s1824_s0 + $0x1d8] sm:$0xff]  ;;  %v654_v41 = vld [vmem:[%s1824_s0 + $0x5c8] sm:$0xff]  ;;  %v911_v44 = vpack.c.bf16 %v651_v38, %v649_v36  ;;  %v75_v46 = vld [vmem:[%s1824_s0 + $0x1c0] sm:$0xff] }
  0x28   :  { %v656_v42 = vld [vmem:[%s1824_s0 + $0x5d8] sm:$0xff]  ;;  %v785_v45 = vpack.c.bf16 %v78_v40, %v76_v39  ;;  %v77_v47 = vld [vmem:[%s1824_s0 + $0x1d0] sm:$0xff]  ;;  %v653_v48 = vld [vmem:[%s1824_s0 + $0x5c0] sm:$0xff] }
  0x29   :  { %768 = vmatpush1.bf16.msra.mxu0 %v767_v58  ;;  %v913_v49 = vpack.c.bf16 %v656_v42, %v654_v41  ;;  %v655_v50 = vld [vmem:[%s1824_s0 + $0x5d0] sm:$0xff]  ;;  %v80_v51 = vld [vmem:[%s1824_s0 + $0x1e8] sm:$0xff]  ;;  %v82_v52 = vld [vmem:[%s1824_s0 + $0x1f8] sm:$0xff]  ;;  %v787_v55 = vpack.c.bf16 %v77_v47, %v75_v46 }
  0x2a   :  { %896 = vmatpush1.bf16.msra.mxu1 %v895_v59  ;;  %770 = vmatprep.subr.bf16.mxu0 %v769_v60  ;;  %v658_v53 = vld [vmem:[%s1824_s0 + $0x5e8] sm:$0xff]  ;;  %v660_v54 = vld [vmem:[%s1824_s0 + $0x5f8] sm:$0xff]  ;;  %v915_v56 = vpack.c.bf16 %v655_v50, %v653_v48  ;;  %v789_v57 = vpack.c.bf16 %v82_v52, %v80_v51  ;;  %v79_v58 = vld [vmem:[%s1824_s0 + $0x1e0] sm:$0xff] }
  0x2b   :  { %898 = vmatprep.subr.bf16.mxu1 %v897_v0  ;;  %v81_v59 = vld [vmem:[%s1824_s0 + $0x1f0] sm:$0xff]  ;;  %v657_v60 = vld [vmem:[%s1824_s0 + $0x5e0] sm:$0xff]  ;;  %v917_v61 = vpack.c.bf16 %v660_v54, %v658_v53  ;;  %v84_v63 = vld [vmem:[%s1824_s0 + $0x208] sm:$0xff] }
  0x2c   :  { %v659_v62 = vld [vmem:[%s1824_s0 + $0x5f0] sm:$0xff]  ;;  %v86_v0 = vld [vmem:[%s1824_s0 + $0x218] sm:$0xff]  ;;  %v662_v1 = vld [vmem:[%s1824_s0 + $0x608] sm:$0xff]  ;;  %v791_v3 = vpack.c.bf16 %v81_v59, %v79_v58 }
  0x2d   :  { %772 = vmatpush1.bf16.msra.mxu0 %v771_v6  ;;  %v664_v2 = vld [vmem:[%s1824_s0 + $0x618] sm:$0xff]  ;;  %v919_v4 = vpack.c.bf16 %v659_v62, %v657_v60  ;;  %v793_v5 = vpack.c.bf16 %v86_v0, %v84_v63  ;;  %v83_v6 = vld [vmem:[%s1824_s0 + $0x200] sm:$0xff]  ;;  %v85_v7 = vld [vmem:[%s1824_s0 + $0x210] sm:$0xff] }
  0x2e   :  { %900 = vmatpush1.bf16.msra.mxu1 %v899_v8  ;;  %774 = vmatprep.subr.bf16.mxu0 %v773_v9  ;;  %v661_v8 = vld [vmem:[%s1824_s0 + $0x600] sm:$0xff]  ;;  %v921_v9 = vpack.c.bf16 %v664_v2, %v662_v1  ;;  %v663_v10 = vld [vmem:[%s1824_s0 + $0x610] sm:$0xff]  ;;  %v88_v11 = vld [vmem:[%s1824_s0 + $0x228] sm:$0xff]  ;;  %v795_v16 = vpack.c.bf16 %v85_v7, %v83_v6 }
  0x2f   :  { %902 = vmatprep.subr.bf16.mxu1 %v901_v13  ;;  %v90_v12 = vld [vmem:[%s1824_s0 + $0x238] sm:$0xff]  ;;  %v666_v13 = vld [vmem:[%s1824_s0 + $0x628] sm:$0xff]  ;;  %v11_v15 = vld [vmem:[%s1825_s1] sm:$0xff]  ;;  %v923_v17 = vpack.c.bf16 %v663_v10, %v661_v8 }
  0x30   :  { %v668_v14 = vld [vmem:[%s1824_s0 + $0x638] sm:$0xff]  ;;  %v797_v18 = vpack.c.bf16 %v90_v12, %v88_v11  ;;  %v667_v23 = vld [vmem:[%s1824_s0 + $0x630] sm:$0xff]  ;;  %v92_v24 = vld [vmem:[%s1824_s0 + $0x248] sm:$0xff] }
  0x31   :  { %776 = vmatpush1.bf16.msra.mxu0 %v775_v19  ;;  %v87_v19 = vld [vmem:[%s1824_s0 + $0x220] sm:$0xff]  ;;  %v925_v22 = vpack.c.bf16 %v668_v14, %v666_v13  ;;  %v670_v26 = vld [vmem:[%s1824_s0 + $0x648] sm:$0xff]  ;;  %v672_v27 = vld [vmem:[%s1824_s0 + $0x658] sm:$0xff] }
  0x32   :  { %904 = vmatpush1.bf16.msra.mxu1 %v903_v20  ;;  %778 = vmatprep.subr.bf16.mxu0 %v777_v21  ;;  %v89_v20 = vld [vmem:[%s1824_s0 + $0x230] sm:$0xff]  ;;  %v665_v21 = vld [vmem:[%s1824_s0 + $0x620] sm:$0xff]  ;;  %v929_v34 = vpack.c.bf16 %v672_v27, %v670_v26  ;;  %v96_v36 = vld [vmem:[%s1824_s0 + $0x268] sm:$0xff] }
  0x33   :  { %906 = vmatprep.subr.bf16.mxu1 %v905_v25  ;;  %v94_v25 = vld [vmem:[%s1824_s0 + $0x258] sm:$0xff]  ;;  %v799_v28 = vpack.c.bf16 %v89_v20, %v87_v19  ;;  %v927_v29 = vpack.c.bf16 %v667_v23, %v665_v21  ;;  %v671_v35 = vld [vmem:[%s1824_s0 + $0x650] sm:$0xff]  ;;  %v674_v38 = vld [vmem:[%s1824_s0 + $0x668] sm:$0xff] }
  0x34   :  { %v801_v30 = vpack.c.bf16 %v94_v25, %v92_v24  ;;  %v676_v39 = vld [vmem:[%s1824_s0 + $0x678] sm:$0xff]  ;;  %v675_v47 = vld [vmem:[%s1824_s0 + $0x670] sm:$0xff]  ;;  %v100_v48 = vld [vmem:[%s1824_s0 + $0x288] sm:$0xff] }
  0x35   :  { %780 = vmatpush1.bf16.msra.mxu0 %v779_v31  ;;  %v91_v31 = vld [vmem:[%s1824_s0 + $0x240] sm:$0xff]  ;;  %v933_v46 = vpack.c.bf16 %v676_v39, %v674_v38  ;;  %v678_v50 = vld [vmem:[%s1824_s0 + $0x688] sm:$0xff]  ;;  %v680_v51 = vld [vmem:[%s1824_s0 + $0x698] sm:$0xff] }
  0x36   :  { %908 = vmatpush1.bf16.msra.mxu1 %v907_v32  ;;  %782 = vmatprep.subr.bf16.mxu0 %v781_v33  ;;  %v93_v32 = vld [vmem:[%s1824_s0 + $0x250] sm:$0xff]  ;;  %v669_v33 = vld [vmem:[%s1824_s0 + $0x640] sm:$0xff]  ;;  %v937_v58 = vpack.c.bf16 %v680_v51, %v678_v50  ;;  %v104_v60 = vld [vmem:[%s1824_s0 + $0x2a8] sm:$0xff] }
  0x37   :  { %910 = vmatprep.subr.bf16.mxu1 %v909_v37  ;;  %v98_v37 = vld [vmem:[%s1824_s0 + $0x278] sm:$0xff]  ;;  %v803_v40 = vpack.c.bf16 %v93_v32, %v91_v31  ;;  %v931_v41 = vpack.c.bf16 %v671_v35, %v669_v33  ;;  %v679_v59 = vld [vmem:[%s1824_s0 + $0x690] sm:$0xff]  ;;  %v682_v62 = vld [vmem:[%s1824_s0 + $0x6a8] sm:$0xff] }
  0x38   :  { %v805_v42 = vpack.c.bf16 %v98_v37, %v96_v36  ;;  %v684_v63 = vld [vmem:[%s1824_s0 + $0x6b8] sm:$0xff]  ;;  %v683_v7 = vld [vmem:[%s1824_s0 + $0x6b0] sm:$0xff]  ;;  %v108_v8 = vld [vmem:[%s1824_s0 + $0x2c8] sm:$0xff] }
  0x39   :  { %784 = vmatpush1.bf16.msra.mxu0 %v783_v43  ;;  %v95_v43 = vld [vmem:[%s1824_s0 + $0x260] sm:$0xff]  ;;  %v941_v6 = vpack.c.bf16 %v684_v63, %v682_v62  ;;  %v686_v10 = vld [vmem:[%s1824_s0 + $0x6c8] sm:$0xff]  ;;  %v688_v11 = vld [vmem:[%s1824_s0 + $0x6d8] sm:$0xff] }
  0x3a   :  { %912 = vmatpush1.bf16.msra.mxu1 %v911_v44  ;;  %786 = vmatprep.subr.bf16.mxu0 %v785_v45  ;;  %v97_v44 = vld [vmem:[%s1824_s0 + $0x270] sm:$0xff]  ;;  %v673_v45 = vld [vmem:[%s1824_s0 + $0x660] sm:$0xff]  ;;  %v16_v12 = vld [vmem:[%s1825_s1 + $0x28] sm:$0xff]  ;;  %v945_v21 = vpack.c.bf16 %v688_v11, %v686_v10 }
  0x3b   :  { %914 = vmatprep.subr.bf16.mxu1 %v913_v49  ;;  %v102_v49 = vld [vmem:[%s1824_s0 + $0x298] sm:$0xff]  ;;  %v807_v52 = vpack.c.bf16 %v97_v44, %v95_v43  ;;  %v935_v53 = vpack.c.bf16 %v675_v47, %v673_v45  ;;  %v107_v14 = vld [vmem:[%s1824_s0 + $0x2c0] sm:$0xff]  ;;  %v687_v20 = vld [vmem:[%s1824_s0 + $0x6d0] sm:$0xff] }
  0x3c   :  { %v809_v54 = vpack.c.bf16 %v102_v49, %v100_v48  ;;  %v685_v19 = vld [vmem:[%s1824_s0 + $0x6c0] sm:$0xff]  ;;  %v114_v23 = vld [vmem:[%s1824_s0 + $0x2f8] sm:$0xff]  ;;  %v690_v25 = vld [vmem:[%s1824_s0 + $0x6e8] sm:$0xff] }
  0x3d   :  { %788 = vmatpush1.bf16.msra.mxu0 %v787_v55  ;;  %v99_v55 = vld [vmem:[%s1824_s0 + $0x280] sm:$0xff]  ;;  %v14_v24 = vld [vmem:[%s1825_s1 + $0x18] sm:$0xff]  ;;  %v113_v31 = vld [vmem:[%s1824_s0 + $0x2f0] sm:$0xff] }
  0x3e   :  { %916 = vmatpush1.bf16.msra.mxu1 %v915_v56  ;;  %790 = vmatprep.subr.bf16.mxu0 %v789_v57  ;;  %v101_v56 = vld [vmem:[%s1824_s0 + $0x290] sm:$0xff]  ;;  %v677_v57 = vld [vmem:[%s1824_s0 + $0x680] sm:$0xff]  ;;  %v692_v26 = vld [vmem:[%s1824_s0 + $0x6f8] sm:$0xff] }
  0x3f   :  { %918 = vmatprep.subr.bf16.mxu1 %v917_v61  ;;  %v106_v61 = vld [vmem:[%s1824_s0 + $0x2b8] sm:$0xff]  ;;  %v811_v0 = vpack.c.bf16 %v101_v56, %v99_v55  ;;  %v939_v1 = vpack.c.bf16 %v679_v59, %v677_v57  ;;  %v689_v32 = vld [vmem:[%s1824_s0 + $0x6e0] sm:$0xff]  ;;  %v949_v33 = vpack.c.bf16 %v692_v26, %v690_v25  ;;  %v116_v35 = vld [vmem:[%s1824_s0 + $0x308] sm:$0xff] }
  0x40   :  { %v813_v2 = vpack.c.bf16 %v106_v61, %v104_v60  ;;  %v118_v36 = vld [vmem:[%s1824_s0 + $0x318] sm:$0xff]  ;;  %v694_v37 = vld [vmem:[%s1824_s0 + $0x708] sm:$0xff]  ;;  %v117_v43 = vld [vmem:[%s1824_s0 + $0x310] sm:$0xff] }
  0x41   :  { %792 = vmatpush1.bf16.msra.mxu0 %v791_v3  ;;  %v103_v3 = vld [vmem:[%s1824_s0 + $0x2a0] sm:$0xff]  ;;  %v696_v38 = vld [vmem:[%s1824_s0 + $0x718] sm:$0xff]  ;;  %v120_v47 = vld [vmem:[%s1824_s0 + $0x328] sm:$0xff] }
  0x42   :  { %920 = vmatpush1.bf16.msra.mxu1 %v919_v4  ;;  %794 = vmatprep.subr.bf16.mxu0 %v793_v5  ;;  %v105_v4 = vld [vmem:[%s1824_s0 + $0x2b0] sm:$0xff]  ;;  %v681_v5 = vld [vmem:[%s1824_s0 + $0x6a0] sm:$0xff]  ;;  %v953_v45 = vpack.c.bf16 %v696_v38, %v694_v37  ;;  %v122_v48 = vld [vmem:[%s1824_s0 + $0x338] sm:$0xff] }
  0x43   :  { %922 = vmatprep.subr.bf16.mxu1 %v921_v9  ;;  %v110_v9 = vld [vmem:[%s1824_s0 + $0x2d8] sm:$0xff]  ;;  %v815_v13 = vpack.c.bf16 %v105_v4, %v103_v3  ;;  %v693_v44 = vld [vmem:[%s1824_s0 + $0x700] sm:$0xff]  ;;  %v698_v49 = vld [vmem:[%s1824_s0 + $0x728] sm:$0xff] }
  0x44   :  { %212 = vmatmul.mubr.f32.vlgmr.msra.gmra.mrb[0].mxu0 %v11_v15  ;;  %v700_v50 = vld [vmem:[%s1824_s0 + $0x738] sm:$0xff]  ;;  %v121_v55 = vld [vmem:[%s1824_s0 + $0x330] sm:$0xff]  ;;  %v697_v56 = vld [vmem:[%s1824_s0 + $0x720] sm:$0xff] }
  0x45   :  { %796 = vmatpush1.bf16.msra.mxu0 %v795_v16  ;;  %499 = vmatmul.mubr.f32.vlgmr.msra.gmra.mrb[0].mxu1 %v11_v15  ;;  %v15_v15 = vld [vmem:[%s1825_s1 + $0x20] sm:$0xff]  ;;  %v943_v16 = vpack.c.bf16 %v683_v7, %v681_v5  ;;  %v957_v57 = vpack.c.bf16 %v700_v50, %v698_v49  ;;  %v124_v59 = vld [vmem:[%s1824_s0 + $0x348] sm:$0xff]  ;;  %v126_v60 = vld [vmem:[%s1824_s0 + $0x358] sm:$0xff] }
  0x46   :  { %924 = vmatpush1.bf16.msra.mxu1 %v923_v17  ;;  %798 = vmatprep.subr.bf16.mxu0 %v797_v18  ;;  %v817_v17 = vpack.c.bf16 %v110_v9, %v108_v8  ;;  %v109_v18 = vld [vmem:[%s1824_s0 + $0x2d0] sm:$0xff]  ;;  %v702_v61 = vld [vmem:[%s1824_s0 + $0x748] sm:$0xff]  ;;  %v704_v62 = vld [vmem:[%s1824_s0 + $0x758] sm:$0xff] }
  0x47   :  { %926 = vmatprep.subr.bf16.mxu1 %v925_v22  ;;  %217 = vmatprep.mubr.f32.mxu0 %v16_v12  ;;  %v112_v22 = vld [vmem:[%s1824_s0 + $0x2e8] sm:$0xff]  ;;  %v819_v27 = vpack.c.bf16 %v109_v18, %v107_v14  ;;  %v125_v3 = vld [vmem:[%s1824_s0 + $0x350] sm:$0xff]  ;;  %v701_v4 = vld [vmem:[%s1824_s0 + $0x740] sm:$0xff]  ;;  %v961_v5 = vpack.c.bf16 %v704_v62, %v702_v61 }
  0x48   :  { %504 = vmatprep.mubr.f32.mxu1 %v16_v12  ;;  %218 = vmatmul.mubr.f32.gmra.mrb[2].mxu0 %v15_v15  ;;  %v128_v7 = vld [vmem:[%s1824_s0 + $0x368] sm:$0xff]  ;;  %v130_v8 = vld [vmem:[%s1824_s0 + $0x378] sm:$0xff]  ;;  %v127_v14 = vld [vmem:[%s1824_s0 + $0x360] sm:$0xff] }
  0x49   :  { %800 = vmatpush1.bf16.msra.mxu0 %v799_v28  ;;  %505 = vmatmul.mubr.f32.gmra.mrb[2].mxu1 %v15_v15  ;;  %v947_v28 = vpack.c.bf16 %v687_v20, %v685_v19  ;;  %v706_v9 = vld [vmem:[%s1824_s0 + $0x768] sm:$0xff]  ;;  %v708_v10 = vld [vmem:[%s1824_s0 + $0x778] sm:$0xff]  ;;  %v129_v15 = vld [vmem:[%s1824_s0 + $0x370] sm:$0xff] }
  0x4a   :  { %928 = vmatpush1.bf16.msra.mxu1 %v927_v29  ;;  %802 = vmatprep.subr.bf16.mxu0 %v801_v30  ;;  %v821_v29 = vpack.c.bf16 %v114_v23, %v112_v22  ;;  %v111_v30 = vld [vmem:[%s1824_s0 + $0x2e0] sm:$0xff]  ;;  %v707_v18 = vld [vmem:[%s1824_s0 + $0x770] sm:$0xff]  ;;  %v132_v19 = vld [vmem:[%s1824_s0 + $0x388] sm:$0xff]  ;;  %v839_v23 = vpack.c.bf16 %v129_v15, %v127_v14 }
  0x4b   :  { %930 = vmatprep.subr.bf16.mxu1 %v929_v34  ;;  %288 = vmatprep.mubr.f32.mxu0 %v14_v24  ;;  %v691_v34 = vld [vmem:[%s1824_s0 + $0x6f0] sm:$0xff]  ;;  %v823_v39 = vpack.c.bf16 %v113_v31, %v111_v30  ;;  %v134_v20 = vld [vmem:[%s1824_s0 + $0x398] sm:$0xff]  ;;  %v131_v26 = vld [vmem:[%s1824_s0 + $0x380] sm:$0xff] }
  0x4c   :  { %575 = vmatprep.mubr.f32.mxu1 %v14_v24  ;;  %v712_v22 = vld [vmem:[%s1824_s0 + $0x798] sm:$0xff]  ;;  %v841_v25 = vpack.c.bf16 %v134_v20, %v132_v19  ;;  %v711_v30 = vld [vmem:[%s1824_s0 + $0x790] sm:$0xff]  ;;  %v136_v31 = vld [vmem:[%s1824_s0 + $0x3a8] sm:$0xff] }
  0x4d   :  { %804 = vmatpush1.bf16.msra.mxu0 %v803_v40  ;;  %v951_v40 = vpack.c.bf16 %v691_v34, %v689_v32  ;;  %v138_v32 = vld [vmem:[%s1824_s0 + $0x3b8] sm:$0xff]  ;;  %v135_v38 = vld [vmem:[%s1824_s0 + $0x3a0] sm:$0xff] }
  0x4e   :  { %932 = vmatpush1.bf16.msra.mxu1 %v931_v41  ;;  %806 = vmatprep.subr.bf16.mxu0 %v805_v42  ;;  %v825_v41 = vpack.c.bf16 %v118_v36, %v116_v35  ;;  %v115_v42 = vld [vmem:[%s1824_s0 + $0x300] sm:$0xff]  ;;  %v716_v34 = vld [vmem:[%s1824_s0 + $0x7b8] sm:$0xff]  ;;  %v845_v37 = vpack.c.bf16 %v138_v32, %v136_v31 }
  0x4f   :  { %934 = vmatprep.subr.bf16.mxu1 %v933_v46  ;;  %v695_v46 = vld [vmem:[%s1824_s0 + $0x710] sm:$0xff]  ;;  %v827_v51 = vpack.c.bf16 %v117_v43, %v115_v42  ;;  %v140_v43 = vld [vmem:[%s1824_s0 + $0x3c8] sm:$0xff]  ;;  %v139_v50 = vld [vmem:[%s1824_s0 + $0x3c0] sm:$0xff] }
  0x50   :  { %v715_v42 = vld [vmem:[%s1824_s0 + $0x7b0] sm:$0xff]  ;;  %v143_v62 = vld [vmem:[%s1824_s0 + $0x3e0] sm:$0xff] }
  0x51   :  { %808 = vmatpush1.bf16.msra.mxu0 %v807_v52  ;;  %v955_v52 = vpack.c.bf16 %v695_v46, %v693_v44  ;;  %v142_v44 = vld [vmem:[%s1824_s0 + $0x3d8] sm:$0xff] }
  0x52   :  { %936 = vmatpush1.bf16.msra.mxu1 %v935_v53  ;;  %810 = vmatprep.subr.bf16.mxu0 %v809_v54  ;;  %v829_v53 = vpack.c.bf16 %v122_v48, %v120_v47  ;;  %v119_v54 = vld [vmem:[%s1824_s0 + $0x320] sm:$0xff]  ;;  %v720_v46 = vld [vmem:[%s1824_s0 + $0x7d8] sm:$0xff]  ;;  %v849_v49 = vpack.c.bf16 %v142_v44, %v140_v43 }
  0x53   :  { %938 = vmatprep.subr.bf16.mxu1 %v937_v58  ;;  %v699_v58 = vld [vmem:[%s1824_s0 + $0x730] sm:$0xff]  ;;  %v831_v63 = vpack.c.bf16 %v121_v55, %v119_v54  ;;  %v144_v55 = vld [vmem:[%s1824_s0 + $0x3e8] sm:$0xff] }
  0x54   :  { %v719_v54 = vld [vmem:[%s1824_s0 + $0x7d0] sm:$0xff] }
  0x55   :  { %812 = vmatpush1.bf16.msra.mxu0 %v811_v0  ;;  %v959_v0 = vpack.c.bf16 %v699_v58, %v697_v56  ;;  %v146_v56 = vld [vmem:[%s1824_s0 + $0x3f8] sm:$0xff] }
  0x56   :  { %940 = vmatpush1.bf16.msra.mxu1 %v939_v1  ;;  %814 = vmatprep.subr.bf16.mxu0 %v813_v2  ;;  %v833_v1 = vpack.c.bf16 %v126_v60, %v124_v59  ;;  %v123_v2 = vld [vmem:[%s1824_s0 + $0x340] sm:$0xff]  ;;  %v724_v58 = vld [vmem:[%s1824_s0 + $0x7f8] sm:$0xff]  ;;  %v853_v61 = vpack.c.bf16 %v146_v56, %v144_v55 }
  0x57   :  { %942 = vmatprep.subr.bf16.mxu1 %v941_v6  ;;  %v703_v6 = vld [vmem:[%s1824_s0 + $0x750] sm:$0xff]  ;;  %v835_v11 = vpack.c.bf16 %v125_v3, %v123_v2 }
  0x58   :  { %v963_v12 = vpack.c.bf16 %v703_v6, %v701_v4  ;;  %v723_v2 = vld [vmem:[%s1824_s0 + $0x7f0] sm:$0xff]  ;;  %v18_v6 = vld [vmem:[%s1825_s1 + $0x38] sm:$0xff] }
  0x59   :  { %816 = vmatpush1.bf16.msra.mxu0 %v815_v13  ;;  %v837_v13 = vpack.c.bf16 %v130_v8, %v128_v7  ;;  %v17_v7 = vld [vmem:[%s1825_s1 + $0x30] sm:$0xff] }
  0x5a   :  { %944 = vmatpush1.bf16.msra.mxu1 %v943_v16  ;;  %818 = vmatprep.subr.bf16.mxu0 %v817_v17  ;;  %v705_v16 = vld [vmem:[%s1824_s0 + $0x760] sm:$0xff]  ;;  %v965_v17 = vpack.c.bf16 %v708_v10, %v706_v9 }
  0x5b   :  { %946 = vmatprep.subr.bf16.mxu1 %v945_v21  ;;  %v710_v21 = vld [vmem:[%s1824_s0 + $0x788] sm:$0xff]  ;;  %v967_v24 = vpack.c.bf16 %v707_v18, %v705_v16 }
  0x5d   :  { %820 = vmatpush1.bf16.msra.mxu0 %v819_v27  ;;  %v133_v27 = vld [vmem:[%s1824_s0 + $0x390] sm:$0xff] }
  0x5e   :  { %948 = vmatpush1.bf16.msra.mxu1 %v947_v28  ;;  %822 = vmatprep.subr.bf16.mxu0 %v821_v29  ;;  %v709_v28 = vld [vmem:[%s1824_s0 + $0x780] sm:$0xff]  ;;  %v969_v29 = vpack.c.bf16 %v712_v22, %v710_v21  ;;  %v843_v35 = vpack.c.bf16 %v133_v27, %v131_v26 }
  0x5f   :  { %950 = vmatprep.subr.bf16.mxu1 %v949_v33  ;;  %v714_v33 = vld [vmem:[%s1824_s0 + $0x7a8] sm:$0xff]  ;;  %v971_v36 = vpack.c.bf16 %v711_v30, %v709_v28 }
  0x61   :  { %824 = vmatpush1.bf16.msra.mxu0 %v823_v39  ;;  %v137_v39 = vld [vmem:[%s1824_s0 + $0x3b0] sm:$0xff] }
  0x62   :  { %952 = vmatpush1.bf16.msra.mxu1 %v951_v40  ;;  %826 = vmatprep.subr.bf16.mxu0 %v825_v41  ;;  %v713_v40 = vld [vmem:[%s1824_s0 + $0x7a0] sm:$0xff]  ;;  %v973_v41 = vpack.c.bf16 %v716_v34, %v714_v33  ;;  %v847_v47 = vpack.c.bf16 %v137_v39, %v135_v38 }
  0x63   :  { %954 = vmatprep.subr.bf16.mxu1 %v953_v45  ;;  %v718_v45 = vld [vmem:[%s1824_s0 + $0x7c8] sm:$0xff]  ;;  %v975_v48 = vpack.c.bf16 %v715_v42, %v713_v40 }
  0x65   :  { %828 = vmatpush1.bf16.msra.mxu0 %v827_v51  ;;  %v141_v51 = vld [vmem:[%s1824_s0 + $0x3d0] sm:$0xff] }
  0x66   :  { %956 = vmatpush1.bf16.msra.mxu1 %v955_v52  ;;  %830 = vmatprep.subr.bf16.mxu0 %v829_v53  ;;  %v717_v52 = vld [vmem:[%s1824_s0 + $0x7c0] sm:$0xff]  ;;  %v977_v53 = vpack.c.bf16 %v720_v46, %v718_v45  ;;  %v851_v59 = vpack.c.bf16 %v141_v51, %v139_v50 }
  0x67   :  { %958 = vmatprep.subr.bf16.mxu1 %v957_v57  ;;  %v722_v57 = vld [vmem:[%s1824_s0 + $0x7e8] sm:$0xff]  ;;  %v979_v60 = vpack.c.bf16 %v719_v54, %v717_v52 }
  0x69   :  { %832 = vmatpush1.bf16.msra.mxu0 %v831_v63  ;;  %v145_v63 = vld [vmem:[%s1824_s0 + $0x3f0] sm:$0xff] }
  0x6a   :  { %960 = vmatpush1.bf16.msra.mxu1 %v959_v0  ;;  %834 = vmatprep.subr.bf16.mxu0 %v833_v1  ;;  %v981_v0 = vpack.c.bf16 %v724_v58, %v722_v57  ;;  %v721_v1 = vld [vmem:[%s1824_s0 + $0x7e0] sm:$0xff]  ;;  %v855_v3 = vpack.c.bf16 %v145_v63, %v143_v62 }
  0x6b   :  { %962 = vmatprep.subr.bf16.mxu1 %v961_v5  ;;  %v983_v4 = vpack.c.bf16 %v723_v2, %v721_v1  ;;  %v13_v5 = vld [vmem:[%s1825_s1 + $0x10] sm:$0xff] }
  0x6d   :  { %836 = vmatpush1.bf16.msra.mxu0 %v835_v11 }
  0x6e   :  { %964 = vmatpush1.bf16.msra.mxu1 %v963_v12  ;;  %838 = vmatprep.subr.bf16.mxu0 %v837_v13 }
  0x6f   :  { %966 = vmatprep.subr.bf16.mxu1 %v965_v17 }
  0x71   :  { %840 = vmatpush1.bf16.msra.mxu0 %v839_v23 }
  0x72   :  { %968 = vmatpush1.bf16.msra.mxu1 %v967_v24  ;;  %842 = vmatprep.subr.bf16.mxu0 %v841_v25 }
  0x73   :  { %970 = vmatprep.subr.bf16.mxu1 %v969_v29 }
  0x75   :  { %844 = vmatpush1.bf16.msra.mxu0 %v843_v35 }
  0x76   :  { %972 = vmatpush1.bf16.msra.mxu1 %v971_v36  ;;  %846 = vmatprep.subr.bf16.mxu0 %v845_v37 }
  0x77   :  { %974 = vmatprep.subr.bf16.mxu1 %v973_v41 }
  0x79   :  { %848 = vmatpush1.bf16.msra.mxu0 %v847_v47 }
  0x7a   :  { %976 = vmatpush1.bf16.msra.mxu1 %v975_v48  ;;  %850 = vmatprep.subr.bf16.mxu0 %v849_v49 }
  0x7b   :  { %978 = vmatprep.subr.bf16.mxu1 %v977_v53 }
  0x7d   :  { %852 = vmatpush1.bf16.msra.mxu0 %v851_v59 }
  0x7e   :  { %980 = vmatpush1.bf16.msra.mxu1 %v979_v60  ;;  %854 = vmatprep.subr.bf16.mxu0 %v853_v61 }
  0x7f   :  { %982 = vmatprep.subr.bf16.mxu1 %v981_v0 }
  0x81   :  { %856 = vmatpush1.bf16.msra.mxu0 %v855_v3 }
  0x82   :  { %984 = vmatpush1.bf16.msra.mxu1 %v983_v4 }
  0x84   :  { %289 = vmatmul.mubr.f32.vlgmr.msra.gmra.mrb[0].mxu0 %v13_v5 }
  0x85   :  { %576 = vmatmul.mubr.f32.vlgmr.msra.gmra.mrb[0].mxu1 %v13_v5  ;;  %294 = vmatprep.mubr.f32.mxu0 %v18_v6 }
  0x86   :  { %581 = vmatprep.mubr.f32.mxu1 %v18_v6 }
  0x88   :  { %295 = vmatmul.mubr.f32.gmra.mrb[2].mxu0 %v17_v7 }
  0x89   :  { %582 = vmatmul.mubr.f32.gmra.mrb[2].mxu1 %v17_v7 }
 0x157   :  { %v290_v8 = vpop.f32.mrb[0].mxu0 }
 0x158   :  { %301 = vst [vmem:[%s1826_s2] sm:$0xff] %v290_v8  ;;  %v577_v9 = vpop.f32.mrb[0].mxu1  ;;  %v292_v10 = vpop.f32.mrb[1].mxu0 }
 0x159   :  { %725 = vst [vmem:[%s1826_s2 + $0x20] sm:$0xff] %v577_v9  ;;  %302 = vst [vmem:[%s1826_s2 + $0x8] sm:$0xff] %v292_v10  ;;  %v579_v11 = vpop.f32.mrb[1].mxu1 }
 0x15a   :  { %726 = vst [vmem:[%s1826_s2 + $0x28] sm:$0xff] %v579_v11 }
 0x15b   :  { %v296_v12 = vpop.f32.mrb[2].mxu0 }
 0x15c   :  { %303 = vst [vmem:[%s1826_s2 + $0x10] sm:$0xff] %v296_v12  ;;  %v583_v13 = vpop.f32.mrb[2].mxu1  ;;  %v298_v14 = vpop.f32.mrb[3].mxu0 }
 0x15d   :  { %727 = vst [vmem:[%s1826_s2 + $0x30] sm:$0xff] %v583_v13  ;;  %304 = vst [vmem:[%s1826_s2 + $0x18] sm:$0xff] %v298_v14  ;;  %v585_v15 = vpop.f32.mrb[3].mxu1 }
 0x15e   :  { %728 = vst [vmem:[%s1826_s2 + $0x38] sm:$0xff] %v585_v15 }

// kernel: decoder_forward.22
= control target key start
LH: loop header
LB: loop body
LE: loop exit
PB: predicated region body
PF: predicated region fallthrough
CT: control target
= control target key end

     0   :  { %s379_s12 = smov 0   ;;  %s415_s0 = inlined_call_operand.vmem [shape: f32[2,16,256], index: 0, kind: input, shape index: {}]   ;;  %s416_s1 = inlined_call_operand.vmem [shape: f32[16,1], index: 1, kind: input, shape index: {}]   ;;  %s417_s2 = inlined_call_operand.vmem [shape: f32[16,1], index: 2, kind: input, shape index: {}]   ;;  %s418_s3 = inlined_call_operand.vmem [shape: f32[2,16,256], index: 3, kind: output, shape index: {}]  }
   0x1 LB: > { %s318_s13 = sadd.s32 4294967295, %s356_s12   ;;  %p322_p0 = scmp.ge.s32.totalorder %s356_s12, 1  ;;  %s356_s12 = sphi %s379_s12, %s13_s12  }
   0x2   : > { %p137_p1 = scmp.lt.s32.totalorder %s356_s12, 3 }
   0x4   : > { %p138_p2 = pnand %p322_p0, %p137_p1 }
   0x5   : > { %p161_p3 = scmp.lt.s32.totalorder (!%p138_p2), %s318_s13, 1  ;;  %v223_v7 = vld [vmem:[%s416_s1] sm:$0xff] (!%p138_p2)  ;;  %v358_v8 = vmov (!%p138_p2), 0   ;;  %v224_v9 = vld [vmem:[%s416_s1 + $0x8] sm:$0xff] (!%p138_p2) }
   0x6   : > { %141 = sbr.rel (%p138_p2) target bundleno = 521 (0x209), region = 32  ;;  %346 = vset.pattern.permute.xlu1 (!%p138_p2), %v358_v8  ;;  %347 = vset.pattern.permute.xlu0 (!%p138_p2), %v358_v8  ;;  %v240_v10 = vld [vmem:[%s417_s2 + $0x8] sm:$0xff] (!%p138_p2)  ;;  %v239_v30 = vld [vmem:[%s417_s2] sm:$0xff] (!%p138_p2) }
   0x7   : > { %227 = vperm.xlu1 (!%p138_p2), %346, %v223_v7  }
   0xb   : > { %232 = vperm.xlu1 (!%p138_p2), %346, %v224_v9  }
   0xd   : > { %s420_s13 = smov (!%p161_p3, %s318_s13), 1 }
   0xe   : > { %s329_s14 = sshll.u32 %s420_s13, 5 }
   0xf   : > { %s165_s17 = scalar_lea.vmem %s415_s0, %s329_s14  ;;  %248 = vperm.xlu1 %346, %v240_v10   ;;  %s170_s7 = scalar_lea.vmem %s418_s3, %s329_s14 }
  0x10   : > { %v171_v0 = vld [vmem:[%s165_s17] sm:$0xff]  ;;  %v172_v1 = vld [vmem:[%s165_s17 + $0x8] sm:$0xff]  ;;  %v173_v2 = vld [vmem:[%s165_s17 + $0x10] sm:$0xff] }
  0x11   : > { %v175_v3 = vadd.f32 %v172_v1, %v171_v0  ;;  %v174_v4 = vld [vmem:[%s165_s17 + $0x18] sm:$0xff] }
  0x13   : > { %v176_v5 = vadd.f32 %v175_v3, %v173_v2 }
  0x15   : > { %v177_v6 = vadd.f32 %v176_v5, %v174_v4 }
  0x17   : > { %178 = vadd.xlane.f32.xlu0 %v177_v6 }
  0x86   : > { %v228_v40 = vpop.permute.xlu1 %227 }
  0x8a   : > { %v233_v41 = vpop.permute.xlu1 %232 }
  0x8e   : > { %v249_v52 = vpop.permute.xlu1 %248 }
  0xa4   : > { %v179_v11 = vpop.xlane.xlu0 %178 }
  0xa5   : > { %v180_v12 = vrot.slane %v179_v11, 4 }
  0xa7   : > { %v181_v13 = vadd.f32 %v180_v12, %v179_v11 }
  0xa9   : > { %v182_v14 = vrot.slane %v181_v13, 2 }
  0xab   : > { %v183_v15 = vadd.f32 %v182_v14, %v181_v13 }
  0xad   : > { %v184_v16 = vrot.slane %v183_v15, 1 }
  0xaf   : > { %v185_v17 = vadd.f32 %v184_v16, %v183_v15 }
  0xb1   : > { %331 = vpush %v185_v17 }
  0xe2   : > { %s332_s24 = spop %331 }
  0xe3   : > { %s189_s25 = smul.f32 0.00024414063, %s332_s24 }
  0xe5   : > { %v190_v18 = vstv %s189_s25 }
  0xe6   : > { %v191_v19 = vsub.f32 %v171_v0, %v190_v18  ;;  %v192_v20 = vsub.f32 %v172_v1, %v190_v18  ;;  %v193_v21 = vsub.f32 %v173_v2, %v190_v18  ;;  %v194_v22 = vsub.f32 %v174_v4, %v190_v18 }
  0xe8   : > { %v195_v23 = vmul.f32 %v191_v19, %v191_v19  ;;  %v196_v24 = vmul.f32 %v192_v20, %v192_v20  ;;  %v197_v25 = vmul.f32 %v193_v21, %v193_v21  ;;  %v198_v27 = vmul.f32 %v194_v22, %v194_v22 }
  0xea   : > { %v199_v26 = vadd.f32 %v196_v24, %v195_v23 }
  0xec   : > { %v200_v28 = vadd.f32 %v199_v26, %v197_v25 }
  0xee   : > { %v201_v29 = vadd.f32 %v200_v28, %v198_v27 }
  0xf0   : > { %202 = vadd.xlane.f32.xlu0 %v201_v29 }
 0x106   : > { %243 = vperm.xlu0 %347, %v239_v30  }
 0x17d   : > { %v203_v31 = vpop.xlane.xlu0 %202 }
 0x17e   : > { %v204_v32 = vrot.slane %v203_v31, 4 }
 0x180   : > { %v205_v33 = vadd.f32 %v204_v32, %v203_v31 }
 0x182   : > { %v206_v34 = vrot.slane %v205_v33, 2 }
 0x184   : > { %v207_v35 = vadd.f32 %v206_v34, %v205_v33 }
 0x185   : > { %v244_v47 = vpop.permute.xlu0 %243 }
 0x186   : > { %v208_v36 = vrot.slane %v207_v35, 1 }
 0x188   : > { %v209_v37 = vadd.f32 %v208_v36, %v207_v35 }
 0x18a   : > { %333 = vpush %v209_v37 }
 0x1bb   : > { %s334_s28 = spop %333 }
 0x1bc   : > { %s213_s29 = smul.f32 0.00024414063, %s334_s28 }
 0x1be   : > { %s214_s30 = sadd.f32 1e-05, %s213_s29 }
 0x1c0   : > { %v215_v38 = vstv %s214_s30 }
 0x1c1   : > { %348 = vrsqrt.f32 %v215_v38 }
 0x1cb   : > { %v349_v39 = vpop.eup %348 }
 0x1cc   : > { %335 = vpush %v349_v39 }
 0x1fd   : > { %s336_s4 = spop %335 }
 0x1fe   : > { %v218_v42 = vstv %s336_s4 }
 0x1ff   : > { %v219_v43 = vmul.f32 %v218_v42, %v191_v19  ;;  %v220_v44 = vmul.f32 %v218_v42, %v192_v20  ;;  %v221_v45 = vmul.f32 %v218_v42, %v193_v21  ;;  %v222_v46 = vmul.f32 %v218_v42, %v194_v22 }
 0x201   : > { %v237_v48 = vmul.f32 %v233_v41, %v221_v45  ;;  %v238_v49 = vmul.f32 %v233_v41, %v222_v46  ;;  %v235_v50 = vmul.f32 %v228_v40, %v219_v43  ;;  %v236_v51 = vmul.f32 %v228_v40, %v220_v44 }
 0x203   : > { %v253_v53 = vadd.f32 %v249_v52, %v237_v48  ;;  %v254_v54 = vadd.f32 %v249_v52, %v238_v49  ;;  %v251_v55 = vadd.f32 %v244_v47, %v235_v50  ;;  %v252_v56 = vadd.f32 %v244_v47, %v236_v51 }
 0x205   : > { %v257_v57 = vmax.f32 %v253_v53, 0.0  ;;  %v258_v58 = vmax.f32 %v254_v54, 0.0  ;;  %v255_v59 = vmax.f32 %v251_v55, 0.0  ;;  %v256_v60 = vmax.f32 %v252_v56, 0.0 }
 0x207   : > { %261 = vst [vmem:[%s170_s7 + $0x10] sm:$0xff] %v257_v57  ;;  %262 = vst [vmem:[%s170_s7 + $0x18] sm:$0xff] %v258_v58 }
 0x208   : > { %259 = vst [vmem:[%s170_s7] sm:$0xff] %v255_v59  ;;  %260 = vst [vmem:[%s170_s7 + $0x8] sm:$0xff] %v256_v60 }
 0x209 PF: > { %s13_s12 = sadd.s32 1, %s356_s12  }
 0x20a   : > { %p10_p4 = scmp.ge.s32.totalorder %s13_s12, 4  }
 0x20c   :  { %12 = sbr.rel (!%p10_p4) target bundleno = 1 (0x1), region = 62 }

// kernel: decoder_forward.24
= control target key start
LH: loop header
LB: loop body
LE: loop exit
PB: predicated region body
PF: predicated region fallthrough
CT: control target
= control target key end

     0   :  { %s407_s12 = smov 0   ;;  %s437_s0 = inlined_call_operand.vmem [shape: f32[2,8,1024], index: 0, kind: input, shape index: {}]   ;;  %s438_s1 = inlined_call_operand.vmem [shape: f32[8,1], index: 1, kind: input, shape index: {}]   ;;  %s439_s2 = inlined_call_operand.vmem [shape: f32[8,1], index: 2, kind: input, shape index: {}]   ;;  %s440_s3 = inlined_call_operand.vmem [shape: f32[2,8,1024], index: 3, kind: output, shape index: {}]  }
   0x1 LB: > { %s346_s13 = sadd.s32 4294967295, %s384_s12   ;;  %p350_p0 = scmp.ge.s32.totalorder %s384_s12, 1  ;;  %s384_s12 = sphi %s407_s12, %s13_s12  }
   0x2   : > { %p137_p1 = scmp.lt.s32.totalorder %s384_s12, 3 }
   0x4   : > { %p138_p2 = pnand %p350_p0, %p137_p1 }
   0x5   : > { %p161_p3 = scmp.lt.s32.totalorder (!%p138_p2), %s346_s13, 1  ;;  %v247_v15 = vld [vmem:[%s438_s1] sm:$0xff] (!%p138_p2)  ;;  %v386_v16 = vmov (!%p138_p2), 0  }
   0x6   : > { %141 = sbr.rel (%p138_p2) target bundleno = 539 (0x21b), region = 32  ;;  %374 = vset.pattern.permute.xlu1 (!%p138_p2), %v386_v16  ;;  %375 = vset.pattern.permute.xlu0 (!%p138_p2), %v386_v16  ;;  %v261_v48 = vld [vmem:[%s439_s2] sm:$0xff] (!%p138_p2) }
   0x7   : > { %250 = vperm.xlu1 (!%p138_p2), %374, %v247_v15  }
   0xb   : > { %264 = vperm.xlu1 (!%p138_p2), %374, %v261_v48  }
   0xd   : > { %s442_s13 = smov (!%p161_p3, %s346_s13), 1 }
   0xe   : > { %s357_s14 = sshll.u32 %s442_s13, 6 }
   0xf   : > { %s165_s17 = scalar_lea.vmem %s437_s0, %s357_s14  ;;  %s170_s30 = scalar_lea.vmem %s440_s3, %s357_s14 }
  0x10   : > { %v171_v0 = vld [vmem:[%s165_s17] sm:$0xff]  ;;  %v172_v1 = vld [vmem:[%s165_s17 + $0x8] sm:$0xff]  ;;  %v173_v2 = vld [vmem:[%s165_s17 + $0x10] sm:$0xff] }
  0x11   : > { %v179_v3 = vadd.f32 %v172_v1, %v171_v0  ;;  %v174_v4 = vld [vmem:[%s165_s17 + $0x18] sm:$0xff]  ;;  %v175_v6 = vld [vmem:[%s165_s17 + $0x20] sm:$0xff]  ;;  %v176_v8 = vld [vmem:[%s165_s17 + $0x28] sm:$0xff] }
  0x12   : > { %v177_v10 = vld [vmem:[%s165_s17 + $0x30] sm:$0xff]  ;;  %v178_v12 = vld [vmem:[%s165_s17 + $0x38] sm:$0xff] }
  0x13   : > { %v180_v5 = vadd.f32 %v179_v3, %v173_v2 }
  0x15   : > { %v181_v7 = vadd.f32 %v180_v5, %v174_v4 }
  0x17   : > { %v182_v9 = vadd.f32 %v181_v7, %v175_v6 }
  0x19   : > { %v183_v11 = vadd.f32 %v182_v9, %v176_v8 }
  0x1b   : > { %v184_v13 = vadd.f32 %v183_v11, %v177_v10 }
  0x1d   : > { %v185_v14 = vadd.f32 %v184_v13, %v178_v12 }
  0x1f   : > { %186 = vadd.xlane.f32.xlu0 %v185_v14 }
  0x86   : > { %v251_v58 = vpop.permute.xlu1 %250 }
  0xac   : > { %v187_v17 = vpop.xlane.xlu0 %186 }
  0xad   : > { %v188_v18 = vrot.slane %v187_v17, 4 }
  0xaf   : > { %v189_v19 = vadd.f32 %v188_v18, %v187_v17 }
  0xb1   : > { %v190_v20 = vrot.slane %v189_v19, 2 }
  0xb3   : > { %v191_v21 = vadd.f32 %v190_v20, %v189_v19 }
  0xb5   : > { %v192_v22 = vrot.slane %v191_v21, 1 }
  0xb7   : > { %v193_v23 = vadd.f32 %v192_v22, %v191_v21 }
  0xb9   : > { %359 = vpush %v193_v23 }
  0xea   : > { %s360_s20 = spop %359 }
  0xeb   : > { %s197_s21 = smul.f32 0.00012207031, %s360_s20 }
  0xed   : > { %v198_v24 = vstv %s197_s21 }
  0xee   : > { %v199_v25 = vsub.f32 %v171_v0, %v198_v24  ;;  %v200_v26 = vsub.f32 %v172_v1, %v198_v24  ;;  %v201_v27 = vsub.f32 %v173_v2, %v198_v24  ;;  %v202_v28 = vsub.f32 %v174_v4, %v198_v24 }
  0xef   : > { %v203_v31 = vsub.f32 %v175_v6, %v198_v24  ;;  %v204_v34 = vsub.f32 %v176_v8, %v198_v24  ;;  %v205_v37 = vsub.f32 %v177_v10, %v198_v24  ;;  %v206_v40 = vsub.f32 %v178_v12, %v198_v24  ;;  %v265_v8 = vpop.permute.xlu1 %264 }
  0xf0   : > { %v207_v29 = vmul.f32 %v199_v25, %v199_v25  ;;  %v208_v30 = vmul.f32 %v200_v26, %v200_v26  ;;  %v209_v32 = vmul.f32 %v201_v27, %v201_v27  ;;  %v210_v35 = vmul.f32 %v202_v28, %v202_v28 }
  0xf1   : > { %v211_v38 = vmul.f32 %v203_v31, %v203_v31  ;;  %v212_v41 = vmul.f32 %v204_v34, %v204_v34  ;;  %v213_v43 = vmul.f32 %v205_v37, %v205_v37  ;;  %v214_v45 = vmul.f32 %v206_v40, %v206_v40 }
  0xf2   : > { %v215_v33 = vadd.f32 %v208_v30, %v207_v29 }
  0xf4   : > { %v216_v36 = vadd.f32 %v215_v33, %v209_v32 }
  0xf6   : > { %v217_v39 = vadd.f32 %v216_v36, %v210_v35 }
  0xf8   : > { %v218_v42 = vadd.f32 %v217_v39, %v211_v38 }
  0xfa   : > { %v219_v44 = vadd.f32 %v218_v42, %v212_v41 }
  0xfc   : > { %v220_v46 = vadd.f32 %v219_v44, %v213_v43 }
  0xfe   : > { %v221_v47 = vadd.f32 %v220_v46, %v214_v45 }
 0x100   : > { %222 = vadd.xlane.f32.xlu0 %v221_v47 }
 0x18d   : > { %v223_v49 = vpop.xlane.xlu0 %222 }
 0x18e   : > { %v224_v50 = vrot.slane %v223_v49, 4 }
 0x190   : > { %v225_v51 = vadd.f32 %v224_v50, %v223_v49 }
 0x192   : > { %v226_v52 = vrot.slane %v225_v51, 2 }
 0x194   : > { %v227_v53 = vadd.f32 %v226_v52, %v225_v51 }
 0x196   : > { %v228_v54 = vrot.slane %v227_v53, 1 }
 0x198   : > { %v229_v55 = vadd.f32 %v228_v54, %v227_v53 }
 0x19a   : > { %361 = vpush %v229_v55 }
 0x1cb   : > { %s362_s24 = spop %361 }
 0x1cc   : > { %s233_s25 = smul.f32 0.00012207031, %s362_s24 }
 0x1ce   : > { %s234_s26 = sadd.f32 1e-05, %s233_s25 }
 0x1d0   : > { %v235_v56 = vstv %s234_s26 }
 0x1d1   : > { %376 = vrsqrt.f32 %v235_v56 }
 0x1db   : > { %v377_v57 = vpop.eup %376 }
 0x1dc   : > { %363 = vpush %v377_v57 }
 0x20d   : > { %s364_s27 = spop %363 }
 0x20e   : > { %v238_v59 = vstv %s364_s27 }
 0x20f   : > { %v239_v60 = vmul.f32 %v238_v59, %v199_v25  ;;  %v240_v61 = vmul.f32 %v238_v59, %v200_v26  ;;  %v241_v62 = vmul.f32 %v238_v59, %v201_v27  ;;  %v242_v63 = vmul.f32 %v238_v59, %v202_v28 }
 0x210   : > { %v243_v0 = vmul.f32 %v238_v59, %v203_v31  ;;  %v244_v1 = vmul.f32 %v238_v59, %v204_v34  ;;  %v245_v2 = vmul.f32 %v238_v59, %v205_v37  ;;  %v246_v3 = vmul.f32 %v238_v59, %v206_v40 }
 0x211   : > { %v253_v4 = vmul.f32 %v251_v58, %v239_v60  ;;  %v254_v5 = vmul.f32 %v251_v58, %v240_v61  ;;  %v255_v6 = vmul.f32 %v251_v58, %v241_v62  ;;  %v256_v7 = vmul.f32 %v251_v58, %v242_v63 }
 0x212   : > { %v257_v9 = vmul.f32 %v251_v58, %v243_v0  ;;  %v258_v10 = vmul.f32 %v251_v58, %v244_v1  ;;  %v259_v11 = vmul.f32 %v251_v58, %v245_v2  ;;  %v260_v12 = vmul.f32 %v251_v58, %v246_v3 }
 0x213   : > { %v267_v13 = vadd.f32 %v265_v8, %v253_v4  ;;  %v268_v14 = vadd.f32 %v265_v8, %v254_v5  ;;  %v269_v15 = vadd.f32 %v265_v8, %v255_v6  ;;  %v270_v16 = vadd.f32 %v265_v8, %v256_v7 }
 0x214   : > { %v271_v17 = vadd.f32 %v265_v8, %v257_v9  ;;  %v272_v18 = vadd.f32 %v265_v8, %v258_v10  ;;  %v273_v19 = vadd.f32 %v265_v8, %v259_v11  ;;  %v274_v20 = vadd.f32 %v265_v8, %v260_v12 }
 0x215   : > { %v275_v21 = vmax.f32 %v267_v13, 0.0  ;;  %v276_v22 = vmax.f32 %v268_v14, 0.0  ;;  %v277_v23 = vmax.f32 %v269_v15, 0.0  ;;  %v278_v24 = vmax.f32 %v270_v16, 0.0 }
 0x216   : > { %v279_v25 = vmax.f32 %v271_v17, 0.0  ;;  %v280_v26 = vmax.f32 %v272_v18, 0.0  ;;  %v281_v27 = vmax.f32 %v273_v19, 0.0  ;;  %v282_v28 = vmax.f32 %v274_v20, 0.0 }
 0x217   : > { %283 = vst [vmem:[%s170_s30] sm:$0xff] %v275_v21  ;;  %284 = vst [vmem:[%s170_s30 + $0x8] sm:$0xff] %v276_v22 }
 0x218   : > { %285 = vst [vmem:[%s170_s30 + $0x10] sm:$0xff] %v277_v23  ;;  %286 = vst [vmem:[%s170_s30 + $0x18] sm:$0xff] %v278_v24 }
 0x219   : > { %287 = vst [vmem:[%s170_s30 + $0x20] sm:$0xff] %v279_v25  ;;  %288 = vst [vmem:[%s170_s30 + $0x28] sm:$0xff] %v280_v26 }
 0x21a   : > { %289 = vst [vmem:[%s170_s30 + $0x30] sm:$0xff] %v281_v27  ;;  %290 = vst [vmem:[%s170_s30 + $0x38] sm:$0xff] %v282_v28 }
 0x21b PF: > { %s13_s12 = sadd.s32 1, %s384_s12  }
 0x21c   : > { %p10_p4 = scmp.ge.s32.totalorder %s13_s12, 4  }
 0x21e   :  { %12 = sbr.rel (!%p10_p4) target bundleno = 1 (0x1), region = 62 }

// kernel: decoder_forward.23
= control target key start
LH: loop header
LB: loop body
LE: loop exit
PB: predicated region body
PF: predicated region fallthrough
CT: control target
= control target key end

     0   :  { %s3524_s0 = inlined_call_operand.vmem [shape: f32[2,256,1024], index: 0, kind: input, shape index: {}]   ;;  %s3525_s1 = inlined_call_operand.vmem [shape: f32[8,256], index: 1, kind: input, shape index: {}]   ;;  %s3526_s2 = inlined_call_operand.vmem [shape: f32[2,8,1024], index: 2, kind: output, shape index: {}]  }
   0x1   :  { %v14_v0 = vld [vmem:[%s3524_s0 + $0x8] sm:$0xff]  ;;  %v16_v2 = vld [vmem:[%s3524_s0 + $0x18] sm:$0xff]  ;;  %v13_v5 = vld [vmem:[%s3524_s0] sm:$0xff] }
   0x2   :  { %v22_v1 = vld [vmem:[%s3524_s0 + $0x48] sm:$0xff]  ;;  %v24_v4 = vld [vmem:[%s3524_s0 + $0x58] sm:$0xff]  ;;  %v21_v6 = vld [vmem:[%s3524_s0 + $0x40] sm:$0xff] }
   0x3   :  { %v1379_v3 = vpack.c.bf16 %v22_v1, %v14_v0  ;;  %v1443_v7 = vpack.c.bf16 %v24_v4, %v16_v2  ;;  %v1381_v8 = vpack.c.bf16 %v21_v6, %v13_v5  ;;  %v15_v9 = vld [vmem:[%s3524_s0 + $0x10] sm:$0xff]  ;;  %v30_v11 = vld [vmem:[%s3524_s0 + $0x88] sm:$0xff]  ;;  %v32_v14 = vld [vmem:[%s3524_s0 + $0x98] sm:$0xff] }
   0x4   :  { %v23_v10 = vld [vmem:[%s3524_s0 + $0x50] sm:$0xff]  ;;  %v38_v13 = vld [vmem:[%s3524_s0 + $0xc8] sm:$0xff]  ;;  %v40_v15 = vld [vmem:[%s3524_s0 + $0xd8] sm:$0xff] }
   0x5   :  { %1380 = vmatprep.subr.bf16.mxu0 %v1379_v3  ;;  %v1445_v12 = vpack.c.bf16 %v23_v10, %v15_v9  ;;  %1444 = vmatprep.subr.bf16.mxu1 %v1443_v7  ;;  %v1383_v16 = vpack.c.bf16 %v38_v13, %v30_v11  ;;  %v1447_v17 = vpack.c.bf16 %v40_v15, %v32_v14  ;;  %v29_v18 = vld [vmem:[%s3524_s0 + $0x80] sm:$0xff]  ;;  %v31_v20 = vld [vmem:[%s3524_s0 + $0x90] sm:$0xff]  ;;  %v46_v23 = vld [vmem:[%s3524_s0 + $0x108] sm:$0xff] }
   0x6   :  { %1382 = vmatpush1.bf16.msra.mxu0 %v1381_v8  ;;  %v37_v19 = vld [vmem:[%s3524_s0 + $0xc0] sm:$0xff]  ;;  %v39_v22 = vld [vmem:[%s3524_s0 + $0xd0] sm:$0xff]  ;;  %v54_v24 = vld [vmem:[%s3524_s0 + $0x148] sm:$0xff] }
   0x7   :  { %1446 = vmatpush1.bf16.msra.mxu1 %v1445_v12  ;;  %v1385_v21 = vpack.c.bf16 %v37_v19, %v29_v18  ;;  %1384 = vmatprep.subr.bf16.mxu0 %v1383_v16  ;;  %v1449_v25 = vpack.c.bf16 %v39_v22, %v31_v20  ;;  %v1387_v26 = vpack.c.bf16 %v54_v24, %v46_v23  ;;  %v48_v27 = vld [vmem:[%s3524_s0 + $0x118] sm:$0xff]  ;;  %v45_v29 = vld [vmem:[%s3524_s0 + $0x100] sm:$0xff]  ;;  %v47_v32 = vld [vmem:[%s3524_s0 + $0x110] sm:$0xff] }
   0x8   :  { %1448 = vmatprep.subr.bf16.mxu1 %v1447_v17  ;;  %v56_v28 = vld [vmem:[%s3524_s0 + $0x158] sm:$0xff]  ;;  %v53_v31 = vld [vmem:[%s3524_s0 + $0x140] sm:$0xff]  ;;  %v55_v33 = vld [vmem:[%s3524_s0 + $0x150] sm:$0xff] }
   0x9   :  { %v1451_v30 = vpack.c.bf16 %v56_v28, %v48_v27  ;;  %v1389_v34 = vpack.c.bf16 %v53_v31, %v45_v29  ;;  %v62_v35 = vld [vmem:[%s3524_s0 + $0x188] sm:$0xff]  ;;  %v64_v37 = vld [vmem:[%s3524_s0 + $0x198] sm:$0xff]  ;;  %v1453_v38 = vpack.c.bf16 %v55_v33, %v47_v32  ;;  %v61_v41 = vld [vmem:[%s3524_s0 + $0x180] sm:$0xff] }
   0xa   :  { %1386 = vmatpush1.bf16.msra.mxu0 %v1385_v21  ;;  %v70_v36 = vld [vmem:[%s3524_s0 + $0x1c8] sm:$0xff]  ;;  %v72_v40 = vld [vmem:[%s3524_s0 + $0x1d8] sm:$0xff]  ;;  %v69_v42 = vld [vmem:[%s3524_s0 + $0x1c0] sm:$0xff] }
   0xb   :  { %1450 = vmatpush1.bf16.msra.mxu1 %v1449_v25  ;;  %1388 = vmatprep.subr.bf16.mxu0 %v1387_v26  ;;  %v1391_v39 = vpack.c.bf16 %v70_v36, %v62_v35  ;;  %v1455_v43 = vpack.c.bf16 %v72_v40, %v64_v37  ;;  %v63_v44 = vld [vmem:[%s3524_s0 + $0x190] sm:$0xff]  ;;  %v78_v46 = vld [vmem:[%s3524_s0 + $0x208] sm:$0xff]  ;;  %v80_v48 = vld [vmem:[%s3524_s0 + $0x218] sm:$0xff]  ;;  %v1393_v50 = vpack.c.bf16 %v69_v42, %v61_v41 }
   0xc   :  { %1452 = vmatprep.subr.bf16.mxu1 %v1451_v30  ;;  %v71_v45 = vld [vmem:[%s3524_s0 + $0x1d0] sm:$0xff]  ;;  %v86_v47 = vld [vmem:[%s3524_s0 + $0x248] sm:$0xff]  ;;  %v88_v49 = vld [vmem:[%s3524_s0 + $0x258] sm:$0xff] }
   0xd   :  { %v1457_v51 = vpack.c.bf16 %v71_v45, %v63_v44  ;;  %v1395_v52 = vpack.c.bf16 %v86_v47, %v78_v46  ;;  %v77_v53 = vld [vmem:[%s3524_s0 + $0x200] sm:$0xff]  ;;  %v79_v55 = vld [vmem:[%s3524_s0 + $0x210] sm:$0xff]  ;;  %v1459_v56 = vpack.c.bf16 %v88_v49, %v80_v48  ;;  %v94_v58 = vld [vmem:[%s3524_s0 + $0x288] sm:$0xff] }
   0xe   :  { %1390 = vmatpush1.bf16.msra.mxu0 %v1389_v34  ;;  %v85_v54 = vld [vmem:[%s3524_s0 + $0x240] sm:$0xff]  ;;  %v87_v57 = vld [vmem:[%s3524_s0 + $0x250] sm:$0xff]  ;;  %v102_v59 = vld [vmem:[%s3524_s0 + $0x2c8] sm:$0xff] }
   0xf   :  { %1454 = vmatpush1.bf16.msra.mxu1 %v1453_v38  ;;  %1392 = vmatprep.subr.bf16.mxu0 %v1391_v39  ;;  %v96_v60 = vld [vmem:[%s3524_s0 + $0x298] sm:$0xff]  ;;  %v1397_v62 = vpack.c.bf16 %v85_v54, %v77_v53  ;;  %v1461_v63 = vpack.c.bf16 %v87_v57, %v79_v55  ;;  %v1399_v0 = vpack.c.bf16 %v102_v59, %v94_v58  ;;  %v93_v1 = vld [vmem:[%s3524_s0 + $0x280] sm:$0xff]  ;;  %v95_v3 = vld [vmem:[%s3524_s0 + $0x290] sm:$0xff] }
  0x10   :  { %1456 = vmatprep.subr.bf16.mxu1 %v1455_v43  ;;  %v104_v61 = vld [vmem:[%s3524_s0 + $0x2d8] sm:$0xff]  ;;  %v101_v2 = vld [vmem:[%s3524_s0 + $0x2c0] sm:$0xff]  ;;  %v103_v5 = vld [vmem:[%s3524_s0 + $0x2d0] sm:$0xff] }
  0x11   :  { %v1463_v4 = vpack.c.bf16 %v104_v61, %v96_v60  ;;  %v110_v6 = vld [vmem:[%s3524_s0 + $0x308] sm:$0xff]  ;;  %v112_v8 = vld [vmem:[%s3524_s0 + $0x318] sm:$0xff]  ;;  %v1401_v10 = vpack.c.bf16 %v101_v2, %v93_v1  ;;  %v1465_v11 = vpack.c.bf16 %v103_v5, %v95_v3  ;;  %v109_v13 = vld [vmem:[%s3524_s0 + $0x300] sm:$0xff] }
  0x12   :  { %1394 = vmatpush1.bf16.msra.mxu0 %v1393_v50  ;;  %v118_v7 = vld [vmem:[%s3524_s0 + $0x348] sm:$0xff]  ;;  %v120_v9 = vld [vmem:[%s3524_s0 + $0x358] sm:$0xff]  ;;  %v117_v14 = vld [vmem:[%s3524_s0 + $0x340] sm:$0xff] }
  0x13   :  { %1458 = vmatpush1.bf16.msra.mxu1 %v1457_v51  ;;  %1396 = vmatprep.subr.bf16.mxu0 %v1395_v52  ;;  %v1403_v12 = vpack.c.bf16 %v118_v7, %v110_v6  ;;  %v111_v15 = vld [vmem:[%s3524_s0 + $0x310] sm:$0xff]  ;;  %v1467_v16 = vpack.c.bf16 %v120_v9, %v112_v8  ;;  %v126_v18 = vld [vmem:[%s3524_s0 + $0x388] sm:$0xff]  ;;  %v128_v20 = vld [vmem:[%s3524_s0 + $0x398] sm:$0xff]  ;;  %v1405_v22 = vpack.c.bf16 %v117_v14, %v109_v13 }
  0x14   :  { %1460 = vmatprep.subr.bf16.mxu1 %v1459_v56  ;;  %v119_v17 = vld [vmem:[%s3524_s0 + $0x350] sm:$0xff]  ;;  %v134_v19 = vld [vmem:[%s3524_s0 + $0x3c8] sm:$0xff]  ;;  %v136_v21 = vld [vmem:[%s3524_s0 + $0x3d8] sm:$0xff] }
  0x15   :  { %v1469_v23 = vpack.c.bf16 %v119_v17, %v111_v15  ;;  %v1407_v24 = vpack.c.bf16 %v134_v19, %v126_v18  ;;  %v125_v25 = vld [vmem:[%s3524_s0 + $0x380] sm:$0xff]  ;;  %v127_v27 = vld [vmem:[%s3524_s0 + $0x390] sm:$0xff]  ;;  %v1471_v28 = vpack.c.bf16 %v136_v21, %v128_v20  ;;  %v142_v30 = vld [vmem:[%s3524_s0 + $0x408] sm:$0xff] }
  0x16   :  { %1398 = vmatpush1.bf16.msra.mxu0 %v1397_v62  ;;  %v133_v26 = vld [vmem:[%s3524_s0 + $0x3c0] sm:$0xff]  ;;  %v135_v29 = vld [vmem:[%s3524_s0 + $0x3d0] sm:$0xff]  ;;  %v150_v31 = vld [vmem:[%s3524_s0 + $0x448] sm:$0xff] }
  0x17   :  { %1462 = vmatpush1.bf16.msra.mxu1 %v1461_v63  ;;  %1400 = vmatprep.subr.bf16.mxu0 %v1399_v0  ;;  %v144_v32 = vld [vmem:[%s3524_s0 + $0x418] sm:$0xff]  ;;  %v1409_v34 = vpack.c.bf16 %v133_v26, %v125_v25  ;;  %v1473_v35 = vpack.c.bf16 %v135_v29, %v127_v27  ;;  %v1411_v36 = vpack.c.bf16 %v150_v31, %v142_v30  ;;  %v141_v37 = vld [vmem:[%s3524_s0 + $0x400] sm:$0xff]  ;;  %v143_v39 = vld [vmem:[%s3524_s0 + $0x410] sm:$0xff] }
  0x18   :  { %1464 = vmatprep.subr.bf16.mxu1 %v1463_v4  ;;  %v152_v33 = vld [vmem:[%s3524_s0 + $0x458] sm:$0xff]  ;;  %v149_v38 = vld [vmem:[%s3524_s0 + $0x440] sm:$0xff]  ;;  %v151_v41 = vld [vmem:[%s3524_s0 + $0x450] sm:$0xff] }
  0x19   :  { %v1475_v40 = vpack.c.bf16 %v152_v33, %v144_v32  ;;  %v158_v42 = vld [vmem:[%s3524_s0 + $0x488] sm:$0xff]  ;;  %v160_v44 = vld [vmem:[%s3524_s0 + $0x498] sm:$0xff]  ;;  %v1413_v46 = vpack.c.bf16 %v149_v38, %v141_v37  ;;  %v1477_v47 = vpack.c.bf16 %v151_v41, %v143_v39  ;;  %v157_v49 = vld [vmem:[%s3524_s0 + $0x480] sm:$0xff] }
  0x1a   :  { %1402 = vmatpush1.bf16.msra.mxu0 %v1401_v10  ;;  %v166_v43 = vld [vmem:[%s3524_s0 + $0x4c8] sm:$0xff]  ;;  %v168_v45 = vld [vmem:[%s3524_s0 + $0x4d8] sm:$0xff]  ;;  %v165_v50 = vld [vmem:[%s3524_s0 + $0x4c0] sm:$0xff] }
  0x1b   :  { %1466 = vmatpush1.bf16.msra.mxu1 %v1465_v11  ;;  %1404 = vmatprep.subr.bf16.mxu0 %v1403_v12  ;;  %v1415_v48 = vpack.c.bf16 %v166_v43, %v158_v42  ;;  %v159_v51 = vld [vmem:[%s3524_s0 + $0x490] sm:$0xff]  ;;  %v1479_v52 = vpack.c.bf16 %v168_v45, %v160_v44  ;;  %v174_v54 = vld [vmem:[%s3524_s0 + $0x508] sm:$0xff]  ;;  %v176_v56 = vld [vmem:[%s3524_s0 + $0x518] sm:$0xff]  ;;  %v1417_v58 = vpack.c.bf16 %v165_v50, %v157_v49 }
  0x1c   :  { %1468 = vmatprep.subr.bf16.mxu1 %v1467_v16  ;;  %v167_v53 = vld [vmem:[%s3524_s0 + $0x4d0] sm:$0xff]  ;;  %v182_v55 = vld [vmem:[%s3524_s0 + $0x548] sm:$0xff]  ;;  %v184_v57 = vld [vmem:[%s3524_s0 + $0x558] sm:$0xff] }
  0x1d   :  { %v1481_v59 = vpack.c.bf16 %v167_v53, %v159_v51  ;;  %v1419_v60 = vpack.c.bf16 %v182_v55, %v174_v54  ;;  %v173_v61 = vld [vmem:[%s3524_s0 + $0x500] sm:$0xff]  ;;  %v175_v63 = vld [vmem:[%s3524_s0 + $0x510] sm:$0xff]  ;;  %v1483_v0 = vpack.c.bf16 %v184_v57, %v176_v56  ;;  %v190_v2 = vld [vmem:[%s3524_s0 + $0x588] sm:$0xff] }
  0x1e   :  { %1406 = vmatpush1.bf16.msra.mxu0 %v1405_v22  ;;  %v181_v62 = vld [vmem:[%s3524_s0 + $0x540] sm:$0xff]  ;;  %v183_v1 = vld [vmem:[%s3524_s0 + $0x550] sm:$0xff]  ;;  %v198_v3 = vld [vmem:[%s3524_s0 + $0x5c8] sm:$0xff] }
  0x1f   :  { %1470 = vmatpush1.bf16.msra.mxu1 %v1469_v23  ;;  %1408 = vmatprep.subr.bf16.mxu0 %v1407_v24  ;;  %v192_v4 = vld [vmem:[%s3524_s0 + $0x598] sm:$0xff]  ;;  %v1421_v6 = vpack.c.bf16 %v181_v62, %v173_v61  ;;  %v189_v7 = vld [vmem:[%s3524_s0 + $0x580] sm:$0xff]  ;;  %v1485_v8 = vpack.c.bf16 %v183_v1, %v175_v63  ;;  %v1423_v9 = vpack.c.bf16 %v198_v3, %v190_v2  ;;  %v191_v11 = vld [vmem:[%s3524_s0 + $0x590] sm:$0xff] }
  0x20   :  { %1472 = vmatprep.subr.bf16.mxu1 %v1471_v28  ;;  %v200_v5 = vld [vmem:[%s3524_s0 + $0x5d8] sm:$0xff]  ;;  %v197_v10 = vld [vmem:[%s3524_s0 + $0x5c0] sm:$0xff]  ;;  %v199_v12 = vld [vmem:[%s3524_s0 + $0x5d0] sm:$0xff] }
  0x21   :  { %v1487_v13 = vpack.c.bf16 %v200_v5, %v192_v4  ;;  %v206_v14 = vld [vmem:[%s3524_s0 + $0x608] sm:$0xff]  ;;  %v208_v17 = vld [vmem:[%s3524_s0 + $0x618] sm:$0xff]  ;;  %v1425_v19 = vpack.c.bf16 %v197_v10, %v189_v7  ;;  %v1489_v20 = vpack.c.bf16 %v199_v12, %v191_v11  ;;  %v205_v22 = vld [vmem:[%s3524_s0 + $0x600] sm:$0xff] }
  0x22   :  { %1410 = vmatpush1.bf16.msra.mxu0 %v1409_v34  ;;  %v214_v15 = vld [vmem:[%s3524_s0 + $0x648] sm:$0xff]  ;;  %v216_v18 = vld [vmem:[%s3524_s0 + $0x658] sm:$0xff]  ;;  %v213_v23 = vld [vmem:[%s3524_s0 + $0x640] sm:$0xff] }
  0x23   :  { %1474 = vmatpush1.bf16.msra.mxu1 %v1473_v35  ;;  %1412 = vmatprep.subr.bf16.mxu0 %v1411_v36  ;;  %v2205_v16 = vld [vmem:[%s3525_s1 + $0x8] sm:$0xff]  ;;  %v1427_v21 = vpack.c.bf16 %v214_v15, %v206_v14  ;;  %v207_v24 = vld [vmem:[%s3524_s0 + $0x610] sm:$0xff]  ;;  %v1491_v25 = vpack.c.bf16 %v216_v18, %v208_v17  ;;  %v224_v29 = vld [vmem:[%s3524_s0 + $0x698] sm:$0xff]  ;;  %v1429_v31 = vpack.c.bf16 %v213_v23, %v205_v22 }
  0x24   :  { %1476 = vmatprep.subr.bf16.mxu1 %v1475_v40  ;;  %333 = vmatprep.mubr.f32.mxu0 %v2205_v16  ;;  %v215_v26 = vld [vmem:[%s3524_s0 + $0x650] sm:$0xff]  ;;  %v222_v27 = vld [vmem:[%s3524_s0 + $0x688] sm:$0xff]  ;;  %v232_v30 = vld [vmem:[%s3524_s0 + $0x6d8] sm:$0xff] }
  0x25   :  { %404 = vmatprep.mubr.f32.mxu1 %v2205_v16  ;;  %v230_v28 = vld [vmem:[%s3524_s0 + $0x6c8] sm:$0xff]  ;;  %v1493_v32 = vpack.c.bf16 %v215_v26, %v207_v24  ;;  %v221_v34 = vld [vmem:[%s3524_s0 + $0x680] sm:$0xff]  ;;  %v223_v36 = vld [vmem:[%s3524_s0 + $0x690] sm:$0xff]  ;;  %v1495_v37 = vpack.c.bf16 %v232_v30, %v224_v29 }
  0x26   :  { %1414 = vmatpush1.bf16.msra.mxu0 %v1413_v46  ;;  %v1431_v33 = vpack.c.bf16 %v230_v28, %v222_v27  ;;  %v229_v35 = vld [vmem:[%s3524_s0 + $0x6c0] sm:$0xff]  ;;  %v231_v38 = vld [vmem:[%s3524_s0 + $0x6d0] sm:$0xff]  ;;  %v238_v39 = vld [vmem:[%s3524_s0 + $0x708] sm:$0xff] }
  0x27   :  { %1478 = vmatpush1.bf16.msra.mxu1 %v1477_v47  ;;  %1416 = vmatprep.subr.bf16.mxu0 %v1415_v48  ;;  %v246_v40 = vld [vmem:[%s3524_s0 + $0x748] sm:$0xff]  ;;  %v240_v41 = vld [vmem:[%s3524_s0 + $0x718] sm:$0xff]  ;;  %v1433_v43 = vpack.c.bf16 %v229_v35, %v221_v34  ;;  %v1497_v44 = vpack.c.bf16 %v231_v38, %v223_v36  ;;  %v237_v46 = vld [vmem:[%s3524_s0 + $0x700] sm:$0xff] }
  0x28   :  { %1480 = vmatprep.subr.bf16.mxu1 %v1479_v52  ;;  %v248_v42 = vld [vmem:[%s3524_s0 + $0x758] sm:$0xff]  ;;  %v1435_v45 = vpack.c.bf16 %v246_v40, %v238_v39  ;;  %v245_v47 = vld [vmem:[%s3524_s0 + $0x740] sm:$0xff]  ;;  %v239_v48 = vld [vmem:[%s3524_s0 + $0x710] sm:$0xff] }
  0x29   :  { %v1499_v49 = vpack.c.bf16 %v248_v42, %v240_v41  ;;  %v247_v50 = vld [vmem:[%s3524_s0 + $0x750] sm:$0xff]  ;;  %v254_v51 = vld [vmem:[%s3524_s0 + $0x788] sm:$0xff]  ;;  %v256_v53 = vld [vmem:[%s3524_s0 + $0x798] sm:$0xff]  ;;  %v1437_v55 = vpack.c.bf16 %v245_v47, %v237_v46 }
  0x2a   :  { %1418 = vmatpush1.bf16.msra.mxu0 %v1417_v58  ;;  %v262_v52 = vld [vmem:[%s3524_s0 + $0x7c8] sm:$0xff]  ;;  %v264_v54 = vld [vmem:[%s3524_s0 + $0x7d8] sm:$0xff]  ;;  %v1501_v56 = vpack.c.bf16 %v247_v50, %v239_v48  ;;  %v253_v58 = vld [vmem:[%s3524_s0 + $0x780] sm:$0xff] }
  0x2b   :  { %1482 = vmatpush1.bf16.msra.mxu1 %v1481_v59  ;;  %1420 = vmatprep.subr.bf16.mxu0 %v1419_v60  ;;  %v1439_v57 = vpack.c.bf16 %v262_v52, %v254_v51  ;;  %v261_v59 = vld [vmem:[%s3524_s0 + $0x7c0] sm:$0xff]  ;;  %v255_v60 = vld [vmem:[%s3524_s0 + $0x790] sm:$0xff]  ;;  %v1503_v61 = vpack.c.bf16 %v264_v54, %v256_v53  ;;  %v18_v63 = vld [vmem:[%s3524_s0 + $0x28] sm:$0xff] }
  0x2c   :  { %1484 = vmatprep.subr.bf16.mxu1 %v1483_v0  ;;  %v263_v62 = vld [vmem:[%s3524_s0 + $0x7d0] sm:$0xff]  ;;  %v26_v0 = vld [vmem:[%s3524_s0 + $0x68] sm:$0xff]  ;;  %v20_v1 = vld [vmem:[%s3524_s0 + $0x38] sm:$0xff]  ;;  %v1441_v3 = vpack.c.bf16 %v261_v59, %v253_v58 }
  0x2d   :  { %v28_v2 = vld [vmem:[%s3524_s0 + $0x78] sm:$0xff]  ;;  %v1505_v4 = vpack.c.bf16 %v263_v62, %v255_v60  ;;  %v1507_v5 = vpack.c.bf16 %v26_v0, %v18_v63  ;;  %v25_v7 = vld [vmem:[%s3524_s0 + $0x60] sm:$0xff]  ;;  %v27_v10 = vld [vmem:[%s3524_s0 + $0x70] sm:$0xff] }
  0x2e   :  { %1422 = vmatpush1.bf16.msra.mxu0 %v1421_v6  ;;  %v17_v6 = vld [vmem:[%s3524_s0 + $0x20] sm:$0xff]  ;;  %v34_v11 = vld [vmem:[%s3524_s0 + $0xa8] sm:$0xff]  ;;  %v44_v14 = vld [vmem:[%s3524_s0 + $0xf8] sm:$0xff] }
  0x2f   :  { %1486 = vmatpush1.bf16.msra.mxu1 %v1485_v8  ;;  %1424 = vmatprep.subr.bf16.mxu0 %v1423_v9  ;;  %v19_v8 = vld [vmem:[%s3524_s0 + $0x30] sm:$0xff]  ;;  %v1571_v9 = vpack.c.bf16 %v28_v2, %v20_v1  ;;  %v42_v12 = vld [vmem:[%s3524_s0 + $0xe8] sm:$0xff]  ;;  %v2338_v15 = vld [vmem:[%s3525_s1] sm:$0xff]  ;;  %v1509_v17 = vpack.c.bf16 %v25_v7, %v17_v6 }
  0x30   :  { %1488 = vmatprep.subr.bf16.mxu1 %v1487_v13  ;;  %v36_v13 = vld [vmem:[%s3524_s0 + $0xb8] sm:$0xff]  ;;  %v1573_v18 = vpack.c.bf16 %v27_v10, %v19_v8  ;;  %v35_v22 = vld [vmem:[%s3524_s0 + $0xb0] sm:$0xff]  ;;  %v58_v26 = vld [vmem:[%s3524_s0 + $0x168] sm:$0xff] }
  0x31   :  { %v1575_v23 = vpack.c.bf16 %v44_v14, %v36_v13  ;;  %v43_v24 = vld [vmem:[%s3524_s0 + $0xf0] sm:$0xff]  ;;  %v52_v27 = vld [vmem:[%s3524_s0 + $0x138] sm:$0xff]  ;;  %v74_v38 = vld [vmem:[%s3524_s0 + $0x1e8] sm:$0xff] }
  0x32   :  { %1426 = vmatpush1.bf16.msra.mxu0 %v1425_v19  ;;  %v1511_v19 = vpack.c.bf16 %v42_v12, %v34_v11  ;;  %v60_v28 = vld [vmem:[%s3524_s0 + $0x178] sm:$0xff]  ;;  %v1577_v30 = vpack.c.bf16 %v43_v24, %v35_v22  ;;  %v51_v34 = vld [vmem:[%s3524_s0 + $0x130] sm:$0xff]  ;;  %v90_v50 = vld [vmem:[%s3524_s0 + $0x268] sm:$0xff] }
  0x33   :  { %1490 = vmatpush1.bf16.msra.mxu1 %v1489_v20  ;;  %1428 = vmatprep.subr.bf16.mxu0 %v1427_v21  ;;  %v33_v20 = vld [vmem:[%s3524_s0 + $0xa0] sm:$0xff]  ;;  %v1579_v35 = vpack.c.bf16 %v60_v28, %v52_v27  ;;  %v59_v36 = vld [vmem:[%s3524_s0 + $0x170] sm:$0xff]  ;;  %v68_v39 = vld [vmem:[%s3524_s0 + $0x1b8] sm:$0xff] }
  0x34   :  { %1492 = vmatprep.subr.bf16.mxu1 %v1491_v25  ;;  %v41_v21 = vld [vmem:[%s3524_s0 + $0xe0] sm:$0xff]  ;;  %v50_v25 = vld [vmem:[%s3524_s0 + $0x128] sm:$0xff]  ;;  %v76_v40 = vld [vmem:[%s3524_s0 + $0x1f8] sm:$0xff]  ;;  %v1581_v42 = vpack.c.bf16 %v59_v36, %v51_v34 }
  0x35   :  { %v1513_v29 = vpack.c.bf16 %v41_v21, %v33_v20  ;;  %v67_v46 = vld [vmem:[%s3524_s0 + $0x1b0] sm:$0xff]  ;;  %v1583_v47 = vpack.c.bf16 %v76_v40, %v68_v39  ;;  %v84_v51 = vld [vmem:[%s3524_s0 + $0x238] sm:$0xff]  ;;  %v106_v62 = vld [vmem:[%s3524_s0 + $0x2e8] sm:$0xff] }
  0x36   :  { %1430 = vmatpush1.bf16.msra.mxu0 %v1429_v31  ;;  %v1515_v31 = vpack.c.bf16 %v58_v26, %v50_v25  ;;  %v75_v48 = vld [vmem:[%s3524_s0 + $0x1f0] sm:$0xff]  ;;  %v92_v52 = vld [vmem:[%s3524_s0 + $0x278] sm:$0xff]  ;;  %v122_v10 = vld [vmem:[%s3524_s0 + $0x368] sm:$0xff] }
  0x37   :  { %1494 = vmatpush1.bf16.msra.mxu1 %v1493_v32  ;;  %1432 = vmatprep.subr.bf16.mxu0 %v1431_v33  ;;  %v49_v32 = vld [vmem:[%s3524_s0 + $0x120] sm:$0xff]  ;;  %v1585_v54 = vpack.c.bf16 %v75_v48, %v67_v46  ;;  %v83_v58 = vld [vmem:[%s3524_s0 + $0x230] sm:$0xff]  ;;  %v1587_v59 = vpack.c.bf16 %v92_v52, %v84_v51  ;;  %v100_v63 = vld [vmem:[%s3524_s0 + $0x2b8] sm:$0xff] }
  0x38   :  { %1496 = vmatprep.subr.bf16.mxu1 %v1495_v37  ;;  %v57_v33 = vld [vmem:[%s3524_s0 + $0x160] sm:$0xff]  ;;  %v66_v37 = vld [vmem:[%s3524_s0 + $0x1a8] sm:$0xff]  ;;  %v91_v60 = vld [vmem:[%s3524_s0 + $0x270] sm:$0xff] }
  0x39   :  { %v1517_v41 = vpack.c.bf16 %v57_v33, %v49_v32  ;;  %v108_v0 = vld [vmem:[%s3524_s0 + $0x2f8] sm:$0xff]  ;;  %v1589_v2 = vpack.c.bf16 %v91_v60, %v83_v58  ;;  %v99_v6 = vld [vmem:[%s3524_s0 + $0x2b0] sm:$0xff]  ;;  %v138_v24 = vld [vmem:[%s3524_s0 + $0x3e8] sm:$0xff] }
  0x3a   :  { %1434 = vmatpush1.bf16.msra.mxu0 %v1433_v43  ;;  %v1519_v43 = vpack.c.bf16 %v74_v38, %v66_v37  ;;  %v1591_v7 = vpack.c.bf16 %v108_v0, %v100_v63  ;;  %v107_v8 = vld [vmem:[%s3524_s0 + $0x2f0] sm:$0xff]  ;;  %v116_v11 = vld [vmem:[%s3524_s0 + $0x338] sm:$0xff]  ;;  %v154_v36 = vld [vmem:[%s3524_s0 + $0x468] sm:$0xff] }
  0x3b   :  { %1498 = vmatpush1.bf16.msra.mxu1 %v1497_v44  ;;  %1436 = vmatprep.subr.bf16.mxu0 %v1435_v45  ;;  %v65_v44 = vld [vmem:[%s3524_s0 + $0x1a0] sm:$0xff]  ;;  %v124_v12 = vld [vmem:[%s3524_s0 + $0x378] sm:$0xff]  ;;  %v1593_v14 = vpack.c.bf16 %v107_v8, %v99_v6  ;;  %v115_v20 = vld [vmem:[%s3524_s0 + $0x330] sm:$0xff] }
  0x3c   :  { %1500 = vmatprep.subr.bf16.mxu1 %v1499_v49  ;;  %v73_v45 = vld [vmem:[%s3524_s0 + $0x1e0] sm:$0xff]  ;;  %v82_v49 = vld [vmem:[%s3524_s0 + $0x228] sm:$0xff]  ;;  %v1595_v21 = vpack.c.bf16 %v124_v12, %v116_v11  ;;  %v123_v22 = vld [vmem:[%s3524_s0 + $0x370] sm:$0xff] }
  0x3d   :  { %v1521_v53 = vpack.c.bf16 %v73_v45, %v65_v44  ;;  %v132_v25 = vld [vmem:[%s3524_s0 + $0x3b8] sm:$0xff]  ;;  %v1597_v28 = vpack.c.bf16 %v123_v22, %v115_v20  ;;  %v131_v32 = vld [vmem:[%s3524_s0 + $0x3b0] sm:$0xff]  ;;  %v170_v48 = vld [vmem:[%s3524_s0 + $0x4e8] sm:$0xff] }
  0x3e   :  { %1438 = vmatpush1.bf16.msra.mxu0 %v1437_v55  ;;  %v1523_v55 = vpack.c.bf16 %v90_v50, %v82_v49  ;;  %v140_v26 = vld [vmem:[%s3524_s0 + $0x3f8] sm:$0xff]  ;;  %v139_v34 = vld [vmem:[%s3524_s0 + $0x3f0] sm:$0xff]  ;;  %v186_v60 = vld [vmem:[%s3524_s0 + $0x568] sm:$0xff] }
  0x3f   :  { %1502 = vmatpush1.bf16.msra.mxu1 %v1501_v56  ;;  %1440 = vmatprep.subr.bf16.mxu0 %v1439_v57  ;;  %v81_v56 = vld [vmem:[%s3524_s0 + $0x220] sm:$0xff]  ;;  %v1599_v33 = vpack.c.bf16 %v140_v26, %v132_v25  ;;  %v148_v37 = vld [vmem:[%s3524_s0 + $0x438] sm:$0xff]  ;;  %v1601_v40 = vpack.c.bf16 %v139_v34, %v131_v32  ;;  %v147_v44 = vld [vmem:[%s3524_s0 + $0x430] sm:$0xff] }
  0x40   :  { %1504 = vmatprep.subr.bf16.mxu1 %v1503_v61  ;;  %v89_v57 = vld [vmem:[%s3524_s0 + $0x260] sm:$0xff]  ;;  %v98_v61 = vld [vmem:[%s3524_s0 + $0x2a8] sm:$0xff]  ;;  %v156_v38 = vld [vmem:[%s3524_s0 + $0x478] sm:$0xff] }
  0x41   :  { %v1525_v1 = vpack.c.bf16 %v89_v57, %v81_v56  ;;  %v1603_v45 = vpack.c.bf16 %v156_v38, %v148_v37  ;;  %v155_v46 = vld [vmem:[%s3524_s0 + $0x470] sm:$0xff]  ;;  %v164_v49 = vld [vmem:[%s3524_s0 + $0x4b8] sm:$0xff]  ;;  %v202_v8 = vld [vmem:[%s3524_s0 + $0x5e8] sm:$0xff] }
  0x42   :  { %1442 = vmatpush1.bf16.msra.mxu0 %v1441_v3  ;;  %v1527_v3 = vpack.c.bf16 %v106_v62, %v98_v61  ;;  %v172_v50 = vld [vmem:[%s3524_s0 + $0x4f8] sm:$0xff]  ;;  %v1605_v52 = vpack.c.bf16 %v155_v46, %v147_v44  ;;  %v163_v56 = vld [vmem:[%s3524_s0 + $0x4b0] sm:$0xff]  ;;  %v218_v22 = vld [vmem:[%s3524_s0 + $0x668] sm:$0xff] }
  0x43   :  { %1506 = vmatpush1.bf16.msra.mxu1 %v1505_v4  ;;  %1508 = vmatprep.subr.bf16.mxu0 %v1507_v5  ;;  %v97_v4 = vld [vmem:[%s3524_s0 + $0x2a0] sm:$0xff]  ;;  %v1607_v57 = vpack.c.bf16 %v172_v50, %v164_v49  ;;  %v171_v58 = vld [vmem:[%s3524_s0 + $0x4f0] sm:$0xff]  ;;  %v180_v61 = vld [vmem:[%s3524_s0 + $0x538] sm:$0xff] }
  0x44   :  { %1572 = vmatprep.subr.bf16.mxu1 %v1571_v9  ;;  %v105_v5 = vld [vmem:[%s3524_s0 + $0x2e0] sm:$0xff]  ;;  %v114_v9 = vld [vmem:[%s3524_s0 + $0x328] sm:$0xff]  ;;  %v188_v62 = vld [vmem:[%s3524_s0 + $0x578] sm:$0xff]  ;;  %v1609_v0 = vpack.c.bf16 %v171_v58, %v163_v56 }
  0x45   :  { %334 = vmatmul.mubr.f32.vlgmr.msra.gmra.mrb[0].mxu0 %v2338_v15  ;;  %v1529_v13 = vpack.c.bf16 %v105_v5, %v97_v4  ;;  %v179_v4 = vld [vmem:[%s3524_s0 + $0x530] sm:$0xff]  ;;  %v1611_v5 = vpack.c.bf16 %v188_v62, %v180_v61  ;;  %v234_v34 = vld [vmem:[%s3524_s0 + $0x6e8] sm:$0xff] }
  0x46   :  { %405 = vmatmul.mubr.f32.vlgmr.msra.gmra.mrb[0].mxu1 %v2338_v15  ;;  %1510 = vmatpush1.bf16.msra.mxu0 %v1509_v17  ;;  %v1531_v17 = vpack.c.bf16 %v122_v10, %v114_v9  ;;  %v187_v6 = vld [vmem:[%s3524_s0 + $0x570] sm:$0xff]  ;;  %v196_v9 = vld [vmem:[%s3524_s0 + $0x5b8] sm:$0xff]  ;;  %v250_v46 = vld [vmem:[%s3524_s0 + $0x768] sm:$0xff] }
  0x47   :  { %1574 = vmatpush1.bf16.msra.mxu1 %v1573_v18  ;;  %1512 = vmatprep.subr.bf16.mxu0 %v1511_v19  ;;  %v113_v18 = vld [vmem:[%s3524_s0 + $0x320] sm:$0xff]  ;;  %v204_v10 = vld [vmem:[%s3524_s0 + $0x5f8] sm:$0xff]  ;;  %v1613_v12 = vpack.c.bf16 %v187_v6, %v179_v4  ;;  %v203_v20 = vld [vmem:[%s3524_s0 + $0x5f0] sm:$0xff] }
  0x48   :  { %1576 = vmatprep.subr.bf16.mxu1 %v1575_v23  ;;  %475 = vmatprep.mubr.f32.mxu0 %v2205_v16  ;;  %v121_v19 = vld [vmem:[%s3524_s0 + $0x360] sm:$0xff]  ;;  %v130_v23 = vld [vmem:[%s3524_s0 + $0x3a8] sm:$0xff]  ;;  %v219_v32 = vld [vmem:[%s3524_s0 + $0x670] sm:$0xff] }
  0x49   :  { %546 = vmatprep.mubr.f32.mxu1 %v2205_v16  ;;  %v1533_v27 = vpack.c.bf16 %v121_v19, %v113_v18  ;;  %v195_v18 = vld [vmem:[%s3524_s0 + $0x5b0] sm:$0xff]  ;;  %v1615_v19 = vpack.c.bf16 %v204_v10, %v196_v9  ;;  %v266_v58 = vld [vmem:[%s3524_s0 + $0x7e8] sm:$0xff] }
  0x4a   :  { %1514 = vmatpush1.bf16.msra.mxu0 %v1513_v29  ;;  %v1535_v29 = vpack.c.bf16 %v138_v24, %v130_v23  ;;  %v212_v23 = vld [vmem:[%s3524_s0 + $0x638] sm:$0xff]  ;;  %v1617_v26 = vpack.c.bf16 %v203_v20, %v195_v18  ;;  %v235_v44 = vld [vmem:[%s3524_s0 + $0x6f0] sm:$0xff]  ;;  %v1124_v6 = vld [vmem:[%s3524_s0 + $0x848] sm:$0xff] }
  0x4b   :  { %1578 = vmatpush1.bf16.msra.mxu1 %v1577_v30  ;;  %1516 = vmatprep.subr.bf16.mxu0 %v1515_v31  ;;  %v129_v30 = vld [vmem:[%s3524_s0 + $0x3a0] sm:$0xff]  ;;  %v220_v24 = vld [vmem:[%s3524_s0 + $0x678] sm:$0xff]  ;;  %v251_v56 = vld [vmem:[%s3524_s0 + $0x770] sm:$0xff] }
  0x4c   :  { %1580 = vmatprep.subr.bf16.mxu1 %v1579_v35  ;;  %v137_v31 = vld [vmem:[%s3524_s0 + $0x3e0] sm:$0xff]  ;;  %v146_v35 = vld [vmem:[%s3524_s0 + $0x428] sm:$0xff]  ;;  %v267_v4 = vld [vmem:[%s3524_s0 + $0x7f0] sm:$0xff] }
  0x4d   :  { %v1537_v39 = vpack.c.bf16 %v137_v31, %v129_v30  ;;  %v211_v30 = vld [vmem:[%s3524_s0 + $0x630] sm:$0xff]  ;;  %v1619_v31 = vpack.c.bf16 %v220_v24, %v212_v23  ;;  %v1140_v20 = vld [vmem:[%s3524_s0 + $0x8c8] sm:$0xff] }
  0x4e   :  { %1518 = vmatpush1.bf16.msra.mxu0 %v1517_v41  ;;  %v1539_v41 = vpack.c.bf16 %v154_v36, %v146_v35  ;;  %v228_v35 = vld [vmem:[%s3524_s0 + $0x6b8] sm:$0xff]  ;;  %v1621_v38 = vpack.c.bf16 %v219_v32, %v211_v30  ;;  %v1125_v18 = vld [vmem:[%s3524_s0 + $0x850] sm:$0xff]  ;;  %v1156_v32 = vld [vmem:[%s3524_s0 + $0x948] sm:$0xff] }
  0x4f   :  { %1582 = vmatpush1.bf16.msra.mxu1 %v1581_v42  ;;  %1520 = vmatprep.subr.bf16.mxu0 %v1519_v43  ;;  %v145_v42 = vld [vmem:[%s3524_s0 + $0x420] sm:$0xff]  ;;  %v236_v36 = vld [vmem:[%s3524_s0 + $0x6f8] sm:$0xff]  ;;  %v1141_v30 = vld [vmem:[%s3524_s0 + $0x8d0] sm:$0xff] }
  0x50   :  { %1584 = vmatprep.subr.bf16.mxu1 %v1583_v47  ;;  %v153_v43 = vld [vmem:[%s3524_s0 + $0x460] sm:$0xff]  ;;  %v162_v47 = vld [vmem:[%s3524_s0 + $0x4a8] sm:$0xff] }
  0x51   :  { %v1541_v51 = vpack.c.bf16 %v153_v43, %v145_v42  ;;  %v227_v42 = vld [vmem:[%s3524_s0 + $0x6b0] sm:$0xff]  ;;  %v1623_v43 = vpack.c.bf16 %v236_v36, %v228_v35 }
  0x52   :  { %1522 = vmatpush1.bf16.msra.mxu0 %v1521_v53  ;;  %v1543_v53 = vpack.c.bf16 %v170_v48, %v162_v47  ;;  %v244_v47 = vld [vmem:[%s3524_s0 + $0x738] sm:$0xff]  ;;  %v1625_v50 = vpack.c.bf16 %v235_v44, %v227_v42  ;;  %v1164_v42 = vld [vmem:[%s3524_s0 + $0x988] sm:$0xff] }
  0x53   :  { %1586 = vmatpush1.bf16.msra.mxu1 %v1585_v54  ;;  %1524 = vmatprep.subr.bf16.mxu0 %v1523_v55  ;;  %v161_v54 = vld [vmem:[%s3524_s0 + $0x4a0] sm:$0xff]  ;;  %v252_v48 = vld [vmem:[%s3524_s0 + $0x778] sm:$0xff] }
  0x54   :  { %1588 = vmatprep.subr.bf16.mxu1 %v1587_v59  ;;  %v169_v55 = vld [vmem:[%s3524_s0 + $0x4e0] sm:$0xff]  ;;  %v178_v59 = vld [vmem:[%s3524_s0 + $0x528] sm:$0xff]  ;;  %v1166_v44 = vld [vmem:[%s3524_s0 + $0x998] sm:$0xff] }
  0x55   :  { %v1545_v63 = vpack.c.bf16 %v169_v55, %v161_v54  ;;  %v243_v54 = vld [vmem:[%s3524_s0 + $0x730] sm:$0xff]  ;;  %v1627_v55 = vpack.c.bf16 %v252_v48, %v244_v47 }
  0x56   :  { %1526 = vmatpush1.bf16.msra.mxu0 %v1525_v1  ;;  %v1547_v1 = vpack.c.bf16 %v186_v60, %v178_v59  ;;  %v260_v59 = vld [vmem:[%s3524_s0 + $0x7b8] sm:$0xff]  ;;  %v1629_v62 = vpack.c.bf16 %v251_v56, %v243_v54  ;;  %v1188_v54 = vld [vmem:[%s3524_s0 + $0xa48] sm:$0xff] }
  0x57   :  { %1590 = vmatpush1.bf16.msra.mxu1 %v1589_v2  ;;  %1528 = vmatprep.subr.bf16.mxu0 %v1527_v3  ;;  %v177_v2 = vld [vmem:[%s3524_s0 + $0x520] sm:$0xff]  ;;  %v268_v60 = vld [vmem:[%s3524_s0 + $0x7f8] sm:$0xff] }
  0x58   :  { %1592 = vmatprep.subr.bf16.mxu1 %v1591_v7  ;;  %v185_v3 = vld [vmem:[%s3524_s0 + $0x560] sm:$0xff]  ;;  %v194_v7 = vld [vmem:[%s3524_s0 + $0x5a8] sm:$0xff]  ;;  %v1190_v56 = vld [vmem:[%s3524_s0 + $0xa58] sm:$0xff] }
  0x59   :  { %v1549_v11 = vpack.c.bf16 %v185_v3, %v177_v2  ;;  %v259_v2 = vld [vmem:[%s3524_s0 + $0x7b0] sm:$0xff]  ;;  %v1631_v3 = vpack.c.bf16 %v268_v60, %v260_v59  ;;  %v1179_v60 = vld [vmem:[%s3524_s0 + $0xa00] sm:$0xff] }
  0x5a   :  { %1530 = vmatpush1.bf16.msra.mxu0 %v1529_v13  ;;  %v1551_v13 = vpack.c.bf16 %v202_v8, %v194_v7  ;;  %v1118_v7 = vld [vmem:[%s3524_s0 + $0x818] sm:$0xff]  ;;  %v1633_v10 = vpack.c.bf16 %v267_v4, %v259_v2  ;;  %v1204_v2 = vld [vmem:[%s3524_s0 + $0xac8] sm:$0xff] }
  0x5b   :  { %1594 = vmatpush1.bf16.msra.mxu1 %v1593_v14  ;;  %1532 = vmatprep.subr.bf16.mxu0 %v1531_v17  ;;  %v193_v14 = vld [vmem:[%s3524_s0 + $0x5a0] sm:$0xff]  ;;  %v1126_v8 = vld [vmem:[%s3524_s0 + $0x858] sm:$0xff] }
  0x5c   :  { %1596 = vmatprep.subr.bf16.mxu1 %v1595_v21  ;;  %v201_v17 = vld [vmem:[%s3524_s0 + $0x5e0] sm:$0xff]  ;;  %v210_v21 = vld [vmem:[%s3524_s0 + $0x628] sm:$0xff]  ;;  %v1206_v4 = vld [vmem:[%s3524_s0 + $0xad8] sm:$0xff] }
  0x5d   :  { %v1553_v25 = vpack.c.bf16 %v201_v17, %v193_v14  ;;  %v1117_v14 = vld [vmem:[%s3524_s0 + $0x810] sm:$0xff]  ;;  %v1699_v17 = vpack.c.bf16 %v1126_v8, %v1118_v7  ;;  %v1195_v8 = vld [vmem:[%s3524_s0 + $0xa80] sm:$0xff] }
  0x5e   :  { %1534 = vmatpush1.bf16.msra.mxu0 %v1533_v27  ;;  %v1555_v27 = vpack.c.bf16 %v218_v22, %v210_v21  ;;  %v1134_v21 = vld [vmem:[%s3524_s0 + $0x898] sm:$0xff]  ;;  %v1701_v24 = vpack.c.bf16 %v1125_v18, %v1117_v14  ;;  %v1220_v14 = vld [vmem:[%s3524_s0 + $0xb48] sm:$0xff] }
  0x5f   :  { %1598 = vmatpush1.bf16.msra.mxu1 %v1597_v28  ;;  %1536 = vmatprep.subr.bf16.mxu0 %v1535_v29  ;;  %v209_v28 = vld [vmem:[%s3524_s0 + $0x620] sm:$0xff]  ;;  %v1142_v22 = vld [vmem:[%s3524_s0 + $0x8d8] sm:$0xff] }
  0x60   :  { %1600 = vmatprep.subr.bf16.mxu1 %v1599_v33  ;;  %v217_v29 = vld [vmem:[%s3524_s0 + $0x660] sm:$0xff]  ;;  %v226_v33 = vld [vmem:[%s3524_s0 + $0x6a8] sm:$0xff]  ;;  %v1222_v18 = vld [vmem:[%s3524_s0 + $0xb58] sm:$0xff] }
  0x61   :  { %v1557_v37 = vpack.c.bf16 %v217_v29, %v209_v28  ;;  %v1133_v28 = vld [vmem:[%s3524_s0 + $0x890] sm:$0xff]  ;;  %v1703_v29 = vpack.c.bf16 %v1142_v22, %v1134_v21  ;;  %v1211_v22 = vld [vmem:[%s3524_s0 + $0xb00] sm:$0xff] }
  0x62   :  { %1538 = vmatpush1.bf16.msra.mxu0 %v1537_v39  ;;  %v1559_v39 = vpack.c.bf16 %v234_v34, %v226_v33  ;;  %v1150_v33 = vld [vmem:[%s3524_s0 + $0x918] sm:$0xff]  ;;  %v1705_v36 = vpack.c.bf16 %v1141_v30, %v1133_v28  ;;  %v1236_v28 = vld [vmem:[%s3524_s0 + $0xbc8] sm:$0xff] }
  0x63   :  { %1602 = vmatpush1.bf16.msra.mxu1 %v1601_v40  ;;  %1540 = vmatprep.subr.bf16.mxu0 %v1539_v41  ;;  %v225_v40 = vld [vmem:[%s3524_s0 + $0x6a0] sm:$0xff]  ;;  %v1158_v34 = vld [vmem:[%s3524_s0 + $0x958] sm:$0xff] }
  0x64   :  { %1604 = vmatprep.subr.bf16.mxu1 %v1603_v45  ;;  %v233_v41 = vld [vmem:[%s3524_s0 + $0x6e0] sm:$0xff]  ;;  %v242_v45 = vld [vmem:[%s3524_s0 + $0x728] sm:$0xff]  ;;  %v1238_v30 = vld [vmem:[%s3524_s0 + $0xbd8] sm:$0xff] }
  0x65   :  { %v1561_v49 = vpack.c.bf16 %v233_v41, %v225_v40  ;;  %v1149_v40 = vld [vmem:[%s3524_s0 + $0x910] sm:$0xff] }
  0x66   :  { %1542 = vmatpush1.bf16.msra.mxu0 %v1541_v51  ;;  %v1563_v51 = vpack.c.bf16 %v250_v46, %v242_v45  ;;  %v1157_v41 = vld [vmem:[%s3524_s0 + $0x950] sm:$0xff]  ;;  %v1174_v45 = vld [vmem:[%s3524_s0 + $0x9d8] sm:$0xff] }
  0x67   :  { %1606 = vmatpush1.bf16.msra.mxu1 %v1605_v52  ;;  %1544 = vmatprep.subr.bf16.mxu0 %v1543_v53  ;;  %v241_v52 = vld [vmem:[%s3524_s0 + $0x720] sm:$0xff]  ;;  %v1709_v47 = vpack.c.bf16 %v1157_v41, %v1149_v40  ;;  %v1252_v40 = vld [vmem:[%s3524_s0 + $0xc48] sm:$0xff]  ;;  %v1254_v41 = vld [vmem:[%s3524_s0 + $0xc58] sm:$0xff] }
  0x68   :  { %1608 = vmatprep.subr.bf16.mxu1 %v1607_v57  ;;  %v249_v53 = vld [vmem:[%s3524_s0 + $0x760] sm:$0xff]  ;;  %v258_v57 = vld [vmem:[%s3524_s0 + $0x7a8] sm:$0xff] }
  0x69   :  { %v1565_v61 = vpack.c.bf16 %v249_v53, %v241_v52  ;;  %v1173_v52 = vld [vmem:[%s3524_s0 + $0x9d0] sm:$0xff]  ;;  %v1180_v53 = vld [vmem:[%s3524_s0 + $0xa08] sm:$0xff] }
  0x6a   :  { %1546 = vmatpush1.bf16.msra.mxu0 %v1545_v63  ;;  %v1567_v63 = vpack.c.bf16 %v266_v58, %v258_v57  ;;  %v1651_v59 = vpack.c.bf16 %v1188_v54, %v1180_v53 }
  0x6b   :  { %1610 = vmatpush1.bf16.msra.mxu1 %v1609_v0  ;;  %1548 = vmatprep.subr.bf16.mxu0 %v1547_v1  ;;  %v257_v0 = vld [vmem:[%s3524_s0 + $0x7a0] sm:$0xff] }
  0x6c   :  { %1612 = vmatprep.subr.bf16.mxu1 %v1611_v5  ;;  %v265_v1 = vld [vmem:[%s3524_s0 + $0x7e0] sm:$0xff]  ;;  %v1116_v5 = vld [vmem:[%s3524_s0 + $0x808] sm:$0xff] }
  0x6d   :  { %v1569_v9 = vpack.c.bf16 %v265_v1, %v257_v0  ;;  %v1189_v0 = vld [vmem:[%s3524_s0 + $0xa50] sm:$0xff]  ;;  %v1196_v1 = vld [vmem:[%s3524_s0 + $0xa88] sm:$0xff] }
  0x6e   :  { %1550 = vmatpush1.bf16.msra.mxu0 %v1549_v11  ;;  %v1635_v11 = vpack.c.bf16 %v1124_v6, %v1116_v5  ;;  %v1655_v7 = vpack.c.bf16 %v1204_v2, %v1196_v1 }
  0x6f   :  { %1614 = vmatpush1.bf16.msra.mxu1 %v1613_v12  ;;  %1552 = vmatprep.subr.bf16.mxu0 %v1551_v13  ;;  %v1115_v12 = vld [vmem:[%s3524_s0 + $0x800] sm:$0xff] }
  0x70   :  { %1616 = vmatprep.subr.bf16.mxu1 %v1615_v19  ;;  %v1123_v13 = vld [vmem:[%s3524_s0 + $0x840] sm:$0xff]  ;;  %v1132_v19 = vld [vmem:[%s3524_s0 + $0x888] sm:$0xff] }
  0x71   :  { %v1637_v23 = vpack.c.bf16 %v1123_v13, %v1115_v12  ;;  %v1205_v12 = vld [vmem:[%s3524_s0 + $0xad0] sm:$0xff]  ;;  %v1212_v13 = vld [vmem:[%s3524_s0 + $0xb08] sm:$0xff] }
  0x72   :  { %1554 = vmatpush1.bf16.msra.mxu0 %v1553_v25  ;;  %v1639_v25 = vpack.c.bf16 %v1140_v20, %v1132_v19  ;;  %v1659_v21 = vpack.c.bf16 %v1220_v14, %v1212_v13 }
  0x73   :  { %1618 = vmatpush1.bf16.msra.mxu1 %v1617_v26  ;;  %1556 = vmatprep.subr.bf16.mxu0 %v1555_v27  ;;  %v1131_v26 = vld [vmem:[%s3524_s0 + $0x880] sm:$0xff] }
  0x74   :  { %1620 = vmatprep.subr.bf16.mxu1 %v1619_v31  ;;  %v1139_v27 = vld [vmem:[%s3524_s0 + $0x8c0] sm:$0xff]  ;;  %v1148_v31 = vld [vmem:[%s3524_s0 + $0x908] sm:$0xff] }
  0x75   :  { %v1641_v35 = vpack.c.bf16 %v1139_v27, %v1131_v26  ;;  %v1221_v26 = vld [vmem:[%s3524_s0 + $0xb50] sm:$0xff]  ;;  %v1228_v27 = vld [vmem:[%s3524_s0 + $0xb88] sm:$0xff] }
  0x76   :  { %1558 = vmatpush1.bf16.msra.mxu0 %v1557_v37  ;;  %v1643_v37 = vpack.c.bf16 %v1156_v32, %v1148_v31 }
  0x77   :  { %1622 = vmatpush1.bf16.msra.mxu1 %v1621_v38  ;;  %1560 = vmatprep.subr.bf16.mxu0 %v1559_v39  ;;  %v1147_v38 = vld [vmem:[%s3524_s0 + $0x900] sm:$0xff] }
  0x78   :  { %1624 = vmatprep.subr.bf16.mxu1 %v1623_v43  ;;  %v1155_v39 = vld [vmem:[%s3524_s0 + $0x940] sm:$0xff]  ;;  %v1172_v43 = vld [vmem:[%s3524_s0 + $0x9c8] sm:$0xff] }
  0x79   :  { %v1645_v46 = vpack.c.bf16 %v1155_v39, %v1147_v38  ;;  %v1647_v48 = vpack.c.bf16 %v1172_v43, %v1164_v42  ;;  %v1237_v38 = vld [vmem:[%s3524_s0 + $0xbd0] sm:$0xff]  ;;  %v1244_v39 = vld [vmem:[%s3524_s0 + $0xc08] sm:$0xff] }
  0x7a   :  { %1562 = vmatpush1.bf16.msra.mxu0 %v1561_v49  ;;  %v1163_v49 = vld [vmem:[%s3524_s0 + $0x980] sm:$0xff] }
  0x7b   :  { %1626 = vmatpush1.bf16.msra.mxu1 %v1625_v50  ;;  %1564 = vmatprep.subr.bf16.mxu0 %v1563_v51  ;;  %v1171_v50 = vld [vmem:[%s3524_s0 + $0x9c0] sm:$0xff]  ;;  %v1165_v51 = vld [vmem:[%s3524_s0 + $0x990] sm:$0xff] }
  0x7c   :  { %1628 = vmatprep.subr.bf16.mxu1 %v1627_v55  ;;  %v1182_v55 = vld [vmem:[%s3524_s0 + $0xa18] sm:$0xff]  ;;  %v1649_v57 = vpack.c.bf16 %v1171_v50, %v1163_v49  ;;  %v1713_v58 = vpack.c.bf16 %v1173_v52, %v1165_v51  ;;  %v1253_v49 = vld [vmem:[%s3524_s0 + $0xc50] sm:$0xff]  ;;  %v1260_v50 = vld [vmem:[%s3524_s0 + $0xc88] sm:$0xff] }
  0x7d   :  { %v1268_v51 = vld [vmem:[%s3524_s0 + $0xcc8] sm:$0xff]  ;;  %v1270_v52 = vld [vmem:[%s3524_s0 + $0xcd8] sm:$0xff] }
  0x7e   :  { %1566 = vmatpush1.bf16.msra.mxu0 %v1565_v61  ;;  %v1187_v61 = vld [vmem:[%s3524_s0 + $0xa40] sm:$0xff] }
  0x7f   :  { %1630 = vmatpush1.bf16.msra.mxu1 %v1629_v62  ;;  %1568 = vmatprep.subr.bf16.mxu0 %v1567_v63  ;;  %v1181_v62 = vld [vmem:[%s3524_s0 + $0xa10] sm:$0xff]  ;;  %v1715_v63 = vpack.c.bf16 %v1190_v56, %v1182_v55  ;;  %v1653_v5 = vpack.c.bf16 %v1187_v61, %v1179_v60  ;;  %v1671_v55 = vpack.c.bf16 %v1268_v51, %v1260_v50  ;;  %v1259_v56 = vld [vmem:[%s3524_s0 + $0xc80] sm:$0xff]  ;;  %v1276_v61 = vld [vmem:[%s3524_s0 + $0xd08] sm:$0xff] }
  0x80   :  { %1632 = vmatprep.subr.bf16.mxu1 %v1631_v3  ;;  %v1198_v3 = vld [vmem:[%s3524_s0 + $0xa98] sm:$0xff]  ;;  %v1717_v6 = vpack.c.bf16 %v1189_v0, %v1181_v62  ;;  %v1269_v60 = vld [vmem:[%s3524_s0 + $0xcd0] sm:$0xff]  ;;  %v1284_v62 = vld [vmem:[%s3524_s0 + $0xd48] sm:$0xff] }
  0x81   :  { %v1286_v0 = vld [vmem:[%s3524_s0 + $0xd58] sm:$0xff] }
  0x82   :  { %1570 = vmatpush1.bf16.msra.mxu0 %v1569_v9  ;;  %v1203_v9 = vld [vmem:[%s3524_s0 + $0xac0] sm:$0xff] }
  0x83   :  { %1634 = vmatpush1.bf16.msra.mxu1 %v1633_v10  ;;  %1636 = vmatprep.subr.bf16.mxu0 %v1635_v11  ;;  %v1197_v10 = vld [vmem:[%s3524_s0 + $0xa90] sm:$0xff]  ;;  %v1719_v11 = vpack.c.bf16 %v1206_v4, %v1198_v3  ;;  %v1657_v19 = vpack.c.bf16 %v1203_v9, %v1195_v8  ;;  %v1675_v3 = vpack.c.bf16 %v1284_v62, %v1276_v61  ;;  %v1275_v4 = vld [vmem:[%s3524_s0 + $0xd00] sm:$0xff]  ;;  %v1292_v9 = vld [vmem:[%s3524_s0 + $0xd88] sm:$0xff] }
  0x84   :  { %1700 = vmatprep.subr.bf16.mxu1 %v1699_v17  ;;  %v1214_v17 = vld [vmem:[%s3524_s0 + $0xb18] sm:$0xff]  ;;  %v1721_v20 = vpack.c.bf16 %v1205_v12, %v1197_v10  ;;  %v1285_v8 = vld [vmem:[%s3524_s0 + $0xd50] sm:$0xff]  ;;  %v1300_v10 = vld [vmem:[%s3524_s0 + $0xdc8] sm:$0xff] }
  0x85   :  { %476 = vmatmul.mubr.f32.vlgmr.msra.gmra.mrb[2].mxu0 %v2338_v15  ;;  %v1302_v12 = vld [vmem:[%s3524_s0 + $0xdd8] sm:$0xff] }
  0x86   :  { %547 = vmatmul.mubr.f32.vlgmr.msra.gmra.mrb[2].mxu1 %v2338_v15  ;;  %1638 = vmatpush1.bf16.msra.mxu0 %v1637_v23  ;;  %v1707_v15 = vpack.c.bf16 %v1158_v34, %v1150_v33  ;;  %v1219_v23 = vld [vmem:[%s3524_s0 + $0xb40] sm:$0xff]  ;;  %v1663_v33 = vpack.c.bf16 %v1236_v28, %v1228_v27 }
  0x87   :  { %1702 = vmatpush1.bf16.msra.mxu1 %v1701_v24  ;;  %1640 = vmatprep.subr.bf16.mxu0 %v1639_v25  ;;  %v1213_v24 = vld [vmem:[%s3524_s0 + $0xb10] sm:$0xff]  ;;  %v1723_v25 = vpack.c.bf16 %v1222_v18, %v1214_v17  ;;  %v1661_v31 = vpack.c.bf16 %v1219_v23, %v1211_v22  ;;  %v1227_v34 = vld [vmem:[%s3524_s0 + $0xb80] sm:$0xff]  ;;  %v1679_v17 = vpack.c.bf16 %v1300_v10, %v1292_v9  ;;  %v1308_v23 = vld [vmem:[%s3524_s0 + $0xe08] sm:$0xff] }
  0x88   :  { %1704 = vmatprep.subr.bf16.mxu1 %v1703_v29  ;;  %882 = vmatprep.mubr.f32.mxu0 %v2205_v16  ;;  %v1230_v29 = vld [vmem:[%s3524_s0 + $0xb98] sm:$0xff]  ;;  %v1725_v32 = vpack.c.bf16 %v1221_v26, %v1213_v24  ;;  %v1291_v18 = vld [vmem:[%s3524_s0 + $0xd80] sm:$0xff]  ;;  %v1301_v22 = vld [vmem:[%s3524_s0 + $0xdd0] sm:$0xff] }
  0x89   :  { %953 = vmatprep.mubr.f32.mxu1 %v2205_v16  ;;  %v1711_v16 = vpack.c.bf16 %v1174_v45, %v1166_v44  ;;  %v1667_v44 = vpack.c.bf16 %v1252_v40, %v1244_v39  ;;  %v1243_v45 = vld [vmem:[%s3524_s0 + $0xc00] sm:$0xff]  ;;  %v1316_v24 = vld [vmem:[%s3524_s0 + $0xe48] sm:$0xff]  ;;  %v1318_v26 = vld [vmem:[%s3524_s0 + $0xe58] sm:$0xff] }
  0x8a   :  { %1642 = vmatpush1.bf16.msra.mxu0 %v1641_v35  ;;  %v1235_v35 = vld [vmem:[%s3524_s0 + $0xbc0] sm:$0xff] }
  0x8b   :  { %1706 = vmatpush1.bf16.msra.mxu1 %v1705_v36  ;;  %1644 = vmatprep.subr.bf16.mxu0 %v1643_v37  ;;  %v1229_v36 = vld [vmem:[%s3524_s0 + $0xb90] sm:$0xff]  ;;  %v1727_v37 = vpack.c.bf16 %v1238_v30, %v1230_v29  ;;  %v1665_v42 = vpack.c.bf16 %v1235_v35, %v1227_v34  ;;  %v1683_v29 = vpack.c.bf16 %v1316_v24, %v1308_v23  ;;  %v1307_v30 = vld [vmem:[%s3524_s0 + $0xe00] sm:$0xff]  ;;  %v1324_v35 = vld [vmem:[%s3524_s0 + $0xe88] sm:$0xff] }
  0x8c   :  { %1708 = vmatprep.subr.bf16.mxu1 %v1707_v15  ;;  %v1246_v15 = vld [vmem:[%s3524_s0 + $0xc18] sm:$0xff]  ;;  %v1729_v43 = vpack.c.bf16 %v1237_v38, %v1229_v36  ;;  %v1317_v34 = vld [vmem:[%s3524_s0 + $0xe50] sm:$0xff]  ;;  %v1332_v36 = vld [vmem:[%s3524_s0 + $0xec8] sm:$0xff] }
  0x8d   :  { %v1334_v38 = vld [vmem:[%s3524_s0 + $0xed8] sm:$0xff] }
  0x8e   :  { %1646 = vmatpush1.bf16.msra.mxu0 %v1645_v46  ;;  %v1251_v46 = vld [vmem:[%s3524_s0 + $0xc40] sm:$0xff] }
  0x8f   :  { %1710 = vmatpush1.bf16.msra.mxu1 %v1709_v47  ;;  %1648 = vmatprep.subr.bf16.mxu0 %v1647_v48  ;;  %v1245_v47 = vld [vmem:[%s3524_s0 + $0xc10] sm:$0xff]  ;;  %v1731_v48 = vpack.c.bf16 %v1254_v41, %v1246_v15  ;;  %v1669_v53 = vpack.c.bf16 %v1251_v46, %v1243_v45  ;;  %v1687_v15 = vpack.c.bf16 %v1332_v36, %v1324_v35  ;;  %v1323_v41 = vld [vmem:[%s3524_s0 + $0xe80] sm:$0xff]  ;;  %v1340_v46 = vld [vmem:[%s3524_s0 + $0xf08] sm:$0xff] }
  0x90   :  { %1712 = vmatprep.subr.bf16.mxu1 %v1711_v16  ;;  %v1262_v16 = vld [vmem:[%s3524_s0 + $0xc98] sm:$0xff]  ;;  %v1733_v54 = vpack.c.bf16 %v1253_v49, %v1245_v47  ;;  %v1333_v45 = vld [vmem:[%s3524_s0 + $0xed0] sm:$0xff]  ;;  %v1348_v47 = vld [vmem:[%s3524_s0 + $0xf48] sm:$0xff] }
  0x91   :  { %v1350_v49 = vld [vmem:[%s3524_s0 + $0xf58] sm:$0xff] }
  0x92   :  { %1650 = vmatpush1.bf16.msra.mxu0 %v1649_v57  ;;  %v1267_v57 = vld [vmem:[%s3524_s0 + $0xcc0] sm:$0xff]  ;;  %v1162_v35 = vld [vmem:[%s3524_s0 + $0x978] sm:$0xff] }
  0x93   :  { %1714 = vmatpush1.bf16.msra.mxu1 %v1713_v58  ;;  %1652 = vmatprep.subr.bf16.mxu0 %v1651_v59  ;;  %v1261_v58 = vld [vmem:[%s3524_s0 + $0xc90] sm:$0xff]  ;;  %v1735_v59 = vpack.c.bf16 %v1270_v52, %v1262_v16  ;;  %v1673_v1 = vpack.c.bf16 %v1267_v57, %v1259_v56  ;;  %v1691_v16 = vpack.c.bf16 %v1348_v47, %v1340_v46  ;;  %v1339_v52 = vld [vmem:[%s3524_s0 + $0xf00] sm:$0xff]  ;;  %v1356_v57 = vld [vmem:[%s3524_s0 + $0xf88] sm:$0xff] }
  0x94   :  { %1716 = vmatprep.subr.bf16.mxu1 %v1715_v63  ;;  %v1278_v63 = vld [vmem:[%s3524_s0 + $0xd18] sm:$0xff]  ;;  %v1737_v2 = vpack.c.bf16 %v1269_v60, %v1261_v58  ;;  %v1349_v56 = vld [vmem:[%s3524_s0 + $0xf50] sm:$0xff]  ;;  %v1364_v58 = vld [vmem:[%s3524_s0 + $0xfc8] sm:$0xff] }
  0x95   :  { %v1366_v60 = vld [vmem:[%s3524_s0 + $0xfd8] sm:$0xff] }
  0x96   :  { %1654 = vmatpush1.bf16.msra.mxu0 %v1653_v5  ;;  %v1283_v5 = vld [vmem:[%s3524_s0 + $0xd40] sm:$0xff]  ;;  %v1170_v46 = vld [vmem:[%s3524_s0 + $0x9b8] sm:$0xff] }
  0x97   :  { %1718 = vmatpush1.bf16.msra.mxu1 %v1717_v6  ;;  %1656 = vmatprep.subr.bf16.mxu0 %v1655_v7  ;;  %v1277_v6 = vld [vmem:[%s3524_s0 + $0xd10] sm:$0xff]  ;;  %v1739_v7 = vpack.c.bf16 %v1286_v0, %v1278_v63  ;;  %v1677_v13 = vpack.c.bf16 %v1283_v5, %v1275_v4  ;;  %v1695_v63 = vpack.c.bf16 %v1364_v58, %v1356_v57  ;;  %v1355_v0 = vld [vmem:[%s3524_s0 + $0xf80] sm:$0xff]  ;;  %v1120_v5 = vld [vmem:[%s3524_s0 + $0x828] sm:$0xff] }
  0x98   :  { %1720 = vmatprep.subr.bf16.mxu1 %v1719_v11  ;;  %v1294_v11 = vld [vmem:[%s3524_s0 + $0xd98] sm:$0xff]  ;;  %v1741_v14 = vpack.c.bf16 %v1285_v8, %v1277_v6  ;;  %v1365_v4 = vld [vmem:[%s3524_s0 + $0xfd0] sm:$0xff]  ;;  %v1128_v6 = vld [vmem:[%s3524_s0 + $0x868] sm:$0xff] }
  0x99   :  { %v1130_v8 = vld [vmem:[%s3524_s0 + $0x878] sm:$0xff] }
  0x9a   :  { %1658 = vmatpush1.bf16.msra.mxu0 %v1657_v19  ;;  %v1299_v19 = vld [vmem:[%s3524_s0 + $0xdc0] sm:$0xff]  ;;  %v1178_v47 = vld [vmem:[%s3524_s0 + $0x9f8] sm:$0xff] }
  0x9b   :  { %1722 = vmatpush1.bf16.msra.mxu1 %v1721_v20  ;;  %1660 = vmatprep.subr.bf16.mxu0 %v1659_v21  ;;  %v1293_v20 = vld [vmem:[%s3524_s0 + $0xd90] sm:$0xff]  ;;  %v1743_v21 = vpack.c.bf16 %v1302_v12, %v1294_v11  ;;  %v1681_v27 = vpack.c.bf16 %v1299_v19, %v1291_v18  ;;  %v1763_v11 = vpack.c.bf16 %v1128_v6, %v1120_v5  ;;  %v1119_v12 = vld [vmem:[%s3524_s0 + $0x820] sm:$0xff]  ;;  %v1136_v19 = vld [vmem:[%s3524_s0 + $0x8a8] sm:$0xff] }
  0x9c   :  { %1724 = vmatprep.subr.bf16.mxu1 %v1723_v25  ;;  %v1310_v25 = vld [vmem:[%s3524_s0 + $0xe18] sm:$0xff]  ;;  %v1745_v28 = vpack.c.bf16 %v1301_v22, %v1293_v20  ;;  %v1129_v18 = vld [vmem:[%s3524_s0 + $0x870] sm:$0xff]  ;;  %v1144_v20 = vld [vmem:[%s3524_s0 + $0x8e8] sm:$0xff] }
  0x9d   :  { %v1146_v22 = vld [vmem:[%s3524_s0 + $0x8f8] sm:$0xff] }
  0x9e   :  { %1662 = vmatpush1.bf16.msra.mxu0 %v1661_v31  ;;  %v1315_v31 = vld [vmem:[%s3524_s0 + $0xe40] sm:$0xff]  ;;  %v1186_v57 = vld [vmem:[%s3524_s0 + $0xa38] sm:$0xff] }
  0x9f   :  { %1726 = vmatpush1.bf16.msra.mxu1 %v1725_v32  ;;  %1664 = vmatprep.subr.bf16.mxu0 %v1663_v33  ;;  %v1309_v32 = vld [vmem:[%s3524_s0 + $0xe10] sm:$0xff]  ;;  %v1747_v33 = vpack.c.bf16 %v1318_v26, %v1310_v25  ;;  %v1685_v39 = vpack.c.bf16 %v1315_v31, %v1307_v30  ;;  %v1767_v25 = vpack.c.bf16 %v1144_v20, %v1136_v19  ;;  %v1135_v26 = vld [vmem:[%s3524_s0 + $0x8a0] sm:$0xff]  ;;  %v1152_v31 = vld [vmem:[%s3524_s0 + $0x928] sm:$0xff] }
  0xa0   :  { %1728 = vmatprep.subr.bf16.mxu1 %v1727_v37  ;;  %v1326_v37 = vld [vmem:[%s3524_s0 + $0xe98] sm:$0xff]  ;;  %v1749_v40 = vpack.c.bf16 %v1317_v34, %v1309_v32  ;;  %v1145_v30 = vld [vmem:[%s3524_s0 + $0x8f0] sm:$0xff]  ;;  %v1160_v32 = vld [vmem:[%s3524_s0 + $0x968] sm:$0xff] }
  0xa1   :  { %v1154_v34 = vld [vmem:[%s3524_s0 + $0x938] sm:$0xff] }
  0xa2   :  { %1666 = vmatpush1.bf16.msra.mxu0 %v1665_v42  ;;  %v1331_v42 = vld [vmem:[%s3524_s0 + $0xec0] sm:$0xff]  ;;  %v1194_v58 = vld [vmem:[%s3524_s0 + $0xa78] sm:$0xff] }
  0xa3   :  { %1730 = vmatpush1.bf16.msra.mxu1 %v1729_v43  ;;  %1668 = vmatprep.subr.bf16.mxu0 %v1667_v44  ;;  %v1325_v43 = vld [vmem:[%s3524_s0 + $0xe90] sm:$0xff]  ;;  %v1751_v44 = vpack.c.bf16 %v1334_v38, %v1326_v37  ;;  %v1689_v50 = vpack.c.bf16 %v1331_v42, %v1323_v41  ;;  %v1771_v38 = vpack.c.bf16 %v1160_v32, %v1152_v31  ;;  %v1202_v5 = vld [vmem:[%s3524_s0 + $0xab8] sm:$0xff] }
  0xa4   :  { %1732 = vmatprep.subr.bf16.mxu1 %v1731_v48  ;;  %v1342_v48 = vld [vmem:[%s3524_s0 + $0xf18] sm:$0xff]  ;;  %v1753_v51 = vpack.c.bf16 %v1333_v45, %v1325_v43  ;;  %v1835_v41 = vpack.c.bf16 %v1162_v35, %v1154_v34  ;;  %v1161_v42 = vld [vmem:[%s3524_s0 + $0x970] sm:$0xff]  ;;  %v1168_v43 = vld [vmem:[%s3524_s0 + $0x9a8] sm:$0xff] }
  0xa5   :  { %v1892_v45 = vld [vmem:[%s3525_s1 + $0x8] sm:$0xff]  ;;  %v1210_v6 = vld [vmem:[%s3524_s0 + $0xaf8] sm:$0xff] }
  0xa6   :  { %1670 = vmatpush1.bf16.msra.mxu0 %v1669_v53  ;;  %v1347_v53 = vld [vmem:[%s3524_s0 + $0xf40] sm:$0xff]  ;;  %v1218_v19 = vld [vmem:[%s3524_s0 + $0xb38] sm:$0xff] }
  0xa7   :  { %1734 = vmatpush1.bf16.msra.mxu1 %v1733_v54  ;;  %1672 = vmatprep.subr.bf16.mxu0 %v1671_v55  ;;  %v1341_v54 = vld [vmem:[%s3524_s0 + $0xf10] sm:$0xff]  ;;  %v1755_v55 = vpack.c.bf16 %v1350_v49, %v1342_v48  ;;  %v1693_v61 = vpack.c.bf16 %v1347_v53, %v1339_v52  ;;  %v1839_v53 = vpack.c.bf16 %v1178_v47, %v1170_v46  ;;  %v1226_v20 = vld [vmem:[%s3524_s0 + $0xb78] sm:$0xff] }
  0xa8   :  { %1736 = vmatprep.subr.bf16.mxu1 %v1735_v59  ;;  %v1358_v59 = vld [vmem:[%s3524_s0 + $0xf98] sm:$0xff]  ;;  %v1757_v62 = vpack.c.bf16 %v1349_v56, %v1341_v54  ;;  %v1169_v52 = vld [vmem:[%s3524_s0 + $0x9b0] sm:$0xff]  ;;  %v1192_v56 = vld [vmem:[%s3524_s0 + $0xa68] sm:$0xff] }
  0xa9   :  { %v1177_v54 = vld [vmem:[%s3524_s0 + $0x9f0] sm:$0xff]  ;;  %v1234_v31 = vld [vmem:[%s3524_s0 + $0xbb8] sm:$0xff] }
  0xaa   :  { %1674 = vmatpush1.bf16.msra.mxu0 %v1673_v1  ;;  %v1363_v1 = vld [vmem:[%s3524_s0 + $0xfc0] sm:$0xff]  ;;  %v1242_v32 = vld [vmem:[%s3524_s0 + $0xbf8] sm:$0xff] }
  0xab   :  { %1738 = vmatpush1.bf16.msra.mxu1 %v1737_v2  ;;  %1676 = vmatprep.subr.bf16.mxu0 %v1675_v3  ;;  %v1357_v2 = vld [vmem:[%s3524_s0 + $0xf90] sm:$0xff]  ;;  %v1759_v3 = vpack.c.bf16 %v1366_v60, %v1358_v59  ;;  %v1697_v9 = vpack.c.bf16 %v1363_v1, %v1355_v0  ;;  %v1841_v60 = vpack.c.bf16 %v1177_v54, %v1169_v52  ;;  %v1264_v52 = vld [vmem:[%s3524_s0 + $0xca8] sm:$0xff]  ;;  %v1266_v54 = vld [vmem:[%s3524_s0 + $0xcb8] sm:$0xff] }
  0xac   :  { %1740 = vmatprep.subr.bf16.mxu1 %v1739_v7  ;;  %v1122_v7 = vld [vmem:[%s3524_s0 + $0x838] sm:$0xff]  ;;  %v1761_v10 = vpack.c.bf16 %v1365_v4, %v1357_v2  ;;  %v1185_v0 = vld [vmem:[%s3524_s0 + $0xa30] sm:$0xff]  ;;  %v1843_v1 = vpack.c.bf16 %v1194_v58, %v1186_v57  ;;  %v1208_v4 = vld [vmem:[%s3524_s0 + $0xae8] sm:$0xff] }
  0xad   :  { %v1193_v2 = vld [vmem:[%s3524_s0 + $0xa70] sm:$0xff] }
  0xae   :  { %1678 = vmatpush1.bf16.msra.mxu0 %v1677_v13  ;;  %v1127_v13 = vld [vmem:[%s3524_s0 + $0x860] sm:$0xff] }
  0xaf   :  { %1742 = vmatpush1.bf16.msra.mxu1 %v1741_v14  ;;  %1680 = vmatprep.subr.bf16.mxu0 %v1679_v17  ;;  %v1121_v14 = vld [vmem:[%s3524_s0 + $0x830] sm:$0xff]  ;;  %v1827_v17 = vpack.c.bf16 %v1130_v8, %v1122_v7  ;;  %v1765_v23 = vpack.c.bf16 %v1127_v13, %v1119_v12  ;;  %v1845_v8 = vpack.c.bf16 %v1193_v2, %v1185_v0  ;;  %v1280_v0 = vld [vmem:[%s3524_s0 + $0xd28] sm:$0xff]  ;;  %v1282_v2 = vld [vmem:[%s3524_s0 + $0xd38] sm:$0xff] }
  0xb0   :  { %1744 = vmatprep.subr.bf16.mxu1 %v1743_v21  ;;  %v1138_v21 = vld [vmem:[%s3524_s0 + $0x8b8] sm:$0xff]  ;;  %v1829_v24 = vpack.c.bf16 %v1129_v18, %v1121_v14  ;;  %v1201_v12 = vld [vmem:[%s3524_s0 + $0xab0] sm:$0xff]  ;;  %v1847_v13 = vpack.c.bf16 %v1210_v6, %v1202_v5  ;;  %v1224_v18 = vld [vmem:[%s3524_s0 + $0xb68] sm:$0xff] }
  0xb1   :  { %v1209_v14 = vld [vmem:[%s3524_s0 + $0xaf0] sm:$0xff] }
  0xb2   :  { %1682 = vmatpush1.bf16.msra.mxu0 %v1681_v27  ;;  %v1143_v27 = vld [vmem:[%s3524_s0 + $0x8e0] sm:$0xff] }
  0xb3   :  { %1746 = vmatpush1.bf16.msra.mxu1 %v1745_v28  ;;  %1684 = vmatprep.subr.bf16.mxu0 %v1683_v29  ;;  %v1137_v28 = vld [vmem:[%s3524_s0 + $0x8b0] sm:$0xff]  ;;  %v1831_v29 = vpack.c.bf16 %v1146_v22, %v1138_v21  ;;  %v1769_v36 = vpack.c.bf16 %v1143_v27, %v1135_v26  ;;  %v1849_v22 = vpack.c.bf16 %v1209_v14, %v1201_v12  ;;  %v1296_v12 = vld [vmem:[%s3524_s0 + $0xda8] sm:$0xff]  ;;  %v1298_v14 = vld [vmem:[%s3524_s0 + $0xdb8] sm:$0xff] }
  0xb4   :  { %1748 = vmatprep.subr.bf16.mxu1 %v1747_v33  ;;  %v3137_v33 = vld [vmem:[%s3525_s1] sm:$0xff]  ;;  %v1833_v37 = vpack.c.bf16 %v1145_v30, %v1137_v28  ;;  %v1217_v26 = vld [vmem:[%s3524_s0 + $0xb30] sm:$0xff]  ;;  %v1851_v27 = vpack.c.bf16 %v1226_v20, %v1218_v19  ;;  %v1240_v30 = vld [vmem:[%s3524_s0 + $0xbe8] sm:$0xff] }
  0xb5   :  { %v1225_v28 = vld [vmem:[%s3524_s0 + $0xb70] sm:$0xff] }
  0xb6   :  { %1686 = vmatpush1.bf16.msra.mxu0 %v1685_v39  ;;  %v1151_v39 = vld [vmem:[%s3524_s0 + $0x920] sm:$0xff]  ;;  %v1853_v35 = vpack.c.bf16 %v1225_v28, %v1217_v26  ;;  %v1312_v26 = vld [vmem:[%s3524_s0 + $0xe28] sm:$0xff]  ;;  %v1314_v28 = vld [vmem:[%s3524_s0 + $0xe38] sm:$0xff] }
  0xb7   :  { %1750 = vmatpush1.bf16.msra.mxu1 %v1749_v40  ;;  %1688 = vmatprep.subr.bf16.mxu0 %v1687_v15  ;;  %v1159_v40 = vld [vmem:[%s3524_s0 + $0x960] sm:$0xff]  ;;  %v1153_v15 = vld [vmem:[%s3524_s0 + $0x930] sm:$0xff] }
  0xb8   :  { %1752 = vmatprep.subr.bf16.mxu1 %v1751_v44  ;;  %v1176_v44 = vld [vmem:[%s3524_s0 + $0x9e8] sm:$0xff]  ;;  %v1773_v48 = vpack.c.bf16 %v1159_v40, %v1151_v39  ;;  %v1837_v49 = vpack.c.bf16 %v1161_v42, %v1153_v15  ;;  %v1233_v39 = vld [vmem:[%s3524_s0 + $0xbb0] sm:$0xff]  ;;  %v1855_v40 = vpack.c.bf16 %v1242_v32, %v1234_v31 }
  0xb9   :  { %v1241_v15 = vld [vmem:[%s3524_s0 + $0xbf0] sm:$0xff]  ;;  %v1256_v42 = vld [vmem:[%s3524_s0 + $0xc68] sm:$0xff] }
  0xba   :  { %1690 = vmatpush1.bf16.msra.mxu0 %v1689_v50  ;;  %v1775_v50 = vpack.c.bf16 %v1176_v44, %v1168_v43  ;;  %v1250_v43 = vld [vmem:[%s3524_s0 + $0xc38] sm:$0xff]  ;;  %v1857_v46 = vpack.c.bf16 %v1241_v15, %v1233_v39  ;;  %v1328_v39 = vld [vmem:[%s3524_s0 + $0xea8] sm:$0xff] }
  0xbb   :  { %1754 = vmatpush1.bf16.msra.mxu1 %v1753_v51  ;;  %1692 = vmatprep.subr.bf16.mxu0 %v1691_v16  ;;  %v1167_v51 = vld [vmem:[%s3524_s0 + $0x9a0] sm:$0xff]  ;;  %v1258_v44 = vld [vmem:[%s3524_s0 + $0xc78] sm:$0xff] }
  0xbc   :  { %1756 = vmatprep.subr.bf16.mxu1 %v1755_v55  ;;  %v1175_v16 = vld [vmem:[%s3524_s0 + $0x9e0] sm:$0xff]  ;;  %v1184_v55 = vld [vmem:[%s3524_s0 + $0xa28] sm:$0xff]  ;;  %v1330_v15 = vld [vmem:[%s3524_s0 + $0xeb8] sm:$0xff] }
  0xbd   :  { %v1777_v59 = vpack.c.bf16 %v1175_v16, %v1167_v51  ;;  %v1859_v51 = vpack.c.bf16 %v1258_v44, %v1250_v43  ;;  %v1257_v16 = vld [vmem:[%s3524_s0 + $0xc70] sm:$0xff] }
  0xbe   :  { %1694 = vmatpush1.bf16.msra.mxu0 %v1693_v61  ;;  %v1779_v61 = vpack.c.bf16 %v1192_v56, %v1184_v55  ;;  %v1274_v55 = vld [vmem:[%s3524_s0 + $0xcf8] sm:$0xff] }
  0xbf   :  { %1758 = vmatpush1.bf16.msra.mxu1 %v1757_v62  ;;  %1696 = vmatprep.subr.bf16.mxu0 %v1695_v63  ;;  %v1183_v62 = vld [vmem:[%s3524_s0 + $0xa20] sm:$0xff] }
  0xc0   :  { %1760 = vmatprep.subr.bf16.mxu1 %v1759_v3  ;;  %v1191_v63 = vld [vmem:[%s3524_s0 + $0xa60] sm:$0xff]  ;;  %v1200_v3 = vld [vmem:[%s3524_s0 + $0xaa8] sm:$0xff] }
  0xc1   :  { %v1781_v7 = vpack.c.bf16 %v1191_v63, %v1183_v62  ;;  %v1863_v62 = vpack.c.bf16 %v1274_v55, %v1266_v54  ;;  %v1273_v63 = vld [vmem:[%s3524_s0 + $0xcf0] sm:$0xff] }
  0xc2   :  { %1698 = vmatpush1.bf16.msra.mxu0 %v1697_v9  ;;  %v1783_v9 = vpack.c.bf16 %v1208_v4, %v1200_v3  ;;  %v1290_v3 = vld [vmem:[%s3524_s0 + $0xd78] sm:$0xff] }
  0xc3   :  { %1762 = vmatpush1.bf16.msra.mxu1 %v1761_v10  ;;  %1764 = vmatprep.subr.bf16.mxu0 %v1763_v11  ;;  %v1199_v10 = vld [vmem:[%s3524_s0 + $0xaa0] sm:$0xff] }
  0xc4   :  { %1828 = vmatprep.subr.bf16.mxu1 %v1827_v17  ;;  %v1207_v11 = vld [vmem:[%s3524_s0 + $0xae0] sm:$0xff]  ;;  %v1216_v17 = vld [vmem:[%s3524_s0 + $0xb28] sm:$0xff] }
  0xc5   :  { %883 = vmatmul.mubr.f32.vlgmr.msra.gmra.mrb[4].mxu0 %v3137_v33  ;;  %v1785_v21 = vpack.c.bf16 %v1207_v11, %v1199_v10  ;;  %v1867_v10 = vpack.c.bf16 %v1290_v3, %v1282_v2  ;;  %v1289_v11 = vld [vmem:[%s3524_s0 + $0xd70] sm:$0xff] }
  0xc6   :  { %954 = vmatmul.mubr.f32.vlgmr.msra.gmra.mrb[4].mxu1 %v3137_v33  ;;  %1766 = vmatpush1.bf16.msra.mxu0 %v1765_v23  ;;  %v1787_v23 = vpack.c.bf16 %v1224_v18, %v1216_v17  ;;  %v1306_v17 = vld [vmem:[%s3524_s0 + $0xdf8] sm:$0xff] }
  0xc7   :  { %1830 = vmatpush1.bf16.msra.mxu1 %v1829_v24  ;;  %1768 = vmatprep.subr.bf16.mxu0 %v1767_v25  ;;  %v1215_v24 = vld [vmem:[%s3524_s0 + $0xb20] sm:$0xff] }
  0xc8   :  { %1832 = vmatprep.subr.bf16.mxu1 %v1831_v29  ;;  %1024 = vmatprep.mubr.f32.mxu0 %v1892_v45  ;;  %v1223_v25 = vld [vmem:[%s3524_s0 + $0xb60] sm:$0xff]  ;;  %v1232_v29 = vld [vmem:[%s3524_s0 + $0xba8] sm:$0xff] }
  0xc9   :  { %1095 = vmatprep.mubr.f32.mxu1 %v1892_v45  ;;  %v1789_v34 = vpack.c.bf16 %v1223_v25, %v1215_v24  ;;  %v1871_v24 = vpack.c.bf16 %v1306_v17, %v1298_v14  ;;  %v1305_v25 = vld [vmem:[%s3524_s0 + $0xdf0] sm:$0xff] }
  0xca   :  { %1770 = vmatpush1.bf16.msra.mxu0 %v1769_v36  ;;  %v1791_v36 = vpack.c.bf16 %v1240_v30, %v1232_v29  ;;  %v1322_v29 = vld [vmem:[%s3524_s0 + $0xe78] sm:$0xff] }
  0xcb   :  { %1834 = vmatpush1.bf16.msra.mxu1 %v1833_v37  ;;  %1772 = vmatprep.subr.bf16.mxu0 %v1771_v38  ;;  %v1231_v37 = vld [vmem:[%s3524_s0 + $0xba0] sm:$0xff] }
  0xcc   :  { %1836 = vmatprep.subr.bf16.mxu1 %v1835_v41  ;;  %v1239_v38 = vld [vmem:[%s3524_s0 + $0xbe0] sm:$0xff]  ;;  %v1248_v41 = vld [vmem:[%s3524_s0 + $0xc28] sm:$0xff] }
  0xcd   :  { %v1793_v45 = vpack.c.bf16 %v1239_v38, %v1231_v37  ;;  %v1795_v47 = vpack.c.bf16 %v1256_v42, %v1248_v41  ;;  %v1875_v37 = vpack.c.bf16 %v1322_v29, %v1314_v28  ;;  %v1321_v38 = vld [vmem:[%s3524_s0 + $0xe70] sm:$0xff]  ;;  %v1338_v41 = vld [vmem:[%s3524_s0 + $0xef8] sm:$0xff] }
  0xce   :  { %1774 = vmatpush1.bf16.msra.mxu0 %v1773_v48  ;;  %v1247_v48 = vld [vmem:[%s3524_s0 + $0xc20] sm:$0xff] }
  0xcf   :  { %1838 = vmatpush1.bf16.msra.mxu1 %v1837_v49  ;;  %1776 = vmatprep.subr.bf16.mxu0 %v1775_v50  ;;  %v1255_v49 = vld [vmem:[%s3524_s0 + $0xc60] sm:$0xff]  ;;  %v1249_v50 = vld [vmem:[%s3524_s0 + $0xc30] sm:$0xff] }
  0xd0   :  { %1840 = vmatprep.subr.bf16.mxu1 %v1839_v53  ;;  %v1272_v53 = vld [vmem:[%s3524_s0 + $0xce8] sm:$0xff]  ;;  %v1797_v56 = vpack.c.bf16 %v1255_v49, %v1247_v48  ;;  %v1861_v57 = vpack.c.bf16 %v1257_v16, %v1249_v50  ;;  %v1879_v48 = vpack.c.bf16 %v1338_v41, %v1330_v15  ;;  %v1337_v49 = vld [vmem:[%s3524_s0 + $0xef0] sm:$0xff]  ;;  %v1346_v16 = vld [vmem:[%s3524_s0 + $0xf38] sm:$0xff] }
  0xd1   :  { %v1799_v58 = vpack.c.bf16 %v1272_v53, %v1264_v52  ;;  %v1344_v50 = vld [vmem:[%s3524_s0 + $0xf28] sm:$0xff]  ;;  %v1354_v52 = vld [vmem:[%s3524_s0 + $0xf78] sm:$0xff] }
  0xd2   :  { %1778 = vmatpush1.bf16.msra.mxu0 %v1777_v59  ;;  %v1263_v59 = vld [vmem:[%s3524_s0 + $0xca0] sm:$0xff] }
  0xd3   :  { %1842 = vmatpush1.bf16.msra.mxu1 %v1841_v60  ;;  %1780 = vmatprep.subr.bf16.mxu0 %v1779_v61  ;;  %v1271_v60 = vld [vmem:[%s3524_s0 + $0xce0] sm:$0xff]  ;;  %v1265_v61 = vld [vmem:[%s3524_s0 + $0xcb0] sm:$0xff] }
  0xd4   :  { %1844 = vmatprep.subr.bf16.mxu1 %v1843_v1  ;;  %v1288_v1 = vld [vmem:[%s3524_s0 + $0xd68] sm:$0xff]  ;;  %v1801_v4 = vpack.c.bf16 %v1271_v60, %v1263_v59  ;;  %v1865_v5 = vpack.c.bf16 %v1273_v63, %v1265_v61  ;;  %v1883_v59 = vpack.c.bf16 %v1354_v52, %v1346_v16  ;;  %v1353_v60 = vld [vmem:[%s3524_s0 + $0xf70] sm:$0xff]  ;;  %v1362_v63 = vld [vmem:[%s3524_s0 + $0xfb8] sm:$0xff] }
  0xd5   :  { %v1803_v6 = vpack.c.bf16 %v1288_v1, %v1280_v0  ;;  %v1360_v61 = vld [vmem:[%s3524_s0 + $0xfa8] sm:$0xff]  ;;  %v1370_v0 = vld [vmem:[%s3524_s0 + $0xff8] sm:$0xff] }
  0xd6   :  { %1782 = vmatpush1.bf16.msra.mxu0 %v1781_v7  ;;  %v1279_v7 = vld [vmem:[%s3524_s0 + $0xd20] sm:$0xff] }
  0xd7   :  { %1846 = vmatpush1.bf16.msra.mxu1 %v1845_v8  ;;  %1784 = vmatprep.subr.bf16.mxu0 %v1783_v9  ;;  %v1287_v8 = vld [vmem:[%s3524_s0 + $0xd60] sm:$0xff]  ;;  %v1281_v9 = vld [vmem:[%s3524_s0 + $0xd30] sm:$0xff] }
  0xd8   :  { %1848 = vmatprep.subr.bf16.mxu1 %v1847_v13  ;;  %v1304_v13 = vld [vmem:[%s3524_s0 + $0xde8] sm:$0xff]  ;;  %v1805_v18 = vpack.c.bf16 %v1287_v8, %v1279_v7  ;;  %v1869_v19 = vpack.c.bf16 %v1289_v11, %v1281_v9  ;;  %v1361_v7 = vld [vmem:[%s3524_s0 + $0xfb0] sm:$0xff] }
  0xd9   :  { %v1807_v20 = vpack.c.bf16 %v1304_v13, %v1296_v12  ;;  %v1369_v8 = vld [vmem:[%s3524_s0 + $0xff0] sm:$0xff] }
  0xda   :  { %1786 = vmatpush1.bf16.msra.mxu0 %v1785_v21  ;;  %v1295_v21 = vld [vmem:[%s3524_s0 + $0xda0] sm:$0xff] }
  0xdb   :  { %1850 = vmatpush1.bf16.msra.mxu1 %v1849_v22  ;;  %1788 = vmatprep.subr.bf16.mxu0 %v1787_v23  ;;  %v1303_v22 = vld [vmem:[%s3524_s0 + $0xde0] sm:$0xff]  ;;  %v1297_v23 = vld [vmem:[%s3524_s0 + $0xdb0] sm:$0xff] }
  0xdc   :  { %1852 = vmatprep.subr.bf16.mxu1 %v1851_v27  ;;  %v1320_v27 = vld [vmem:[%s3524_s0 + $0xe68] sm:$0xff]  ;;  %v1809_v30 = vpack.c.bf16 %v1303_v22, %v1295_v21  ;;  %v1873_v31 = vpack.c.bf16 %v1305_v25, %v1297_v23 }
  0xdd   :  { %v1811_v32 = vpack.c.bf16 %v1320_v27, %v1312_v26 }
  0xde   :  { %1790 = vmatpush1.bf16.msra.mxu0 %v1789_v34  ;;  %v1311_v34 = vld [vmem:[%s3524_s0 + $0xe20] sm:$0xff] }
  0xdf   :  { %1854 = vmatpush1.bf16.msra.mxu1 %v1853_v35  ;;  %1792 = vmatprep.subr.bf16.mxu0 %v1791_v36  ;;  %v1319_v35 = vld [vmem:[%s3524_s0 + $0xe60] sm:$0xff]  ;;  %v1313_v36 = vld [vmem:[%s3524_s0 + $0xe30] sm:$0xff] }
  0xe0   :  { %1856 = vmatprep.subr.bf16.mxu1 %v1855_v40  ;;  %v1336_v40 = vld [vmem:[%s3524_s0 + $0xee8] sm:$0xff]  ;;  %v1813_v42 = vpack.c.bf16 %v1319_v35, %v1311_v34  ;;  %v1877_v43 = vpack.c.bf16 %v1321_v38, %v1313_v36 }
  0xe1   :  { %v1815_v44 = vpack.c.bf16 %v1336_v40, %v1328_v39 }
  0xe2   :  { %1794 = vmatpush1.bf16.msra.mxu0 %v1793_v45  ;;  %v1327_v45 = vld [vmem:[%s3524_s0 + $0xea0] sm:$0xff] }
  0xe3   :  { %1858 = vmatpush1.bf16.msra.mxu1 %v1857_v46  ;;  %1796 = vmatprep.subr.bf16.mxu0 %v1795_v47  ;;  %v1335_v46 = vld [vmem:[%s3524_s0 + $0xee0] sm:$0xff]  ;;  %v1329_v47 = vld [vmem:[%s3524_s0 + $0xeb0] sm:$0xff] }
  0xe4   :  { %1860 = vmatprep.subr.bf16.mxu1 %v1859_v51  ;;  %v1352_v51 = vld [vmem:[%s3524_s0 + $0xf68] sm:$0xff]  ;;  %v1817_v53 = vpack.c.bf16 %v1335_v46, %v1327_v45  ;;  %v1881_v54 = vpack.c.bf16 %v1337_v49, %v1329_v47 }
  0xe5   :  { %v1819_v55 = vpack.c.bf16 %v1352_v51, %v1344_v50 }
  0xe6   :  { %1798 = vmatpush1.bf16.msra.mxu0 %v1797_v56  ;;  %v1343_v56 = vld [vmem:[%s3524_s0 + $0xf20] sm:$0xff] }
  0xe7   :  { %1862 = vmatpush1.bf16.msra.mxu1 %v1861_v57  ;;  %1800 = vmatprep.subr.bf16.mxu0 %v1799_v58  ;;  %v1351_v57 = vld [vmem:[%s3524_s0 + $0xf60] sm:$0xff]  ;;  %v1345_v58 = vld [vmem:[%s3524_s0 + $0xf30] sm:$0xff] }
  0xe8   :  { %1864 = vmatprep.subr.bf16.mxu1 %v1863_v62  ;;  %v1368_v62 = vld [vmem:[%s3524_s0 + $0xfe8] sm:$0xff]  ;;  %v1821_v1 = vpack.c.bf16 %v1351_v57, %v1343_v56  ;;  %v1885_v2 = vpack.c.bf16 %v1353_v60, %v1345_v58 }
  0xe9   :  { %v1823_v3 = vpack.c.bf16 %v1368_v62, %v1360_v61 }
  0xea   :  { %1802 = vmatpush1.bf16.msra.mxu0 %v1801_v4  ;;  %v1359_v4 = vld [vmem:[%s3524_s0 + $0xfa0] sm:$0xff] }
  0xeb   :  { %1866 = vmatpush1.bf16.msra.mxu1 %v1865_v5  ;;  %1804 = vmatprep.subr.bf16.mxu0 %v1803_v6  ;;  %v1367_v5 = vld [vmem:[%s3524_s0 + $0xfe0] sm:$0xff]  ;;  %v1887_v6 = vpack.c.bf16 %v1370_v0, %v1362_v63 }
  0xec   :  { %1868 = vmatprep.subr.bf16.mxu1 %v1867_v10  ;;  %v1825_v9 = vpack.c.bf16 %v1367_v5, %v1359_v4  ;;  %v1889_v10 = vpack.c.bf16 %v1369_v8, %v1361_v7 }
  0xee   :  { %1806 = vmatpush1.bf16.msra.mxu0 %v1805_v18 }
  0xef   :  { %1870 = vmatpush1.bf16.msra.mxu1 %v1869_v19  ;;  %1808 = vmatprep.subr.bf16.mxu0 %v1807_v20 }
  0xf0   :  { %1872 = vmatprep.subr.bf16.mxu1 %v1871_v24 }
  0xf2   :  { %1810 = vmatpush1.bf16.msra.mxu0 %v1809_v30 }
  0xf3   :  { %1874 = vmatpush1.bf16.msra.mxu1 %v1873_v31  ;;  %1812 = vmatprep.subr.bf16.mxu0 %v1811_v32 }
  0xf4   :  { %1876 = vmatprep.subr.bf16.mxu1 %v1875_v37 }
  0xf6   :  { %1814 = vmatpush1.bf16.msra.mxu0 %v1813_v42 }
  0xf7   :  { %1878 = vmatpush1.bf16.msra.mxu1 %v1877_v43  ;;  %1816 = vmatprep.subr.bf16.mxu0 %v1815_v44 }
  0xf8   :  { %1880 = vmatprep.subr.bf16.mxu1 %v1879_v48 }
  0xfa   :  { %1818 = vmatpush1.bf16.msra.mxu0 %v1817_v53 }
  0xfb   :  { %1882 = vmatpush1.bf16.msra.mxu1 %v1881_v54  ;;  %1820 = vmatprep.subr.bf16.mxu0 %v1819_v55 }
  0xfc   :  { %1884 = vmatprep.subr.bf16.mxu1 %v1883_v59 }
  0xfe   :  { %1822 = vmatpush1.bf16.msra.mxu0 %v1821_v1 }
  0xff   :  { %1886 = vmatpush1.bf16.msra.mxu1 %v1885_v2  ;;  %1824 = vmatprep.subr.bf16.mxu0 %v1823_v3 }
 0x100   :  { %1888 = vmatprep.subr.bf16.mxu1 %v1887_v6 }
 0x102   :  { %1826 = vmatpush1.bf16.msra.mxu0 %v1825_v9 }
 0x103   :  { %1890 = vmatpush1.bf16.msra.mxu1 %v1889_v10 }
 0x105   :  { %1025 = vmatmul.mubr.f32.vlgmr.msra.gmra.mrb[6].mxu0 %v3137_v33 }
 0x106   :  { %1096 = vmatmul.mubr.f32.vlgmr.msra.gmra.mrb[6].mxu1 %v3137_v33 }
 0x118   :  { %v335_v11 = vpop.f32.mrb[0].mxu0 }
 0x119   :  { %553 = vst [vmem:[%s3526_s2] sm:$0xff] %v335_v11  ;;  %v406_v12 = vpop.f32.mrb[0].mxu1  ;;  %v337_v13 = vpop.f32.mrb[1].mxu0 }
 0x11a   :  { %555 = vst [vmem:[%s3526_s2 + $0x10] sm:$0xff] %v406_v12  ;;  %554 = vst [vmem:[%s3526_s2 + $0x8] sm:$0xff] %v337_v13  ;;  %v408_v14 = vpop.f32.mrb[1].mxu1 }
 0x11b   :  { %556 = vst [vmem:[%s3526_s2 + $0x18] sm:$0xff] %v408_v14 }
 0x158   :  { %v477_v33 = vpop.f32.mrb[2].mxu0 }
 0x159   :  { %557 = vst [vmem:[%s3526_s2 + $0x20] sm:$0xff] %v477_v33  ;;  %v548_v17 = vpop.f32.mrb[2].mxu1  ;;  %v479_v18 = vpop.f32.mrb[3].mxu0 }
 0x15a   :  { %559 = vst [vmem:[%s3526_s2 + $0x30] sm:$0xff] %v548_v17  ;;  %558 = vst [vmem:[%s3526_s2 + $0x28] sm:$0xff] %v479_v18  ;;  %v550_v19 = vpop.f32.mrb[3].mxu1 }
 0x15b   :  { %560 = vst [vmem:[%s3526_s2 + $0x38] sm:$0xff] %v550_v19 }
 0x198   :  { %v884_v20 = vpop.f32.mrb[4].mxu0 }
 0x199   :  { %1371 = vst [vmem:[%s3526_s2 + $0x40] sm:$0xff] %v884_v20  ;;  %v955_v21 = vpop.f32.mrb[4].mxu1  ;;  %v886_v22 = vpop.f32.mrb[5].mxu0 }
 0x19a   :  { %1373 = vst [vmem:[%s3526_s2 + $0x50] sm:$0xff] %v955_v21  ;;  %1372 = vst [vmem:[%s3526_s2 + $0x48] sm:$0xff] %v886_v22  ;;  %v957_v23 = vpop.f32.mrb[5].mxu1 }
 0x19b   :  { %1374 = vst [vmem:[%s3526_s2 + $0x58] sm:$0xff] %v957_v23 }
 0x1d8   :  { %v1026_v24 = vpop.f32.mrb[6].mxu0 }
 0x1d9   :  { %1375 = vst [vmem:[%s3526_s2 + $0x60] sm:$0xff] %v1026_v24  ;;  %v1097_v25 = vpop.f32.mrb[6].mxu1  ;;  %v1028_v26 = vpop.f32.mrb[7].mxu0 }
 0x1da   :  { %1377 = vst [vmem:[%s3526_s2 + $0x70] sm:$0xff] %v1097_v25  ;;  %1376 = vst [vmem:[%s3526_s2 + $0x68] sm:$0xff] %v1028_v26  ;;  %v1099_v27 = vpop.f32.mrb[7].mxu1 }
 0x1db   :  { %1378 = vst [vmem:[%s3526_s2 + $0x78] sm:$0xff] %v1099_v27 }

// kernel: decoder_forward.25
= control target key start
LH: loop header
LB: loop body
LE: loop exit
PB: predicated region body
PF: predicated region fallthrough
CT: control target
= control target key end

     0   :  { %vm419_vm0 = vcmask 64512   ;;  %s5745_s0 = inlined_call_operand.vmem [shape: f32[2,392,1024], index: 0, kind: input, shape index: {}]   ;;  %s5746_s1 = inlined_call_operand.vmem [shape: f32[3,392], index: 1, kind: input, shape index: {}]   ;;  %s5747_s2 = inlined_call_operand.vmem [shape: f32[3,1], index: 2, kind: input, shape index: {}]   ;;  %s5748_s3 = inlined_call_operand.vmem [shape: f32[2,3,1024], index: 3, kind: output, shape index: {}]  }
   0x1   :  { %v17_v0 = vld [vmem:[%s5745_s0 + $0x8] sm:$0xff]  ;;  %v19_v2 = vld [vmem:[%s5745_s0 + $0x18] sm:$0xff]  ;;  %v16_v5 = vld [vmem:[%s5745_s0] sm:$0xff] }
   0x2   :  { %v25_v1 = vld [vmem:[%s5745_s0 + $0x48] sm:$0xff]  ;;  %v27_v4 = vld [vmem:[%s5745_s0 + $0x58] sm:$0xff]  ;;  %v24_v6 = vld [vmem:[%s5745_s0 + $0x40] sm:$0xff] }
   0x3   :  { %v2422_v3 = vpack.c.bf16 %v25_v1, %v17_v0  ;;  %v2518_v7 = vpack.c.bf16 %v27_v4, %v19_v2  ;;  %v2424_v8 = vpack.c.bf16 %v24_v6, %v16_v5  ;;  %v18_v9 = vld [vmem:[%s5745_s0 + $0x10] sm:$0xff]  ;;  %v33_v11 = vld [vmem:[%s5745_s0 + $0x88] sm:$0xff]  ;;  %v35_v14 = vld [vmem:[%s5745_s0 + $0x98] sm:$0xff] }
   0x4   :  { %v26_v10 = vld [vmem:[%s5745_s0 + $0x50] sm:$0xff]  ;;  %v41_v13 = vld [vmem:[%s5745_s0 + $0xc8] sm:$0xff]  ;;  %v43_v15 = vld [vmem:[%s5745_s0 + $0xd8] sm:$0xff] }
   0x5   :  { %2423 = vmatprep.subr.bf16.mxu0 %v2422_v3  ;;  %v2520_v12 = vpack.c.bf16 %v26_v10, %v18_v9  ;;  %2519 = vmatprep.subr.bf16.mxu1 %v2518_v7  ;;  %v2426_v16 = vpack.c.bf16 %v41_v13, %v33_v11  ;;  %v2522_v17 = vpack.c.bf16 %v43_v15, %v35_v14  ;;  %v32_v18 = vld [vmem:[%s5745_s0 + $0x80] sm:$0xff]  ;;  %v34_v20 = vld [vmem:[%s5745_s0 + $0x90] sm:$0xff]  ;;  %v49_v23 = vld [vmem:[%s5745_s0 + $0x108] sm:$0xff] }
   0x6   :  { %2425 = vmatpush1.bf16.msra.mxu0 %v2424_v8  ;;  %v40_v19 = vld [vmem:[%s5745_s0 + $0xc0] sm:$0xff]  ;;  %v42_v22 = vld [vmem:[%s5745_s0 + $0xd0] sm:$0xff]  ;;  %v57_v24 = vld [vmem:[%s5745_s0 + $0x148] sm:$0xff] }
   0x7   :  { %2521 = vmatpush1.bf16.msra.mxu1 %v2520_v12  ;;  %v2428_v21 = vpack.c.bf16 %v40_v19, %v32_v18  ;;  %2427 = vmatprep.subr.bf16.mxu0 %v2426_v16  ;;  %v2524_v25 = vpack.c.bf16 %v42_v22, %v34_v20  ;;  %v2430_v26 = vpack.c.bf16 %v57_v24, %v49_v23  ;;  %v51_v27 = vld [vmem:[%s5745_s0 + $0x118] sm:$0xff]  ;;  %v48_v29 = vld [vmem:[%s5745_s0 + $0x100] sm:$0xff]  ;;  %v50_v32 = vld [vmem:[%s5745_s0 + $0x110] sm:$0xff] }
   0x8   :  { %2523 = vmatprep.subr.bf16.mxu1 %v2522_v17  ;;  %v59_v28 = vld [vmem:[%s5745_s0 + $0x158] sm:$0xff]  ;;  %v56_v31 = vld [vmem:[%s5745_s0 + $0x140] sm:$0xff]  ;;  %v58_v33 = vld [vmem:[%s5745_s0 + $0x150] sm:$0xff] }
   0x9   :  { %v2526_v30 = vpack.c.bf16 %v59_v28, %v51_v27  ;;  %v2432_v34 = vpack.c.bf16 %v56_v31, %v48_v29  ;;  %v65_v35 = vld [vmem:[%s5745_s0 + $0x188] sm:$0xff]  ;;  %v67_v37 = vld [vmem:[%s5745_s0 + $0x198] sm:$0xff]  ;;  %v2528_v38 = vpack.c.bf16 %v58_v33, %v50_v32  ;;  %v64_v41 = vld [vmem:[%s5745_s0 + $0x180] sm:$0xff] }
   0xa   :  { %2429 = vmatpush1.bf16.msra.mxu0 %v2428_v21  ;;  %v73_v36 = vld [vmem:[%s5745_s0 + $0x1c8] sm:$0xff]  ;;  %v75_v40 = vld [vmem:[%s5745_s0 + $0x1d8] sm:$0xff]  ;;  %v72_v42 = vld [vmem:[%s5745_s0 + $0x1c0] sm:$0xff] }
   0xb   :  { %2525 = vmatpush1.bf16.msra.mxu1 %v2524_v25  ;;  %2431 = vmatprep.subr.bf16.mxu0 %v2430_v26  ;;  %v2434_v39 = vpack.c.bf16 %v73_v36, %v65_v35  ;;  %v2530_v43 = vpack.c.bf16 %v75_v40, %v67_v37  ;;  %v66_v44 = vld [vmem:[%s5745_s0 + $0x190] sm:$0xff]  ;;  %v81_v46 = vld [vmem:[%s5745_s0 + $0x208] sm:$0xff]  ;;  %v83_v48 = vld [vmem:[%s5745_s0 + $0x218] sm:$0xff]  ;;  %v2436_v50 = vpack.c.bf16 %v72_v42, %v64_v41 }
   0xc   :  { %2527 = vmatprep.subr.bf16.mxu1 %v2526_v30  ;;  %v74_v45 = vld [vmem:[%s5745_s0 + $0x1d0] sm:$0xff]  ;;  %v89_v47 = vld [vmem:[%s5745_s0 + $0x248] sm:$0xff]  ;;  %v91_v49 = vld [vmem:[%s5745_s0 + $0x258] sm:$0xff] }
   0xd   :  { %v2532_v51 = vpack.c.bf16 %v74_v45, %v66_v44  ;;  %v2438_v52 = vpack.c.bf16 %v89_v47, %v81_v46  ;;  %v80_v53 = vld [vmem:[%s5745_s0 + $0x200] sm:$0xff]  ;;  %v82_v55 = vld [vmem:[%s5745_s0 + $0x210] sm:$0xff]  ;;  %v2534_v56 = vpack.c.bf16 %v91_v49, %v83_v48  ;;  %v97_v58 = vld [vmem:[%s5745_s0 + $0x288] sm:$0xff] }
   0xe   :  { %2433 = vmatpush1.bf16.msra.mxu0 %v2432_v34  ;;  %v88_v54 = vld [vmem:[%s5745_s0 + $0x240] sm:$0xff]  ;;  %v90_v57 = vld [vmem:[%s5745_s0 + $0x250] sm:$0xff]  ;;  %v105_v59 = vld [vmem:[%s5745_s0 + $0x2c8] sm:$0xff] }
   0xf   :  { %2529 = vmatpush1.bf16.msra.mxu1 %v2528_v38  ;;  %2435 = vmatprep.subr.bf16.mxu0 %v2434_v39  ;;  %v99_v60 = vld [vmem:[%s5745_s0 + $0x298] sm:$0xff]  ;;  %v2440_v62 = vpack.c.bf16 %v88_v54, %v80_v53  ;;  %v2536_v63 = vpack.c.bf16 %v90_v57, %v82_v55  ;;  %v2442_v0 = vpack.c.bf16 %v105_v59, %v97_v58  ;;  %v96_v1 = vld [vmem:[%s5745_s0 + $0x280] sm:$0xff]  ;;  %v98_v3 = vld [vmem:[%s5745_s0 + $0x290] sm:$0xff] }
  0x10   :  { %2531 = vmatprep.subr.bf16.mxu1 %v2530_v43  ;;  %v107_v61 = vld [vmem:[%s5745_s0 + $0x2d8] sm:$0xff]  ;;  %v104_v2 = vld [vmem:[%s5745_s0 + $0x2c0] sm:$0xff]  ;;  %v106_v5 = vld [vmem:[%s5745_s0 + $0x2d0] sm:$0xff] }
  0x11   :  { %v2538_v4 = vpack.c.bf16 %v107_v61, %v99_v60  ;;  %v113_v6 = vld [vmem:[%s5745_s0 + $0x308] sm:$0xff]  ;;  %v115_v8 = vld [vmem:[%s5745_s0 + $0x318] sm:$0xff]  ;;  %v2444_v10 = vpack.c.bf16 %v104_v2, %v96_v1  ;;  %v2540_v11 = vpack.c.bf16 %v106_v5, %v98_v3  ;;  %v112_v13 = vld [vmem:[%s5745_s0 + $0x300] sm:$0xff] }
  0x12   :  { %2437 = vmatpush1.bf16.msra.mxu0 %v2436_v50  ;;  %v121_v7 = vld [vmem:[%s5745_s0 + $0x348] sm:$0xff]  ;;  %v123_v9 = vld [vmem:[%s5745_s0 + $0x358] sm:$0xff]  ;;  %v120_v14 = vld [vmem:[%s5745_s0 + $0x340] sm:$0xff] }
  0x13   :  { %2533 = vmatpush1.bf16.msra.mxu1 %v2532_v51  ;;  %2439 = vmatprep.subr.bf16.mxu0 %v2438_v52  ;;  %v2446_v12 = vpack.c.bf16 %v121_v7, %v113_v6  ;;  %v114_v15 = vld [vmem:[%s5745_s0 + $0x310] sm:$0xff]  ;;  %v2542_v16 = vpack.c.bf16 %v123_v9, %v115_v8  ;;  %v129_v18 = vld [vmem:[%s5745_s0 + $0x388] sm:$0xff]  ;;  %v131_v20 = vld [vmem:[%s5745_s0 + $0x398] sm:$0xff]  ;;  %v2448_v22 = vpack.c.bf16 %v120_v14, %v112_v13 }
  0x14   :  { %2535 = vmatprep.subr.bf16.mxu1 %v2534_v56  ;;  %v122_v17 = vld [vmem:[%s5745_s0 + $0x350] sm:$0xff]  ;;  %v137_v19 = vld [vmem:[%s5745_s0 + $0x3c8] sm:$0xff]  ;;  %v139_v21 = vld [vmem:[%s5745_s0 + $0x3d8] sm:$0xff] }
  0x15   :  { %v2544_v23 = vpack.c.bf16 %v122_v17, %v114_v15  ;;  %v2450_v24 = vpack.c.bf16 %v137_v19, %v129_v18  ;;  %v128_v25 = vld [vmem:[%s5745_s0 + $0x380] sm:$0xff]  ;;  %v130_v27 = vld [vmem:[%s5745_s0 + $0x390] sm:$0xff]  ;;  %v2546_v28 = vpack.c.bf16 %v139_v21, %v131_v20  ;;  %v145_v30 = vld [vmem:[%s5745_s0 + $0x408] sm:$0xff] }
  0x16   :  { %2441 = vmatpush1.bf16.msra.mxu0 %v2440_v62  ;;  %v136_v26 = vld [vmem:[%s5745_s0 + $0x3c0] sm:$0xff]  ;;  %v138_v29 = vld [vmem:[%s5745_s0 + $0x3d0] sm:$0xff]  ;;  %v153_v31 = vld [vmem:[%s5745_s0 + $0x448] sm:$0xff] }
  0x17   :  { %2537 = vmatpush1.bf16.msra.mxu1 %v2536_v63  ;;  %2443 = vmatprep.subr.bf16.mxu0 %v2442_v0  ;;  %v147_v32 = vld [vmem:[%s5745_s0 + $0x418] sm:$0xff]  ;;  %v2452_v34 = vpack.c.bf16 %v136_v26, %v128_v25  ;;  %v2548_v35 = vpack.c.bf16 %v138_v29, %v130_v27  ;;  %v2454_v36 = vpack.c.bf16 %v153_v31, %v145_v30  ;;  %v144_v37 = vld [vmem:[%s5745_s0 + $0x400] sm:$0xff]  ;;  %v146_v39 = vld [vmem:[%s5745_s0 + $0x410] sm:$0xff] }
  0x18   :  { %2539 = vmatprep.subr.bf16.mxu1 %v2538_v4  ;;  %v155_v33 = vld [vmem:[%s5745_s0 + $0x458] sm:$0xff]  ;;  %v152_v38 = vld [vmem:[%s5745_s0 + $0x440] sm:$0xff]  ;;  %v154_v41 = vld [vmem:[%s5745_s0 + $0x450] sm:$0xff] }
  0x19   :  { %v2550_v40 = vpack.c.bf16 %v155_v33, %v147_v32  ;;  %v161_v42 = vld [vmem:[%s5745_s0 + $0x488] sm:$0xff]  ;;  %v163_v44 = vld [vmem:[%s5745_s0 + $0x498] sm:$0xff]  ;;  %v2456_v46 = vpack.c.bf16 %v152_v38, %v144_v37  ;;  %v2552_v47 = vpack.c.bf16 %v154_v41, %v146_v39  ;;  %v160_v49 = vld [vmem:[%s5745_s0 + $0x480] sm:$0xff] }
  0x1a   :  { %2445 = vmatpush1.bf16.msra.mxu0 %v2444_v10  ;;  %v169_v43 = vld [vmem:[%s5745_s0 + $0x4c8] sm:$0xff]  ;;  %v171_v45 = vld [vmem:[%s5745_s0 + $0x4d8] sm:$0xff]  ;;  %v168_v50 = vld [vmem:[%s5745_s0 + $0x4c0] sm:$0xff] }
  0x1b   :  { %2541 = vmatpush1.bf16.msra.mxu1 %v2540_v11  ;;  %2447 = vmatprep.subr.bf16.mxu0 %v2446_v12  ;;  %v2458_v48 = vpack.c.bf16 %v169_v43, %v161_v42  ;;  %v162_v51 = vld [vmem:[%s5745_s0 + $0x490] sm:$0xff]  ;;  %v2554_v52 = vpack.c.bf16 %v171_v45, %v163_v44  ;;  %v177_v54 = vld [vmem:[%s5745_s0 + $0x508] sm:$0xff]  ;;  %v179_v56 = vld [vmem:[%s5745_s0 + $0x518] sm:$0xff]  ;;  %v2460_v58 = vpack.c.bf16 %v168_v50, %v160_v49 }
  0x1c   :  { %2543 = vmatprep.subr.bf16.mxu1 %v2542_v16  ;;  %v170_v53 = vld [vmem:[%s5745_s0 + $0x4d0] sm:$0xff]  ;;  %v185_v55 = vld [vmem:[%s5745_s0 + $0x548] sm:$0xff]  ;;  %v187_v57 = vld [vmem:[%s5745_s0 + $0x558] sm:$0xff] }
  0x1d   :  { %v2556_v59 = vpack.c.bf16 %v170_v53, %v162_v51  ;;  %v2462_v60 = vpack.c.bf16 %v185_v55, %v177_v54  ;;  %v176_v61 = vld [vmem:[%s5745_s0 + $0x500] sm:$0xff]  ;;  %v178_v63 = vld [vmem:[%s5745_s0 + $0x510] sm:$0xff]  ;;  %v2558_v0 = vpack.c.bf16 %v187_v57, %v179_v56  ;;  %v193_v2 = vld [vmem:[%s5745_s0 + $0x588] sm:$0xff] }
  0x1e   :  { %2449 = vmatpush1.bf16.msra.mxu0 %v2448_v22  ;;  %v184_v62 = vld [vmem:[%s5745_s0 + $0x540] sm:$0xff]  ;;  %v186_v1 = vld [vmem:[%s5745_s0 + $0x550] sm:$0xff]  ;;  %v201_v3 = vld [vmem:[%s5745_s0 + $0x5c8] sm:$0xff] }
  0x1f   :  { %2545 = vmatpush1.bf16.msra.mxu1 %v2544_v23  ;;  %2451 = vmatprep.subr.bf16.mxu0 %v2450_v24  ;;  %v195_v4 = vld [vmem:[%s5745_s0 + $0x598] sm:$0xff]  ;;  %v2464_v6 = vpack.c.bf16 %v184_v62, %v176_v61  ;;  %v192_v7 = vld [vmem:[%s5745_s0 + $0x580] sm:$0xff]  ;;  %v2560_v8 = vpack.c.bf16 %v186_v1, %v178_v63  ;;  %v2466_v9 = vpack.c.bf16 %v201_v3, %v193_v2  ;;  %v194_v11 = vld [vmem:[%s5745_s0 + $0x590] sm:$0xff]  ;;  %v3262_v2 = vmov 0  }
  0x20   :  { %2547 = vmatprep.subr.bf16.mxu1 %v2546_v28  ;;  %v203_v5 = vld [vmem:[%s5745_s0 + $0x5d8] sm:$0xff]  ;;  %v200_v10 = vld [vmem:[%s5745_s0 + $0x5c0] sm:$0xff]  ;;  %v202_v12 = vld [vmem:[%s5745_s0 + $0x5d0] sm:$0xff]  ;;  %3223 = vset.pattern.permute.xlu0 %v3262_v2 }
  0x21   :  { %v2562_v13 = vpack.c.bf16 %v203_v5, %v195_v4  ;;  %v209_v14 = vld [vmem:[%s5745_s0 + $0x608] sm:$0xff]  ;;  %v3580_v16 = vld [vmem:[%s5746_s1] sm:$0x77]  ;;  %v211_v17 = vld [vmem:[%s5745_s0 + $0x618] sm:$0xff]  ;;  %v2468_v20 = vpack.c.bf16 %v200_v10, %v192_v7  ;;  %v2564_v21 = vpack.c.bf16 %v202_v12, %v194_v11 }
  0x22   :  { %2453 = vmatpush1.bf16.msra.mxu0 %v2452_v34  ;;  %v217_v15 = vld [vmem:[%s5745_s0 + $0x648] sm:$0xff]  ;;  %v219_v18 = vld [vmem:[%s5745_s0 + $0x658] sm:$0xff]  ;;  %v3590_v19 = vcombine.high %v3580_v16, %v3580_v16  ;;  %v208_v23 = vld [vmem:[%s5745_s0 + $0x600] sm:$0xff] }
  0x23   :  { %2549 = vmatpush1.bf16.msra.mxu1 %v2548_v35  ;;  %2455 = vmatprep.subr.bf16.mxu0 %v2454_v36  ;;  %v2470_v22 = vpack.c.bf16 %v217_v15, %v209_v14  ;;  %v216_v24 = vld [vmem:[%s5745_s0 + $0x640] sm:$0xff]  ;;  %v210_v25 = vld [vmem:[%s5745_s0 + $0x610] sm:$0xff]  ;;  %v2566_v26 = vpack.c.bf16 %v219_v18, %v211_v17  ;;  %v225_v28 = vld [vmem:[%s5745_s0 + $0x688] sm:$0xff] }
  0x24   :  { %2551 = vmatprep.subr.bf16.mxu1 %v2550_v40  ;;  %v218_v27 = vld [vmem:[%s5745_s0 + $0x650] sm:$0xff]  ;;  %v233_v29 = vld [vmem:[%s5745_s0 + $0x6c8] sm:$0xff]  ;;  %486 = vmatprep.mubr.f32.mxu0 %v3590_v19  ;;  %v227_v30 = vld [vmem:[%s5745_s0 + $0x698] sm:$0xff]  ;;  %v2472_v32 = vpack.c.bf16 %v216_v24, %v208_v23 }
  0x25   :  { %v235_v31 = vld [vmem:[%s5745_s0 + $0x6d8] sm:$0xff]  ;;  %628 = vmatprep.mubr.f32.mxu1 %v3590_v19  ;;  %v2568_v33 = vpack.c.bf16 %v218_v27, %v210_v25  ;;  %v2474_v34 = vpack.c.bf16 %v233_v29, %v225_v28  ;;  %v224_v35 = vld [vmem:[%s5745_s0 + $0x680] sm:$0xff]  ;;  %v226_v37 = vld [vmem:[%s5745_s0 + $0x690] sm:$0xff] }
  0x26   :  { %2457 = vmatpush1.bf16.msra.mxu0 %v2456_v46  ;;  %v232_v36 = vld [vmem:[%s5745_s0 + $0x6c0] sm:$0xff]  ;;  %v2570_v38 = vpack.c.bf16 %v235_v31, %v227_v30  ;;  %v234_v39 = vld [vmem:[%s5745_s0 + $0x6d0] sm:$0xff]  ;;  %v241_v40 = vld [vmem:[%s5745_s0 + $0x708] sm:$0xff] }
  0x27   :  { %2553 = vmatpush1.bf16.msra.mxu1 %v2552_v47  ;;  %2459 = vmatprep.subr.bf16.mxu0 %v2458_v48  ;;  %v249_v41 = vld [vmem:[%s5745_s0 + $0x748] sm:$0xff]  ;;  %v243_v42 = vld [vmem:[%s5745_s0 + $0x718] sm:$0xff]  ;;  %v2476_v44 = vpack.c.bf16 %v232_v36, %v224_v35  ;;  %v2572_v45 = vpack.c.bf16 %v234_v39, %v226_v37  ;;  %v240_v47 = vld [vmem:[%s5745_s0 + $0x700] sm:$0xff] }
  0x28   :  { %2555 = vmatprep.subr.bf16.mxu1 %v2554_v52  ;;  %v251_v43 = vld [vmem:[%s5745_s0 + $0x758] sm:$0xff]  ;;  %v2478_v46 = vpack.c.bf16 %v249_v41, %v241_v40  ;;  %v248_v48 = vld [vmem:[%s5745_s0 + $0x740] sm:$0xff]  ;;  %v242_v49 = vld [vmem:[%s5745_s0 + $0x710] sm:$0xff] }
  0x29   :  { %v2574_v50 = vpack.c.bf16 %v251_v43, %v243_v42  ;;  %v250_v51 = vld [vmem:[%s5745_s0 + $0x750] sm:$0xff]  ;;  %v257_v52 = vld [vmem:[%s5745_s0 + $0x788] sm:$0xff]  ;;  %v259_v54 = vld [vmem:[%s5745_s0 + $0x798] sm:$0xff]  ;;  %v2480_v56 = vpack.c.bf16 %v248_v48, %v240_v47 }
  0x2a   :  { %2461 = vmatpush1.bf16.msra.mxu0 %v2460_v58  ;;  %v265_v53 = vld [vmem:[%s5745_s0 + $0x7c8] sm:$0xff]  ;;  %v267_v55 = vld [vmem:[%s5745_s0 + $0x7d8] sm:$0xff]  ;;  %v2576_v57 = vpack.c.bf16 %v250_v51, %v242_v49  ;;  %v258_v61 = vld [vmem:[%s5745_s0 + $0x790] sm:$0xff] }
  0x2b   :  { %2557 = vmatpush1.bf16.msra.mxu1 %v2556_v59  ;;  %2463 = vmatprep.subr.bf16.mxu0 %v2462_v60  ;;  %v2482_v58 = vpack.c.bf16 %v265_v53, %v257_v52  ;;  %v256_v59 = vld [vmem:[%s5745_s0 + $0x780] sm:$0xff]  ;;  %v2578_v62 = vpack.c.bf16 %v267_v55, %v259_v54  ;;  %v266_v63 = vld [vmem:[%s5745_s0 + $0x7d0] sm:$0xff]  ;;  %v281_v1 = vld [vmem:[%s5745_s0 + $0x848] sm:$0xff] }
  0x2c   :  { %2559 = vmatprep.subr.bf16.mxu1 %v2558_v0  ;;  %v264_v60 = vld [vmem:[%s5745_s0 + $0x7c0] sm:$0xff]  ;;  %v273_v0 = vld [vmem:[%s5745_s0 + $0x808] sm:$0xff]  ;;  %v275_v3 = vld [vmem:[%s5745_s0 + $0x818] sm:$0xff] }
  0x2d   :  { %v283_v4 = vld [vmem:[%s5745_s0 + $0x858] sm:$0xff]  ;;  %v2484_v5 = vpack.c.bf16 %v264_v60, %v256_v59  ;;  %v2486_v7 = vpack.c.bf16 %v281_v1, %v273_v0  ;;  %v274_v10 = vld [vmem:[%s5745_s0 + $0x810] sm:$0xff]  ;;  %v297_v14 = vld [vmem:[%s5745_s0 + $0x8c8] sm:$0xff] }
  0x2e   :  { %2465 = vmatpush1.bf16.msra.mxu0 %v2464_v6  ;;  %v2580_v6 = vpack.c.bf16 %v266_v63, %v258_v61  ;;  %v2582_v11 = vpack.c.bf16 %v283_v4, %v275_v3  ;;  %v282_v12 = vld [vmem:[%s5745_s0 + $0x850] sm:$0xff]  ;;  %v291_v15 = vld [vmem:[%s5745_s0 + $0x898] sm:$0xff]  ;;  %v296_v23 = vld [vmem:[%s5745_s0 + $0x8c0] sm:$0xff] }
  0x2f   :  { %2561 = vmatpush1.bf16.msra.mxu1 %v2560_v8  ;;  %2467 = vmatprep.subr.bf16.mxu0 %v2466_v9  ;;  %v272_v8 = vld [vmem:[%s5745_s0 + $0x800] sm:$0xff]  ;;  %v299_v17 = vld [vmem:[%s5745_s0 + $0x8d8] sm:$0xff]  ;;  %v290_v24 = vld [vmem:[%s5745_s0 + $0x890] sm:$0xff] }
  0x30   :  { %2563 = vmatprep.subr.bf16.mxu1 %v2562_v13  ;;  %v280_v9 = vld [vmem:[%s5745_s0 + $0x840] sm:$0xff]  ;;  %v289_v13 = vld [vmem:[%s5745_s0 + $0x888] sm:$0xff]  ;;  %v298_v27 = vld [vmem:[%s5745_s0 + $0x8d0] sm:$0xff] }
  0x31   :  { %v2488_v18 = vpack.c.bf16 %v280_v9, %v272_v8  ;;  %v3726_v25 = vld [vmem:[%s5746_s1 + $0x8] sm:$0x77]  ;;  %v307_v31 = vld [vmem:[%s5745_s0 + $0x918] sm:$0xff]  ;;  %v304_v36 = vld [vmem:[%s5745_s0 + $0x900] sm:$0xff] }
  0x32   :  { %2469 = vmatpush1.bf16.msra.mxu0 %v2468_v20  ;;  %v288_v20 = vld [vmem:[%s5745_s0 + $0x880] sm:$0xff]  ;;  %v305_v28 = vld [vmem:[%s5745_s0 + $0x908] sm:$0xff]  ;;  %v3739_v30 = vcombine.high %v3726_v25, %v3726_v25  ;;  %v314_v40 = vld [vmem:[%s5745_s0 + $0x950] sm:$0xff] }
  0x33   :  { %2565 = vmatpush1.bf16.msra.mxu1 %v2564_v21  ;;  %2471 = vmatprep.subr.bf16.mxu0 %v2470_v22  ;;  %v2584_v21 = vpack.c.bf16 %v282_v12, %v274_v10  ;;  %v2490_v22 = vpack.c.bf16 %v297_v14, %v289_v13  ;;  %v313_v29 = vld [vmem:[%s5745_s0 + $0x948] sm:$0xff]  ;;  %v312_v37 = vld [vmem:[%s5745_s0 + $0x940] sm:$0xff]  ;;  %v323_v43 = vld [vmem:[%s5745_s0 + $0x998] sm:$0xff] }
  0x34   :  { %2567 = vmatprep.subr.bf16.mxu1 %v2566_v26  ;;  %v2586_v26 = vpack.c.bf16 %v299_v17, %v291_v15  ;;  %v2494_v35 = vpack.c.bf16 %v313_v29, %v305_v28  ;;  %v321_v41 = vld [vmem:[%s5745_s0 + $0x988] sm:$0xff]  ;;  %v320_v48 = vld [vmem:[%s5745_s0 + $0x980] sm:$0xff]  ;;  %v330_v52 = vld [vmem:[%s5745_s0 + $0x9d0] sm:$0xff] }
  0x35   :  { %v329_v42 = vld [vmem:[%s5745_s0 + $0x9c8] sm:$0xff]  ;;  %v328_v49 = vld [vmem:[%s5745_s0 + $0x9c0] sm:$0xff]  ;;  %v339_v55 = vld [vmem:[%s5745_s0 + $0xa18] sm:$0xff] }
  0x36   :  { %2473 = vmatpush1.bf16.msra.mxu0 %v2472_v32  ;;  %v315_v32 = vld [vmem:[%s5745_s0 + $0x958] sm:$0xff]  ;;  %v2498_v47 = vpack.c.bf16 %v329_v42, %v321_v41  ;;  %v337_v53 = vld [vmem:[%s5745_s0 + $0xa08] sm:$0xff]  ;;  %v336_v60 = vld [vmem:[%s5745_s0 + $0xa00] sm:$0xff] }
  0x37   :  { %2569 = vmatpush1.bf16.msra.mxu1 %v2568_v33  ;;  %2475 = vmatprep.subr.bf16.mxu0 %v2474_v34  ;;  %v2492_v33 = vpack.c.bf16 %v296_v23, %v288_v20  ;;  %v2588_v34 = vpack.c.bf16 %v298_v27, %v290_v24  ;;  %v2590_v39 = vpack.c.bf16 %v315_v32, %v307_v31  ;;  %v345_v54 = vld [vmem:[%s5745_s0 + $0xa48] sm:$0xff]  ;;  %v344_v61 = vld [vmem:[%s5745_s0 + $0xa40] sm:$0xff]  ;;  %v346_v0 = vld [vmem:[%s5745_s0 + $0xa50] sm:$0xff] }
  0x38   :  { %2571 = vmatprep.subr.bf16.mxu1 %v2570_v38  ;;  %v306_v38 = vld [vmem:[%s5745_s0 + $0x910] sm:$0xff]  ;;  %v2502_v59 = vpack.c.bf16 %v345_v54, %v337_v53  ;;  %v353_v1 = vld [vmem:[%s5745_s0 + $0xa88] sm:$0xff]  ;;  %v355_v3 = vld [vmem:[%s5745_s0 + $0xa98] sm:$0xff] }
  0x39   :  { %v361_v2 = vld [vmem:[%s5745_s0 + $0xac8] sm:$0xff]  ;;  %v363_v4 = vld [vmem:[%s5745_s0 + $0xad8] sm:$0xff]  ;;  %v352_v8 = vld [vmem:[%s5745_s0 + $0xa80] sm:$0xff] }
  0x3a   :  { %2477 = vmatpush1.bf16.msra.mxu0 %v2476_v44  ;;  %v331_v44 = vld [vmem:[%s5745_s0 + $0x9d8] sm:$0xff]  ;;  %v360_v9 = vld [vmem:[%s5745_s0 + $0xac0] sm:$0xff]  ;;  %v354_v10 = vld [vmem:[%s5745_s0 + $0xa90] sm:$0xff] }
  0x3b   :  { %2573 = vmatpush1.bf16.msra.mxu1 %v2572_v45  ;;  %2479 = vmatprep.subr.bf16.mxu0 %v2478_v46  ;;  %v2496_v45 = vpack.c.bf16 %v312_v37, %v304_v36  ;;  %v2592_v46 = vpack.c.bf16 %v314_v40, %v306_v38  ;;  %v2594_v51 = vpack.c.bf16 %v331_v44, %v323_v43  ;;  %v362_v12 = vld [vmem:[%s5745_s0 + $0xad0] sm:$0xff]  ;;  %v369_v13 = vld [vmem:[%s5745_s0 + $0xb08] sm:$0xff]  ;;  %v371_v15 = vld [vmem:[%s5745_s0 + $0xb18] sm:$0xff] }
  0x3c   :  { %2575 = vmatprep.subr.bf16.mxu1 %v2574_v50  ;;  %v322_v50 = vld [vmem:[%s5745_s0 + $0x990] sm:$0xff]  ;;  %v377_v14 = vld [vmem:[%s5745_s0 + $0xb48] sm:$0xff]  ;;  %v379_v17 = vld [vmem:[%s5745_s0 + $0xb58] sm:$0xff]  ;;  %v2604_v20 = vpack.c.bf16 %v362_v12, %v354_v10 }
  0x3d   :  { %v376_v23 = vld [vmem:[%s5745_s0 + $0xb40] sm:$0xff]  ;;  %v370_v24 = vld [vmem:[%s5745_s0 + $0xb10] sm:$0xff]  ;;  %v385_v28 = vld [vmem:[%s5745_s0 + $0xb88] sm:$0xff] }
  0x3e   :  { %2481 = vmatpush1.bf16.msra.mxu0 %v2480_v56  ;;  %v347_v56 = vld [vmem:[%s5745_s0 + $0xa58] sm:$0xff]  ;;  %v378_v27 = vld [vmem:[%s5745_s0 + $0xb50] sm:$0xff]  ;;  %v393_v29 = vld [vmem:[%s5745_s0 + $0xbc8] sm:$0xff] }
  0x3f   :  { %2577 = vmatpush1.bf16.msra.mxu1 %v2576_v57  ;;  %2483 = vmatprep.subr.bf16.mxu0 %v2482_v58  ;;  %v2500_v57 = vpack.c.bf16 %v328_v49, %v320_v48  ;;  %v2596_v58 = vpack.c.bf16 %v330_v52, %v322_v50  ;;  %v2598_v63 = vpack.c.bf16 %v347_v56, %v339_v55  ;;  %v387_v31 = vld [vmem:[%s5745_s0 + $0xb98] sm:$0xff]  ;;  %v384_v36 = vld [vmem:[%s5745_s0 + $0xb80] sm:$0xff]  ;;  %v394_v40 = vld [vmem:[%s5745_s0 + $0xbd0] sm:$0xff] }
  0x40   :  { %2579 = vmatprep.subr.bf16.mxu1 %v2578_v62  ;;  %v338_v62 = vld [vmem:[%s5745_s0 + $0xa10] sm:$0xff]  ;;  %v395_v32 = vld [vmem:[%s5745_s0 + $0xbd8] sm:$0xff]  ;;  %v392_v37 = vld [vmem:[%s5745_s0 + $0xbc0] sm:$0xff] }
  0x41   :  { %v2610_v38 = vpack.c.bf16 %v395_v32, %v387_v31  ;;  %v2516_v41 = vpack.c.bf16 %v392_v37, %v384_v36  ;;  %v401_v43 = vld [vmem:[%s5745_s0 + $0xc08] sm:$0xff]  ;;  %v403_v44 = vld [vmem:[%s5745_s0 + $0xc18] sm:$0xff]  ;;  %v20_v50 = vld [vmem:[%s5745_s0 + $0x20] sm:$0xff] }
  0x42   :  { %2485 = vmatpush1.bf16.msra.mxu0 %v2484_v5  ;;  %v2504_v5 = vpack.c.bf16 %v344_v61, %v336_v60  ;;  %v23_v48 = vld [vmem:[%s5745_s0 + $0x38] sm:$0xff]  ;;  %v22_v52 = vld [vmem:[%s5745_s0 + $0x30] sm:$0xff]  ;;  %v37_v54 = vld [vmem:[%s5745_s0 + $0xa8] sm:$0xff] }
  0x43   :  { %2581 = vmatpush1.bf16.msra.mxu1 %v2580_v6  ;;  %2487 = vmatprep.subr.bf16.mxu0 %v2486_v7  ;;  %v2600_v6 = vpack.c.bf16 %v346_v0, %v338_v62  ;;  %v2506_v7 = vpack.c.bf16 %v361_v2, %v353_v1  ;;  %v31_v49 = vld [vmem:[%s5745_s0 + $0x78] sm:$0xff]  ;;  %v30_v53 = vld [vmem:[%s5745_s0 + $0x70] sm:$0xff]  ;;  %v45_v55 = vld [vmem:[%s5745_s0 + $0xe8] sm:$0xff] }
  0x44   :  { %2583 = vmatprep.subr.bf16.mxu1 %v2582_v11  ;;  %v2602_v11 = vpack.c.bf16 %v363_v4, %v355_v3  ;;  %v402_v56 = vld [vmem:[%s5745_s0 + $0xc10] sm:$0xff]  ;;  %v2710_v60 = vpack.c.bf16 %v31_v49, %v23_v48  ;;  %v2712_v62 = vpack.c.bf16 %v30_v53, %v22_v52  ;;  %v36_v0 = vld [vmem:[%s5745_s0 + $0xa0] sm:$0xff]  ;;  %v85_v32 = vld [vmem:[%s5745_s0 + $0x228] sm:$0xff] }
  0x45   :  { %487 = vmatmul.mubr.f32.vlgmr.msra.gmra.mrb[0].mxu0 %v3580_v16  ;;  %v44_v1 = vld [vmem:[%s5745_s0 + $0xe0] sm:$0xff]  ;;  %v38_v2 = vld [vmem:[%s5745_s0 + $0xb0] sm:$0xff] }
  0x46   :  { %2489 = vmatpush1.bf16.msra.mxu0 %v2488_v18  ;;  %629 = vmatmul.mubr.f32.vlgmr.msra.gmra.mrb[0].mxu1 %v3580_v16  ;;  %v2508_v18 = vpack.c.bf16 %v360_v9, %v352_v8  ;;  %v46_v4 = vld [vmem:[%s5745_s0 + $0xf0] sm:$0xff]  ;;  %v63_v8 = vld [vmem:[%s5745_s0 + $0x178] sm:$0xff]  ;;  %v2620_v9 = vpack.c.bf16 %v44_v1, %v36_v0  ;;  %v60_v12 = vld [vmem:[%s5745_s0 + $0x160] sm:$0xff] }
  0x47   :  { %2585 = vmatpush1.bf16.msra.mxu1 %v2584_v21  ;;  %2491 = vmatprep.subr.bf16.mxu0 %v2490_v22  ;;  %v2510_v21 = vpack.c.bf16 %v377_v14, %v369_v13  ;;  %v368_v22 = vld [vmem:[%s5745_s0 + $0xb00] sm:$0xff]  ;;  %v2716_v10 = vpack.c.bf16 %v46_v4, %v38_v2  ;;  %v54_v13 = vld [vmem:[%s5745_s0 + $0x130] sm:$0xff]  ;;  %v133_v4 = vld [vmem:[%s5745_s0 + $0x3a8] sm:$0xff] }
  0x48   :  { %2587 = vmatprep.subr.bf16.mxu1 %v2586_v26  ;;  %2018 = vmatprep.mubr.msk.f32.mxu0 %vm419_vm0, %v3739_v30  ;;  %v2606_v26 = vpack.c.bf16 %v379_v17, %v371_v15  ;;  %v62_v15 = vld [vmem:[%s5745_s0 + $0x170] sm:$0xff]  ;;  %v69_v17 = vld [vmem:[%s5745_s0 + $0x1a8] sm:$0xff]  ;;  %v108_v52 = vld [vmem:[%s5745_s0 + $0x2e0] sm:$0xff] }
  0x49   :  { %2019 = vmatprep.mubr.msk.f32.mxu1 %vm419_vm0, %v3739_v30  ;;  %v78_v31 = vld [vmem:[%s5745_s0 + $0x1f0] sm:$0xff]  ;;  %v124_v0 = vld [vmem:[%s5745_s0 + $0x360] sm:$0xff] }
  0x4a   :  { %2493 = vmatpush1.bf16.msra.mxu0 %v2492_v33  ;;  %v2512_v33 = vpack.c.bf16 %v376_v23, %v368_v22  ;;  %v2720_v23 = vpack.c.bf16 %v62_v15, %v54_v13  ;;  %v102_v53 = vld [vmem:[%s5745_s0 + $0x2b0] sm:$0xff] }
  0x4b   :  { %2589 = vmatpush1.bf16.msra.mxu1 %v2588_v34  ;;  %2495 = vmatprep.subr.bf16.mxu0 %v2494_v35  ;;  %v2608_v34 = vpack.c.bf16 %v378_v27, %v370_v24  ;;  %v2514_v35 = vpack.c.bf16 %v393_v29, %v385_v28  ;;  %v76_v27 = vld [vmem:[%s5745_s0 + $0x1e0] sm:$0xff]  ;;  %v70_v28 = vld [vmem:[%s5745_s0 + $0x1b0] sm:$0xff] }
  0x4c   :  { %2591 = vmatprep.subr.bf16.mxu1 %v2590_v39  ;;  %v386_v39 = vld [vmem:[%s5745_s0 + $0xb90] sm:$0xff]  ;;  %v2724_v37 = vpack.c.bf16 %v78_v31, %v70_v28 }
  0x4d   :  { %v2612_v42 = vpack.c.bf16 %v394_v40, %v386_v39  ;;  %v84_v39 = vld [vmem:[%s5745_s0 + $0x220] sm:$0xff]  ;;  %v118_v1 = vld [vmem:[%s5745_s0 + $0x330] sm:$0xff] }
  0x4e   :  { %2497 = vmatpush1.bf16.msra.mxu0 %v2496_v45  ;;  %v21_v45 = vld [vmem:[%s5745_s0 + $0x28] sm:$0xff]  ;;  %v92_v40 = vld [vmem:[%s5745_s0 + $0x260] sm:$0xff]  ;;  %v134_v13 = vld [vmem:[%s5745_s0 + $0x3b0] sm:$0xff] }
  0x4f   :  { %2593 = vmatpush1.bf16.msra.mxu1 %v2592_v46  ;;  %2499 = vmatprep.subr.bf16.mxu0 %v2498_v47  ;;  %v400_v46 = vld [vmem:[%s5745_s0 + $0xc00] sm:$0xff]  ;;  %v29_v47 = vld [vmem:[%s5745_s0 + $0x68] sm:$0xff]  ;;  %v2632_v48 = vpack.c.bf16 %v92_v40, %v84_v39  ;;  %v142_v15 = vld [vmem:[%s5745_s0 + $0x3f0] sm:$0xff] }
  0x50   :  { %2595 = vmatprep.subr.bf16.mxu1 %v2594_v51  ;;  %v28_v51 = vld [vmem:[%s5745_s0 + $0x60] sm:$0xff]  ;;  %v150_v28 = vld [vmem:[%s5745_s0 + $0x430] sm:$0xff] }
  0x51   :  { %v2616_v61 = vpack.c.bf16 %v28_v51, %v20_v50  ;;  %v100_v51 = vld [vmem:[%s5745_s0 + $0x2a0] sm:$0xff]  ;;  %v158_v31 = vld [vmem:[%s5745_s0 + $0x470] sm:$0xff] }
  0x52   :  { %2501 = vmatpush1.bf16.msra.mxu0 %v2500_v57  ;;  %v2614_v57 = vpack.c.bf16 %v29_v47, %v21_v45  ;;  %v109_v45 = vld [vmem:[%s5745_s0 + $0x2e8] sm:$0xff]  ;;  %v111_v47 = vld [vmem:[%s5745_s0 + $0x2f8] sm:$0xff]  ;;  %v164_v39 = vld [vmem:[%s5745_s0 + $0x4a0] sm:$0xff] }
  0x53   :  { %2597 = vmatpush1.bf16.msra.mxu1 %v2596_v58  ;;  %2503 = vmatprep.subr.bf16.mxu0 %v2502_v59  ;;  %v39_v58 = vld [vmem:[%s5745_s0 + $0xb8] sm:$0xff]  ;;  %v172_v40 = vld [vmem:[%s5745_s0 + $0x4e0] sm:$0xff] }
  0x54   :  { %2599 = vmatprep.subr.bf16.mxu1 %v2598_v63  ;;  %v47_v59 = vld [vmem:[%s5745_s0 + $0xf8] sm:$0xff]  ;;  %v2618_v63 = vpack.c.bf16 %v45_v55, %v37_v54  ;;  %v110_v55 = vld [vmem:[%s5745_s0 + $0x2f0] sm:$0xff] }
  0x55   :  { %v2714_v3 = vpack.c.bf16 %v47_v59, %v39_v58  ;;  %v119_v58 = vld [vmem:[%s5745_s0 + $0x338] sm:$0xff] }
  0x56   :  { %2505 = vmatpush1.bf16.msra.mxu0 %v2504_v5  ;;  %v53_v5 = vld [vmem:[%s5745_s0 + $0x128] sm:$0xff]  ;;  %v127_v59 = vld [vmem:[%s5745_s0 + $0x378] sm:$0xff] }
  0x57   :  { %2601 = vmatpush1.bf16.msra.mxu1 %v2600_v6  ;;  %2507 = vmatprep.subr.bf16.mxu0 %v2506_v7  ;;  %v61_v6 = vld [vmem:[%s5745_s0 + $0x168] sm:$0xff]  ;;  %v55_v7 = vld [vmem:[%s5745_s0 + $0x138] sm:$0xff]  ;;  %v2734_v2 = vpack.c.bf16 %v127_v59, %v119_v58 }
  0x58   :  { %2603 = vmatprep.subr.bf16.mxu1 %v2602_v11  ;;  %v2622_v11 = vpack.c.bf16 %v61_v6, %v53_v5  ;;  %v2718_v14 = vpack.c.bf16 %v63_v8, %v55_v7  ;;  %v141_v5 = vld [vmem:[%s5745_s0 + $0x3e8] sm:$0xff]  ;;  %v135_v6 = vld [vmem:[%s5745_s0 + $0x3b8] sm:$0xff]  ;;  %v408_v8 = vld [vmem:[%s5747_s2] sm:$0x7] }
  0x59   :  { %v143_v7 = vld [vmem:[%s5745_s0 + $0x3f8] sm:$0xff]  ;;  %411 = vperm.xlu0 %3223, %v408_v8  }
  0x5a   :  { %2509 = vmatpush1.bf16.msra.mxu0 %v2508_v18  ;;  %v77_v18 = vld [vmem:[%s5745_s0 + $0x1e8] sm:$0xff]  ;;  %v199_v58 = vld [vmem:[%s5745_s0 + $0x5b8] sm:$0xff] }
  0x5b   :  { %2605 = vmatpush1.bf16.msra.mxu1 %v2604_v20  ;;  %2511 = vmatprep.subr.bf16.mxu0 %v2510_v21  ;;  %v71_v20 = vld [vmem:[%s5745_s0 + $0x1b8] sm:$0xff]  ;;  %v2626_v24 = vpack.c.bf16 %v77_v18, %v69_v17  ;;  %v149_v17 = vld [vmem:[%s5745_s0 + $0x428] sm:$0xff] }
  0x5c   :  { %2607 = vmatprep.subr.bf16.mxu1 %v2606_v26  ;;  %v79_v21 = vld [vmem:[%s5745_s0 + $0x1f8] sm:$0xff]  ;;  %v68_v26 = vld [vmem:[%s5745_s0 + $0x1a0] sm:$0xff]  ;;  %v157_v18 = vld [vmem:[%s5745_s0 + $0x468] sm:$0xff] }
  0x5d   :  { %v2722_v29 = vpack.c.bf16 %v79_v21, %v71_v20  ;;  %v2628_v36 = vpack.c.bf16 %v76_v27, %v68_v26  ;;  %v151_v20 = vld [vmem:[%s5745_s0 + $0x438] sm:$0xff]  ;;  %v148_v26 = vld [vmem:[%s5745_s0 + $0x420] sm:$0xff] }
  0x5e   :  { %2513 = vmatpush1.bf16.msra.mxu0 %v2512_v33  ;;  %v93_v33 = vld [vmem:[%s5745_s0 + $0x268] sm:$0xff]  ;;  %v159_v21 = vld [vmem:[%s5745_s0 + $0x478] sm:$0xff]  ;;  %v156_v27 = vld [vmem:[%s5745_s0 + $0x460] sm:$0xff] }
  0x5f   :  { %2609 = vmatpush1.bf16.msra.mxu1 %v2608_v34  ;;  %2515 = vmatprep.subr.bf16.mxu0 %v2514_v35  ;;  %v87_v34 = vld [vmem:[%s5745_s0 + $0x238] sm:$0xff] }
  0x60   :  { %2611 = vmatprep.subr.bf16.mxu1 %v2610_v38  ;;  %v95_v35 = vld [vmem:[%s5745_s0 + $0x278] sm:$0xff]  ;;  %v2630_v38 = vpack.c.bf16 %v93_v33, %v85_v32  ;;  %v165_v32 = vld [vmem:[%s5745_s0 + $0x4a8] sm:$0xff] }
  0x61   :  { %v173_v33 = vld [vmem:[%s5745_s0 + $0x4e8] sm:$0xff]  ;;  %v207_v59 = vld [vmem:[%s5745_s0 + $0x5f8] sm:$0xff] }
  0x62   :  { %2517 = vmatpush1.bf16.msra.mxu0 %v2516_v41  ;;  %v86_v41 = vld [vmem:[%s5745_s0 + $0x230] sm:$0xff] }
  0x63   :  { %2613 = vmatpush1.bf16.msra.mxu1 %v2612_v42  ;;  %525 = vmatprep.subr.mxu0 %v401_v43  ;;  %v2726_v42 = vpack.c.bf16 %v95_v35, %v87_v34  ;;  %v94_v43 = vld [vmem:[%s5745_s0 + $0x270] sm:$0xff]  ;;  %v167_v34 = vld [vmem:[%s5745_s0 + $0x4b8] sm:$0xff] }
  0x64   :  { %667 = vmatprep.subr.mxu1 %v403_v44  ;;  %v101_v44 = vld [vmem:[%s5745_s0 + $0x2a8] sm:$0xff]  ;;  %v2728_v49 = vpack.c.bf16 %v94_v43, %v86_v41  ;;  %v175_v35 = vld [vmem:[%s5745_s0 + $0x4f8] sm:$0xff]  ;;  %v166_v41 = vld [vmem:[%s5745_s0 + $0x4b0] sm:$0xff] }
  0x65   :  { %v2634_v50 = vpack.c.bf16 %v109_v45, %v101_v44  ;;  %v174_v43 = vld [vmem:[%s5745_s0 + $0x4f0] sm:$0xff]  ;;  %v181_v44 = vld [vmem:[%s5745_s0 + $0x528] sm:$0xff] }
  0x66   :  { %526 = vmatpush1.msra.mxu0 %v400_v46  ;;  %v103_v46 = vld [vmem:[%s5745_s0 + $0x2b8] sm:$0xff]  ;;  %v189_v45 = vld [vmem:[%s5745_s0 + $0x568] sm:$0xff] }
  0x67   :  { %668 = vmatpush1.msra.mxu1 %v402_v56  ;;  %558 = vmatmul.mubr.f32.vlgmr.msra.gmra.mrb[0].mxu0 %v3726_v25  ;;  %v2730_v54 = vpack.c.bf16 %v111_v47, %v103_v46  ;;  %v117_v56 = vld [vmem:[%s5745_s0 + $0x328] sm:$0xff]  ;;  %v183_v46 = vld [vmem:[%s5745_s0 + $0x538] sm:$0xff] }
  0x68   :  { %700 = vmatmul.mubr.f32.vlgmr.msra.gmra.mrb[0].mxu1 %v3726_v25  ;;  %2615 = vmatprep.subr.bf16.mxu0 %v2614_v57  ;;  %v52_v25 = vld [vmem:[%s5745_s0 + $0x120] sm:$0xff]  ;;  %v125_v57 = vld [vmem:[%s5745_s0 + $0x368] sm:$0xff]  ;;  %v191_v47 = vld [vmem:[%s5745_s0 + $0x578] sm:$0xff] }
  0x69   :  { %2711 = vmatprep.subr.bf16.mxu1 %v2710_v60  ;;  %2617 = vmatpush1.bf16.msra.mxu0 %v2616_v61  ;;  %v2624_v22 = vpack.c.bf16 %v60_v12, %v52_v25  ;;  %v2636_v60 = vpack.c.bf16 %v108_v52, %v100_v51  ;;  %v2732_v61 = vpack.c.bf16 %v110_v55, %v102_v53  ;;  %v132_v25 = vld [vmem:[%s5745_s0 + $0x3a0] sm:$0xff]  ;;  %v182_v53 = vld [vmem:[%s5745_s0 + $0x530] sm:$0xff] }
  0x6a   :  { %2713 = vmatpush1.bf16.msra.mxu1 %v2712_v62  ;;  %2619 = vmatprep.subr.bf16.mxu0 %v2618_v63  ;;  %v2638_v62 = vpack.c.bf16 %v125_v57, %v117_v56  ;;  %v116_v63 = vld [vmem:[%s5745_s0 + $0x320] sm:$0xff]  ;;  %v190_v55 = vld [vmem:[%s5745_s0 + $0x570] sm:$0xff]  ;;  %v197_v56 = vld [vmem:[%s5745_s0 + $0x5a8] sm:$0xff] }
  0x6b   :  { %2715 = vmatprep.subr.bf16.mxu1 %v2714_v3  ;;  %770 = vmatprep.mubr.f32.mxu0 %v3590_v19  ;;  %v126_v3 = vld [vmem:[%s5745_s0 + $0x370] sm:$0xff]  ;;  %v140_v12 = vld [vmem:[%s5745_s0 + $0x3e0] sm:$0xff]  ;;  %v205_v57 = vld [vmem:[%s5745_s0 + $0x5e8] sm:$0xff] }
  0x6c   :  { %912 = vmatprep.mubr.f32.mxu1 %v3590_v19  ;;  %v180_v51 = vld [vmem:[%s5745_s0 + $0x520] sm:$0xff] }
  0x6d   :  { %2621 = vmatpush1.bf16.msra.mxu0 %v2620_v9  ;;  %v2640_v9 = vpack.c.bf16 %v124_v0, %v116_v63  ;;  %v188_v52 = vld [vmem:[%s5745_s0 + $0x560] sm:$0xff] }
  0x6e   :  { %2717 = vmatpush1.bf16.msra.mxu1 %v2716_v10  ;;  %2623 = vmatprep.subr.bf16.mxu0 %v2622_v11  ;;  %v2736_v10 = vpack.c.bf16 %v126_v3, %v118_v1  ;;  %v2642_v11 = vpack.c.bf16 %v141_v5, %v133_v4  ;;  %v196_v63 = vld [vmem:[%s5745_s0 + $0x5a0] sm:$0xff]  ;;  %v198_v1 = vld [vmem:[%s5745_s0 + $0x5b0] sm:$0xff]  ;;  %v213_v4 = vld [vmem:[%s5745_s0 + $0x628] sm:$0xff] }
  0x6f   :  { %2719 = vmatprep.subr.bf16.mxu1 %v2718_v14  ;;  %v2738_v14 = vpack.c.bf16 %v143_v7, %v135_v6  ;;  %v204_v0 = vld [vmem:[%s5745_s0 + $0x5e0] sm:$0xff]  ;;  %v206_v3 = vld [vmem:[%s5745_s0 + $0x5f0] sm:$0xff]  ;;  %v221_v5 = vld [vmem:[%s5745_s0 + $0x668] sm:$0xff] }
  0x70   :  { %v215_v6 = vld [vmem:[%s5745_s0 + $0x638] sm:$0xff]  ;;  %v2660_v8 = vpack.c.bf16 %v204_v0, %v196_v63  ;;  %v284_v63 = vld [vmem:[%s5745_s0 + $0x860] sm:$0xff]  ;;  %v278_v0 = vld [vmem:[%s5745_s0 + $0x830] sm:$0xff] }
  0x71   :  { %2625 = vmatpush1.bf16.msra.mxu0 %v2624_v22  ;;  %v2644_v22 = vpack.c.bf16 %v140_v12, %v132_v25  ;;  %v223_v7 = vld [vmem:[%s5745_s0 + $0x678] sm:$0xff]  ;;  %v220_v25 = vld [vmem:[%s5745_s0 + $0x660] sm:$0xff]  ;;  %v214_v12 = vld [vmem:[%s5745_s0 + $0x630] sm:$0xff] }
  0x72   :  { %2721 = vmatpush1.bf16.msra.mxu1 %v2720_v23  ;;  %2627 = vmatprep.subr.bf16.mxu0 %v2626_v24  ;;  %v2740_v23 = vpack.c.bf16 %v142_v15, %v134_v13  ;;  %v2646_v24 = vpack.c.bf16 %v157_v18, %v149_v17  ;;  %v2758_v13 = vpack.c.bf16 %v223_v7, %v215_v6  ;;  %v229_v15 = vld [vmem:[%s5745_s0 + $0x6a8] sm:$0xff]  ;;  %v231_v18 = vld [vmem:[%s5745_s0 + $0x6b8] sm:$0xff] }
  0x73   :  { %2723 = vmatprep.subr.bf16.mxu1 %v2722_v29  ;;  %v2742_v29 = vpack.c.bf16 %v159_v21, %v151_v20  ;;  %v237_v17 = vld [vmem:[%s5745_s0 + $0x6e8] sm:$0xff]  ;;  %v239_v20 = vld [vmem:[%s5745_s0 + $0x6f8] sm:$0xff] }
  0x74   :  { %v303_v6 = vld [vmem:[%s5745_s0 + $0x8f8] sm:$0xff] }
  0x75   :  { %2629 = vmatpush1.bf16.msra.mxu0 %v2628_v36  ;;  %v2648_v36 = vpack.c.bf16 %v156_v27, %v148_v26  ;;  %v236_v26 = vld [vmem:[%s5745_s0 + $0x6e0] sm:$0xff]  ;;  %v230_v27 = vld [vmem:[%s5745_s0 + $0x6b0] sm:$0xff] }
  0x76   :  { %2725 = vmatpush1.bf16.msra.mxu1 %v2724_v37  ;;  %2631 = vmatprep.subr.bf16.mxu0 %v2630_v38  ;;  %v2744_v37 = vpack.c.bf16 %v158_v31, %v150_v28  ;;  %v2650_v38 = vpack.c.bf16 %v173_v33, %v165_v32  ;;  %v2762_v28 = vpack.c.bf16 %v239_v20, %v231_v18  ;;  %v245_v31 = vld [vmem:[%s5745_s0 + $0x728] sm:$0xff]  ;;  %v247_v33 = vld [vmem:[%s5745_s0 + $0x738] sm:$0xff]  ;;  %v4352_v20 = vld [vmem:[%s5746_s1] sm:$0x77] }
  0x77   :  { %2727 = vmatprep.subr.bf16.mxu1 %v2726_v42  ;;  %v2746_v42 = vpack.c.bf16 %v175_v35, %v167_v34  ;;  %v253_v32 = vld [vmem:[%s5745_s0 + $0x768] sm:$0xff]  ;;  %v255_v34 = vld [vmem:[%s5745_s0 + $0x778] sm:$0xff] }
  0x78   :  { %v319_v18 = vld [vmem:[%s5745_s0 + $0x978] sm:$0xff] }
  0x79   :  { %2633 = vmatpush1.bf16.msra.mxu0 %v2632_v48  ;;  %v2652_v48 = vpack.c.bf16 %v172_v40, %v164_v39  ;;  %v252_v39 = vld [vmem:[%s5745_s0 + $0x760] sm:$0xff]  ;;  %v246_v40 = vld [vmem:[%s5745_s0 + $0x730] sm:$0xff] }
  0x7a   :  { %2729 = vmatpush1.bf16.msra.mxu1 %v2728_v49  ;;  %2635 = vmatprep.subr.bf16.mxu0 %v2634_v50  ;;  %v2748_v49 = vpack.c.bf16 %v174_v43, %v166_v41  ;;  %v2654_v50 = vpack.c.bf16 %v189_v45, %v181_v44  ;;  %v2766_v41 = vpack.c.bf16 %v255_v34, %v247_v33  ;;  %v261_v43 = vld [vmem:[%s5745_s0 + $0x7a8] sm:$0xff]  ;;  %v263_v45 = vld [vmem:[%s5745_s0 + $0x7b8] sm:$0xff] }
  0x7b   :  { %2731 = vmatprep.subr.bf16.mxu1 %v2730_v54  ;;  %v2750_v54 = vpack.c.bf16 %v191_v47, %v183_v46  ;;  %v269_v44 = vld [vmem:[%s5745_s0 + $0x7e8] sm:$0xff]  ;;  %v271_v46 = vld [vmem:[%s5745_s0 + $0x7f8] sm:$0xff] }
  0x7c   :  { %v335_v33 = vld [vmem:[%s5745_s0 + $0x9f8] sm:$0xff] }
  0x7d   :  { %2637 = vmatpush1.bf16.msra.mxu0 %v2636_v60  ;;  %v2656_v60 = vpack.c.bf16 %v188_v52, %v180_v51  ;;  %v268_v51 = vld [vmem:[%s5745_s0 + $0x7e0] sm:$0xff]  ;;  %v262_v52 = vld [vmem:[%s5745_s0 + $0x7b0] sm:$0xff] }
  0x7e   :  { %2733 = vmatpush1.bf16.msra.mxu1 %v2732_v61  ;;  %2639 = vmatprep.subr.bf16.mxu0 %v2638_v62  ;;  %v2752_v61 = vpack.c.bf16 %v190_v55, %v182_v53  ;;  %v2658_v62 = vpack.c.bf16 %v205_v57, %v197_v56  ;;  %v2770_v53 = vpack.c.bf16 %v271_v46, %v263_v45  ;;  %v277_v55 = vld [vmem:[%s5745_s0 + $0x828] sm:$0xff]  ;;  %v279_v57 = vld [vmem:[%s5745_s0 + $0x838] sm:$0xff] }
  0x7f   :  { %2735 = vmatprep.subr.bf16.mxu1 %v2734_v2  ;;  %v2754_v2 = vpack.c.bf16 %v207_v59, %v199_v58  ;;  %v285_v56 = vld [vmem:[%s5745_s0 + $0x868] sm:$0xff]  ;;  %v287_v58 = vld [vmem:[%s5745_s0 + $0x878] sm:$0xff] }
  0x80   :  { %v351_v45 = vld [vmem:[%s5745_s0 + $0xa78] sm:$0xff] }
  0x81   :  { %2641 = vmatpush1.bf16.msra.mxu0 %v2640_v9  ;;  %v2756_v9 = vpack.c.bf16 %v206_v3, %v198_v1  ;;  %v2774_v1 = vpack.c.bf16 %v287_v58, %v279_v57  ;;  %v293_v3 = vld [vmem:[%s5745_s0 + $0x8a8] sm:$0xff]  ;;  %v367_v57 = vld [vmem:[%s5745_s0 + $0xaf8] sm:$0xff] }
  0x82   :  { %2737 = vmatpush1.bf16.msra.mxu1 %v2736_v10  ;;  %2643 = vmatprep.subr.bf16.mxu0 %v2642_v11  ;;  %v2662_v10 = vpack.c.bf16 %v221_v5, %v213_v4  ;;  %v212_v11 = vld [vmem:[%s5745_s0 + $0x620] sm:$0xff]  ;;  %v301_v4 = vld [vmem:[%s5745_s0 + $0x8e8] sm:$0xff]  ;;  %v295_v5 = vld [vmem:[%s5745_s0 + $0x8b8] sm:$0xff] }
  0x83   :  { %2739 = vmatprep.subr.bf16.mxu1 %v2738_v14  ;;  %v222_v14 = vld [vmem:[%s5745_s0 + $0x670] sm:$0xff]  ;;  %v2664_v21 = vpack.c.bf16 %v220_v25, %v212_v11  ;;  %v300_v11 = vld [vmem:[%s5745_s0 + $0x8e0] sm:$0xff] }
  0x84   :  { %v294_v25 = vld [vmem:[%s5745_s0 + $0x8b0] sm:$0xff] }
  0x85   :  { %2645 = vmatpush1.bf16.msra.mxu0 %v2644_v22  ;;  %v2760_v22 = vpack.c.bf16 %v222_v14, %v214_v12  ;;  %v2778_v12 = vpack.c.bf16 %v303_v6, %v295_v5  ;;  %v309_v14 = vld [vmem:[%s5745_s0 + $0x928] sm:$0xff]  ;;  %v383_v5 = vld [vmem:[%s5745_s0 + $0xb78] sm:$0xff] }
  0x86   :  { %2741 = vmatpush1.bf16.msra.mxu1 %v2740_v23  ;;  %2647 = vmatprep.subr.bf16.mxu0 %v2646_v24  ;;  %v2666_v23 = vpack.c.bf16 %v237_v17, %v229_v15  ;;  %v228_v24 = vld [vmem:[%s5745_s0 + $0x6a0] sm:$0xff]  ;;  %v317_v15 = vld [vmem:[%s5745_s0 + $0x968] sm:$0xff]  ;;  %v311_v17 = vld [vmem:[%s5745_s0 + $0x938] sm:$0xff] }
  0x87   :  { %2743 = vmatprep.subr.bf16.mxu1 %v2742_v29  ;;  %v238_v29 = vld [vmem:[%s5745_s0 + $0x6f0] sm:$0xff]  ;;  %v2668_v35 = vpack.c.bf16 %v236_v26, %v228_v24  ;;  %v316_v24 = vld [vmem:[%s5745_s0 + $0x960] sm:$0xff] }
  0x88   :  { %v310_v26 = vld [vmem:[%s5745_s0 + $0x930] sm:$0xff] }
  0x89   :  { %2649 = vmatpush1.bf16.msra.mxu0 %v2648_v36  ;;  %v2764_v36 = vpack.c.bf16 %v238_v29, %v230_v27  ;;  %v2782_v27 = vpack.c.bf16 %v319_v18, %v311_v17  ;;  %v325_v29 = vld [vmem:[%s5745_s0 + $0x9a8] sm:$0xff]  ;;  %v399_v17 = vld [vmem:[%s5745_s0 + $0xbf8] sm:$0xff] }
  0x8a   :  { %2745 = vmatpush1.bf16.msra.mxu1 %v2744_v37  ;;  %2651 = vmatprep.subr.bf16.mxu0 %v2650_v38  ;;  %v2670_v37 = vpack.c.bf16 %v253_v32, %v245_v31  ;;  %v244_v38 = vld [vmem:[%s5745_s0 + $0x720] sm:$0xff]  ;;  %v333_v31 = vld [vmem:[%s5745_s0 + $0x9e8] sm:$0xff]  ;;  %v327_v32 = vld [vmem:[%s5745_s0 + $0x9b8] sm:$0xff] }
  0x8b   :  { %2747 = vmatprep.subr.bf16.mxu1 %v2746_v42  ;;  %v254_v42 = vld [vmem:[%s5745_s0 + $0x770] sm:$0xff]  ;;  %v2672_v47 = vpack.c.bf16 %v252_v39, %v244_v38  ;;  %v332_v38 = vld [vmem:[%s5745_s0 + $0x9e0] sm:$0xff] }
  0x8c   :  { %v326_v39 = vld [vmem:[%s5745_s0 + $0x9b0] sm:$0xff] }
  0x8d   :  { %2653 = vmatpush1.bf16.msra.mxu0 %v2652_v48  ;;  %v2768_v48 = vpack.c.bf16 %v254_v42, %v246_v40  ;;  %v2786_v40 = vpack.c.bf16 %v335_v33, %v327_v32  ;;  %v341_v42 = vld [vmem:[%s5745_s0 + $0xa28] sm:$0xff]  ;;  %v407_v32 = vld [vmem:[%s5745_s0 + $0xc38] sm:$0xff] }
  0x8e   :  { %2749 = vmatpush1.bf16.msra.mxu1 %v2748_v49  ;;  %2655 = vmatprep.subr.bf16.mxu0 %v2654_v50  ;;  %v2674_v49 = vpack.c.bf16 %v269_v44, %v261_v43  ;;  %v260_v50 = vld [vmem:[%s5745_s0 + $0x7a0] sm:$0xff]  ;;  %v349_v43 = vld [vmem:[%s5745_s0 + $0xa68] sm:$0xff]  ;;  %v343_v44 = vld [vmem:[%s5745_s0 + $0xa38] sm:$0xff] }
  0x8f   :  { %2751 = vmatprep.subr.bf16.mxu1 %v2750_v54  ;;  %v270_v54 = vld [vmem:[%s5745_s0 + $0x7f0] sm:$0xff]  ;;  %v2676_v59 = vpack.c.bf16 %v268_v51, %v260_v50  ;;  %v348_v50 = vld [vmem:[%s5745_s0 + $0xa60] sm:$0xff]  ;;  %v2023_v33 = vld [vmem:[%s5745_s0 + $0xc48] sm:$0xff] }
  0x90   :  { %v342_v51 = vld [vmem:[%s5745_s0 + $0xa30] sm:$0xff] }
  0x91   :  { %2657 = vmatpush1.bf16.msra.mxu0 %v2656_v60  ;;  %v2772_v60 = vpack.c.bf16 %v270_v54, %v262_v52  ;;  %v2790_v52 = vpack.c.bf16 %v351_v45, %v343_v44  ;;  %v357_v54 = vld [vmem:[%s5745_s0 + $0xaa8] sm:$0xff]  ;;  %v406_v44 = vld [vmem:[%s5745_s0 + $0xc30] sm:$0xff] }
  0x92   :  { %2753 = vmatpush1.bf16.msra.mxu1 %v2752_v61  ;;  %2659 = vmatprep.subr.bf16.mxu0 %v2658_v62  ;;  %v2678_v61 = vpack.c.bf16 %v285_v56, %v277_v55  ;;  %v276_v62 = vld [vmem:[%s5745_s0 + $0x820] sm:$0xff]  ;;  %v365_v55 = vld [vmem:[%s5745_s0 + $0xae8] sm:$0xff]  ;;  %v359_v56 = vld [vmem:[%s5745_s0 + $0xab8] sm:$0xff] }
  0x93   :  { %2755 = vmatprep.subr.bf16.mxu1 %v2754_v2  ;;  %v286_v2 = vld [vmem:[%s5745_s0 + $0x870] sm:$0xff]  ;;  %v2680_v7 = vpack.c.bf16 %v284_v63, %v276_v62  ;;  %v364_v62 = vld [vmem:[%s5745_s0 + $0xae0] sm:$0xff] }
  0x94   :  { %v358_v63 = vld [vmem:[%s5745_s0 + $0xab0] sm:$0xff] }
  0x95   :  { %2661 = vmatpush1.bf16.msra.mxu0 %v2660_v8  ;;  %v2776_v8 = vpack.c.bf16 %v286_v2, %v278_v0  ;;  %v2794_v0 = vpack.c.bf16 %v367_v57, %v359_v56  ;;  %v373_v2 = vld [vmem:[%s5745_s0 + $0xb28] sm:$0xff]  ;;  %v2048_v57 = vld [vmem:[%s5745_s0 + $0xd10] sm:$0xff] }
  0x96   :  { %2757 = vmatpush1.bf16.msra.mxu1 %v2756_v9  ;;  %2663 = vmatprep.subr.bf16.mxu0 %v2662_v10  ;;  %v2682_v9 = vpack.c.bf16 %v301_v4, %v293_v3  ;;  %v292_v10 = vld [vmem:[%s5745_s0 + $0x8a0] sm:$0xff]  ;;  %v381_v3 = vld [vmem:[%s5745_s0 + $0xb68] sm:$0xff]  ;;  %v375_v4 = vld [vmem:[%s5745_s0 + $0xb38] sm:$0xff] }
  0x97   :  { %2759 = vmatprep.subr.bf16.mxu1 %v2758_v13  ;;  %v302_v13 = vld [vmem:[%s5745_s0 + $0x8f0] sm:$0xff] }
  0x99   :  { %2665 = vmatpush1.bf16.msra.mxu0 %v2664_v21  ;;  %v2684_v21 = vpack.c.bf16 %v300_v11, %v292_v10  ;;  %v380_v10 = vld [vmem:[%s5745_s0 + $0xb60] sm:$0xff]  ;;  %v374_v11 = vld [vmem:[%s5745_s0 + $0xb30] sm:$0xff] }
  0x9a   :  { %2761 = vmatpush1.bf16.msra.mxu1 %v2760_v22  ;;  %2667 = vmatprep.subr.bf16.mxu0 %v2666_v23  ;;  %v2686_v22 = vpack.c.bf16 %v317_v15, %v309_v14  ;;  %v308_v23 = vld [vmem:[%s5745_s0 + $0x920] sm:$0xff]  ;;  %v397_v14 = vld [vmem:[%s5745_s0 + $0xbe8] sm:$0xff]  ;;  %v391_v15 = vld [vmem:[%s5745_s0 + $0xbb8] sm:$0xff] }
  0x9b   :  { %2763 = vmatprep.subr.bf16.mxu1 %v2762_v28  ;;  %v318_v28 = vld [vmem:[%s5745_s0 + $0x970] sm:$0xff]  ;;  %v2688_v34 = vpack.c.bf16 %v316_v24, %v308_v23  ;;  %v396_v23 = vld [vmem:[%s5745_s0 + $0xbe0] sm:$0xff]  ;;  %v2802_v24 = vpack.c.bf16 %v399_v17, %v391_v15 }
  0x9c   :  { %v2080_v17 = vld [vmem:[%s5745_s0 + $0xe10] sm:$0xff] }
  0x9d   :  { %2669 = vmatpush1.bf16.msra.mxu0 %v2668_v35  ;;  %v2784_v35 = vpack.c.bf16 %v318_v28, %v310_v26  ;;  %v390_v26 = vld [vmem:[%s5745_s0 + $0xbb0] sm:$0xff] }
  0x9e   :  { %2765 = vmatpush1.bf16.msra.mxu1 %v2764_v36  ;;  %2671 = vmatprep.subr.bf16.mxu0 %v2670_v37  ;;  %v2690_v36 = vpack.c.bf16 %v333_v31, %v325_v29  ;;  %v324_v37 = vld [vmem:[%s5745_s0 + $0x9a0] sm:$0xff]  ;;  %v405_v31 = vld [vmem:[%s5745_s0 + $0xc28] sm:$0xff] }
  0x9f   :  { %2767 = vmatprep.subr.bf16.mxu1 %v2766_v41  ;;  %v334_v41 = vld [vmem:[%s5745_s0 + $0x9f0] sm:$0xff]  ;;  %v2692_v46 = vpack.c.bf16 %v332_v38, %v324_v37  ;;  %v2033_v37 = vld [vmem:[%s5745_s0 + $0xc98] sm:$0xff]  ;;  %v2022_v38 = vld [vmem:[%s5745_s0 + $0xc40] sm:$0xff] }
  0xa1   :  { %2673 = vmatpush1.bf16.msra.mxu0 %v2672_v47  ;;  %v2788_v47 = vpack.c.bf16 %v334_v41, %v326_v39  ;;  %v2030_v39 = vld [vmem:[%s5745_s0 + $0xc80] sm:$0xff]  ;;  %v2032_v41 = vld [vmem:[%s5745_s0 + $0xc90] sm:$0xff] }
  0xa2   :  { %2769 = vmatpush1.bf16.msra.mxu1 %v2768_v48  ;;  %2675 = vmatprep.subr.bf16.mxu0 %v2674_v49  ;;  %v2694_v48 = vpack.c.bf16 %v349_v43, %v341_v42  ;;  %v340_v49 = vld [vmem:[%s5745_s0 + $0xa20] sm:$0xff]  ;;  %v2039_v42 = vld [vmem:[%s5745_s0 + $0xcc8] sm:$0xff] }
  0xa3   :  { %2771 = vmatprep.subr.bf16.mxu1 %v2770_v53  ;;  %v350_v53 = vld [vmem:[%s5745_s0 + $0xa70] sm:$0xff]  ;;  %v2696_v58 = vpack.c.bf16 %v348_v50, %v340_v49  ;;  %v2047_v43 = vld [vmem:[%s5745_s0 + $0xd08] sm:$0xff]  ;;  %v2808_v49 = vpack.c.bf16 %v2030_v39, %v2022_v38 }
  0xa5   :  { %2677 = vmatpush1.bf16.msra.mxu0 %v2676_v59  ;;  %v2792_v59 = vpack.c.bf16 %v350_v53, %v342_v51  ;;  %v2810_v51 = vpack.c.bf16 %v2047_v43, %v2039_v42  ;;  %v2046_v53 = vld [vmem:[%s5745_s0 + $0xd00] sm:$0xff]  ;;  %v2104_v42 = vld [vmem:[%s5745_s0 + $0xed0] sm:$0xff] }
  0xa6   :  { %2773 = vmatpush1.bf16.msra.mxu1 %v2772_v60  ;;  %2679 = vmatprep.subr.bf16.mxu0 %v2678_v61  ;;  %v2698_v60 = vpack.c.bf16 %v365_v55, %v357_v54  ;;  %v356_v61 = vld [vmem:[%s5745_s0 + $0xaa0] sm:$0xff]  ;;  %v2040_v54 = vld [vmem:[%s5745_s0 + $0xcd0] sm:$0xff]  ;;  %v4551_v55 = vld [vmem:[%s5746_s1 + $0x8] sm:$0x77] }
  0xa7   :  { %2775 = vmatprep.subr.bf16.mxu1 %v2774_v1  ;;  %v366_v1 = vld [vmem:[%s5745_s0 + $0xaf0] sm:$0xff]  ;;  %v2700_v6 = vpack.c.bf16 %v364_v62, %v356_v61  ;;  %v2065_v61 = vld [vmem:[%s5745_s0 + $0xd98] sm:$0xff] }
  0xa8   :  { %771 = vmatmul.mubr.f32.vlgmr.msra.gmra.mrb[2].mxu0 %v3580_v16  ;;  %v2780_v16 = vpack.c.bf16 %v302_v13, %v294_v25  ;;  %v2798_v25 = vpack.c.bf16 %v383_v5, %v375_v4  ;;  %v389_v13 = vld [vmem:[%s5745_s0 + $0xba8] sm:$0xff]  ;;  %v2064_v5 = vld [vmem:[%s5745_s0 + $0xd90] sm:$0xff] }
  0xa9   :  { %2681 = vmatpush1.bf16.msra.mxu0 %v2680_v7  ;;  %913 = vmatmul.mubr.f32.vlgmr.msra.gmra.mrb[2].mxu1 %v4352_v20  ;;  %v2796_v7 = vpack.c.bf16 %v366_v1, %v358_v63  ;;  %v2908_v63 = vpack.c.bf16 %v2048_v57, %v2040_v54  ;;  %v2054_v1 = vld [vmem:[%s5745_s0 + $0xd40] sm:$0xff]  ;;  %v2120_v54 = vld [vmem:[%s5745_s0 + $0xf50] sm:$0xff] }
  0xaa   :  { %2777 = vmatpush1.bf16.msra.mxu1 %v2776_v8  ;;  %2683 = vmatprep.subr.bf16.mxu0 %v2682_v9  ;;  %v2702_v8 = vpack.c.bf16 %v381_v3, %v373_v2  ;;  %v372_v9 = vld [vmem:[%s5745_s0 + $0xb20] sm:$0xff]  ;;  %v2056_v3 = vld [vmem:[%s5745_s0 + $0xd50] sm:$0xff] }
  0xab   :  { %2779 = vmatprep.subr.bf16.mxu1 %v2778_v12  ;;  %2020 = vmatprep.mubr.msk.f32.mxu0 %vm419_vm0, %v3739_v30  ;;  %v382_v12 = vld [vmem:[%s5745_s0 + $0xb70] sm:$0xff]  ;;  %v2704_v18 = vpack.c.bf16 %v380_v10, %v372_v9  ;;  %v2062_v2 = vld [vmem:[%s5745_s0 + $0xd80] sm:$0xff]  ;;  %v2081_v9 = vld [vmem:[%s5745_s0 + $0xe18] sm:$0xff] }
  0xac   :  { %2021 = vmatprep.mubr.msk.f32.mxu1 %vm419_vm0, %v3739_v30  ;;  %v2816_v10 = vpack.c.bf16 %v2062_v2, %v2054_v1  ;;  %v2128_v57 = vld [vmem:[%s5745_s0 + $0xf90] sm:$0xff]  ;;  %v2134_v1 = vld [vmem:[%s5745_s0 + $0xfc0] sm:$0xff] }
  0xad   :  { %2685 = vmatpush1.bf16.msra.mxu0 %v2684_v21  ;;  %v2800_v21 = vpack.c.bf16 %v382_v12, %v374_v11  ;;  %v2912_v11 = vpack.c.bf16 %v2064_v5, %v2056_v3  ;;  %v2070_v12 = vld [vmem:[%s5745_s0 + $0xdc0] sm:$0xff]  ;;  %v2136_v3 = vld [vmem:[%s5745_s0 + $0xfd0] sm:$0xff] }
  0xae   :  { %2781 = vmatpush1.bf16.msra.mxu1 %v2780_v16  ;;  %2687 = vmatprep.subr.bf16.mxu0 %v2686_v22  ;;  %v2706_v16 = vpack.c.bf16 %v397_v14, %v389_v13  ;;  %v388_v22 = vld [vmem:[%s5745_s0 + $0xba0] sm:$0xff]  ;;  %v2072_v14 = vld [vmem:[%s5745_s0 + $0xdd0] sm:$0xff] }
  0xaf   :  { %2783 = vmatprep.subr.bf16.mxu1 %v2782_v27  ;;  %v398_v27 = vld [vmem:[%s5745_s0 + $0xbf0] sm:$0xff]  ;;  %v2708_v28 = vpack.c.bf16 %v396_v23, %v388_v22  ;;  %v2078_v13 = vld [vmem:[%s5745_s0 + $0xe00] sm:$0xff]  ;;  %v2097_v22 = vld [vmem:[%s5745_s0 + $0xe98] sm:$0xff] }
  0xb0   :  { %v2804_v29 = vpack.c.bf16 %v398_v27, %v390_v26  ;;  %v2820_v23 = vpack.c.bf16 %v2078_v13, %v2070_v12  ;;  %v2086_v27 = vld [vmem:[%s5745_s0 + $0xe40] sm:$0xff]  ;;  %v2144_v5 = vld [vmem:[%s5745_s0 + $0x1010] sm:$0xff] }
  0xb1   :  { %2689 = vmatpush1.bf16.msra.mxu0 %v2688_v34  ;;  %v404_v34 = vld [vmem:[%s5745_s0 + $0xc20] sm:$0xff] }
  0xb2   :  { %2785 = vmatpush1.bf16.msra.mxu1 %v2784_v35  ;;  %2691 = vmatprep.subr.bf16.mxu0 %v2690_v36  ;;  %v2031_v35 = vld [vmem:[%s5745_s0 + $0xc88] sm:$0xff]  ;;  %v2025_v36 = vld [vmem:[%s5745_s0 + $0xc58] sm:$0xff]  ;;  %v2142_v2 = vld [vmem:[%s5745_s0 + $0x1000] sm:$0xff] }
  0xb3   :  { %2787 = vmatprep.subr.bf16.mxu1 %v2786_v40  ;;  %v2024_v40 = vld [vmem:[%s5745_s0 + $0xc50] sm:$0xff]  ;;  %v2806_v45 = vpack.c.bf16 %v2031_v35, %v2023_v33  ;;  %v2103_v33 = vld [vmem:[%s5745_s0 + $0xec8] sm:$0xff]  ;;  %v2105_v35 = vld [vmem:[%s5745_s0 + $0xed8] sm:$0xff] }
  0xb4   :  { %v2904_v50 = vpack.c.bf16 %v2032_v41, %v2024_v40  ;;  %v2102_v40 = vld [vmem:[%s5745_s0 + $0xec0] sm:$0xff] }
  0xb5   :  { %2693 = vmatpush1.bf16.msra.mxu0 %v2692_v46  ;;  %v2041_v46 = vld [vmem:[%s5745_s0 + $0xcd8] sm:$0xff]  ;;  %v2110_v41 = vld [vmem:[%s5745_s0 + $0xf00] sm:$0xff] }
  0xb6   :  { %2789 = vmatpush1.bf16.msra.mxu1 %v2788_v47  ;;  %2695 = vmatprep.subr.bf16.mxu0 %v2694_v48  ;;  %v2049_v47 = vld [vmem:[%s5745_s0 + $0xd18] sm:$0xff]  ;;  %v2902_v48 = vpack.c.bf16 %v2033_v37, %v2025_v36  ;;  %v2150_v12 = vld [vmem:[%s5745_s0 + $0x1040] sm:$0xff] }
  0xb7   :  { %2791 = vmatprep.subr.bf16.mxu1 %v2790_v52  ;;  %v2038_v52 = vld [vmem:[%s5745_s0 + $0xcc0] sm:$0xff]  ;;  %v2906_v56 = vpack.c.bf16 %v2049_v47, %v2041_v46  ;;  %v2113_v36 = vld [vmem:[%s5745_s0 + $0xf18] sm:$0xff]  ;;  %v2127_v46 = vld [vmem:[%s5745_s0 + $0xf88] sm:$0xff] }
  0xb8   :  { %v2812_v62 = vpack.c.bf16 %v2046_v53, %v2038_v52  ;;  %v2922_v43 = vpack.c.bf16 %v2113_v36, %v2105_v35  ;;  %v2121_v47 = vld [vmem:[%s5745_s0 + $0xf58] sm:$0xff]  ;;  %v2118_v52 = vld [vmem:[%s5745_s0 + $0xf40] sm:$0xff] }
  0xb9   :  { %2697 = vmatpush1.bf16.msra.mxu0 %v2696_v58  ;;  %v2055_v58 = vld [vmem:[%s5745_s0 + $0xd48] sm:$0xff]  ;;  %v2126_v53 = vld [vmem:[%s5745_s0 + $0xf80] sm:$0xff]  ;;  %v2185_v35 = vld [vmem:[%s5745_s0 + $0x1158] sm:$0xff] }
  0xba   :  { %2793 = vmatpush1.bf16.msra.mxu1 %v2792_v59  ;;  %2699 = vmatprep.subr.bf16.mxu0 %v2698_v60  ;;  %v2063_v59 = vld [vmem:[%s5745_s0 + $0xd88] sm:$0xff]  ;;  %v2057_v60 = vld [vmem:[%s5745_s0 + $0xd58] sm:$0xff]  ;;  %v2158_v13 = vld [vmem:[%s5745_s0 + $0x1080] sm:$0xff] }
  0xbb   :  { %2795 = vmatprep.subr.bf16.mxu1 %v2794_v0  ;;  %v2814_v0 = vpack.c.bf16 %v2063_v59, %v2055_v58  ;;  %v2910_v4 = vpack.c.bf16 %v2065_v61, %v2057_v60  ;;  %v2135_v58 = vld [vmem:[%s5745_s0 + $0xfc8] sm:$0xff]  ;;  %v2137_v60 = vld [vmem:[%s5745_s0 + $0xfd8] sm:$0xff] }
  0xbc   :  { %v2143_v59 = vld [vmem:[%s5745_s0 + $0x1008] sm:$0xff]  ;;  %v2145_v61 = vld [vmem:[%s5745_s0 + $0x1018] sm:$0xff] }
  0xbd   :  { %2701 = vmatpush1.bf16.msra.mxu0 %v2700_v6  ;;  %v2071_v6 = vld [vmem:[%s5745_s0 + $0xdc8] sm:$0xff]  ;;  %v2193_v36 = vld [vmem:[%s5745_s0 + $0x1198] sm:$0xff] }
  0xbe   :  { %2797 = vmatpush1.bf16.msra.mxu1 %v2796_v7  ;;  %2703 = vmatprep.subr.bf16.mxu0 %v2702_v8  ;;  %v2079_v7 = vld [vmem:[%s5745_s0 + $0xe08] sm:$0xff]  ;;  %v2073_v8 = vld [vmem:[%s5745_s0 + $0xdd8] sm:$0xff] }
  0xbf   :  { %2799 = vmatprep.subr.bf16.mxu1 %v2798_v25  ;;  %v2818_v25 = vpack.c.bf16 %v2079_v7, %v2071_v6  ;;  %v2914_v15 = vpack.c.bf16 %v2081_v9, %v2073_v8  ;;  %v2151_v6 = vld [vmem:[%s5745_s0 + $0x1048] sm:$0xff]  ;;  %v2153_v8 = vld [vmem:[%s5745_s0 + $0x1058] sm:$0xff] }
  0xc0   :  { %v2159_v7 = vld [vmem:[%s5745_s0 + $0x1088] sm:$0xff]  ;;  %v2161_v9 = vld [vmem:[%s5745_s0 + $0x1098] sm:$0xff] }
  0xc1   :  { %2705 = vmatpush1.bf16.msra.mxu0 %v2704_v18  ;;  %v2087_v18 = vld [vmem:[%s5745_s0 + $0xe48] sm:$0xff] }
  0xc2   :  { %2801 = vmatpush1.bf16.msra.mxu1 %v2800_v21  ;;  %2707 = vmatprep.subr.bf16.mxu0 %v2706_v16  ;;  %v2095_v21 = vld [vmem:[%s5745_s0 + $0xe88] sm:$0xff]  ;;  %v2089_v16 = vld [vmem:[%s5745_s0 + $0xe58] sm:$0xff] }
  0xc3   :  { %2803 = vmatprep.subr.bf16.mxu1 %v2802_v24  ;;  %v2916_v24 = vpack.c.bf16 %v2080_v17, %v2072_v14  ;;  %v2822_v26 = vpack.c.bf16 %v2095_v21, %v2087_v18  ;;  %v2152_v14 = vld [vmem:[%s5745_s0 + $0x1050] sm:$0xff]  ;;  %v2167_v18 = vld [vmem:[%s5745_s0 + $0x10c8] sm:$0xff] }
  0xc4   :  { %v2160_v17 = vld [vmem:[%s5745_s0 + $0x1090] sm:$0xff]  ;;  %v2175_v21 = vld [vmem:[%s5745_s0 + $0x1108] sm:$0xff] }
  0xc5   :  { %2709 = vmatpush1.bf16.msra.mxu0 %v2708_v28  ;;  %v2094_v28 = vld [vmem:[%s5745_s0 + $0xe80] sm:$0xff] }
  0xc6   :  { %2805 = vmatpush1.bf16.msra.mxu1 %v2804_v29  ;;  %809 = vmatprep.subr.mxu0 %v405_v31  ;;  %v2088_v29 = vld [vmem:[%s5745_s0 + $0xe50] sm:$0xff]  ;;  %v2918_v31 = vpack.c.bf16 %v2097_v22, %v2089_v16  ;;  %v2824_v37 = vpack.c.bf16 %v2094_v28, %v2086_v27  ;;  %v2169_v16 = vld [vmem:[%s5745_s0 + $0x10d8] sm:$0xff]  ;;  %v2166_v27 = vld [vmem:[%s5745_s0 + $0x10c0] sm:$0xff] }
  0xc7   :  { %951 = vmatprep.subr.mxu1 %v407_v32  ;;  %v2096_v32 = vld [vmem:[%s5745_s0 + $0xe90] sm:$0xff]  ;;  %v2177_v22 = vld [vmem:[%s5745_s0 + $0x1118] sm:$0xff]  ;;  %v2174_v28 = vld [vmem:[%s5745_s0 + $0x1100] sm:$0xff] }
  0xc8   :  { %v2920_v38 = vpack.c.bf16 %v2096_v32, %v2088_v29  ;;  %v2168_v29 = vld [vmem:[%s5745_s0 + $0x10d0] sm:$0xff] }
  0xc9   :  { %810 = vmatpush1.msra.mxu0 %v404_v34  ;;  %v2111_v34 = vld [vmem:[%s5745_s0 + $0xf08] sm:$0xff]  ;;  %v2176_v32 = vld [vmem:[%s5745_s0 + $0x1110] sm:$0xff] }
  0xca   :  { %952 = vmatpush1.msra.mxu1 %v406_v44  ;;  %842 = vmatmul.mubr.f32.vlgmr.msra.gmra.mrb[2].mxu0 %v4551_v55  ;;  %v2826_v39 = vpack.c.bf16 %v2111_v34, %v2103_v33  ;;  %v2112_v44 = vld [vmem:[%s5745_s0 + $0xf10] sm:$0xff]  ;;  %v2183_v33 = vld [vmem:[%s5745_s0 + $0x1148] sm:$0xff] }
  0xcb   :  { %984 = vmatmul.mubr.f32.vlgmr.msra.gmra.mrb[2].mxu1 %v4551_v55  ;;  %2807 = vmatprep.subr.bf16.mxu0 %v2806_v45  ;;  %v2119_v45 = vld [vmem:[%s5745_s0 + $0xf48] sm:$0xff] }
  0xcc   :  { %2903 = vmatprep.subr.bf16.mxu1 %v2902_v48  ;;  %2809 = vmatpush1.bf16.msra.mxu0 %v2808_v49  ;;  %v2129_v48 = vld [vmem:[%s5745_s0 + $0xf98] sm:$0xff]  ;;  %v2828_v49 = vpack.c.bf16 %v2110_v41, %v2102_v40  ;;  %v2191_v34 = vld [vmem:[%s5745_s0 + $0x1188] sm:$0xff]  ;;  %v2182_v40 = vld [vmem:[%s5745_s0 + $0x1140] sm:$0xff] }
  0xcd   :  { %2905 = vmatpush1.bf16.msra.mxu1 %v2904_v50  ;;  %2811 = vmatprep.subr.bf16.mxu0 %v2810_v51  ;;  %v2924_v50 = vpack.c.bf16 %v2112_v44, %v2104_v42  ;;  %v2830_v51 = vpack.c.bf16 %v2127_v46, %v2119_v45  ;;  %v2190_v41 = vld [vmem:[%s5745_s0 + $0x1180] sm:$0xff]  ;;  %v2184_v42 = vld [vmem:[%s5745_s0 + $0x1150] sm:$0xff]  ;;  %v2199_v45 = vld [vmem:[%s5745_s0 + $0x11c8] sm:$0xff] }
  0xce   :  { %2907 = vmatprep.subr.bf16.mxu1 %v2906_v56  ;;  %1481 = vmatprep.mubr.f32.mxu0 %v3590_v19  ;;  %v2926_v56 = vpack.c.bf16 %v2129_v48, %v2121_v47  ;;  %v2192_v44 = vld [vmem:[%s5745_s0 + $0x1190] sm:$0xff]  ;;  %v2207_v46 = vld [vmem:[%s5745_s0 + $0x1208] sm:$0xff]  ;;  %v2201_v47 = vld [vmem:[%s5745_s0 + $0x11d8] sm:$0xff] }
  0xcf   :  { %1623 = vmatprep.mubr.f32.mxu1 %v3590_v19  ;;  %v2209_v48 = vld [vmem:[%s5745_s0 + $0x1218] sm:$0xff] }
  0xd0   :  { %2813 = vmatpush1.bf16.msra.mxu0 %v2812_v62  ;;  %v2832_v62 = vpack.c.bf16 %v2126_v53, %v2118_v52  ;;  %v2198_v52 = vld [vmem:[%s5745_s0 + $0x11c0] sm:$0xff] }
  0xd1   :  { %2909 = vmatpush1.bf16.msra.mxu1 %v2908_v63  ;;  %2815 = vmatprep.subr.bf16.mxu0 %v2814_v0  ;;  %v2928_v63 = vpack.c.bf16 %v2128_v57, %v2120_v54  ;;  %v2834_v0 = vpack.c.bf16 %v2143_v59, %v2135_v58  ;;  %v2206_v53 = vld [vmem:[%s5745_s0 + $0x1200] sm:$0xff]  ;;  %v2200_v54 = vld [vmem:[%s5745_s0 + $0x11d0] sm:$0xff]  ;;  %v2215_v58 = vld [vmem:[%s5745_s0 + $0x1248] sm:$0xff] }
  0xd2   :  { %2911 = vmatprep.subr.bf16.mxu1 %v2910_v4  ;;  %v2930_v4 = vpack.c.bf16 %v2145_v61, %v2137_v60  ;;  %v2208_v57 = vld [vmem:[%s5745_s0 + $0x1210] sm:$0xff]  ;;  %v2223_v59 = vld [vmem:[%s5745_s0 + $0x1288] sm:$0xff]  ;;  %v2217_v60 = vld [vmem:[%s5745_s0 + $0x1258] sm:$0xff] }
  0xd3   :  { %v2225_v61 = vld [vmem:[%s5745_s0 + $0x1298] sm:$0xff] }
  0xd4   :  { %2817 = vmatpush1.bf16.msra.mxu0 %v2816_v10  ;;  %v2836_v10 = vpack.c.bf16 %v2142_v2, %v2134_v1  ;;  %v2214_v1 = vld [vmem:[%s5745_s0 + $0x1240] sm:$0xff] }
  0xd5   :  { %2913 = vmatpush1.bf16.msra.mxu1 %v2912_v11  ;;  %2819 = vmatprep.subr.bf16.mxu0 %v2818_v25  ;;  %v2932_v11 = vpack.c.bf16 %v2144_v5, %v2136_v3  ;;  %v2838_v25 = vpack.c.bf16 %v2159_v7, %v2151_v6  ;;  %v2222_v2 = vld [vmem:[%s5745_s0 + $0x1280] sm:$0xff]  ;;  %v2216_v3 = vld [vmem:[%s5745_s0 + $0x1250] sm:$0xff]  ;;  %v2231_v6 = vld [vmem:[%s5745_s0 + $0x12c8] sm:$0xff] }
  0xd6   :  { %2915 = vmatprep.subr.bf16.mxu1 %v2914_v15  ;;  %v2934_v15 = vpack.c.bf16 %v2161_v9, %v2153_v8  ;;  %v2224_v5 = vld [vmem:[%s5745_s0 + $0x1290] sm:$0xff]  ;;  %v2239_v7 = vld [vmem:[%s5745_s0 + $0x1308] sm:$0xff]  ;;  %v2233_v8 = vld [vmem:[%s5745_s0 + $0x12d8] sm:$0xff] }
  0xd7   :  { %v2241_v9 = vld [vmem:[%s5745_s0 + $0x1318] sm:$0xff] }
  0xd8   :  { %2821 = vmatpush1.bf16.msra.mxu0 %v2820_v23  ;;  %v2840_v23 = vpack.c.bf16 %v2158_v13, %v2150_v12  ;;  %v2230_v12 = vld [vmem:[%s5745_s0 + $0x12c0] sm:$0xff] }
  0xd9   :  { %2917 = vmatpush1.bf16.msra.mxu1 %v2916_v24  ;;  %2823 = vmatprep.subr.bf16.mxu0 %v2822_v26  ;;  %v2936_v24 = vpack.c.bf16 %v2160_v17, %v2152_v14  ;;  %v2842_v26 = vpack.c.bf16 %v2175_v21, %v2167_v18  ;;  %v2238_v13 = vld [vmem:[%s5745_s0 + $0x1300] sm:$0xff]  ;;  %v2232_v14 = vld [vmem:[%s5745_s0 + $0x12d0] sm:$0xff]  ;;  %v2247_v18 = vld [vmem:[%s5745_s0 + $0x1348] sm:$0xff] }
  0xda   :  { %2919 = vmatprep.subr.bf16.mxu1 %v2918_v31  ;;  %v2938_v31 = vpack.c.bf16 %v2177_v22, %v2169_v16  ;;  %v2240_v17 = vld [vmem:[%s5745_s0 + $0x1310] sm:$0xff]  ;;  %v2255_v21 = vld [vmem:[%s5745_s0 + $0x1388] sm:$0xff]  ;;  %v2249_v16 = vld [vmem:[%s5745_s0 + $0x1358] sm:$0xff] }
  0xdb   :  { %v2257_v22 = vld [vmem:[%s5745_s0 + $0x1398] sm:$0xff] }
  0xdc   :  { %2825 = vmatpush1.bf16.msra.mxu0 %v2824_v37  ;;  %v2844_v37 = vpack.c.bf16 %v2174_v28, %v2166_v27  ;;  %v2246_v27 = vld [vmem:[%s5745_s0 + $0x1340] sm:$0xff] }
  0xdd   :  { %2921 = vmatpush1.bf16.msra.mxu1 %v2920_v38  ;;  %2827 = vmatprep.subr.bf16.mxu0 %v2826_v39  ;;  %v2940_v38 = vpack.c.bf16 %v2176_v32, %v2168_v29  ;;  %v2846_v39 = vpack.c.bf16 %v2191_v34, %v2183_v33  ;;  %v2254_v28 = vld [vmem:[%s5745_s0 + $0x1380] sm:$0xff]  ;;  %v2248_v29 = vld [vmem:[%s5745_s0 + $0x1350] sm:$0xff]  ;;  %v2263_v33 = vld [vmem:[%s5745_s0 + $0x13c8] sm:$0xff] }
  0xde   :  { %2923 = vmatprep.subr.bf16.mxu1 %v2922_v43  ;;  %v2942_v43 = vpack.c.bf16 %v2193_v36, %v2185_v35  ;;  %v2256_v32 = vld [vmem:[%s5745_s0 + $0x1390] sm:$0xff]  ;;  %v2271_v34 = vld [vmem:[%s5745_s0 + $0x1408] sm:$0xff]  ;;  %v2265_v35 = vld [vmem:[%s5745_s0 + $0x13d8] sm:$0xff] }
  0xdf   :  { %v2273_v36 = vld [vmem:[%s5745_s0 + $0x1418] sm:$0xff] }
  0xe0   :  { %2829 = vmatpush1.bf16.msra.mxu0 %v2828_v49  ;;  %v2848_v49 = vpack.c.bf16 %v2190_v41, %v2182_v40  ;;  %v2866_v40 = vpack.c.bf16 %v2271_v34, %v2263_v33  ;;  %v2262_v41 = vld [vmem:[%s5745_s0 + $0x13c0] sm:$0xff]  ;;  %v2343_v33 = vld [vmem:[%s5745_s0 + $0x1648] sm:$0xff] }
  0xe1   :  { %2925 = vmatpush1.bf16.msra.mxu1 %v2924_v50  ;;  %2831 = vmatprep.subr.bf16.mxu0 %v2830_v51  ;;  %v2944_v50 = vpack.c.bf16 %v2192_v44, %v2184_v42  ;;  %v2850_v51 = vpack.c.bf16 %v2207_v46, %v2199_v45  ;;  %v2270_v42 = vld [vmem:[%s5745_s0 + $0x1400] sm:$0xff]  ;;  %v2962_v44 = vpack.c.bf16 %v2273_v36, %v2265_v35  ;;  %v2272_v45 = vld [vmem:[%s5745_s0 + $0x1410] sm:$0xff]  ;;  %v2279_v46 = vld [vmem:[%s5745_s0 + $0x1448] sm:$0xff] }
  0xe2   :  { %2927 = vmatprep.subr.bf16.mxu1 %v2926_v56  ;;  %v2946_v56 = vpack.c.bf16 %v2209_v48, %v2201_v47  ;;  %v2287_v47 = vld [vmem:[%s5745_s0 + $0x1488] sm:$0xff]  ;;  %v2281_v48 = vld [vmem:[%s5745_s0 + $0x1458] sm:$0xff] }
  0xe3   :  { %v2351_v34 = vld [vmem:[%s5745_s0 + $0x1688] sm:$0xff]  ;;  %v2345_v35 = vld [vmem:[%s5745_s0 + $0x1658] sm:$0xff] }
  0xe4   :  { %2833 = vmatpush1.bf16.msra.mxu0 %v2832_v62  ;;  %v2852_v62 = vpack.c.bf16 %v2206_v53, %v2198_v52  ;;  %v2870_v52 = vpack.c.bf16 %v2287_v47, %v2279_v46  ;;  %v2278_v53 = vld [vmem:[%s5745_s0 + $0x1440] sm:$0xff]  ;;  %v2353_v36 = vld [vmem:[%s5745_s0 + $0x1698] sm:$0xff]  ;;  %v2367_v46 = vld [vmem:[%s5745_s0 + $0x1708] sm:$0xff] }
  0xe5   :  { %2929 = vmatpush1.bf16.msra.mxu1 %v2928_v63  ;;  %2835 = vmatprep.subr.bf16.mxu0 %v2834_v0  ;;  %v2948_v63 = vpack.c.bf16 %v2208_v57, %v2200_v54  ;;  %v2854_v0 = vpack.c.bf16 %v2223_v59, %v2215_v58  ;;  %v2286_v54 = vld [vmem:[%s5745_s0 + $0x1480] sm:$0xff]  ;;  %v2288_v58 = vld [vmem:[%s5745_s0 + $0x1490] sm:$0xff]  ;;  %v2295_v59 = vld [vmem:[%s5745_s0 + $0x14c8] sm:$0xff] }
  0xe6   :  { %2931 = vmatprep.subr.bf16.mxu1 %v2930_v4  ;;  %v2950_v4 = vpack.c.bf16 %v2225_v61, %v2217_v60  ;;  %v2303_v60 = vld [vmem:[%s5745_s0 + $0x1508] sm:$0xff]  ;;  %v2297_v61 = vld [vmem:[%s5745_s0 + $0x14d8] sm:$0xff] }
  0xe7   :  { %v2361_v47 = vld [vmem:[%s5745_s0 + $0x16d8] sm:$0xff] }
  0xe8   :  { %2837 = vmatpush1.bf16.msra.mxu0 %v2836_v10  ;;  %v2856_v10 = vpack.c.bf16 %v2222_v2, %v2214_v1  ;;  %v2874_v1 = vpack.c.bf16 %v2303_v60, %v2295_v59  ;;  %v2294_v2 = vld [vmem:[%s5745_s0 + $0x14c0] sm:$0xff]  ;;  %v2383_v59 = vld [vmem:[%s5745_s0 + $0x1788] sm:$0xff]  ;;  %v2377_v60 = vld [vmem:[%s5745_s0 + $0x1758] sm:$0xff] }
  0xe9   :  { %2933 = vmatpush1.bf16.msra.mxu1 %v2932_v11  ;;  %2839 = vmatprep.subr.bf16.mxu0 %v2838_v25  ;;  %v2952_v11 = vpack.c.bf16 %v2224_v5, %v2216_v3  ;;  %v2858_v25 = vpack.c.bf16 %v2239_v7, %v2231_v6  ;;  %v2302_v3 = vld [vmem:[%s5745_s0 + $0x1500] sm:$0xff]  ;;  %v2304_v6 = vld [vmem:[%s5745_s0 + $0x1510] sm:$0xff]  ;;  %v2311_v7 = vld [vmem:[%s5745_s0 + $0x1548] sm:$0xff] }
  0xea   :  { %2935 = vmatprep.subr.bf16.mxu1 %v2934_v15  ;;  %v2954_v15 = vpack.c.bf16 %v2241_v9, %v2233_v8  ;;  %v2319_v8 = vld [vmem:[%s5745_s0 + $0x1588] sm:$0xff]  ;;  %v2313_v9 = vld [vmem:[%s5745_s0 + $0x1558] sm:$0xff] }
  0xec   :  { %2841 = vmatpush1.bf16.msra.mxu0 %v2840_v23  ;;  %v2860_v23 = vpack.c.bf16 %v2238_v13, %v2230_v12  ;;  %v2878_v12 = vpack.c.bf16 %v2319_v8, %v2311_v7  ;;  %v2310_v13 = vld [vmem:[%s5745_s0 + $0x1540] sm:$0xff]  ;;  %v2399_v7 = vld [vmem:[%s5745_s0 + $0x1808] sm:$0xff]  ;;  %v2393_v8 = vld [vmem:[%s5745_s0 + $0x17d8] sm:$0xff] }
  0xed   :  { %2937 = vmatpush1.bf16.msra.mxu1 %v2936_v24  ;;  %2843 = vmatprep.subr.bf16.mxu0 %v2842_v26  ;;  %v2956_v24 = vpack.c.bf16 %v2240_v17, %v2232_v14  ;;  %v2862_v26 = vpack.c.bf16 %v2255_v21, %v2247_v18  ;;  %v2318_v14 = vld [vmem:[%s5745_s0 + $0x1580] sm:$0xff]  ;;  %v2327_v18 = vld [vmem:[%s5745_s0 + $0x15c8] sm:$0xff] }
  0xee   :  { %2939 = vmatprep.subr.bf16.mxu1 %v2938_v31  ;;  %v2958_v31 = vpack.c.bf16 %v2257_v22, %v2249_v16  ;;  %v2335_v21 = vld [vmem:[%s5745_s0 + $0x1608] sm:$0xff]  ;;  %v2329_v16 = vld [vmem:[%s5745_s0 + $0x15d8] sm:$0xff] }
  0xef   :  { %v2337_v22 = vld [vmem:[%s5745_s0 + $0x1618] sm:$0xff] }
  0xf0   :  { %2845 = vmatpush1.bf16.msra.mxu0 %v2844_v37  ;;  %v2864_v37 = vpack.c.bf16 %v2254_v28, %v2246_v27  ;;  %v2326_v27 = vld [vmem:[%s5745_s0 + $0x15c0] sm:$0xff] }
  0xf1   :  { %2941 = vmatpush1.bf16.msra.mxu1 %v2940_v38  ;;  %2847 = vmatprep.subr.bf16.mxu0 %v2846_v39  ;;  %v1411_v38 = vld [vmem:[%s5747_s2] sm:$0x7]  ;;  %v2960_v39 = vpack.c.bf16 %v2256_v32, %v2248_v29  ;;  %v2328_v29 = vld [vmem:[%s5745_s0 + $0x15d0] sm:$0xff] }
  0xf2   :  { %2943 = vmatprep.subr.bf16.mxu1 %v2942_v43  ;;  %v2264_v43 = vld [vmem:[%s5745_s0 + $0x13d0] sm:$0xff]  ;;  %1414 = vperm.xlu0 %3223, %v1411_v38   ;;  %v2334_v28 = vld [vmem:[%s5745_s0 + $0x1600] sm:$0xff] }
  0xf3   :  { %v2336_v32 = vld [vmem:[%s5745_s0 + $0x1610] sm:$0xff] }
  0xf4   :  { %2849 = vmatpush1.bf16.msra.mxu0 %v2848_v49  ;;  %v2289_v49 = vld [vmem:[%s5745_s0 + $0x1498] sm:$0xff]  ;;  %v2980_v38 = vpack.c.bf16 %v2336_v32, %v2328_v29  ;;  %v2034_v29 = vld [vmem:[%s5745_s0 + $0xca0] sm:$0xff]  ;;  %v2036_v32 = vld [vmem:[%s5745_s0 + $0xcb0] sm:$0xff] }
  0xf5   :  { %2945 = vmatpush1.bf16.msra.mxu1 %v2944_v50  ;;  %2851 = vmatprep.subr.bf16.mxu0 %v2850_v51  ;;  %v2868_v50 = vpack.c.bf16 %v2270_v42, %v2262_v41  ;;  %v2964_v51 = vpack.c.bf16 %v2272_v45, %v2264_v43  ;;  %v2966_v57 = vpack.c.bf16 %v2289_v49, %v2281_v48  ;;  %v2350_v41 = vld [vmem:[%s5745_s0 + $0x1680] sm:$0xff]  ;;  %v2344_v42 = vld [vmem:[%s5745_s0 + $0x1650] sm:$0xff]  ;;  %v2359_v45 = vld [vmem:[%s5745_s0 + $0x16c8] sm:$0xff] }
  0xf6   :  { %2947 = vmatprep.subr.bf16.mxu1 %v2946_v56  ;;  %v2280_v56 = vld [vmem:[%s5745_s0 + $0x1450] sm:$0xff]  ;;  %v2982_v43 = vpack.c.bf16 %v2353_v36, %v2345_v35  ;;  %v2369_v48 = vld [vmem:[%s5745_s0 + $0x1718] sm:$0xff] }
  0xf7   :  { %v2408_v35 = vld [vmem:[%s5745_s0 + $0x1850] sm:$0xff] }
  0xf8   :  { %2853 = vmatpush1.bf16.msra.mxu0 %v2852_v62  ;;  %v2305_v62 = vld [vmem:[%s5745_s0 + $0x1518] sm:$0xff] }
  0xf9   :  { %2949 = vmatpush1.bf16.msra.mxu1 %v2948_v63  ;;  %2855 = vmatprep.subr.bf16.mxu0 %v2854_v0  ;;  %v2872_v63 = vpack.c.bf16 %v2286_v54, %v2278_v53  ;;  %v2968_v0 = vpack.c.bf16 %v2288_v58, %v2280_v56  ;;  %v2970_v5 = vpack.c.bf16 %v2305_v62, %v2297_v61  ;;  %v2366_v53 = vld [vmem:[%s5745_s0 + $0x1700] sm:$0xff]  ;;  %v2360_v54 = vld [vmem:[%s5745_s0 + $0x16d0] sm:$0xff]  ;;  %v2375_v58 = vld [vmem:[%s5745_s0 + $0x1748] sm:$0xff] }
  0xfa   :  { %2951 = vmatprep.subr.bf16.mxu1 %v2950_v4  ;;  %v2296_v4 = vld [vmem:[%s5745_s0 + $0x14d0] sm:$0xff]  ;;  %v2986_v56 = vpack.c.bf16 %v2369_v48, %v2361_v47  ;;  %v2385_v61 = vld [vmem:[%s5745_s0 + $0x1798] sm:$0xff]  ;;  %v2059_v48 = vld [vmem:[%s5745_s0 + $0xd68] sm:$0xff] }
  0xfb   :  { %v2052_v47 = vld [vmem:[%s5745_s0 + $0xd30] sm:$0xff] }
  0xfc   :  { %2857 = vmatpush1.bf16.msra.mxu0 %v2856_v10  ;;  %v2321_v10 = vld [vmem:[%s5745_s0 + $0x1598] sm:$0xff] }
  0xfd   :  { %2953 = vmatpush1.bf16.msra.mxu1 %v2952_v11  ;;  %2859 = vmatprep.subr.bf16.mxu0 %v2858_v25  ;;  %v2876_v11 = vpack.c.bf16 %v2302_v3, %v2294_v2  ;;  %v2972_v25 = vpack.c.bf16 %v2304_v6, %v2296_v4  ;;  %v2974_v17 = vpack.c.bf16 %v2321_v10, %v2313_v9  ;;  %v2382_v2 = vld [vmem:[%s5745_s0 + $0x1780] sm:$0xff]  ;;  %v2376_v3 = vld [vmem:[%s5745_s0 + $0x1750] sm:$0xff]  ;;  %v2391_v6 = vld [vmem:[%s5745_s0 + $0x17c8] sm:$0xff] }
  0xfe   :  { %2955 = vmatprep.subr.bf16.mxu1 %v2954_v15  ;;  %v2312_v15 = vld [vmem:[%s5745_s0 + $0x1550] sm:$0xff]  ;;  %v2990_v4 = vpack.c.bf16 %v2385_v61, %v2377_v60  ;;  %v2401_v9 = vld [vmem:[%s5745_s0 + $0x1818] sm:$0xff]  ;;  %v2075_v60 = vld [vmem:[%s5745_s0 + $0xde8] sm:$0xff] }
  0xff   :  { %v2083_v61 = vld [vmem:[%s5745_s0 + $0xe28] sm:$0xff] }
 0x100   :  { %2861 = vmatpush1.bf16.msra.mxu0 %v2860_v23  ;;  %v2880_v23 = vpack.c.bf16 %v2318_v14, %v2310_v13  ;;  %v2398_v13 = vld [vmem:[%s5745_s0 + $0x1800] sm:$0xff]  ;;  %v2994_v14 = vpack.c.bf16 %v2401_v9, %v2393_v8  ;;  %v2099_v8 = vld [vmem:[%s5745_s0 + $0xea8] sm:$0xff]  ;;  %v2093_v9 = vld [vmem:[%s5745_s0 + $0xe78] sm:$0xff] }
 0x101   :  { %2957 = vmatpush1.bf16.msra.mxu1 %v2956_v24  ;;  %2863 = vmatprep.subr.bf16.mxu0 %v2862_v26  ;;  %v2882_v26 = vpack.c.bf16 %v2335_v21, %v2327_v18  ;;  %v2407_v21 = vld [vmem:[%s5745_s0 + $0x1848] sm:$0xff] }
 0x102   :  { %2959 = vmatprep.subr.bf16.mxu1 %v2958_v31  ;;  %v2978_v31 = vpack.c.bf16 %v2337_v22, %v2329_v16  ;;  %v2409_v16 = vld [vmem:[%s5745_s0 + $0x1858] sm:$0xff]  ;;  %v2027_v22 = vld [vmem:[%s5745_s0 + $0xc68] sm:$0xff] }
 0x104   :  { %2865 = vmatpush1.bf16.msra.mxu0 %v2864_v37  ;;  %v2884_v37 = vpack.c.bf16 %v2334_v28, %v2326_v27  ;;  %v2037_v27 = vld [vmem:[%s5745_s0 + $0xcb8] sm:$0xff]  ;;  %v2026_v28 = vld [vmem:[%s5745_s0 + $0xc60] sm:$0xff] }
 0x105   :  { %2961 = vmatpush1.bf16.msra.mxu1 %v2960_v39  ;;  %2867 = vmatprep.subr.bf16.mxu0 %v2866_v40  ;;  %v2886_v39 = vpack.c.bf16 %v2351_v34, %v2343_v33  ;;  %v2342_v40 = vld [vmem:[%s5745_s0 + $0x1640] sm:$0xff]  ;;  %v2043_v33 = vld [vmem:[%s5745_s0 + $0xce8] sm:$0xff] }
 0x106   :  { %2963 = vmatprep.subr.bf16.mxu1 %v2962_v44  ;;  %v2352_v44 = vld [vmem:[%s5745_s0 + $0x1690] sm:$0xff]  ;;  %v2888_v49 = vpack.c.bf16 %v2350_v41, %v2342_v40  ;;  %v2051_v34 = vld [vmem:[%s5745_s0 + $0xd28] sm:$0xff]  ;;  %v3000_v40 = vpack.c.bf16 %v2034_v29, %v2026_v28 }
 0x108   :  { %2869 = vmatpush1.bf16.msra.mxu0 %v2868_v50  ;;  %v2984_v50 = vpack.c.bf16 %v2352_v44, %v2344_v42  ;;  %v3002_v42 = vpack.c.bf16 %v2051_v34, %v2043_v33  ;;  %v2050_v44 = vld [vmem:[%s5745_s0 + $0xd20] sm:$0xff] }
 0x109   :  { %2965 = vmatpush1.bf16.msra.mxu1 %v2964_v51  ;;  %2871 = vmatprep.subr.bf16.mxu0 %v2870_v52  ;;  %v2890_v51 = vpack.c.bf16 %v2367_v46, %v2359_v45  ;;  %v2358_v52 = vld [vmem:[%s5745_s0 + $0x16c0] sm:$0xff]  ;;  %v2044_v45 = vld [vmem:[%s5745_s0 + $0xcf0] sm:$0xff] }
 0x10a   :  { %2967 = vmatprep.subr.bf16.mxu1 %v2966_v57  ;;  %v2368_v57 = vld [vmem:[%s5745_s0 + $0x1710] sm:$0xff]  ;;  %v2892_v62 = vpack.c.bf16 %v2366_v53, %v2358_v52  ;;  %v3100_v53 = vpack.c.bf16 %v2052_v47, %v2044_v45  ;;  %v2133_v45 = vld [vmem:[%s5745_s0 + $0xfb8] sm:$0xff] }
 0x10b   :  { %1482 = vmatmul.mubr.f32.vlgmr.msra.gmra.mrb[4].mxu0 %v4352_v20 }
 0x10c   :  { %2873 = vmatpush1.bf16.msra.mxu0 %v2872_v63  ;;  %1624 = vmatmul.mubr.f32.vlgmr.msra.gmra.mrb[4].mxu1 %v4352_v20  ;;  %v2320_v20 = vld [vmem:[%s5745_s0 + $0x1590] sm:$0xff]  ;;  %v2988_v63 = vpack.c.bf16 %v2368_v57, %v2360_v54 }
 0x10d   :  { %2969 = vmatpush1.bf16.msra.mxu1 %v2968_v0  ;;  %2875 = vmatprep.subr.bf16.mxu0 %v2874_v1  ;;  %v2976_v24 = vpack.c.bf16 %v2320_v20, %v2312_v15  ;;  %v2894_v0 = vpack.c.bf16 %v2383_v59, %v2375_v58  ;;  %v2374_v1 = vld [vmem:[%s5745_s0 + $0x1740] sm:$0xff]  ;;  %v2392_v15 = vld [vmem:[%s5745_s0 + $0x17d0] sm:$0xff] }
 0x10e   :  { %2971 = vmatprep.subr.bf16.mxu1 %v2970_v5  ;;  %2414 = vmatprep.mubr.msk.f32.mxu0 %vm419_vm0, %v3739_v30  ;;  %v2384_v5 = vld [vmem:[%s5745_s0 + $0x1790] sm:$0xff]  ;;  %v2896_v10 = vpack.c.bf16 %v2382_v2, %v2374_v1  ;;  %v3010_v2 = vpack.c.bf16 %v2083_v61, %v2075_v60  ;;  %v2138_v61 = vld [vmem:[%s5745_s0 + $0xfe0] sm:$0xff] }
 0x10f   :  { %2415 = vmatprep.mubr.msk.f32.mxu1 %vm419_vm0, %v3739_v30  ;;  %v2060_v57 = vld [vmem:[%s5745_s0 + $0xd70] sm:$0xff] }
 0x110   :  { %2877 = vmatpush1.bf16.msra.mxu0 %v2876_v11  ;;  %v2992_v11 = vpack.c.bf16 %v2384_v5, %v2376_v3  ;;  %v2068_v59 = vld [vmem:[%s5745_s0 + $0xdb0] sm:$0xff]  ;;  %v2074_v3 = vld [vmem:[%s5745_s0 + $0xde0] sm:$0xff] }
 0x111   :  { %2973 = vmatpush1.bf16.msra.mxu1 %v2972_v25  ;;  %2879 = vmatprep.subr.bf16.mxu0 %v2878_v12  ;;  %v2898_v25 = vpack.c.bf16 %v2399_v7, %v2391_v6  ;;  %v2390_v12 = vld [vmem:[%s5745_s0 + $0x17c0] sm:$0xff]  ;;  %v3104_v1 = vpack.c.bf16 %v2068_v59, %v2060_v57  ;;  %v2076_v5 = vld [vmem:[%s5745_s0 + $0xdf0] sm:$0xff]  ;;  %v2091_v7 = vld [vmem:[%s5745_s0 + $0xe68] sm:$0xff] }
 0x112   :  { %2975 = vmatprep.subr.bf16.mxu1 %v2974_v17  ;;  %v2400_v17 = vld [vmem:[%s5745_s0 + $0x1810] sm:$0xff]  ;;  %v2900_v20 = vpack.c.bf16 %v2398_v13, %v2390_v12  ;;  %v5224_v13 = vpop.permute.xlu0 %411  ;;  %v2149_v57 = vld [vmem:[%s5745_s0 + $0x1038] sm:$0xff] }
 0x113   :  { %v2996_v18 = vpack.c.bf16 %v2400_v17, %v2392_v15  ;;  %v2084_v6 = vld [vmem:[%s5745_s0 + $0xe30] sm:$0xff]  ;;  %v2098_v15 = vld [vmem:[%s5745_s0 + $0xea0] sm:$0xff] }
 0x114   :  { %2881 = vmatpush1.bf16.msra.mxu0 %v2880_v23  ;;  %v2406_v23 = vld [vmem:[%s5745_s0 + $0x1840] sm:$0xff]  ;;  %v3108_v12 = vpack.c.bf16 %v2084_v6, %v2076_v5  ;;  %v2092_v17 = vld [vmem:[%s5745_s0 + $0xe70] sm:$0xff]  ;;  %v2165_v5 = vld [vmem:[%s5745_s0 + $0x10b8] sm:$0xff] }
 0x115   :  { %2977 = vmatpush1.bf16.msra.mxu1 %v2976_v24  ;;  %2883 = vmatprep.subr.bf16.mxu0 %v2882_v26  ;;  %v2035_v24 = vld [vmem:[%s5745_s0 + $0xca8] sm:$0xff]  ;;  %v2029_v26 = vld [vmem:[%s5745_s0 + $0xc78] sm:$0xff] }
 0x116   :  { %2979 = vmatprep.subr.bf16.mxu1 %v2978_v31  ;;  %v2028_v31 = vld [vmem:[%s5745_s0 + $0xc70] sm:$0xff]  ;;  %v2998_v36 = vpack.c.bf16 %v2035_v24, %v2027_v22  ;;  %v2117_v24 = vld [vmem:[%s5745_s0 + $0xf38] sm:$0xff] }
 0x117   :  { %v3096_v41 = vpack.c.bf16 %v2036_v32, %v2028_v31 }
 0x118   :  { %2885 = vmatpush1.bf16.msra.mxu0 %v2884_v37  ;;  %v2045_v37 = vld [vmem:[%s5745_s0 + $0xcf8] sm:$0xff] }
 0x119   :  { %2981 = vmatpush1.bf16.msra.mxu1 %v2980_v38  ;;  %2887 = vmatprep.subr.bf16.mxu0 %v2886_v39  ;;  %v2053_v38 = vld [vmem:[%s5745_s0 + $0xd38] sm:$0xff]  ;;  %v3094_v39 = vpack.c.bf16 %v2037_v27, %v2029_v26 }
 0x11a   :  { %2983 = vmatprep.subr.bf16.mxu1 %v2982_v43  ;;  %v2042_v43 = vld [vmem:[%s5745_s0 + $0xce0] sm:$0xff]  ;;  %v3098_v46 = vpack.c.bf16 %v2053_v38, %v2045_v37  ;;  %v2108_v38 = vld [vmem:[%s5745_s0 + $0xef0] sm:$0xff] }
 0x11b   :  { %v3004_v52 = vpack.c.bf16 %v2050_v44, %v2042_v43  ;;  %v2114_v37 = vld [vmem:[%s5745_s0 + $0xf20] sm:$0xff]  ;;  %v2131_v43 = vld [vmem:[%s5745_s0 + $0xfa8] sm:$0xff]  ;;  %v2125_v44 = vld [vmem:[%s5745_s0 + $0xf78] sm:$0xff] }
 0x11c   :  { %2889 = vmatpush1.bf16.msra.mxu0 %v2888_v49  ;;  %v2067_v49 = vld [vmem:[%s5745_s0 + $0xda8] sm:$0xff] }
 0x11d   :  { %2985 = vmatpush1.bf16.msra.mxu1 %v2984_v50  ;;  %2891 = vmatprep.subr.bf16.mxu0 %v2890_v51  ;;  %v2061_v50 = vld [vmem:[%s5745_s0 + $0xd78] sm:$0xff]  ;;  %v3006_v54 = vpack.c.bf16 %v2067_v49, %v2059_v48  ;;  %v2122_v49 = vld [vmem:[%s5745_s0 + $0xf60] sm:$0xff] }
 0x11e   :  { %2987 = vmatprep.subr.bf16.mxu1 %v2986_v56  ;;  %v2069_v51 = vld [vmem:[%s5745_s0 + $0xdb8] sm:$0xff]  ;;  %v2066_v56 = vld [vmem:[%s5745_s0 + $0xda0] sm:$0xff] }
 0x11f   :  { %v3102_v58 = vpack.c.bf16 %v2069_v51, %v2061_v50  ;;  %v2130_v50 = vld [vmem:[%s5745_s0 + $0xfa0] sm:$0xff]  ;;  %v2124_v51 = vld [vmem:[%s5745_s0 + $0xf70] sm:$0xff] }
 0x120   :  { %2893 = vmatpush1.bf16.msra.mxu0 %v2892_v62  ;;  %v2077_v62 = vld [vmem:[%s5745_s0 + $0xdf8] sm:$0xff] }
 0x121   :  { %2989 = vmatpush1.bf16.msra.mxu1 %v2988_v63  ;;  %2895 = vmatprep.subr.bf16.mxu0 %v2894_v0  ;;  %v2085_v63 = vld [vmem:[%s5745_s0 + $0xe38] sm:$0xff] }
 0x122   :  { %2991 = vmatprep.subr.bf16.mxu1 %v2990_v4  ;;  %v2082_v4 = vld [vmem:[%s5745_s0 + $0xe20] sm:$0xff] }
 0x124   :  { %2897 = vmatpush1.bf16.msra.mxu0 %v2896_v10  ;;  %v2101_v10 = vld [vmem:[%s5745_s0 + $0xeb8] sm:$0xff] }
 0x125   :  { %2993 = vmatpush1.bf16.msra.mxu1 %v2992_v11  ;;  %2899 = vmatprep.subr.bf16.mxu0 %v2898_v25  ;;  %v3012_v11 = vpack.c.bf16 %v2082_v4, %v2074_v3  ;;  %v2090_v25 = vld [vmem:[%s5745_s0 + $0xe60] sm:$0xff]  ;;  %v2163_v3 = vld [vmem:[%s5745_s0 + $0x10a8] sm:$0xff]  ;;  %v2157_v4 = vld [vmem:[%s5745_s0 + $0x1078] sm:$0xff] }
 0x126   :  { %2995 = vmatprep.subr.bf16.mxu1 %v2994_v14  ;;  %v3014_v14 = vpack.c.bf16 %v2099_v8, %v2091_v7  ;;  %v3016_v29 = vpack.c.bf16 %v2098_v15, %v2090_v25  ;;  %v2156_v25 = vld [vmem:[%s5745_s0 + $0x1070] sm:$0xff] }
 0x127   :  { %v2164_v15 = vld [vmem:[%s5745_s0 + $0x10b0] sm:$0xff] }
 0x128   :  { %2901 = vmatpush1.bf16.msra.mxu0 %v2900_v20  ;;  %v2100_v20 = vld [vmem:[%s5745_s0 + $0xeb0] sm:$0xff] }
 0x129   :  { %2997 = vmatpush1.bf16.msra.mxu1 %v2996_v18  ;;  %1520 = vmatprep.subr.mxu0 %v2407_v21  ;;  %v3110_v18 = vpack.c.bf16 %v2101_v10, %v2093_v9  ;;  %v2107_v21 = vld [vmem:[%s5745_s0 + $0xee8] sm:$0xff]  ;;  %v3112_v31 = vpack.c.bf16 %v2100_v20, %v2092_v17  ;;  %v2154_v10 = vld [vmem:[%s5745_s0 + $0x1060] sm:$0xff] }
 0x12a   :  { %1662 = vmatprep.subr.mxu1 %v2409_v16  ;;  %v2115_v16 = vld [vmem:[%s5745_s0 + $0xf28] sm:$0xff] }
 0x12b   :  { %v2171_v17 = vld [vmem:[%s5745_s0 + $0x10e8] sm:$0xff] }
 0x12c   :  { %1521 = vmatpush1.msra.mxu0 %v2406_v23  ;;  %v2109_v23 = vld [vmem:[%s5745_s0 + $0xef8] sm:$0xff]  ;;  %v2179_v20 = vld [vmem:[%s5745_s0 + $0x1128] sm:$0xff] }
 0x12d   :  { %1663 = vmatpush1.msra.mxu1 %v2408_v35  ;;  %1553 = vmatmul.mubr.f32.vlgmr.msra.gmra.mrb[4].mxu0 %v4551_v55  ;;  %v3018_v35 = vpack.c.bf16 %v2115_v16, %v2107_v21  ;;  %v2173_v16 = vld [vmem:[%s5745_s0 + $0x10f8] sm:$0xff] }
 0x12e   :  { %1695 = vmatmul.mubr.f32.vlgmr.msra.gmra.mrb[4].mxu1 %v4551_v55  ;;  %2999 = vmatprep.subr.bf16.mxu0 %v2998_v36  ;;  %v2058_v55 = vld [vmem:[%s5745_s0 + $0xd60] sm:$0xff] }
 0x12f   :  { %3095 = vmatprep.subr.bf16.mxu1 %v3094_v39  ;;  %3001 = vmatpush1.bf16.msra.mxu0 %v3000_v40  ;;  %v3008_v0 = vpack.c.bf16 %v2066_v56, %v2058_v55  ;;  %v2106_v36 = vld [vmem:[%s5745_s0 + $0xee0] sm:$0xff]  ;;  %v3114_v40 = vpack.c.bf16 %v2117_v24, %v2109_v23  ;;  %v2147_v55 = vld [vmem:[%s5745_s0 + $0x1028] sm:$0xff]  ;;  %v2141_v56 = vld [vmem:[%s5745_s0 + $0xff8] sm:$0xff] }
 0x130   :  { %3097 = vmatpush1.bf16.msra.mxu1 %v3096_v41  ;;  %3003 = vmatprep.subr.bf16.mxu0 %v3002_v42  ;;  %v2116_v41 = vld [vmem:[%s5745_s0 + $0xf30] sm:$0xff]  ;;  %v2123_v42 = vld [vmem:[%s5745_s0 + $0xf68] sm:$0xff] }
 0x131   :  { %3099 = vmatprep.subr.bf16.mxu1 %v3098_v46  ;;  %1765 = vmatprep.mubr.f32.mxu0 %v3590_v19  ;;  %v3020_v46 = vpack.c.bf16 %v2114_v37, %v2106_v36  ;;  %v3116_v47 = vpack.c.bf16 %v2116_v41, %v2108_v38  ;;  %v3022_v48 = vpack.c.bf16 %v2131_v43, %v2123_v42  ;;  %v2189_v36 = vld [vmem:[%s5745_s0 + $0x1178] sm:$0xff]  ;;  %v2186_v41 = vld [vmem:[%s5745_s0 + $0x1160] sm:$0xff]  ;;  %v2188_v43 = vld [vmem:[%s5745_s0 + $0x1170] sm:$0xff] }
 0x132   :  { %1907 = vmatprep.mubr.f32.mxu1 %v3590_v19  ;;  %v3106_v19 = vpack.c.bf16 %v2085_v63, %v2077_v62  ;;  %v2146_v62 = vld [vmem:[%s5745_s0 + $0x1020] sm:$0xff]  ;;  %v2140_v63 = vld [vmem:[%s5745_s0 + $0xff0] sm:$0xff]  ;;  %v2197_v37 = vld [vmem:[%s5745_s0 + $0x11b8] sm:$0xff] }
 0x133   :  { %3005 = vmatpush1.bf16.msra.mxu0 %v3004_v52  ;;  %v3118_v52 = vpack.c.bf16 %v2133_v45, %v2125_v44  ;;  %v3028_v6 = vpack.c.bf16 %v2146_v62, %v2138_v61  ;;  %v2194_v42 = vld [vmem:[%s5745_s0 + $0x11a0] sm:$0xff]  ;;  %v3134_v44 = vpack.c.bf16 %v2197_v37, %v2189_v36  ;;  %v2196_v45 = vld [vmem:[%s5745_s0 + $0x11b0] sm:$0xff]  ;;  %v2229_v61 = vld [vmem:[%s5745_s0 + $0x12b8] sm:$0xff] }
 0x134   :  { %3101 = vmatpush1.bf16.msra.mxu1 %v3100_v53  ;;  %3007 = vmatprep.subr.bf16.mxu0 %v3006_v54  ;;  %v2132_v53 = vld [vmem:[%s5745_s0 + $0xfb0] sm:$0xff]  ;;  %v2139_v54 = vld [vmem:[%s5745_s0 + $0xfe8] sm:$0xff] }
 0x135   :  { %3103 = vmatprep.subr.bf16.mxu1 %v3102_v58  ;;  %v3024_v58 = vpack.c.bf16 %v2130_v50, %v2122_v49  ;;  %v3120_v59 = vpack.c.bf16 %v2132_v53, %v2124_v51  ;;  %v3026_v60 = vpack.c.bf16 %v2147_v55, %v2139_v54  ;;  %v2213_v49 = vld [vmem:[%s5745_s0 + $0x1238] sm:$0xff]  ;;  %v3040_v50 = vpack.c.bf16 %v2194_v42, %v2186_v41  ;;  %v2202_v53 = vld [vmem:[%s5745_s0 + $0x11e0] sm:$0xff]  ;;  %v2204_v55 = vld [vmem:[%s5745_s0 + $0x11f0] sm:$0xff] }
 0x136   :  { %v3136_v51 = vpack.c.bf16 %v2196_v45, %v2188_v43  ;;  %v2210_v54 = vld [vmem:[%s5745_s0 + $0x1220] sm:$0xff]  ;;  %v2268_v41 = vld [vmem:[%s5745_s0 + $0x13f0] sm:$0xff]  ;;  %v2291_v45 = vld [vmem:[%s5745_s0 + $0x14a8] sm:$0xff] }
 0x137   :  { %3009 = vmatpush1.bf16.msra.mxu0 %v3008_v0  ;;  %v3122_v0 = vpack.c.bf16 %v2149_v57, %v2141_v56  ;;  %v2212_v57 = vld [vmem:[%s5745_s0 + $0x1230] sm:$0xff]  ;;  %v3044_v62 = vpack.c.bf16 %v2210_v54, %v2202_v53 }
 0x138   :  { %3105 = vmatpush1.bf16.msra.mxu1 %v3104_v1  ;;  %3011 = vmatprep.subr.bf16.mxu0 %v3010_v2  ;;  %v2148_v1 = vld [vmem:[%s5745_s0 + $0x1030] sm:$0xff]  ;;  %v2155_v2 = vld [vmem:[%s5745_s0 + $0x1068] sm:$0xff] }
 0x139   :  { %3107 = vmatprep.subr.bf16.mxu1 %v3106_v19  ;;  %v3124_v8 = vpack.c.bf16 %v2148_v1, %v2140_v63  ;;  %v3030_v9 = vpack.c.bf16 %v2163_v3, %v2155_v2  ;;  %v3140_v63 = vpack.c.bf16 %v2212_v57, %v2204_v55  ;;  %v2218_v1 = vld [vmem:[%s5745_s0 + $0x1260] sm:$0xff]  ;;  %v2220_v3 = vld [vmem:[%s5745_s0 + $0x1270] sm:$0xff]  ;;  %v2307_v57 = vld [vmem:[%s5745_s0 + $0x1528] sm:$0xff] }
 0x13a   :  { %v559_v22 = vpop.f32.mrb[0].mxu0  ;;  %v2226_v2 = vld [vmem:[%s5745_s0 + $0x12a0] sm:$0xff]  ;;  %v2276_v43 = vld [vmem:[%s5745_s0 + $0x1430] sm:$0xff] }
 0x13b   :  { %3013 = vmatpush1.bf16.msra.mxu0 %v3012_v11  ;;  %v3190_v26 = vadd.f32 %v559_v22, %v5224_v13  ;;  %v701_v27 = vpop.f32.mrb[0].mxu1  ;;  %v561_v28 = vpop.f32.mrb[1].mxu0  ;;  %v2162_v11 = vld [vmem:[%s5745_s0 + $0x10a0] sm:$0xff]  ;;  %v2181_v22 = vld [vmem:[%s5745_s0 + $0x1138] sm:$0xff]  ;;  %v2284_v53 = vld [vmem:[%s5745_s0 + $0x1470] sm:$0xff] }
 0x13c   :  { %3109 = vmatpush1.bf16.msra.mxu1 %v3108_v12  ;;  %v3192_v32 = vadd.f32 %v701_v27, %v5224_v13  ;;  %v3191_v33 = vadd.f32 %v561_v28, %v5224_v13  ;;  %v703_v34 = vpop.f32.mrb[1].mxu1  ;;  %3015 = vmatprep.subr.bf16.mxu0 %v3014_v14  ;;  %v3126_v14 = vpack.c.bf16 %v2165_v5, %v2157_v4  ;;  %v2170_v28 = vld [vmem:[%s5745_s0 + $0x10e0] sm:$0xff]  ;;  %v2228_v5 = vld [vmem:[%s5745_s0 + $0x12b0] sm:$0xff] }
 0x13d   :  { %3226 = vtanh.f32 %v3190_v26  ;;  %v3193_v39 = vadd.f32 %v703_v34, %v5224_v13  ;;  %3111 = vmatprep.subr.bf16.mxu1 %v3110_v18  ;;  %v3032_v24 = vpack.c.bf16 %v2162_v11, %v2154_v10  ;;  %v3128_v26 = vpack.c.bf16 %v2164_v15, %v2156_v25  ;;  %v2187_v34 = vld [vmem:[%s5745_s0 + $0x1168] sm:$0xff]  ;;  %v2234_v25 = vld [vmem:[%s5745_s0 + $0x12e0] sm:$0xff]  ;;  %v2292_v55 = vld [vmem:[%s5745_s0 + $0x14b0] sm:$0xff] }
 0x13e   :  { %3228 = vtanh.f32 %v3192_v32  ;;  %v3034_v27 = vpack.c.bf16 %v2179_v20, %v2171_v17  ;;  %v3130_v32 = vpack.c.bf16 %v2181_v22, %v2173_v16  ;;  %v3144_v10 = vpack.c.bf16 %v2228_v5, %v2220_v3  ;;  %v2244_v17 = vld [vmem:[%s5745_s0 + $0x1330] sm:$0xff]  ;;  %v2251_v20 = vld [vmem:[%s5745_s0 + $0x1368] sm:$0xff]  ;;  %v2261_v16 = vld [vmem:[%s5745_s0 + $0x13b8] sm:$0xff] }
 0x13f   :  { %3230 = vtanh.f32 %v3191_v33  ;;  %3017 = vmatpush1.bf16.msra.mxu0 %v3016_v29  ;;  %v2178_v29 = vld [vmem:[%s5745_s0 + $0x1120] sm:$0xff]  ;;  %v2180_v33 = vld [vmem:[%s5745_s0 + $0x1130] sm:$0xff]  ;;  %v2323_v5 = vld [vmem:[%s5745_s0 + $0x15a8] sm:$0xff] }
 0x140   :  { %3232 = vtanh.f32 %v3193_v39  ;;  %3113 = vmatpush1.bf16.msra.mxu1 %v3112_v31  ;;  %3019 = vmatprep.subr.bf16.mxu0 %v3018_v35  ;;  %v2172_v31 = vld [vmem:[%s5745_s0 + $0x10f0] sm:$0xff]  ;;  %v2195_v35 = vld [vmem:[%s5745_s0 + $0x11a8] sm:$0xff]  ;;  %v3036_v38 = vpack.c.bf16 %v2178_v29, %v2170_v28 }
 0x141   :  { %3115 = vmatprep.subr.bf16.mxu1 %v3114_v40  ;;  %v3132_v39 = vpack.c.bf16 %v2180_v33, %v2172_v31  ;;  %v3038_v40 = vpack.c.bf16 %v2195_v35, %v2187_v34  ;;  %v2252_v28 = vld [vmem:[%s5745_s0 + $0x1370] sm:$0xff]  ;;  %v2275_v33 = vld [vmem:[%s5745_s0 + $0x1428] sm:$0xff]  ;;  %v2269_v34 = vld [vmem:[%s5745_s0 + $0x13f8] sm:$0xff] }
 0x142   :  { %v2260_v31 = vld [vmem:[%s5745_s0 + $0x13b0] sm:$0xff]  ;;  %v2277_v35 = vld [vmem:[%s5745_s0 + $0x1438] sm:$0xff] }
 0x143   :  { %3021 = vmatpush1.bf16.msra.mxu0 %v3020_v46  ;;  %v2203_v46 = vld [vmem:[%s5745_s0 + $0x11e8] sm:$0xff]  ;;  %v3152_v37 = vpack.c.bf16 %v2260_v31, %v2252_v28  ;;  %v3154_v42 = vpack.c.bf16 %v2277_v35, %v2269_v34  ;;  %v2308_v3 = vld [vmem:[%s5745_s0 + $0x1530] sm:$0xff] }
 0x144   :  { %3117 = vmatpush1.bf16.msra.mxu1 %v3116_v47  ;;  %3023 = vmatprep.subr.bf16.mxu0 %v3022_v48  ;;  %v2211_v47 = vld [vmem:[%s5745_s0 + $0x1228] sm:$0xff]  ;;  %v2205_v48 = vld [vmem:[%s5745_s0 + $0x11f8] sm:$0xff]  ;;  %v2340_v28 = vld [vmem:[%s5745_s0 + $0x1630] sm:$0xff] }
 0x145   :  { %3119 = vmatprep.subr.bf16.mxu1 %v3118_v52  ;;  %v3042_v52 = vpack.c.bf16 %v2211_v47, %v2203_v46  ;;  %v3138_v56 = vpack.c.bf16 %v2213_v49, %v2205_v48  ;;  %v2285_v46 = vld [vmem:[%s5745_s0 + $0x1478] sm:$0xff]  ;;  %v3156_v49 = vpack.c.bf16 %v2276_v43, %v2268_v41  ;;  %v2355_v31 = vld [vmem:[%s5745_s0 + $0x16a8] sm:$0xff]  ;;  %v2356_v41 = vld [vmem:[%s5745_s0 + $0x16b0] sm:$0xff] }
 0x146   :  { %v2293_v47 = vld [vmem:[%s5745_s0 + $0x14b8] sm:$0xff]  ;;  %v2371_v43 = vld [vmem:[%s5745_s0 + $0x1728] sm:$0xff] }
 0x147   :  { %v3227_v19 = vpop.eup %3226  ;;  %3025 = vmatpush1.bf16.msra.mxu0 %v3024_v58  ;;  %v2219_v58 = vld [vmem:[%s5745_s0 + $0x1268] sm:$0xff]  ;;  %v3158_v54 = vpack.c.bf16 %v2293_v47, %v2285_v46 }
 0x148   :  { %v3229_v7 = vpop.eup %3228  ;;  %3121 = vmatpush1.bf16.msra.mxu1 %v3120_v59  ;;  %3027 = vmatprep.subr.bf16.mxu0 %v3026_v60  ;;  %v2227_v59 = vld [vmem:[%s5745_s0 + $0x12a8] sm:$0xff]  ;;  %v2221_v60 = vld [vmem:[%s5745_s0 + $0x1278] sm:$0xff] }
 0x149   :  { %v3231_v12 = vpop.eup %3230  ;;  %3123 = vmatprep.subr.bf16.mxu1 %v3122_v0  ;;  %v3046_v0 = vpack.c.bf16 %v2227_v59, %v2219_v58  ;;  %v3142_v4 = vpack.c.bf16 %v2229_v61, %v2221_v60  ;;  %v2301_v58 = vld [vmem:[%s5745_s0 + $0x14f8] sm:$0xff]  ;;  %v3160_v61 = vpack.c.bf16 %v2292_v55, %v2284_v53  ;;  %v2372_v53 = vld [vmem:[%s5745_s0 + $0x1730] sm:$0xff]  ;;  %v2387_v55 = vld [vmem:[%s5745_s0 + $0x17a8] sm:$0xff] }
 0x14a   :  { %v3233_v18 = vpop.eup %3232  ;;  %v1006_v21 = vcombine.low %v3227_v19, %v3231_v12  ;;  %v2235_v19 = vld [vmem:[%s5745_s0 + $0x12e8] sm:$0xff]  ;;  %v2242_v12 = vld [vmem:[%s5745_s0 + $0x1320] sm:$0xff]  ;;  %v2309_v59 = vld [vmem:[%s5745_s0 + $0x1538] sm:$0xff] }
 0x14b   :  { %v1007_v23 = vcombine.low %v3229_v7, %v3233_v18  ;;  %3029 = vmatpush1.bf16.msra.mxu0 %v3028_v6  ;;  %v2243_v6 = vld [vmem:[%s5745_s0 + $0x1328] sm:$0xff]  ;;  %v2237_v7 = vld [vmem:[%s5745_s0 + $0x12f8] sm:$0xff]  ;;  %v3052_v22 = vpack.c.bf16 %v2242_v12, %v2234_v25  ;;  %v2322_v25 = vld [vmem:[%s5745_s0 + $0x15a0] sm:$0xff] }
 0x14c   :  { %1014 = vst [vmem:[%s5748_s3] sm:$0x77] %v1006_v21  ;;  %3125 = vmatpush1.bf16.msra.mxu1 %v3124_v8  ;;  %3031 = vmatprep.subr.bf16.mxu0 %v3030_v9  ;;  %v2245_v8 = vld [vmem:[%s5745_s0 + $0x1338] sm:$0xff]  ;;  %v3048_v9 = vpack.c.bf16 %v2226_v2, %v2218_v1  ;;  %v3050_v11 = vpack.c.bf16 %v2243_v6, %v2235_v19  ;;  %v2259_v18 = vld [vmem:[%s5745_s0 + $0x13a8] sm:$0xff]  ;;  %v2300_v1 = vld [vmem:[%s5745_s0 + $0x14f0] sm:$0xff] }
 0x14d   :  { %1015 = vst [vmem:[%s5748_s3 + $0x8] sm:$0x77] %v1007_v23  ;;  %3127 = vmatprep.subr.bf16.mxu1 %v3126_v14  ;;  %v2236_v14 = vld [vmem:[%s5745_s0 + $0x12f0] sm:$0xff]  ;;  %v3146_v15 = vpack.c.bf16 %v2245_v8, %v2237_v7  ;;  %v2253_v21 = vld [vmem:[%s5745_s0 + $0x1378] sm:$0xff]  ;;  %v3162_v2 = vpack.c.bf16 %v2309_v59, %v2301_v58  ;;  %v3260_v19 = vld [vmem:[%s5746_s1] sm:$0x77] }
 0x14e   :  { %v3148_v23 = vpack.c.bf16 %v2244_v17, %v2236_v14  ;;  %v3150_v29 = vpack.c.bf16 %v2261_v16, %v2253_v21  ;;  %v2317_v6 = vld [vmem:[%s5745_s0 + $0x1578] sm:$0xff]  ;;  %v2316_v12 = vld [vmem:[%s5745_s0 + $0x1570] sm:$0xff]  ;;  %v2331_v17 = vld [vmem:[%s5745_s0 + $0x15e8] sm:$0xff] }
 0x14f   :  { %3033 = vmatpush1.bf16.msra.mxu0 %v3032_v24  ;;  %v3054_v24 = vpack.c.bf16 %v2259_v18, %v2251_v20  ;;  %v2325_v7 = vld [vmem:[%s5745_s0 + $0x15b8] sm:$0xff]  ;;  %v2339_v20 = vld [vmem:[%s5745_s0 + $0x1628] sm:$0xff] }
 0x150   :  { %3129 = vmatpush1.bf16.msra.mxu1 %v3128_v26  ;;  %3035 = vmatprep.subr.bf16.mxu0 %v3034_v27  ;;  %v2250_v26 = vld [vmem:[%s5745_s0 + $0x1360] sm:$0xff]  ;;  %v3166_v14 = vpack.c.bf16 %v2325_v7, %v2317_v6  ;;  %v2333_v18 = vld [vmem:[%s5745_s0 + $0x15f8] sm:$0xff] }
 0x151   :  { %3131 = vmatprep.subr.bf16.mxu1 %v3130_v32  ;;  %v2258_v27 = vld [vmem:[%s5745_s0 + $0x13a0] sm:$0xff]  ;;  %v2267_v32 = vld [vmem:[%s5745_s0 + $0x13e8] sm:$0xff]  ;;  %v2341_v21 = vld [vmem:[%s5745_s0 + $0x1638] sm:$0xff] }
 0x152   :  { %v3056_v36 = vpack.c.bf16 %v2258_v27, %v2250_v26  ;;  %v2338_v26 = vld [vmem:[%s5745_s0 + $0x1620] sm:$0xff]  ;;  %v2332_v27 = vld [vmem:[%s5745_s0 + $0x15f0] sm:$0xff] }
 0x153   :  { %3037 = vmatpush1.bf16.msra.mxu0 %v3036_v38  ;;  %v3058_v38 = vpack.c.bf16 %v2275_v33, %v2267_v32  ;;  %v2349_v32 = vld [vmem:[%s5745_s0 + $0x1678] sm:$0xff]  ;;  %v3172_v35 = vpack.c.bf16 %v2340_v28, %v2332_v27 }
 0x154   :  { %3133 = vmatpush1.bf16.msra.mxu1 %v3132_v39  ;;  %3039 = vmatprep.subr.bf16.mxu0 %v3038_v40  ;;  %v2266_v39 = vld [vmem:[%s5745_s0 + $0x13e0] sm:$0xff]  ;;  %v2357_v33 = vld [vmem:[%s5745_s0 + $0x16b8] sm:$0xff] }
 0x155   :  { %3135 = vmatprep.subr.bf16.mxu1 %v3134_v44  ;;  %v2274_v40 = vld [vmem:[%s5745_s0 + $0x1420] sm:$0xff]  ;;  %v2283_v44 = vld [vmem:[%s5745_s0 + $0x1468] sm:$0xff] }
 0x156   :  { %v3060_v48 = vpack.c.bf16 %v2274_v40, %v2266_v39  ;;  %v2348_v39 = vld [vmem:[%s5745_s0 + $0x1670] sm:$0xff]  ;;  %v3174_v40 = vpack.c.bf16 %v2357_v33, %v2349_v32 }
 0x157   :  { %3041 = vmatpush1.bf16.msra.mxu0 %v3040_v50  ;;  %v3062_v50 = vpack.c.bf16 %v2291_v45, %v2283_v44  ;;  %v2365_v44 = vld [vmem:[%s5745_s0 + $0x16f8] sm:$0xff]  ;;  %v3176_v47 = vpack.c.bf16 %v2356_v41, %v2348_v39 }
 0x158   :  { %3137 = vmatpush1.bf16.msra.mxu1 %v3136_v51  ;;  %3043 = vmatprep.subr.bf16.mxu0 %v3042_v52  ;;  %v2282_v51 = vld [vmem:[%s5745_s0 + $0x1460] sm:$0xff]  ;;  %v2373_v45 = vld [vmem:[%s5745_s0 + $0x1738] sm:$0xff] }
 0x159   :  { %3139 = vmatprep.subr.bf16.mxu1 %v3138_v56  ;;  %v2290_v52 = vld [vmem:[%s5745_s0 + $0x14a0] sm:$0xff]  ;;  %v2299_v56 = vld [vmem:[%s5745_s0 + $0x14e8] sm:$0xff] }
 0x15a   :  { %v3064_v60 = vpack.c.bf16 %v2290_v52, %v2282_v51  ;;  %v2364_v51 = vld [vmem:[%s5745_s0 + $0x16f0] sm:$0xff]  ;;  %v3178_v52 = vpack.c.bf16 %v2373_v45, %v2365_v44 }
 0x15b   :  { %3045 = vmatpush1.bf16.msra.mxu0 %v3044_v62  ;;  %v3066_v62 = vpack.c.bf16 %v2307_v57, %v2299_v56  ;;  %v2381_v56 = vld [vmem:[%s5745_s0 + $0x1778] sm:$0xff]  ;;  %v3180_v59 = vpack.c.bf16 %v2372_v53, %v2364_v51 }
 0x15c   :  { %3141 = vmatpush1.bf16.msra.mxu1 %v3140_v63  ;;  %3047 = vmatprep.subr.bf16.mxu0 %v3046_v0  ;;  %v2298_v63 = vld [vmem:[%s5745_s0 + $0x14e0] sm:$0xff]  ;;  %v2389_v57 = vld [vmem:[%s5745_s0 + $0x17b8] sm:$0xff] }
 0x15d   :  { %3143 = vmatprep.subr.bf16.mxu1 %v3142_v4  ;;  %v2306_v0 = vld [vmem:[%s5745_s0 + $0x1520] sm:$0xff]  ;;  %v2315_v4 = vld [vmem:[%s5745_s0 + $0x1568] sm:$0xff] }
 0x15e   :  { %v3068_v8 = vpack.c.bf16 %v2306_v0, %v2298_v63  ;;  %v2380_v63 = vld [vmem:[%s5745_s0 + $0x1770] sm:$0xff]  ;;  %v3182_v0 = vpack.c.bf16 %v2389_v57, %v2381_v56 }
 0x15f   :  { %3049 = vmatpush1.bf16.msra.mxu0 %v3048_v9  ;;  %v3164_v9 = vpack.c.bf16 %v2308_v3, %v2300_v1  ;;  %v2388_v1 = vld [vmem:[%s5745_s0 + $0x17b0] sm:$0xff]  ;;  %v2403_v3 = vld [vmem:[%s5745_s0 + $0x1828] sm:$0xff] }
 0x160   :  { %3145 = vmatpush1.bf16.msra.mxu1 %v3144_v10  ;;  %3051 = vmatprep.subr.bf16.mxu0 %v3050_v11  ;;  %v3070_v10 = vpack.c.bf16 %v2323_v5, %v2315_v4  ;;  %v2314_v11 = vld [vmem:[%s5745_s0 + $0x1560] sm:$0xff]  ;;  %v2397_v4 = vld [vmem:[%s5745_s0 + $0x17f8] sm:$0xff]  ;;  %v3184_v6 = vpack.c.bf16 %v2388_v1, %v2380_v63 }
 0x161   :  { %3147 = vmatprep.subr.bf16.mxu1 %v3146_v15  ;;  %v2324_v15 = vld [vmem:[%s5745_s0 + $0x15b0] sm:$0xff]  ;;  %v3072_v16 = vpack.c.bf16 %v2322_v25, %v2314_v11  ;;  %v2405_v5 = vld [vmem:[%s5745_s0 + $0x1838] sm:$0xff] }
 0x162   :  { %v2396_v11 = vld [vmem:[%s5745_s0 + $0x17f0] sm:$0xff] }
 0x163   :  { %3053 = vmatpush1.bf16.msra.mxu0 %v3052_v22  ;;  %v3168_v22 = vpack.c.bf16 %v2324_v15, %v2316_v12  ;;  %v2404_v25 = vld [vmem:[%s5745_s0 + $0x1830] sm:$0xff]  ;;  %v2411_v15 = vld [vmem:[%s5745_s0 + $0x1868] sm:$0xff] }
 0x164   :  { %3149 = vmatpush1.bf16.msra.mxu1 %v3148_v23  ;;  %3055 = vmatprep.subr.bf16.mxu0 %v3054_v24  ;;  %v3074_v23 = vpack.c.bf16 %v2339_v20, %v2331_v17  ;;  %v2330_v24 = vld [vmem:[%s5745_s0 + $0x15e0] sm:$0xff]  ;;  %v2413_v17 = vld [vmem:[%s5745_s0 + $0x1878] sm:$0xff] }
 0x165   :  { %3151 = vmatprep.subr.bf16.mxu1 %v3150_v29  ;;  %v2347_v29 = vld [vmem:[%s5745_s0 + $0x1668] sm:$0xff]  ;;  %v3076_v34 = vpack.c.bf16 %v2338_v26, %v2330_v24  ;;  %v2410_v20 = vld [vmem:[%s5745_s0 + $0x1860] sm:$0xff] }
 0x167   :  { %3057 = vmatpush1.bf16.msra.mxu0 %v3056_v36  ;;  %v3078_v36 = vpack.c.bf16 %v2355_v31, %v2347_v29 }
 0x168   :  { %3153 = vmatpush1.bf16.msra.mxu1 %v3152_v37  ;;  %3059 = vmatprep.subr.bf16.mxu0 %v3058_v38  ;;  %v2346_v37 = vld [vmem:[%s5745_s0 + $0x1660] sm:$0xff] }
 0x169   :  { %3155 = vmatprep.subr.bf16.mxu1 %v3154_v42  ;;  %v2354_v38 = vld [vmem:[%s5745_s0 + $0x16a0] sm:$0xff]  ;;  %v2363_v42 = vld [vmem:[%s5745_s0 + $0x16e8] sm:$0xff] }
 0x16a   :  { %v3080_v46 = vpack.c.bf16 %v2354_v38, %v2346_v37 }
 0x16b   :  { %3061 = vmatpush1.bf16.msra.mxu0 %v3060_v48  ;;  %v3082_v48 = vpack.c.bf16 %v2371_v43, %v2363_v42 }
 0x16c   :  { %3157 = vmatpush1.bf16.msra.mxu1 %v3156_v49  ;;  %3063 = vmatprep.subr.bf16.mxu0 %v3062_v50  ;;  %v2362_v49 = vld [vmem:[%s5745_s0 + $0x16e0] sm:$0xff] }
 0x16d   :  { %3159 = vmatprep.subr.bf16.mxu1 %v3158_v54  ;;  %v2370_v50 = vld [vmem:[%s5745_s0 + $0x1720] sm:$0xff]  ;;  %v2379_v54 = vld [vmem:[%s5745_s0 + $0x1768] sm:$0xff] }
 0x16e   :  { %1766 = vmatmul.mubr.f32.vlgmr.msra.gmra.mrb[6].mxu0 %v3260_v19  ;;  %v3084_v58 = vpack.c.bf16 %v2370_v50, %v2362_v49 }
 0x16f   :  { %3065 = vmatpush1.bf16.msra.mxu0 %v3064_v60  ;;  %1908 = vmatmul.mubr.f32.vlgmr.msra.gmra.mrb[6].mxu1 %v3260_v19  ;;  %v3086_v60 = vpack.c.bf16 %v2387_v55, %v2379_v54 }
 0x170   :  { %3161 = vmatpush1.bf16.msra.mxu1 %v3160_v61  ;;  %3067 = vmatprep.subr.bf16.mxu0 %v3066_v62  ;;  %v2378_v61 = vld [vmem:[%s5745_s0 + $0x1760] sm:$0xff] }
 0x171   :  { %3163 = vmatprep.subr.bf16.mxu1 %v3162_v2  ;;  %2416 = vmatprep.mubr.msk.f32.mxu0 %vm419_vm0, %v3739_v30  ;;  %v2386_v62 = vld [vmem:[%s5745_s0 + $0x17a0] sm:$0xff]  ;;  %v2395_v2 = vld [vmem:[%s5745_s0 + $0x17e8] sm:$0xff] }
 0x172   :  { %2417 = vmatprep.mubr.msk.f32.mxu1 %vm419_vm0, %v3739_v30  ;;  %v3170_v30 = vpack.c.bf16 %v2341_v21, %v2333_v18  ;;  %v3088_v19 = vpack.c.bf16 %v2386_v62, %v2378_v61  ;;  %v3090_v7 = vpack.c.bf16 %v2403_v3, %v2395_v2  ;;  %v2412_v18 = vld [vmem:[%s5745_s0 + $0x1870] sm:$0xff]  ;;  %v3261_v21 = vld [vmem:[%s5746_s1 + $0x8] sm:$0x77] }
 0x173   :  { %3069 = vmatpush1.bf16.msra.mxu0 %v3068_v8  ;;  %v2394_v8 = vld [vmem:[%s5745_s0 + $0x17e0] sm:$0xff] }
 0x174   :  { %3165 = vmatpush1.bf16.msra.mxu1 %v3164_v9  ;;  %3071 = vmatprep.subr.bf16.mxu0 %v3070_v10  ;;  %v2402_v9 = vld [vmem:[%s5745_s0 + $0x1820] sm:$0xff]  ;;  %v3186_v10 = vpack.c.bf16 %v2405_v5, %v2397_v4 }
 0x175   :  { %3167 = vmatprep.subr.bf16.mxu1 %v3166_v14  ;;  %v3092_v12 = vpack.c.bf16 %v2402_v9, %v2394_v8  ;;  %v3188_v14 = vpack.c.bf16 %v2404_v25, %v2396_v11 }
 0x177   :  { %3073 = vmatpush1.bf16.msra.mxu0 %v3072_v16 }
 0x178   :  { %3169 = vmatpush1.bf16.msra.mxu1 %v3168_v22  ;;  %3075 = vmatprep.subr.bf16.mxu0 %v3074_v23 }
 0x179   :  { %3171 = vmatprep.subr.bf16.mxu1 %v3170_v30 }
 0x17b   :  { %3077 = vmatpush1.bf16.msra.mxu0 %v3076_v34 }
 0x17c   :  { %3173 = vmatpush1.bf16.msra.mxu1 %v3172_v35  ;;  %3079 = vmatprep.subr.bf16.mxu0 %v3078_v36  ;;  %v1415_v36 = vpop.permute.xlu0 %1414 }
 0x17d   :  { %3175 = vmatprep.subr.bf16.mxu1 %v3174_v40 }
 0x17f   :  { %3081 = vmatpush1.bf16.msra.mxu0 %v3080_v46 }
 0x180   :  { %3177 = vmatpush1.bf16.msra.mxu1 %v3176_v47  ;;  %3083 = vmatprep.subr.bf16.mxu0 %v3082_v48 }
 0x181   :  { %3179 = vmatprep.subr.bf16.mxu1 %v3178_v52 }
 0x183   :  { %3085 = vmatpush1.bf16.msra.mxu0 %v3084_v58 }
 0x184   :  { %3181 = vmatpush1.bf16.msra.mxu1 %v3180_v59  ;;  %3087 = vmatprep.subr.bf16.mxu0 %v3086_v60 }
 0x185   :  { %3183 = vmatprep.subr.bf16.mxu1 %v3182_v0 }
 0x187   :  { %3089 = vmatpush1.bf16.msra.mxu0 %v3088_v19 }
 0x188   :  { %3185 = vmatpush1.bf16.msra.mxu1 %v3184_v6  ;;  %3091 = vmatprep.subr.bf16.mxu0 %v3090_v7 }
 0x189   :  { %3187 = vmatprep.subr.bf16.mxu1 %v3186_v10 }
 0x18b   :  { %3093 = vmatpush1.bf16.msra.mxu0 %v3092_v12 }
 0x18c   :  { %3189 = vmatpush1.bf16.msra.mxu1 %v3188_v14  ;;  %1804 = vmatprep.subr.mxu0 %v2411_v15 }
 0x18d   :  { %1946 = vmatprep.subr.mxu1 %v2413_v17 }
 0x18f   :  { %1805 = vmatpush1.msra.mxu0 %v2410_v20 }
 0x190   :  { %1947 = vmatpush1.msra.mxu1 %v2412_v18  ;;  %1837 = vmatmul.mubr.f32.vlgmr.msra.gmra.mrb[6].mxu0 %v3261_v21 }
 0x191   :  { %1979 = vmatmul.mubr.f32.vlgmr.msra.gmra.mrb[6].mxu1 %v3261_v21 }
 0x19d   :  { %v843_v16 = vpop.f32.mrb[2].mxu0 }
 0x19e   :  { %v3194_v22 = vadd.f32 %v843_v16, %v5224_v13  ;;  %v985_v23 = vpop.f32.mrb[2].mxu1  ;;  %v845_v24 = vpop.f32.mrb[3].mxu0 }
 0x19f   :  { %v3196_v26 = vadd.f32 %v985_v23, %v5224_v13  ;;  %v3195_v27 = vadd.f32 %v845_v24, %v5224_v13  ;;  %v987_v30 = vpop.f32.mrb[3].mxu1 }
 0x1a0   :  { %3234 = vtanh.f32 %v3194_v22  ;;  %v3197_v28 = vadd.f32 %v987_v30, %v5224_v13 }
 0x1a1   :  { %3236 = vtanh.f32 %v3196_v26 }
 0x1a2   :  { %3238 = vtanh.f32 %v3195_v27 }
 0x1a3   :  { %3240 = vtanh.f32 %v3197_v28 }
 0x1aa   :  { %v3235_v29 = vpop.eup %3234 }
 0x1ab   :  { %v3237_v31 = vpop.eup %3236 }
 0x1ac   :  { %v3239_v32 = vpop.eup %3238 }
 0x1ad   :  { %v3241_v33 = vpop.eup %3240  ;;  %v1008_v34 = vcombine.low %v3235_v29, %v3239_v32 }
 0x1ae   :  { %v1009_v35 = vcombine.low %v3237_v31, %v3241_v33 }
 0x1af   :  { %1016 = vst [vmem:[%s5748_s3 + $0x10] sm:$0x77] %v1008_v34 }
 0x1b0   :  { %1017 = vst [vmem:[%s5748_s3 + $0x18] sm:$0x77] %v1009_v35 }
 0x200   :  { %v1554_v37 = vpop.f32.mrb[4].mxu0 }
 0x201   :  { %v3198_v13 = vadd.f32 %v1554_v37, %v1415_v36  ;;  %v1696_v38 = vpop.f32.mrb[4].mxu1  ;;  %v1556_v39 = vpop.f32.mrb[5].mxu0 }
 0x202   :  { %v3200_v40 = vadd.f32 %v1696_v38, %v1415_v36  ;;  %v3199_v41 = vadd.f32 %v1556_v39, %v1415_v36  ;;  %v1698_v42 = vpop.f32.mrb[5].mxu1 }
 0x203   :  { %3242 = vtanh.f32 %v3198_v13  ;;  %v3201_v43 = vadd.f32 %v1698_v42, %v1415_v36 }
 0x204   :  { %3244 = vtanh.f32 %v3200_v40 }
 0x205   :  { %3246 = vtanh.f32 %v3199_v41 }
 0x206   :  { %3248 = vtanh.f32 %v3201_v43 }
 0x20d   :  { %v3243_v44 = vpop.eup %3242 }
 0x20e   :  { %v3245_v45 = vpop.eup %3244 }
 0x20f   :  { %v3247_v46 = vpop.eup %3246 }
 0x210   :  { %v3249_v47 = vpop.eup %3248  ;;  %v2001_v48 = vcombine.low %v3243_v44, %v3247_v46 }
 0x211   :  { %v2002_v49 = vcombine.low %v3245_v45, %v3249_v47 }
 0x212   :  { %2418 = vst [vmem:[%s5748_s3 + $0x20] sm:$0x77] %v2001_v48 }
 0x213   :  { %2419 = vst [vmem:[%s5748_s3 + $0x28] sm:$0x77] %v2002_v49 }
 0x263   :  { %v1838_v50 = vpop.f32.mrb[6].mxu0 }
 0x264   :  { %v3202_v51 = vadd.f32 %v1838_v50, %v1415_v36  ;;  %v1980_v52 = vpop.f32.mrb[6].mxu1  ;;  %v1840_v53 = vpop.f32.mrb[7].mxu0 }
 0x265   :  { %v3204_v54 = vadd.f32 %v1980_v52, %v1415_v36  ;;  %v3203_v55 = vadd.f32 %v1840_v53, %v1415_v36  ;;  %v1982_v56 = vpop.f32.mrb[7].mxu1 }
 0x266   :  { %3250 = vtanh.f32 %v3202_v51  ;;  %v3205_v57 = vadd.f32 %v1982_v56, %v1415_v36 }
 0x267   :  { %3252 = vtanh.f32 %v3204_v54 }
 0x268   :  { %3254 = vtanh.f32 %v3203_v55 }
 0x269   :  { %3256 = vtanh.f32 %v3205_v57 }
 0x270   :  { %v3251_v58 = vpop.eup %3250 }
 0x271   :  { %v3253_v59 = vpop.eup %3252 }
 0x272   :  { %v3255_v60 = vpop.eup %3254 }
 0x273   :  { %v3257_v61 = vpop.eup %3256  ;;  %v2003_v62 = vcombine.low %v3251_v58, %v3255_v60 }
 0x274   :  { %v2004_v63 = vcombine.low %v3253_v59, %v3257_v61 }
 0x275   :  { %2420 = vst [vmem:[%s5748_s3 + $0x30] sm:$0x77] %v2003_v62 }
 0x276   :  { %2421 = vst [vmem:[%s5748_s3 + $0x38] sm:$0x77] %v2004_v63 }

</bundles_post_ra>
